<compile_context>
chip_gen: v7x
topology: tpu7x:2x2x1
jax: 0.10.0
libtpu: 0.0.40
codegen_flags: <defaults>
</compile_context>

<pallas_src>
import functools

import numpy as np
import jax
import jax.numpy as jnp
from jax.experimental import pallas as pl
from jax.experimental.pallas import tpu as pltpu

# ----------------------------- mini Swin3D config ---------------------------
PATCH_SIZE = (2, 4, 4)        # (pt, ph, pw)
EMBED_DIM = 32
DEPTHS = (2, 2)
NUM_HEADS = (2, 4)
WINDOW_SIZE = (2, 2, 2)
MLP_RATIO = 4
LN_EPS = 1e-5
BM = 512                      # row-tile cap for the row-parallel fused kernels
_VMEM_LIMIT = 48 * 1024 * 1024


def _round_up(n, m):
    return ((n + m - 1) // m) * m


def _row_grid(M, cap=BM):
    # Expose >=2 grid steps where possible: feeds v7x's second TensorCore and
    # gives the BlockSpec pipeline a step to overlap DMA with compute.
    bm = min(cap, max(8, _round_up(pl.cdiv(M, 2), 8)))
    return bm, pl.cdiv(M, bm)


# ------------------------------- Pallas kernels -----------------------------
def _patch_embed_kernel(x_ref, w_ref, b_ref, g_ref, bb_ref, o_ref, *, eps):
    # fused: patch-extract matmul (Conv3d k=stride=patch) + bias + LayerNorm
    h = jnp.dot(x_ref[...].astype(jnp.bfloat16), w_ref[...],
                preferred_element_type=jnp.float32) + b_ref[...]
    mu = jnp.mean(h, axis=-1, keepdims=True)
    hc = h - mu
    var = jnp.mean(hc * hc, axis=-1, keepdims=True)
    o_ref[...] = (hc * jax.lax.rsqrt(var + eps) * g_ref[...]
                  + bb_ref[...]).astype(o_ref.dtype)


def _fused_mlp_kernel(x_ref, g_ref, b_ref, w1_ref, b1_ref, w2_ref, b2_ref,
                      o_ref, *, eps):
    # fused: norm2 + fc1 + GELU + fc2 + residual add (bf16 MXU, f32 accum)
    x = x_ref[...].astype(jnp.float32)
    mu = jnp.mean(x, axis=-1, keepdims=True)
    xc = x - mu
    var = jnp.mean(xc * xc, axis=-1, keepdims=True)
    h = xc * jax.lax.rsqrt(var + eps) * g_ref[...] + b_ref[...]
    h = jnp.dot(h.astype(jnp.bfloat16), w1_ref[...],
                preferred_element_type=jnp.float32) + b1_ref[...]
    # TODO(synk): torch nn.GELU default is erf-exact; tanh approximation used
    # here for guaranteed Mosaic lowering.
    h = jax.nn.gelu(h, approximate=True)
    h = jnp.dot(h.astype(jnp.bfloat16), w2_ref[...],
                preferred_element_type=jnp.float32) + b2_ref[...]
    o_ref[...] = (x + h).astype(o_ref.dtype)


def _merge_kernel(x_ref, g_ref, b_ref, w_ref, o_ref, *, eps):
    # fused: patch-merging LayerNorm + reduction linear (4C -> 2C, no bias)
    x = x_ref[...].astype(jnp.float32)
    mu = jnp.mean(x, axis=-1, keepdims=True)
    xc = x - mu
    var = jnp.mean(xc * xc, axis=-1, keepdims=True)
    h = xc * jax.lax.rsqrt(var + eps) * g_ref[...] + b_ref[...]
    o_ref[...] = jnp.dot(h.astype(jnp.bfloat16), w_ref[...],
                         preferred_element_type=jnp.float32).astype(o_ref.dtype)


def _fused_window_attn_kernel(x_ref, g1_ref, b1_ref, qkvw_ref, qkvb_ref,
                              projw_ref, projb_ref, bm_ref, o_ref,
                              *, num_heads, nW, scale, eps, masked):
    # fused (single grid step, B folded into the window axis):
    #   norm1 -> QKV -> head-batched softmax(QK^T*scale + bias [+ shift-mask])
    #   -> PV -> single output projection -> residual add
    x = x_ref[...].astype(jnp.float32)                  # (Wt, N, C), Wt = B*nW
    Wt, N, C = x.shape
    B = Wt // nW
    hd = C // num_heads
    rows = Wt * N

    # ---- LayerNorm (norm1) ----
    xf = x.reshape(rows, C)
    mu = jnp.mean(xf, axis=-1, keepdims=True)
    xc = xf - mu
    var = jnp.mean(xc * xc, axis=-1, keepdims=True)
    h = xc * jax.lax.rsqrt(var + eps) * g1_ref[...] + b1_ref[...]

    # ---- one big QKV matmul over all batch*window rows (bf16 MXU) ----
    qkv = jnp.dot(h.astype(jnp.bfloat16), qkvw_ref[...],
                  preferred_element_type=jnp.float32) + qkvb_ref[...]  # (rows,3C)

    # ---- gather heads into the batch dim: (rows, C) -> (Wt*nh, N, hd) ----
    def split_heads(base, do_scale):
        parts = []
        for hh in range(num_heads):
            sl = qkv[:, base + hh * hd: base + (hh + 1) * hd]
            if do_scale:
                sl = sl * scale
            parts.append(sl.reshape(Wt, 1, N, hd))
        return jnp.concatenate(parts, axis=1).reshape(Wt * num_heads, N, hd)

    q = split_heads(0, True).astype(jnp.bfloat16)
    k = split_heads(C, False).astype(jnp.bfloat16)
    v = split_heads(2 * C, False).astype(jnp.bfloat16)

    # ---- one batched scores einsum over (window, head) ----
    scores = jnp.einsum("bnd,bmd->bnm", q, k,
                        preferred_element_type=jnp.float32)   # (Wt*nh, N, N)
    if masked:
        # bm_ref: (nW*nh, N, N) = rel-pos bias + shift mask, broadcast over B
        scores = (scores.reshape(B, nW * num_heads, N, N)
                  + bm_ref[...][None]).reshape(Wt * num_heads, N, N)
    else:
        # bm_ref: (nh, N, N) rel-pos bias, broadcast over all windows
        scores = (scores.reshape(Wt, num_heads, N, N)
                  + bm_ref[...][None]).reshape(Wt * num_heads, N, N)

    scores = scores - jnp.max(scores, axis=-1, keepdims=True)
    p = jnp.exp(scores)
    p = p * pl.reciprocal(jnp.sum(p, axis=-1, keepdims=True), approx=True)

    # ---- one batched context einsum ----
    ctx = jnp.einsum("bnm,bmd->bnd", p.astype(jnp.bfloat16), v,
                     preferred_element_type=jnp.float32)      # (Wt*nh, N, hd)
    ctx4 = ctx.reshape(Wt, num_heads, N, hd)
    ctx_cat = jnp.concatenate(
        [ctx4[:, hh].reshape(rows, hd) for hh in range(num_heads)],
        axis=-1)                                              # (rows, C)

    # ---- single output projection + residual ----
    out = jnp.dot(ctx_cat.astype(jnp.bfloat16), projw_ref[...],
                  preferred_element_type=jnp.float32) + projb_ref[...]
    o_ref[...] = (xf + out).reshape(Wt, N, C).astype(o_ref.dtype)


def _norm_pool_head_kernel(x_ref, g_ref, b_ref, w_ref, hb_ref, o_ref, *, eps):
    # fused: final LayerNorm + global average pool + Linear(C, 1)
    x = x_ref[...].astype(jnp.float32)                  # (B, L, C)
    mu = jnp.mean(x, axis=-1, keepdims=True)
    xc = x - mu
    var = jnp.mean(xc * xc, axis=-1, keepdims=True)
    h = xc * jax.lax.rsqrt(var + eps) * g_ref[0] + b_ref[0]
    pooled = jnp.mean(h, axis=1)                        # (B, C)
    o_ref[...] = (jnp.dot(pooled, w_ref[...],
                          preferred_element_type=jnp.float32)
                  + hb_ref[...]).astype(o_ref.dtype)


# ----------------------------- Pallas wrappers -------------------------------
def pallas_patch_embed(x, w, b, gamma, beta):
    M, K = x.shape
    N = w.shape[1]
    bm, gm = _row_grid(M)
    return pl.pallas_call(
        functools.partial(_patch_embed_kernel, eps=LN_EPS),
        out_shape=jax.ShapeDtypeStruct((M, N), x.dtype),
        grid=(gm,),
        in_specs=[
            pl.BlockSpec((bm, K), lambda i: (i, 0)),
            pl.BlockSpec((K, N), lambda i: (0, 0)),
            pl.BlockSpec((1, N), lambda i: (0, 0)),
            pl.BlockSpec((1, N), lambda i: (0, 0)),
            pl.BlockSpec((1, N), lambda i: (0, 0)),
        ],
        out_specs=pl.BlockSpec((bm, N), lambda i: (i, 0)),
        compiler_params=pltpu.CompilerParams(dimension_semantics=("parallel",)),
    )(x, w, b.reshape(1, N), gamma.reshape(1, N), beta.reshape(1, N))


def pallas_mlp_block(x, gamma, beta, w1, b1, w2, b2):
    M, C = x.shape
    Hd = w1.shape[1]
    bm, gm = _row_grid(M)
    return pl.pallas_call(
        functools.partial(_fused_mlp_kernel, eps=LN_EPS),
        out_shape=jax.ShapeDtypeStruct((M, C), x.dtype),
        grid=(gm,),
        in_specs=[
            pl.BlockSpec((bm, C), lambda i: (i, 0)),
            pl.BlockSpec((1, C), lambda i: (0, 0)),
            pl.BlockSpec((1, C), lambda i: (0, 0)),
            pl.BlockSpec((C, Hd), lambda i: (0, 0)),
            pl.BlockSpec((1, Hd), lambda i: (0, 0)),
            pl.BlockSpec((Hd, C), lambda i: (0, 0)),
            pl.BlockSpec((1, C), lambda i: (0, 0)),
        ],
        out_specs=pl.BlockSpec((bm, C), lambda i: (i, 0)),
        compiler_params=pltpu.CompilerParams(
            dimension_semantics=("parallel",),
            vmem_limit_bytes=_VMEM_LIMIT),
    )(x, gamma.reshape(1, C), beta.reshape(1, C),
      w1, b1.reshape(1, Hd), w2, b2.reshape(1, C))


def pallas_patch_merge(x, gamma, beta, w):
    M, C4 = x.shape
    C2 = w.shape[1]
    bm, gm = _row_grid(M)
    return pl.pallas_call(
        functools.partial(_merge_kernel, eps=LN_EPS),
        out_shape=jax.ShapeDtypeStruct((M, C2), x.dtype),
        grid=(gm,),
        in_specs=[
            pl.BlockSpec((bm, C4), lambda i: (i, 0)),
            pl.BlockSpec((1, C4), lambda i: (0, 0)),
            pl.BlockSpec((1, C4), lambda i: (0, 0)),
            pl.BlockSpec((C4, C2), lambda i: (0, 0)),
        ],
        out_specs=pl.BlockSpec((bm, C2), lambda i: (i, 0)),
        compiler_params=pltpu.CompilerParams(dimension_semantics=("parallel",)),
    )(x, gamma.reshape(1, C4), beta.reshape(1, C4), w)


def pallas_window_attn_block(xw, gamma, beta, qkv_w, qkv_b, proj_w, proj_b,
                             bm, num_heads, nW, scale, masked):
    """xw: (B*nW, N, C) windowed pre-norm input; returns xw + attn(LN(xw))."""
    Wt, N, C = xw.shape
    BMd = bm.shape[0]                     # nh (unmasked) or nW*nh (masked)
    return pl.pallas_call(
        functools.partial(_fused_window_attn_kernel, num_heads=num_heads,
                          nW=nW, scale=scale, eps=LN_EPS, masked=masked),
        out_shape=jax.ShapeDtypeStruct((Wt, N, C), xw.dtype),
        grid=(1,),
        in_specs=[
            pl.BlockSpec((Wt, N, C), lambda i: (0, 0, 0)),
            pl.BlockSpec((1, C), lambda i: (0, 0)),
            pl.BlockSpec((1, C), lambda i: (0, 0)),
            pl.BlockSpec((C, 3 * C), lambda i: (0, 0)),
            pl.BlockSpec((1, 3 * C), lambda i: (0, 0)),
            pl.BlockSpec((C, C), lambda i: (0, 0)),
            pl.BlockSpec((1, C), lambda i: (0, 0)),
            pl.BlockSpec((BMd, N, N), lambda i: (0, 0, 0)),
        ],
        out_specs=pl.BlockSpec((Wt, N, C), lambda i: (0, 0, 0)),
        compiler_params=pltpu.CompilerParams(
            dimension_semantics=("arbitrary",),
            vmem_limit_bytes=_VMEM_LIMIT),
    )(xw, gamma.reshape(1, C), beta.reshape(1, C),
      qkv_w, qkv_b.reshape(1, 3 * C), proj_w, proj_b.reshape(1, C), bm)


def pallas_norm_pool_head(x, gamma, beta, w, b):
    """x: (B, L, C) -> LN -> mean over L -> Linear(C, 1) -> (B, 1)"""
    B, L, C = x.shape
    return pl.pallas_call(
        functools.partial(_norm_pool_head_kernel, eps=LN_EPS),
        out_shape=jax.ShapeDtypeStruct((B, 1), x.dtype),
        grid=(1,),
        in_specs=[
            pl.BlockSpec((B, L, C), lambda i: (0, 0, 0)),
            pl.BlockSpec((1, C), lambda i: (0, 0)),
            pl.BlockSpec((1, C), lambda i: (0, 0)),
            pl.BlockSpec((C, 1), lambda i: (0, 0)),
            pl.BlockSpec((1, 1), lambda i: (0, 0)),
        ],
        out_specs=pl.BlockSpec((B, 1), lambda i: (0, 0)),
        compiler_params=pltpu.CompilerParams(dimension_semantics=("arbitrary",)),
    )(x, gamma.reshape(1, C), beta.reshape(1, C), w, b.reshape(1, 1))


# ------------------------- model glue (plain JAX / numpy) --------------------
def _relative_position_index(window_size):
    wt, wh, ww = window_size
    coords = np.stack(np.meshgrid(np.arange(wt), np.arange(wh), np.arange(ww),
                                  indexing="ij"))
    cf = coords.reshape(3, -1)
    rel = cf[:, :, None] - cf[:, None, :]
    rel = rel.transpose(1, 2, 0).astype(np.int64)
    rel[..., 0] += wt - 1
    rel[..., 1] += wh - 1
    rel[..., 2] += ww - 1
    rel[..., 0] *= (2 * wh - 1) * (2 * ww - 1)
    rel[..., 1] *= (2 * ww - 1)
    return rel.sum(-1)                                   # (N, N)


REL_INDEX = _relative_position_index(WINDOW_SIZE)


def _compute_attn_mask(Tp, Hp, Wp, ws, ss):
    mask = np.zeros((Tp, Hp, Wp), dtype=np.float32)
    slices = [((0, -ws[i]), (-ws[i], -ss[i]), (-ss[i], None)) for i in range(3)]
    cnt = 0
    for d in slices[0]:
        for h in slices[1]:
            for w in slices[2]:
                mask[d[0]:d[1], h[0]:h[1], w[0]:w[1]] = cnt
                cnt += 1
    nT, nHw, nWw = Tp // ws[0], Hp // ws[1], Wp // ws[2]
    mw = mask.reshape(nT, ws[0], nHw, ws[1], nWw, ws[2])
    mw = mw.transpose(0, 2, 4, 1, 3, 5).reshape(nT * nHw * nWw,
                                                ws[0] * ws[1] * ws[2])
    am = mw[:, None, :] - mw[:, :, None]
    am = np.where(am != 0, -100.0, 0.0).astype(np.float32)
    return jnp.asarray(am)                                # (nW, N, N)


def shifted_window_attention_block(x, blk, window_size, shift_size, num_heads):
    """Fused: norm1 + shifted-window attention + projection + residual."""
    B, T, H, W, C = x.shape
    ws, ss = list(window_size), list(shift_size)
    for i, s in enumerate((T, H, W)):        # torchvision window/shift clamp
        if s <= ws[i]:
            ws[i] = s
            ss[i] = 0
    pad = [(ws[i] - (T, H, W)[i] % ws[i]) % ws[i] for i in range(3)]
    # TODO(synk): when padding is needed, LN runs inside the kernel on the
    # zero-padded rows (torchvision normalizes before padding); identical for
    # window-divisible inputs like the ones used here (pad == 0).
    xp = (jnp.pad(x, ((0, 0), (0, pad[0]), (0, pad[1]), (0, pad[2]), (0, 0)))
          if sum(pad) > 0 else x)
    _, Tp, Hp, Wp, _ = xp.shape
    if sum(ss) > 0:
        xp = jnp.roll(xp, shift=(-ss[0], -ss[1], -ss[2]), axis=(1, 2, 3))

    nT, nHw, nWw = Tp // ws[0], Hp // ws[1], Wp // ws[2]
    nW = nT * nHw * nWw
    N = ws[0] * ws[1] * ws[2]
    # TODO(synk): window partition / reverse are XLA transposes; at real scale
    # express them through BlockSpec index_maps (window-tile grid).
    xw = xp.reshape(B, nT, ws[0], nHw, ws[1], nWw, ws[2], C)
    xw = jnp.transpose(xw, (0, 1, 3, 5, 2, 4, 6, 7)).reshape(B * nW, N, C)

    hd = C // num_heads
    # relative-position bias precomputed at init (prefix slice == torchvision's
    # prefix-sliced gather when the window is clamped).
    bias = blk["rpb_bias"][:, :N, :N]                    # (nh, N, N)
    if sum(ss) > 0:
        mask = _compute_attn_mask(Tp, Hp, Wp, ws, ss)    # (nW, N, N)
        bm = (bias[None, :, :, :] + mask[:, None, :, :]).reshape(
            nW * num_heads, N, N)
        masked = True
    else:
        bm = bias
        masked = False

    out = pallas_window_attn_block(xw, blk["norm1_g"], blk["norm1_b"],
                                   blk["qkv_w"], blk["qkv_b"],
                                   blk["proj_w"], blk["proj_b"],
                                   bm, num_heads, nW, hd ** -0.5, masked)

    out = out.reshape(B, nT, nHw, nWw, ws[0], ws[1], ws[2], C)
    xp = jnp.transpose(out, (0, 1, 4, 2, 5, 3, 6, 7)).reshape(B, Tp, Hp, Wp, C)
    if sum(ss) > 0:
        xp = jnp.roll(xp, shift=(ss[0], ss[1], ss[2]), axis=(1, 2, 3))
    return xp[:, :T, :H, :W, :]


def swin_block(x, blk, window_size, shift_size, num_heads):
    B, T, H, W, C = x.shape
    # norm1 + attention + proj + residual (all fused into one pallas_call)
    x = shifted_window_attention_block(x, blk, window_size, shift_size,
                                       num_heads)
    # norm2 + MLP + residual (fused); stochastic depth = identity (eval)
    flat = pallas_mlp_block(x.reshape(-1, C), blk["norm2_g"], blk["norm2_b"],
                            blk["fc1_w"], blk["fc1_b"],
                            blk["fc2_w"], blk["fc2_b"])
    return flat.reshape(x.shape)


def patch_merging(x, mp):
    B, T, H, W, C = x.shape
    x = jnp.pad(x, ((0, 0), (0, 0), (0, H % 2), (0, W % 2), (0, 0)))
    x0 = x[:, :, 0::2, 0::2, :]
    x1 = x[:, :, 1::2, 0::2, :]
    x2 = x[:, :, 0::2, 1::2, :]
    x3 = x[:, :, 1::2, 1::2, :]
    xc = jnp.concatenate([x0, x1, x2, x3], axis=-1)
    B2, T2, H2, W2, C4 = xc.shape
    flat = pallas_patch_merge(xc.reshape(-1, C4), mp["norm_g"], mp["norm_b"],
                              mp["red_w"])
    return flat.reshape(B2, T2, H2, W2, C4 // 2)


def video_swin_forward(params, x):
    # x: (B, T, C, H, W)  -- same layout the PyTorch module receives
    x = jnp.transpose(x, (0, 2, 1, 3, 4))                 # (B, C, T, H, W)
    B, C, T, H, W = x.shape
    pt, ph, pw = PATCH_SIZE
    Tn, Hn, Wn = T // pt, H // ph, W // pw

    # patch embed: Conv3d(k=stride=patch) == patch-extract + matmul (+ LN fused)
    xp = x.reshape(B, C, Tn, pt, Hn, ph, Wn, pw)
    xp = jnp.transpose(xp, (0, 2, 4, 6, 1, 3, 5, 7)).reshape(
        B * Tn * Hn * Wn, C * pt * ph * pw)
    pe = params["patch_embed"]
    h = pallas_patch_embed(xp, pe["w"], pe["b"], pe["norm_g"], pe["norm_b"])
    feat = h.reshape(B, Tn, Hn, Wn, EMBED_DIM)

    for si, depth in enumerate(DEPTHS):
        stage = params["stages"][si]
        nh = NUM_HEADS[si]
        for bi in range(depth):
            shift = tuple(0 if bi % 2 == 0 else w // 2 for w in WINDOW_SIZE)
            feat = swin_block(feat, stage["blocks"][bi], WINDOW_SIZE, shift, nh)
        if si < len(DEPTHS) - 1:
            feat = patch_merging(feat, stage["merge"])

    B2, T2, H2, W2, C2 = feat.shape
    return pallas_norm_pool_head(feat.reshape(B2, T2 * H2 * W2, C2),
                                 params["norm_g"], params["norm_b"],
                                 params["head_w"], params["head_b"])   # (B, 1)


# ------------------------------ parameter init -------------------------------
def init_params(key):
    ks = iter(jax.random.split(key, 256))

    def nrm(shape, scale=0.02, dtype=jnp.float32):
        return (jax.random.normal(next(ks), shape, jnp.float32) * scale
                ).astype(dtype)

    NF = WINDOW_SIZE[0] * WINDOW_SIZE[1] * WINDOW_SIZE[2]
    table_rows = (2 * WINDOW_SIZE[0] - 1) * (2 * WINDOW_SIZE[1] - 1) * \
                 (2 * WINDOW_SIZE[2] - 1)

    def rpb_bias(nh):
        tbl = nrm((table_rows, nh))                       # f32 rel-pos table
        b = tbl[REL_INDEX.reshape(-1)].reshape(NF, NF, nh)
        return jnp.transpose(b, (2, 0, 1))                # (nh, NF, NF)

    kdim = 3 * PATCH_SIZE[0] * PATCH_SIZE[1] * PATCH_SIZE[2]
    params = {
        "patch_embed": {
            "w": nrm((kdim, EMBED_DIM), dtype=jnp.bfloat16),   # matmul layout
            "b": jnp.zeros((EMBED_DIM,), jnp.float32),
            "norm_g": jnp.ones((EMBED_DIM,), jnp.float32),
            "norm_b": jnp.zeros((EMBED_DIM,), jnp.float32),
        },
        "stages": [],
    }
    dim = EMBED_DIM
    for si, depth in enumerate(DEPTHS):
        nh = NUM_HEADS[si]
        blocks = []
        for _ in range(depth):
            hid = dim * MLP_RATIO
            blocks.append({
                "norm1_g": jnp.ones((dim,), jnp.float32),
                "norm1_b": jnp.zeros((dim,), jnp.float32),
                "qkv_w": nrm((dim, 3 * dim), dtype=jnp.bfloat16),
                "qkv_b": jnp.zeros((3 * dim,), jnp.float32),
                "proj_w": nrm((dim, dim), dtype=jnp.bfloat16),
                "proj_b": jnp.zeros((dim,), jnp.float32),
                "rpb_bias": rpb_bias(nh),                 # precomputed (nh,N,N)
                "norm2_g": jnp.ones((dim,), jnp.float32),
                "norm2_b": jnp.zeros((dim,), jnp.float32),
                "fc1_w": nrm((dim, hid), dtype=jnp.bfloat16),
                "fc1_b": jnp.zeros((hid,), jnp.float32),
                "fc2_w": nrm((hid, dim), dtype=jnp.bfloat16),
                "fc2_b": jnp.zeros((dim,), jnp.float32),
            })
        stage = {"blocks": blocks}
        if si < len(DEPTHS) - 1:
            stage["merge"] = {
                "norm_g": jnp.ones((4 * dim,), jnp.float32),
                "norm_b": jnp.zeros((4 * dim,), jnp.float32),
                "red_w": nrm((4 * dim, 2 * dim), dtype=jnp.bfloat16),
            }
        params["stages"].append(stage)
        if si < len(DEPTHS) - 1:
            dim *= 2
    params["norm_g"] = jnp.ones((dim,), jnp.float32)
    params["norm_b"] = jnp.zeros((dim,), jnp.float32)
    params["head_w"] = nrm((dim, 1))            # new head: Linear(num_features, 1)
    params["head_b"] = jnp.zeros((1,), jnp.float32)
    return params


# ----------------------------------- main ------------------------------------
if __name__ == "__main__":
    key = jax.random.PRNGKey(0)
    pkey, xkey = jax.random.split(key)
    params = init_params(pkey)
    # (B, T, C, H, W) = (2, 4, 3, 16, 16) -- module permutes to (B, C, T, H, W)
    x = jax.random.normal(xkey, (2, 4, 3, 16, 16), jnp.float32)
    fwd = jax.jit(video_swin_forward)
    out = jax.block_until_ready(fwd(params, x))
    assert out.shape == (2, 1), out.shape
    assert bool(jnp.all(jnp.isfinite(out)))
    print("KERNEL_OK")
</pallas_src>

<mosaic_0001>
module attributes {stable_mosaic.version = 11 : i64} {
  func.func @_patch_embed_kernel(%arg0: i32, %arg1: memref<32x96xf32, #tpu.memory_space<vmem>>, %arg2: memref<96x32xbf16, #tpu.memory_space<vmem>>, %arg3: memref<1x32xf32, #tpu.memory_space<vmem>>, %arg4: memref<1x32xf32, #tpu.memory_space<vmem>>, %arg5: memref<1x32xf32, #tpu.memory_space<vmem>>, %arg6: memref<32x32xf32, #tpu.memory_space<vmem>>) attributes {dimension_semantics = [#tpu.dimension_semantics<parallel>], iteration_bounds = array<i64: 2>, scalar_prefetch = 0 : i64, scratch_operands = 0 : i64, tpu.core_type = #tpu.core_type<tc>, window_params = [{transform_indices = @transform_0, window_bounds = array<i64: 32, 96>}, {pipeline_mode = #tpu.pipeline_mode<synchronous>, transform_indices = @transform_1, window_bounds = array<i64: 96, 32>}, {pipeline_mode = #tpu.pipeline_mode<synchronous>, transform_indices = @transform_2, window_bounds = array<i64: 1, 32>}, {pipeline_mode = #tpu.pipeline_mode<synchronous>, transform_indices = @transform_3, window_bounds = array<i64: 1, 32>}, {pipeline_mode = #tpu.pipeline_mode<synchronous>, transform_indices = @transform_4, window_bounds = array<i64: 1, 32>}, {transform_indices = @transform_5, window_bounds = array<i64: 32, 32>}]} {
    %c0 = arith.constant 0 : index
    %c0_0 = arith.constant 0 : index
    %0 = vector.load %arg1[%c0, %c0_0] : memref<32x96xf32, #tpu.memory_space<vmem>>, vector<32x96xf32>
    %1 = arith.truncf %0 : vector<32x96xf32> to vector<32x96xbf16>
    %c0_1 = arith.constant 0 : index
    %c0_2 = arith.constant 0 : index
    %2 = vector.load %arg2[%c0_1, %c0_2] : memref<96x32xbf16, #tpu.memory_space<vmem>>, vector<96x32xbf16>
    %cst = arith.constant dense<0.000000e+00> : vector<32x32xf32>
    %3 = tpu.matmul %1, %2, %cst {dimension_numbers = #tpu.dot_dimension_numbers<[1], [0], [0], [1], [0, 0, 1, 1], [], []>} : vector<32x96xbf16>, vector<96x32xbf16>, vector<32x32xf32> -> vector<32x32xf32>
    %c0_3 = arith.constant 0 : index
    %c0_4 = arith.constant 0 : index
    %4 = vector.load %arg3[%c0_3, %c0_4] : memref<1x32xf32, #tpu.memory_space<vmem>>, vector<1x32xf32>
    %5 = vector.broadcast %4 : vector<1x32xf32> to vector<32x32xf32>
    %6 = arith.addf %3, %5 : vector<32x32xf32>
    %cst_5 = arith.constant dense<0.000000e+00> : vector<32xf32>
    %7 = vector.multi_reduction <add>, %6, %cst_5 [1] : vector<32x32xf32> to vector<32xf32>
    %8 = vector.shape_cast %7 : vector<32xf32> to vector<32x1xf32>
    %cst_6 = arith.constant 3.200000e+01 : f32
    %9 = vector.broadcast %cst_6 : f32 to vector<32x1xf32>
    %10 = arith.divf %8, %9 : vector<32x1xf32>
    %11 = vector.broadcast %10 : vector<32x1xf32> to vector<32x32xf32>
    %12 = arith.subf %6, %11 : vector<32x32xf32>
    %13 = arith.mulf %12, %12 : vector<32x32xf32>
    %cst_7 = arith.constant dense<0.000000e+00> : vector<32xf32>
    %14 = vector.multi_reduction <add>, %13, %cst_7 [1] : vector<32x32xf32> to vector<32xf32>
    %15 = vector.shape_cast %14 : vector<32xf32> to vector<32x1xf32>
    %cst_8 = arith.constant 3.200000e+01 : f32
    %16 = vector.broadcast %cst_8 : f32 to vector<32x1xf32>
    %17 = arith.divf %15, %16 : vector<32x1xf32>
    %cst_9 = arith.constant 9.99999974E-6 : f32
    %18 = vector.broadcast %cst_9 : f32 to vector<32x1xf32>
    %19 = arith.addf %17, %18 : vector<32x1xf32>
    %20 = math.rsqrt %19 : vector<32x1xf32>
    %21 = vector.broadcast %20 : vector<32x1xf32> to vector<32x32xf32>
    %22 = arith.mulf %12, %21 : vector<32x32xf32>
    %c0_10 = arith.constant 0 : index
    %c0_11 = arith.constant 0 : index
    %23 = vector.load %arg4[%c0_10, %c0_11] : memref<1x32xf32, #tpu.memory_space<vmem>>, vector<1x32xf32>
    %24 = vector.broadcast %23 : vector<1x32xf32> to vector<32x32xf32>
    %25 = arith.mulf %22, %24 : vector<32x32xf32>
    %c0_12 = arith.constant 0 : index
    %c0_13 = arith.constant 0 : index
    %26 = vector.load %arg5[%c0_12, %c0_13] : memref<1x32xf32, #tpu.memory_space<vmem>>, vector<1x32xf32>
    %27 = vector.broadcast %26 : vector<1x32xf32> to vector<32x32xf32>
    %28 = arith.addf %25, %27 : vector<32x32xf32>
    %c0_14 = arith.constant 0 : index
    %c0_15 = arith.constant 0 : index
    %29 = vector.load %arg6[%c0_14, %c0_15] : memref<32x32xf32, #tpu.memory_space<vmem>>, vector<32x32xf32>
    tpu.vector_store %arg6[%c0_14, %c0_15], %28 {strides = array<i32>} : memref<32x32xf32, #tpu.memory_space<vmem>>, vector<32x32xf32>,
    return
  }
  func.func @transform_0(%arg0: i32) -> (i32, i32) {
    %c0_i32 = arith.constant 0 : i32
    %c0_i32_0 = arith.constant 0 : i32
    return %arg0, %c0_i32 : i32, i32
  }
  func.func @transform_1(%arg0: i32) -> (i32, i32) {
    %c0_i32 = arith.constant 0 : i32
    %c0_i32_0 = arith.constant 0 : i32
    %c0_i32_1 = arith.constant 0 : i32
    return %c0_i32, %c0_i32_0 : i32, i32
  }
  func.func @transform_2(%arg0: i32) -> (i32, i32) {
    %c0_i32 = arith.constant 0 : i32
    %c0_i32_0 = arith.constant 0 : i32
    %c0_i32_1 = arith.constant 0 : i32
    return %c0_i32, %c0_i32_0 : i32, i32
  }
  func.func @transform_3(%arg0: i32) -> (i32, i32) {
    %c0_i32 = arith.constant 0 : i32
    %c0_i32_0 = arith.constant 0 : i32
    %c0_i32_1 = arith.constant 0 : i32
    return %c0_i32, %c0_i32_0 : i32, i32
  }
  func.func @transform_4(%arg0: i32) -> (i32, i32) {
    %c0_i32 = arith.constant 0 : i32
    %c0_i32_0 = arith.constant 0 : i32
    %c0_i32_1 = arith.constant 0 : i32
    return %c0_i32, %c0_i32_0 : i32, i32
  }
  func.func @transform_5(%arg0: i32) -> (i32, i32) {
    %c0_i32 = arith.constant 0 : i32
    %c0_i32_0 = arith.constant 0 : i32
    return %arg0, %c0_i32 : i32, i32
  }
}

module attributes {stable_mosaic.version = 11 : i64} {
  func.func @_fused_window_attn_kernel(%arg0: i32, %arg1: memref<8x8x32xf32, #tpu.memory_space<vmem>>, %arg2: memref<1x32xf32, #tpu.memory_space<vmem>>, %arg3: memref<1x32xf32, #tpu.memory_space<vmem>>, %arg4: memref<32x96xbf16, #tpu.memory_space<vmem>>, %arg5: memref<1x96xf32, #tpu.memory_space<vmem>>, %arg6: memref<32x32xbf16, #tpu.memory_space<vmem>>, %arg7: memref<1x32xf32, #tpu.memory_space<vmem>>, %arg8: memref<2x8x8xf32, #tpu.memory_space<vmem>>, %arg9: memref<8x8x32xf32, #tpu.memory_space<vmem>>) attributes {dimension_semantics = [#tpu.dimension_semantics<arbitrary>], iteration_bounds = array<i64: 1>, scalar_prefetch = 0 : i64, scratch_operands = 0 : i64, tpu.core_type = #tpu.core_type<tc>, window_params = [{pipeline_mode = #tpu.pipeline_mode<synchronous>, transform_indices = @transform_0, window_bounds = array<i64: 8, 8, 32>}, {pipeline_mode = #tpu.pipeline_mode<synchronous>, transform_indices = @transform_1, window_bounds = array<i64: 1, 32>}, {pipeline_mode = #tpu.pipeline_mode<synchronous>, transform_indices = @transform_2, window_bounds = array<i64: 1, 32>}, {pipeline_mode = #tpu.pipeline_mode<synchronous>, transform_indices = @transform_3, window_bounds = array<i64: 32, 96>}, {pipeline_mode = #tpu.pipeline_mode<synchronous>, transform_indices = @transform_4, window_bounds = array<i64: 1, 96>}, {pipeline_mode = #tpu.pipeline_mode<synchronous>, transform_indices = @transform_5, window_bounds = array<i64: 32, 32>}, {pipeline_mode = #tpu.pipeline_mode<synchronous>, transform_indices = @transform_6, window_bounds = array<i64: 1, 32>}, {pipeline_mode = #tpu.pipeline_mode<synchronous>, transform_indices = @transform_7, window_bounds = array<i64: 2, 8, 8>}, {pipeline_mode = #tpu.pipeline_mode<synchronous>, transform_indices = @transform_8, window_bounds = array<i64: 8, 8, 32>}]} {
    %c0 = arith.constant 0 : index
    %c0_0 = arith.constant 0 : index
    %c0_1 = arith.constant 0 : index
    %0 = vector.load %arg1[%c0, %c0_0, %c0_1] : memref<8x8x32xf32, #tpu.memory_space<vmem>>, vector<8x8x32xf32>
    %1 = vector.shape_cast %0 : vector<8x8x32xf32> to vector<64x32xf32>
    %cst = arith.constant dense<0.000000e+00> : vector<64xf32>
    %2 = vector.multi_reduction <add>, %1, %cst [1] : vector<64x32xf32> to vector<64xf32>
    %3 = vector.shape_cast %2 : vector<64xf32> to vector<64x1xf32>
    %cst_2 = arith.constant 3.200000e+01 : f32
    %4 = vector.broadcast %cst_2 : f32 to vector<64x1xf32>
    %5 = arith.divf %3, %4 : vector<64x1xf32>
    %6 = vector.broadcast %5 : vector<64x1xf32> to vector<64x32xf32>
    %7 = arith.subf %1, %6 : vector<64x32xf32>
    %8 = arith.mulf %7, %7 : vector<64x32xf32>
    %cst_3 = arith.constant dense<0.000000e+00> : vector<64xf32>
    %9 = vector.multi_reduction <add>, %8, %cst_3 [1] : vector<64x32xf32> to vector<64xf32>
    %10 = vector.shape_cast %9 : vector<64xf32> to vector<64x1xf32>
    %cst_4 = arith.constant 3.200000e+01 : f32
    %11 = vector.broadcast %cst_4 : f32 to vector<64x1xf32>
    %12 = arith.divf %10, %11 : vector<64x1xf32>
    %cst_5 = arith.constant 9.99999974E-6 : f32
    %13 = vector.broadcast %cst_5 : f32 to vector<64x1xf32>
    %14 = arith.addf %12, %13 : vector<64x1xf32>
    %15 = math.rsqrt %14 : vector<64x1xf32>
    %16 = vector.broadcast %15 : vector<64x1xf32> to vector<64x32xf32>
    %17 = arith.mulf %7, %16 : vector<64x32xf32>
    %c0_6 = arith.constant 0 : index
    %c0_7 = arith.constant 0 : index
    %18 = vector.load %arg2[%c0_6, %c0_7] : memref<1x32xf32, #tpu.memory_space<vmem>>, vector<1x32xf32>
    %19 = vector.broadcast %18 : vector<1x32xf32> to vector<64x32xf32>
    %20 = arith.mulf %17, %19 : vector<64x32xf32>
    %c0_8 = arith.constant 0 : index
    %c0_9 = arith.constant 0 : index
    %21 = vector.load %arg3[%c0_8, %c0_9] : memref<1x32xf32, #tpu.memory_space<vmem>>, vector<1x32xf32>
    %22 = vector.broadcast %21 : vector<1x32xf32> to vector<64x32xf32>
    %23 = arith.addf %20, %22 : vector<64x32xf32>
    %24 = arith.truncf %23 : vector<64x32xf32> to vector<64x32xbf16>
    %c0_10 = arith.constant 0 : index
    %c0_11 = arith.constant 0 : index
    %25 = vector.load %arg4[%c0_10, %c0_11] : memref<32x96xbf16, #tpu.memory_space<vmem>>, vector<32x96xbf16>
    %cst_12 = arith.constant dense<0.000000e+00> : vector<64x96xf32>
    %26 = tpu.matmul %24, %25, %cst_12 {dimension_numbers = #tpu.dot_dimension_numbers<[1], [0], [0], [1], [0, 0, 1, 1], [], []>} : vector<64x32xbf16>, vector<32x96xbf16>, vector<64x96xf32> -> vector<64x96xf32>
    %c0_13 = arith.constant 0 : index
    %c0_14 = arith.constant 0 : index
    %27 = vector.load %arg5[%c0_13, %c0_14] : memref<1x96xf32, #tpu.memory_space<vmem>>, vector<1x96xf32>
    %28 = vector.broadcast %27 : vector<1x96xf32> to vector<64x96xf32>
    %29 = arith.addf %26, %28 : vector<64x96xf32>
    %30 = vector.extract_strided_slice %29 {offsets = [0, 0], sizes = [64, 16], strides = [1, 1]} : vector<64x96xf32> to vector<64x16xf32>
    %cst_15 = arith.constant 2.500000e-01 : f32
    %31 = vector.broadcast %cst_15 : f32 to vector<64x16xf32>
    %32 = arith.mulf %30, %31 : vector<64x16xf32>
    %33 = vector.shape_cast %32 : vector<64x16xf32> to vector<8x1x8x16xf32>
    %34 = vector.extract_strided_slice %29 {offsets = [0, 16], sizes = [64, 16], strides = [1, 1]} : vector<64x96xf32> to vector<64x16xf32>
    %cst_16 = arith.constant 2.500000e-01 : f32
    %35 = vector.broadcast %cst_16 : f32 to vector<64x16xf32>
    %36 = arith.mulf %34, %35 : vector<64x16xf32>
    %37 = vector.shape_cast %36 : vector<64x16xf32> to vector<8x1x8x16xf32>
    %38 = tpu.concatenate %33, %37 in 1 : vector<8x1x8x16xf32>, vector<8x1x8x16xf32> -> vector<8x2x8x16xf32>
    %39 = vector.shape_cast %38 : vector<8x2x8x16xf32> to vector<16x8x16xf32>
    %40 = arith.truncf %39 : vector<16x8x16xf32> to vector<16x8x16xbf16>
    %41 = vector.extract_strided_slice %29 {offsets = [0, 32], sizes = [64, 16], strides = [1, 1]} : vector<64x96xf32> to vector<64x16xf32>
    %42 = vector.shape_cast %41 : vector<64x16xf32> to vector<8x1x8x16xf32>
    %43 = vector.extract_strided_slice %29 {offsets = [0, 48], sizes = [64, 16], strides = [1, 1]} : vector<64x96xf32> to vector<64x16xf32>
    %44 = vector.shape_cast %43 : vector<64x16xf32> to vector<8x1x8x16xf32>
    %45 = tpu.concatenate %42, %44 in 1 : vector<8x1x8x16xf32>, vector<8x1x8x16xf32> -> vector<8x2x8x16xf32>
    %46 = vector.shape_cast %45 : vector<8x2x8x16xf32> to vector<16x8x16xf32>
    %47 = arith.truncf %46 : vector<16x8x16xf32> to vector<16x8x16xbf16>
    %48 = vector.extract_strided_slice %29 {offsets = [0, 64], sizes = [64, 16], strides = [1, 1]} : vector<64x96xf32> to vector<64x16xf32>
    %49 = vector.shape_cast %48 : vector<64x16xf32> to vector<8x1x8x16xf32>
    %50 = vector.extract_strided_slice %29 {offsets = [0, 80], sizes = [64, 16], strides = [1, 1]} : vector<64x96xf32> to vector<64x16xf32>
    %51 = vector.shape_cast %50 : vector<64x16xf32> to vector<8x1x8x16xf32>
    %52 = tpu.concatenate %49, %51 in 1 : vector<8x1x8x16xf32>, vector<8x1x8x16xf32> -> vector<8x2x8x16xf32>
    %53 = vector.shape_cast %52 : vector<8x2x8x16xf32> to vector<16x8x16xf32>
    %54 = arith.truncf %53 : vector<16x8x16xf32> to vector<16x8x16xbf16>
    "tpu.trace_start"() <{level = 10 : i32, message = "bnd,bmd->bnm"}> : () -> ()
    %cst_17 = arith.constant dense<0.000000e+00> : vector<16x8x8xf32>
    %55 = tpu.matmul %40, %47, %cst_17 {dimension_numbers = #tpu.dot_dimension_numbers<[2], [2], [1], [1], [0, 0, 0, 1, 1, 1], [0], [0]>} : vector<16x8x16xbf16>, vector<16x8x16xbf16>, vector<16x8x8xf32> -> vector<16x8x8xf32>
    "tpu.trace_stop"() : () -> ()
    %56 = vector.shape_cast %55 : vector<16x8x8xf32> to vector<8x2x8x8xf32>
    %c0_18 = arith.constant 0 : index
    %c0_19 = arith.constant 0 : index
    %c0_20 = arith.constant 0 : index
    %57 = vector.load %arg8[%c0_18, %c0_19, %c0_20] : memref<2x8x8xf32, #tpu.memory_space<vmem>>, vector<2x8x8xf32>
    %58 = vector.shape_cast %57 : vector<2x8x8xf32> to vector<1x2x8x8xf32>
    %59 = vector.broadcast %58 : vector<1x2x8x8xf32> to vector<8x2x8x8xf32>
    %60 = arith.addf %56, %59 : vector<8x2x8x8xf32>
    %61 = vector.shape_cast %60 : vector<8x2x8x8xf32> to vector<16x8x8xf32>
    %cst_21 = arith.constant dense<0xFF800000> : vector<16x8xf32>
    %62 = vector.multi_reduction <maximumf>, %61, %cst_21 [2] : vector<16x8x8xf32> to vector<16x8xf32>
    %63 = vector.shape_cast %62 : vector<16x8xf32> to vector<16x8x1xf32>
    %64 = vector.broadcast %63 : vector<16x8x1xf32> to vector<16x8x8xf32>
    %65 = arith.subf %61, %64 : vector<16x8x8xf32>
    %66 = math.exp %65 : vector<16x8x8xf32>
    %cst_22 = arith.constant dense<0.000000e+00> : vector<16x8xf32>
    %67 = vector.multi_reduction <add>, %66, %cst_22 [2] : vector<16x8x8xf32> to vector<16x8xf32>
    %68 = vector.shape_cast %67 : vector<16x8xf32> to vector<16x8x1xf32>
    %69 = tpu.reciprocal %68 {approx = true} : vector<16x8x1xf32> -> vector<16x8x1xf32>
    %70 = vector.broadcast %69 : vector<16x8x1xf32> to vector<16x8x8xf32>
    %71 = arith.mulf %66, %70 : vector<16x8x8xf32>
    %72 = arith.truncf %71 : vector<16x8x8xf32> to vector<16x8x8xbf16>
    "tpu.trace_start"() <{level = 10 : i32, message = "bnm,bmd->bnd"}> : () -> ()
    %cst_23 = arith.constant dense<0.000000e+00> : vector<16x8x16xf32>
    %73 = tpu.matmul %72, %54, %cst_23 {dimension_numbers = #tpu.dot_dimension_numbers<[2], [1], [1], [2], [0, 0, 0, 1, 1, 2], [0], [0]>} : vector<16x8x8xbf16>, vector<16x8x16xbf16>, vector<16x8x16xf32> -> vector<16x8x16xf32>
    "tpu.trace_stop"() : () -> ()
    %74 = vector.shape_cast %73 : vector<16x8x16xf32> to vector<8x2x8x16xf32>
    %75 = vector.extract_strided_slice %74 {offsets = [0, 0, 0, 0], sizes = [8, 1, 8, 16], strides = [1, 1, 1, 1]} : vector<8x2x8x16xf32> to vector<8x1x8x16xf32>
    %76 = vector.shape_cast %75 : vector<8x1x8x16xf32> to vector<8x8x16xf32>
    %77 = vector.shape_cast %76 : vector<8x8x16xf32> to vector<64x16xf32>
    %78 = vector.extract_strided_slice %74 {offsets = [0, 1, 0, 0], sizes = [8, 1, 8, 16], strides = [1, 1, 1, 1]} : vector<8x2x8x16xf32> to vector<8x1x8x16xf32>
    %79 = vector.shape_cast %78 : vector<8x1x8x16xf32> to vector<8x8x16xf32>
    %80 = vector.shape_cast %79 : vector<8x8x16xf32> to vector<64x16xf32>
    %81 = tpu.concatenate %77, %80 in 1 : vector<64x16xf32>, vector<64x16xf32> -> vector<64x32xf32>
    %82 = arith.truncf %81 : vector<64x32xf32> to vector<64x32xbf16>
    %c0_24 = arith.constant 0 : index
    %c0_25 = arith.constant 0 : index
    %83 = vector.load %arg6[%c0_24, %c0_25] : memref<32x32xbf16, #tpu.memory_space<vmem>>, vector<32x32xbf16>
    %cst_26 = arith.constant dense<0.000000e+00> : vector<64x32xf32>
    %84 = tpu.matmul %82, %83, %cst_26 {dimension_numbers = #tpu.dot_dimension_numbers<[1], [0], [0], [1], [0, 0, 1, 1], [], []>} : vector<64x32xbf16>, vector<32x32xbf16>, vector<64x32xf32> -> vector<64x32xf32>
    %c0_27 = arith.constant 0 : index
    %c0_28 = arith.constant 0 : index
    %85 = vector.load %arg7[%c0_27, %c0_28] : memref<1x32xf32, #tpu.memory_space<vmem>>, vector<1x32xf32>
    %86 = vector.broadcast %85 : vector<1x32xf32> to vector<64x32xf32>
    %87 = arith.addf %84, %86 : vector<64x32xf32>
    %88 = arith.addf %1, %87 : vector<64x32xf32>
    %89 = vector.shape_cast %88 : vector<64x32xf32> to vector<8x8x32xf32>
    %c0_29 = arith.constant 0 : index
    %c0_30 = arith.constant 0 : index
    %c0_31 = arith.constant 0 : index
    %90 = vector.load %arg9[%c0_29, %c0_30, %c0_31] : memref<8x8x32xf32, #tpu.memory_space<vmem>>, vector<8x8x32xf32>
    tpu.vector_store %arg9[%c0_29, %c0_30, %c0_31], %89 {strides = array<i32>} : memref<8x8x32xf32, #tpu.memory_space<vmem>>, vector<8x8x32xf32>,
    return
  }
  func.func @transform_0(%arg0: i32) -> (i32, i32, i32) {
    %c0_i32 = arith.constant 0 : i32
    %c0_i32_0 = arith.constant 0 : i32
    %c0_i32_1 = arith.constant 0 : i32
    %c0_i32_2 = arith.constant 0 : i32
    return %c0_i32, %c0_i32_0, %c0_i32_1 : i32, i32, i32
  }
  func.func @transform_1(%arg0: i32) -> (i32, i32) {
    %c0_i32 = arith.constant 0 : i32
    %c0_i32_0 = arith.constant 0 : i32
    %c0_i32_1 = arith.constant 0 : i32
    return %c0_i32, %c0_i32_0 : i32, i32
  }
  func.func @transform_2(%arg0: i32) -> (i32, i32) {
    %c0_i32 = arith.constant 0 : i32
    %c0_i32_0 = arith.constant 0 : i32
    %c0_i32_1 = arith.constant 0 : i32
    return %c0_i32, %c0_i32_0 : i32, i32
  }
  func.func @transform_3(%arg0: i32) -> (i32, i32) {
    %c0_i32 = arith.constant 0 : i32
    %c0_i32_0 = arith.constant 0 : i32
    %c0_i32_1 = arith.constant 0 : i32
    return %c0_i32, %c0_i32_0 : i32, i32
  }
  func.func @transform_4(%arg0: i32) -> (i32, i32) {
    %c0_i32 = arith.constant 0 : i32
    %c0_i32_0 = arith.constant 0 : i32
    %c0_i32_1 = arith.constant 0 : i32
    return %c0_i32, %c0_i32_0 : i32, i32
  }
  func.func @transform_5(%arg0: i32) -> (i32, i32) {
    %c0_i32 = arith.constant 0 : i32
    %c0_i32_0 = arith.constant 0 : i32
    %c0_i32_1 = arith.constant 0 : i32
    return %c0_i32, %c0_i32_0 : i32, i32
  }
  func.func @transform_6(%arg0: i32) -> (i32, i32) {
    %c0_i32 = arith.constant 0 : i32
    %c0_i32_0 = arith.constant 0 : i32
    %c0_i32_1 = arith.constant 0 : i32
    return %c0_i32, %c0_i32_0 : i32, i32
  }
  func.func @transform_7(%arg0: i32) -> (i32, i32, i32) {
    %c0_i32 = arith.constant 0 : i32
    %c0_i32_0 = arith.constant 0 : i32
    %c0_i32_1 = arith.constant 0 : i32
    %c0_i32_2 = arith.constant 0 : i32
    return %c0_i32, %c0_i32_0, %c0_i32_1 : i32, i32, i32
  }
  func.func @transform_8(%arg0: i32) -> (i32, i32, i32) {
    %c0_i32 = arith.constant 0 : i32
    %c0_i32_0 = arith.constant 0 : i32
    %c0_i32_1 = arith.constant 0 : i32
    %c0_i32_2 = arith.constant 0 : i32
    return %c0_i32, %c0_i32_0, %c0_i32_1 : i32, i32, i32
  }
}

module attributes {stable_mosaic.version = 11 : i64} {
  func.func @_fused_mlp_kernel(%arg0: i32, %arg1: memref<32x32xf32, #tpu.memory_space<vmem>>, %arg2: memref<1x32xf32, #tpu.memory_space<vmem>>, %arg3: memref<1x32xf32, #tpu.memory_space<vmem>>, %arg4: memref<32x128xbf16, #tpu.memory_space<vmem>>, %arg5: memref<1x128xf32, #tpu.memory_space<vmem>>, %arg6: memref<128x32xbf16, #tpu.memory_space<vmem>>, %arg7: memref<1x32xf32, #tpu.memory_space<vmem>>, %arg8: memref<32x32xf32, #tpu.memory_space<vmem>>) attributes {dimension_semantics = [#tpu.dimension_semantics<parallel>], iteration_bounds = array<i64: 2>, scalar_prefetch = 0 : i64, scratch_operands = 0 : i64, tpu.core_type = #tpu.core_type<tc>, window_params = [{transform_indices = @transform_0, window_bounds = array<i64: 32, 32>}, {pipeline_mode = #tpu.pipeline_mode<synchronous>, transform_indices = @transform_1, window_bounds = array<i64: 1, 32>}, {pipeline_mode = #tpu.pipeline_mode<synchronous>, transform_indices = @transform_2, window_bounds = array<i64: 1, 32>}, {pipeline_mode = #tpu.pipeline_mode<synchronous>, transform_indices = @transform_3, window_bounds = array<i64: 32, 128>}, {pipeline_mode = #tpu.pipeline_mode<synchronous>, transform_indices = @transform_4, window_bounds = array<i64: 1, 128>}, {pipeline_mode = #tpu.pipeline_mode<synchronous>, transform_indices = @transform_5, window_bounds = array<i64: 128, 32>}, {pipeline_mode = #tpu.pipeline_mode<synchronous>, transform_indices = @transform_6, window_bounds = array<i64: 1, 32>}, {transform_indices = @transform_7, window_bounds = array<i64: 32, 32>}]} {
    %c0 = arith.constant 0 : index
    %c0_0 = arith.constant 0 : index
    %0 = vector.load %arg1[%c0, %c0_0] : memref<32x32xf32, #tpu.memory_space<vmem>>, vector<32x32xf32>
    %cst = arith.constant dense<0.000000e+00> : vector<32xf32>
    %1 = vector.multi_reduction <add>, %0, %cst [1] : vector<32x32xf32> to vector<32xf32>
    %2 = vector.shape_cast %1 : vector<32xf32> to vector<32x1xf32>
    %cst_1 = arith.constant 3.200000e+01 : f32
    %3 = vector.broadcast %cst_1 : f32 to vector<32x1xf32>
    %4 = arith.divf %2, %3 : vector<32x1xf32>
    %5 = vector.broadcast %4 : vector<32x1xf32> to vector<32x32xf32>
    %6 = arith.subf %0, %5 : vector<32x32xf32>
    %7 = arith.mulf %6, %6 : vector<32x32xf32>
    %cst_2 = arith.constant dense<0.000000e+00> : vector<32xf32>
    %8 = vector.multi_reduction <add>, %7, %cst_2 [1] : vector<32x32xf32> to vector<32xf32>
    %9 = vector.shape_cast %8 : vector<32xf32> to vector<32x1xf32>
    %cst_3 = arith.constant 3.200000e+01 : f32
    %10 = vector.broadcast %cst_3 : f32 to vector<32x1xf32>
    %11 = arith.divf %9, %10 : vector<32x1xf32>
    %cst_4 = arith.constant 9.99999974E-6 : f32
    %12 = vector.broadcast %cst_4 : f32 to vector<32x1xf32>
    %13 = arith.addf %11, %12 : vector<32x1xf32>
    %14 = math.rsqrt %13 : vector<32x1xf32>
    %15 = vector.broadcast %14 : vector<32x1xf32> to vector<32x32xf32>
    %16 = arith.mulf %6, %15 : vector<32x32xf32>
    %c0_5 = arith.constant 0 : index
    %c0_6 = arith.constant 0 : index
    %17 = vector.load %arg2[%c0_5, %c0_6] : memref<1x32xf32, #tpu.memory_space<vmem>>, vector<1x32xf32>
    %18 = vector.broadcast %17 : vector<1x32xf32> to vector<32x32xf32>
    %19 = arith.mulf %16, %18 : vector<32x32xf32>
    %c0_7 = arith.constant 0 : index
    %c0_8 = arith.constant 0 : index
    %20 = vector.load %arg3[%c0_7, %c0_8] : memref<1x32xf32, #tpu.memory_space<vmem>>, vector<1x32xf32>
    %21 = vector.broadcast %20 : vector<1x32xf32> to vector<32x32xf32>
    %22 = arith.addf %19, %21 : vector<32x32xf32>
    %23 = arith.truncf %22 : vector<32x32xf32> to vector<32x32xbf16>
    %c0_9 = arith.constant 0 : index
    %c0_10 = arith.constant 0 : index
    %24 = vector.load %arg4[%c0_9, %c0_10] : memref<32x128xbf16, #tpu.memory_space<vmem>>, vector<32x128xbf16>
    %cst_11 = arith.constant dense<0.000000e+00> : vector<32x128xf32>
    %25 = tpu.matmul %23, %24, %cst_11 {dimension_numbers = #tpu.dot_dimension_numbers<[1], [0], [0], [1], [0, 0, 1, 1], [], []>} : vector<32x32xbf16>, vector<32x128xbf16>, vector<32x128xf32> -> vector<32x128xf32>
    %c0_12 = arith.constant 0 : index
    %c0_13 = arith.constant 0 : index
    %26 = vector.load %arg5[%c0_12, %c0_13] : memref<1x128xf32, #tpu.memory_space<vmem>>, vector<1x128xf32>
    %27 = vector.broadcast %26 : vector<1x128xf32> to vector<32x128xf32>
    %28 = arith.addf %25, %27 : vector<32x128xf32>
    %29 = arith.mulf %28, %28 : vector<32x128xf32>
    %30 = arith.mulf %28, %29 : vector<32x128xf32>
    %cst_14 = arith.constant 4.471500e-02 : f32
    %31 = vector.broadcast %cst_14 : f32 to vector<32x128xf32>
    %32 = arith.mulf %31, %30 : vector<32x128xf32>
    %33 = arith.addf %28, %32 : vector<32x128xf32>
    %cst_15 = arith.constant 0.797884583 : f32
    %34 = vector.broadcast %cst_15 : f32 to vector<32x128xf32>
    %35 = arith.mulf %34, %33 : vector<32x128xf32>
    %36 = math.tanh %35 : vector<32x128xf32>
    %cst_16 = arith.constant 1.000000e+00 : f32
    %37 = vector.broadcast %cst_16 : f32 to vector<32x128xf32>
    %38 = arith.addf %37, %36 : vector<32x128xf32>
    %cst_17 = arith.constant 5.000000e-01 : f32
    %39 = vector.broadcast %cst_17 : f32 to vector<32x128xf32>
    %40 = arith.mulf %39, %38 : vector<32x128xf32>
    %41 = arith.mulf %28, %40 : vector<32x128xf32>
    %42 = arith.truncf %41 : vector<32x128xf32> to vector<32x128xbf16>
    %c0_18 = arith.constant 0 : index
    %c0_19 = arith.constant 0 : index
    %43 = vector.load %arg6[%c0_18, %c0_19] : memref<128x32xbf16, #tpu.memory_space<vmem>>, vector<128x32xbf16>
    %cst_20 = arith.constant dense<0.000000e+00> : vector<32x32xf32>
    %44 = tpu.matmul %42, %43, %cst_20 {dimension_numbers = #tpu.dot_dimension_numbers<[1], [0], [0], [1], [0, 0, 1, 1], [], []>} : vector<32x128xbf16>, vector<128x32xbf16>, vector<32x32xf32> -> vector<32x32xf32>
    %c0_21 = arith.constant 0 : index
    %c0_22 = arith.constant 0 : index
    %45 = vector.load %arg7[%c0_21, %c0_22] : memref<1x32xf32, #tpu.memory_space<vmem>>, vector<1x32xf32>
    %46 = vector.broadcast %45 : vector<1x32xf32> to vector<32x32xf32>
    %47 = arith.addf %44, %46 : vector<32x32xf32>
    %48 = arith.addf %0, %47 : vector<32x32xf32>
    %c0_23 = arith.constant 0 : index
    %c0_24 = arith.constant 0 : index
    %49 = vector.load %arg8[%c0_23, %c0_24] : memref<32x32xf32, #tpu.memory_space<vmem>>, vector<32x32xf32>
    tpu.vector_store %arg8[%c0_23, %c0_24], %48 {strides = array<i32>} : memref<32x32xf32, #tpu.memory_space<vmem>>, vector<32x32xf32>,
    return
  }
  func.func @transform_0(%arg0: i32) -> (i32, i32) {
    %c0_i32 = arith.constant 0 : i32
    %c0_i32_0 = arith.constant 0 : i32
    return %arg0, %c0_i32 : i32, i32
  }
  func.func @transform_1(%arg0: i32) -> (i32, i32) {
    %c0_i32 = arith.constant 0 : i32
    %c0_i32_0 = arith.constant 0 : i32
    %c0_i32_1 = arith.constant 0 : i32
    return %c0_i32, %c0_i32_0 : i32, i32
  }
  func.func @transform_2(%arg0: i32) -> (i32, i32) {
    %c0_i32 = arith.constant 0 : i32
    %c0_i32_0 = arith.constant 0 : i32
    %c0_i32_1 = arith.constant 0 : i32
    return %c0_i32, %c0_i32_0 : i32, i32
  }
  func.func @transform_3(%arg0: i32) -> (i32, i32) {
    %c0_i32 = arith.constant 0 : i32
    %c0_i32_0 = arith.constant 0 : i32
    %c0_i32_1 = arith.constant 0 : i32
    return %c0_i32, %c0_i32_0 : i32, i32
  }
  func.func @transform_4(%arg0: i32) -> (i32, i32) {
    %c0_i32 = arith.constant 0 : i32
    %c0_i32_0 = arith.constant 0 : i32
    %c0_i32_1 = arith.constant 0 : i32
    return %c0_i32, %c0_i32_0 : i32, i32
  }
  func.func @transform_5(%arg0: i32) -> (i32, i32) {
    %c0_i32 = arith.constant 0 : i32
    %c0_i32_0 = arith.constant 0 : i32
    %c0_i32_1 = arith.constant 0 : i32
    return %c0_i32, %c0_i32_0 : i32, i32
  }
  func.func @transform_6(%arg0: i32) -> (i32, i32) {
    %c0_i32 = arith.constant 0 : i32
    %c0_i32_0 = arith.constant 0 : i32
    %c0_i32_1 = arith.constant 0 : i32
    return %c0_i32, %c0_i32_0 : i32, i32
  }
  func.func @transform_7(%arg0: i32) -> (i32, i32) {
    %c0_i32 = arith.constant 0 : i32
    %c0_i32_0 = arith.constant 0 : i32
    return %arg0, %c0_i32 : i32, i32
  }
}

module attributes {stable_mosaic.version = 11 : i64} {
  func.func @_fused_window_attn_kernel(%arg0: i32, %arg1: memref<8x8x32xf32, #tpu.memory_space<vmem>>, %arg2: memref<1x32xf32, #tpu.memory_space<vmem>>, %arg3: memref<1x32xf32, #tpu.memory_space<vmem>>, %arg4: memref<32x96xbf16, #tpu.memory_space<vmem>>, %arg5: memref<1x96xf32, #tpu.memory_space<vmem>>, %arg6: memref<32x32xbf16, #tpu.memory_space<vmem>>, %arg7: memref<1x32xf32, #tpu.memory_space<vmem>>, %arg8: memref<8x8x8xf32, #tpu.memory_space<vmem>>, %arg9: memref<8x8x32xf32, #tpu.memory_space<vmem>>) attributes {dimension_semantics = [#tpu.dimension_semantics<arbitrary>], iteration_bounds = array<i64: 1>, scalar_prefetch = 0 : i64, scratch_operands = 0 : i64, tpu.core_type = #tpu.core_type<tc>, window_params = [{pipeline_mode = #tpu.pipeline_mode<synchronous>, transform_indices = @transform_0, window_bounds = array<i64: 8, 8, 32>}, {pipeline_mode = #tpu.pipeline_mode<synchronous>, transform_indices = @transform_1, window_bounds = array<i64: 1, 32>}, {pipeline_mode = #tpu.pipeline_mode<synchronous>, transform_indices = @transform_2, window_bounds = array<i64: 1, 32>}, {pipeline_mode = #tpu.pipeline_mode<synchronous>, transform_indices = @transform_3, window_bounds = array<i64: 32, 96>}, {pipeline_mode = #tpu.pipeline_mode<synchronous>, transform_indices = @transform_4, window_bounds = array<i64: 1, 96>}, {pipeline_mode = #tpu.pipeline_mode<synchronous>, transform_indices = @transform_5, window_bounds = array<i64: 32, 32>}, {pipeline_mode = #tpu.pipeline_mode<synchronous>, transform_indices = @transform_6, window_bounds = array<i64: 1, 32>}, {pipeline_mode = #tpu.pipeline_mode<synchronous>, transform_indices = @transform_7, window_bounds = array<i64: 8, 8, 8>}, {pipeline_mode = #tpu.pipeline_mode<synchronous>, transform_indices = @transform_8, window_bounds = array<i64: 8, 8, 32>}]} {
    %c0 = arith.constant 0 : index
    %c0_0 = arith.constant 0 : index
    %c0_1 = arith.constant 0 : index
    %0 = vector.load %arg1[%c0, %c0_0, %c0_1] : memref<8x8x32xf32, #tpu.memory_space<vmem>>, vector<8x8x32xf32>
    %1 = vector.shape_cast %0 : vector<8x8x32xf32> to vector<64x32xf32>
    %cst = arith.constant dense<0.000000e+00> : vector<64xf32>
    %2 = vector.multi_reduction <add>, %1, %cst [1] : vector<64x32xf32> to vector<64xf32>
    %3 = vector.shape_cast %2 : vector<64xf32> to vector<64x1xf32>
    %cst_2 = arith.constant 3.200000e+01 : f32
    %4 = vector.broadcast %cst_2 : f32 to vector<64x1xf32>
    %5 = arith.divf %3, %4 : vector<64x1xf32>
    %6 = vector.broadcast %5 : vector<64x1xf32> to vector<64x32xf32>
    %7 = arith.subf %1, %6 : vector<64x32xf32>
    %8 = arith.mulf %7, %7 : vector<64x32xf32>
    %cst_3 = arith.constant dense<0.000000e+00> : vector<64xf32>
    %9 = vector.multi_reduction <add>, %8, %cst_3 [1] : vector<64x32xf32> to vector<64xf32>
    %10 = vector.shape_cast %9 : vector<64xf32> to vector<64x1xf32>
    %cst_4 = arith.constant 3.200000e+01 : f32
    %11 = vector.broadcast %cst_4 : f32 to vector<64x1xf32>
    %12 = arith.divf %10, %11 : vector<64x1xf32>
    %cst_5 = arith.constant 9.99999974E-6 : f32
    %13 = vector.broadcast %cst_5 : f32 to vector<64x1xf32>
    %14 = arith.addf %12, %13 : vector<64x1xf32>
    %15 = math.rsqrt %14 : vector<64x1xf32>
    %16 = vector.broadcast %15 : vector<64x1xf32> to vector<64x32xf32>
    %17 = arith.mulf %7, %16 : vector<64x32xf32>
    %c0_6 = arith.constant 0 : index
    %c0_7 = arith.constant 0 : index
    %18 = vector.load %arg2[%c0_6, %c0_7] : memref<1x32xf32, #tpu.memory_space<vmem>>, vector<1x32xf32>
    %19 = vector.broadcast %18 : vector<1x32xf32> to vector<64x32xf32>
    %20 = arith.mulf %17, %19 : vector<64x32xf32>
    %c0_8 = arith.constant 0 : index
    %c0_9 = arith.constant 0 : index
    %21 = vector.load %arg3[%c0_8, %c0_9] : memref<1x32xf32, #tpu.memory_space<vmem>>, vector<1x32xf32>
    %22 = vector.broadcast %21 : vector<1x32xf32> to vector<64x32xf32>
    %23 = arith.addf %20, %22 : vector<64x32xf32>
    %24 = arith.truncf %23 : vector<64x32xf32> to vector<64x32xbf16>
    %c0_10 = arith.constant 0 : index
    %c0_11 = arith.constant 0 : index
    %25 = vector.load %arg4[%c0_10, %c0_11] : memref<32x96xbf16, #tpu.memory_space<vmem>>, vector<32x96xbf16>
    %cst_12 = arith.constant dense<0.000000e+00> : vector<64x96xf32>
    %26 = tpu.matmul %24, %25, %cst_12 {dimension_numbers = #tpu.dot_dimension_numbers<[1], [0], [0], [1], [0, 0, 1, 1], [], []>} : vector<64x32xbf16>, vector<32x96xbf16>, vector<64x96xf32> -> vector<64x96xf32>
    %c0_13 = arith.constant 0 : index
    %c0_14 = arith.constant 0 : index
    %27 = vector.load %arg5[%c0_13, %c0_14] : memref<1x96xf32, #tpu.memory_space<vmem>>, vector<1x96xf32>
    %28 = vector.broadcast %27 : vector<1x96xf32> to vector<64x96xf32>
    %29 = arith.addf %26, %28 : vector<64x96xf32>
    %30 = vector.extract_strided_slice %29 {offsets = [0, 0], sizes = [64, 16], strides = [1, 1]} : vector<64x96xf32> to vector<64x16xf32>
    %cst_15 = arith.constant 2.500000e-01 : f32
    %31 = vector.broadcast %cst_15 : f32 to vector<64x16xf32>
    %32 = arith.mulf %30, %31 : vector<64x16xf32>
    %33 = vector.shape_cast %32 : vector<64x16xf32> to vector<8x1x8x16xf32>
    %34 = vector.extract_strided_slice %29 {offsets = [0, 16], sizes = [64, 16], strides = [1, 1]} : vector<64x96xf32> to vector<64x16xf32>
    %cst_16 = arith.constant 2.500000e-01 : f32
    %35 = vector.broadcast %cst_16 : f32 to vector<64x16xf32>
    %36 = arith.mulf %34, %35 : vector<64x16xf32>
    %37 = vector.shape_cast %36 : vector<64x16xf32> to vector<8x1x8x16xf32>
    %38 = tpu.concatenate %33, %37 in 1 : vector<8x1x8x16xf32>, vector<8x1x8x16xf32> -> vector<8x2x8x16xf32>
    %39 = vector.shape_cast %38 : vector<8x2x8x16xf32> to vector<16x8x16xf32>
    %40 = arith.truncf %39 : vector<16x8x16xf32> to vector<16x8x16xbf16>
    %41 = vector.extract_strided_slice %29 {offsets = [0, 32], sizes = [64, 16], strides = [1, 1]} : vector<64x96xf32> to vector<64x16xf32>
    %42 = vector.shape_cast %41 : vector<64x16xf32> to vector<8x1x8x16xf32>
    %43 = vector.extract_strided_slice %29 {offsets = [0, 48], sizes = [64, 16], strides = [1, 1]} : vector<64x96xf32> to vector<64x16xf32>
    %44 = vector.shape_cast %43 : vector<64x16xf32> to vector<8x1x8x16xf32>
    %45 = tpu.concatenate %42, %44 in 1 : vector<8x1x8x16xf32>, vector<8x1x8x16xf32> -> vector<8x2x8x16xf32>
    %46 = vector.shape_cast %45 : vector<8x2x8x16xf32> to vector<16x8x16xf32>
    %47 = arith.truncf %46 : vector<16x8x16xf32> to vector<16x8x16xbf16>
    %48 = vector.extract_strided_slice %29 {offsets = [0, 64], sizes = [64, 16], strides = [1, 1]} : vector<64x96xf32> to vector<64x16xf32>
    %49 = vector.shape_cast %48 : vector<64x16xf32> to vector<8x1x8x16xf32>
    %50 = vector.extract_strided_slice %29 {offsets = [0, 80], sizes = [64, 16], strides = [1, 1]} : vector<64x96xf32> to vector<64x16xf32>
    %51 = vector.shape_cast %50 : vector<64x16xf32> to vector<8x1x8x16xf32>
    %52 = tpu.concatenate %49, %51 in 1 : vector<8x1x8x16xf32>, vector<8x1x8x16xf32> -> vector<8x2x8x16xf32>
    %53 = vector.shape_cast %52 : vector<8x2x8x16xf32> to vector<16x8x16xf32>
    %54 = arith.truncf %53 : vector<16x8x16xf32> to vector<16x8x16xbf16>
    "tpu.trace_start"() <{level = 10 : i32, message = "bnd,bmd->bnm"}> : () -> ()
    %cst_17 = arith.constant dense<0.000000e+00> : vector<16x8x8xf32>
    %55 = tpu.matmul %40, %47, %cst_17 {dimension_numbers = #tpu.dot_dimension_numbers<[2], [2], [1], [1], [0, 0, 0, 1, 1, 1], [0], [0]>} : vector<16x8x16xbf16>, vector<16x8x16xbf16>, vector<16x8x8xf32> -> vector<16x8x8xf32>
    "tpu.trace_stop"() : () -> ()
    %56 = vector.shape_cast %55 : vector<16x8x8xf32> to vector<2x8x8x8xf32>
    %c0_18 = arith.constant 0 : index
    %c0_19 = arith.constant 0 : index
    %c0_20 = arith.constant 0 : index
    %57 = vector.load %arg8[%c0_18, %c0_19, %c0_20] : memref<8x8x8xf32, #tpu.memory_space<vmem>>, vector<8x8x8xf32>
    %58 = vector.shape_cast %57 : vector<8x8x8xf32> to vector<1x8x8x8xf32>
    %59 = vector.broadcast %58 : vector<1x8x8x8xf32> to vector<2x8x8x8xf32>
    %60 = arith.addf %56, %59 : vector<2x8x8x8xf32>
    %61 = vector.shape_cast %60 : vector<2x8x8x8xf32> to vector<16x8x8xf32>
    %cst_21 = arith.constant dense<0xFF800000> : vector<16x8xf32>
    %62 = vector.multi_reduction <maximumf>, %61, %cst_21 [2] : vector<16x8x8xf32> to vector<16x8xf32>
    %63 = vector.shape_cast %62 : vector<16x8xf32> to vector<16x8x1xf32>
    %64 = vector.broadcast %63 : vector<16x8x1xf32> to vector<16x8x8xf32>
    %65 = arith.subf %61, %64 : vector<16x8x8xf32>
    %66 = math.exp %65 : vector<16x8x8xf32>
    %cst_22 = arith.constant dense<0.000000e+00> : vector<16x8xf32>
    %67 = vector.multi_reduction <add>, %66, %cst_22 [2] : vector<16x8x8xf32> to vector<16x8xf32>
    %68 = vector.shape_cast %67 : vector<16x8xf32> to vector<16x8x1xf32>
    %69 = tpu.reciprocal %68 {approx = true} : vector<16x8x1xf32> -> vector<16x8x1xf32>
    %70 = vector.broadcast %69 : vector<16x8x1xf32> to vector<16x8x8xf32>
    %71 = arith.mulf %66, %70 : vector<16x8x8xf32>
    %72 = arith.truncf %71 : vector<16x8x8xf32> to vector<16x8x8xbf16>
    "tpu.trace_start"() <{level = 10 : i32, message = "bnm,bmd->bnd"}> : () -> ()
    %cst_23 = arith.constant dense<0.000000e+00> : vector<16x8x16xf32>
    %73 = tpu.matmul %72, %54, %cst_23 {dimension_numbers = #tpu.dot_dimension_numbers<[2], [1], [1], [2], [0, 0, 0, 1, 1, 2], [0], [0]>} : vector<16x8x8xbf16>, vector<16x8x16xbf16>, vector<16x8x16xf32> -> vector<16x8x16xf32>
    "tpu.trace_stop"() : () -> ()
    %74 = vector.shape_cast %73 : vector<16x8x16xf32> to vector<8x2x8x16xf32>
    %75 = vector.extract_strided_slice %74 {offsets = [0, 0, 0, 0], sizes = [8, 1, 8, 16], strides = [1, 1, 1, 1]} : vector<8x2x8x16xf32> to vector<8x1x8x16xf32>
    %76 = vector.shape_cast %75 : vector<8x1x8x16xf32> to vector<8x8x16xf32>
    %77 = vector.shape_cast %76 : vector<8x8x16xf32> to vector<64x16xf32>
    %78 = vector.extract_strided_slice %74 {offsets = [0, 1, 0, 0], sizes = [8, 1, 8, 16], strides = [1, 1, 1, 1]} : vector<8x2x8x16xf32> to vector<8x1x8x16xf32>
    %79 = vector.shape_cast %78 : vector<8x1x8x16xf32> to vector<8x8x16xf32>
    %80 = vector.shape_cast %79 : vector<8x8x16xf32> to vector<64x16xf32>
    %81 = tpu.concatenate %77, %80 in 1 : vector<64x16xf32>, vector<64x16xf32> -> vector<64x32xf32>
    %82 = arith.truncf %81 : vector<64x32xf32> to vector<64x32xbf16>
    %c0_24 = arith.constant 0 : index
    %c0_25 = arith.constant 0 : index
    %83 = vector.load %arg6[%c0_24, %c0_25] : memref<32x32xbf16, #tpu.memory_space<vmem>>, vector<32x32xbf16>
    %cst_26 = arith.constant dense<0.000000e+00> : vector<64x32xf32>
    %84 = tpu.matmul %82, %83, %cst_26 {dimension_numbers = #tpu.dot_dimension_numbers<[1], [0], [0], [1], [0, 0, 1, 1], [], []>} : vector<64x32xbf16>, vector<32x32xbf16>, vector<64x32xf32> -> vector<64x32xf32>
    %c0_27 = arith.constant 0 : index
    %c0_28 = arith.constant 0 : index
    %85 = vector.load %arg7[%c0_27, %c0_28] : memref<1x32xf32, #tpu.memory_space<vmem>>, vector<1x32xf32>
    %86 = vector.broadcast %85 : vector<1x32xf32> to vector<64x32xf32>
    %87 = arith.addf %84, %86 : vector<64x32xf32>
    %88 = arith.addf %1, %87 : vector<64x32xf32>
    %89 = vector.shape_cast %88 : vector<64x32xf32> to vector<8x8x32xf32>
    %c0_29 = arith.constant 0 : index
    %c0_30 = arith.constant 0 : index
    %c0_31 = arith.constant 0 : index
    %90 = vector.load %arg9[%c0_29, %c0_30, %c0_31] : memref<8x8x32xf32, #tpu.memory_space<vmem>>, vector<8x8x32xf32>
    tpu.vector_store %arg9[%c0_29, %c0_30, %c0_31], %89 {strides = array<i32>} : memref<8x8x32xf32, #tpu.memory_space<vmem>>, vector<8x8x32xf32>,
    return
  }
  func.func @transform_0(%arg0: i32) -> (i32, i32, i32) {
    %c0_i32 = arith.constant 0 : i32
    %c0_i32_0 = arith.constant 0 : i32
    %c0_i32_1 = arith.constant 0 : i32
    %c0_i32_2 = arith.constant 0 : i32
    return %c0_i32, %c0_i32_0, %c0_i32_1 : i32, i32, i32
  }
  func.func @transform_1(%arg0: i32) -> (i32, i32) {
    %c0_i32 = arith.constant 0 : i32
    %c0_i32_0 = arith.constant 0 : i32
    %c0_i32_1 = arith.constant 0 : i32
    return %c0_i32, %c0_i32_0 : i32, i32
  }
  func.func @transform_2(%arg0: i32) -> (i32, i32) {
    %c0_i32 = arith.constant 0 : i32
    %c0_i32_0 = arith.constant 0 : i32
    %c0_i32_1 = arith.constant 0 : i32
    return %c0_i32, %c0_i32_0 : i32, i32
  }
  func.func @transform_3(%arg0: i32) -> (i32, i32) {
    %c0_i32 = arith.constant 0 : i32
    %c0_i32_0 = arith.constant 0 : i32
    %c0_i32_1 = arith.constant 0 : i32
    return %c0_i32, %c0_i32_0 : i32, i32
  }
  func.func @transform_4(%arg0: i32) -> (i32, i32) {
    %c0_i32 = arith.constant 0 : i32
    %c0_i32_0 = arith.constant 0 : i32
    %c0_i32_1 = arith.constant 0 : i32
    return %c0_i32, %c0_i32_0 : i32, i32
  }
  func.func @transform_5(%arg0: i32) -> (i32, i32) {
    %c0_i32 = arith.constant 0 : i32
    %c0_i32_0 = arith.constant 0 : i32
    %c0_i32_1 = arith.constant 0 : i32
    return %c0_i32, %c0_i32_0 : i32, i32
  }
  func.func @transform_6(%arg0: i32) -> (i32, i32) {
    %c0_i32 = arith.constant 0 : i32
    %c0_i32_0 = arith.constant 0 : i32
    %c0_i32_1 = arith.constant 0 : i32
    return %c0_i32, %c0_i32_0 : i32, i32
  }
  func.func @transform_7(%arg0: i32) -> (i32, i32, i32) {
    %c0_i32 = arith.constant 0 : i32
    %c0_i32_0 = arith.constant 0 : i32
    %c0_i32_1 = arith.constant 0 : i32
    %c0_i32_2 = arith.constant 0 : i32
    return %c0_i32, %c0_i32_0, %c0_i32_1 : i32, i32, i32
  }
  func.func @transform_8(%arg0: i32) -> (i32, i32, i32) {
    %c0_i32 = arith.constant 0 : i32
    %c0_i32_0 = arith.constant 0 : i32
    %c0_i32_1 = arith.constant 0 : i32
    %c0_i32_2 = arith.constant 0 : i32
    return %c0_i32, %c0_i32_0, %c0_i32_1 : i32, i32, i32
  }
}

module attributes {stable_mosaic.version = 11 : i64} {
  func.func @_merge_kernel(%arg0: i32, %arg1: memref<8x128xf32, #tpu.memory_space<vmem>>, %arg2: memref<1x128xf32, #tpu.memory_space<vmem>>, %arg3: memref<1x128xf32, #tpu.memory_space<vmem>>, %arg4: memref<128x64xbf16, #tpu.memory_space<vmem>>, %arg5: memref<8x64xf32, #tpu.memory_space<vmem>>) attributes {dimension_semantics = [#tpu.dimension_semantics<parallel>], iteration_bounds = array<i64: 2>, scalar_prefetch = 0 : i64, scratch_operands = 0 : i64, tpu.core_type = #tpu.core_type<tc>, window_params = [{transform_indices = @transform_0, window_bounds = array<i64: 8, 128>}, {pipeline_mode = #tpu.pipeline_mode<synchronous>, transform_indices = @transform_1, window_bounds = array<i64: 1, 128>}, {pipeline_mode = #tpu.pipeline_mode<synchronous>, transform_indices = @transform_2, window_bounds = array<i64: 1, 128>}, {pipeline_mode = #tpu.pipeline_mode<synchronous>, transform_indices = @transform_3, window_bounds = array<i64: 128, 64>}, {transform_indices = @transform_4, window_bounds = array<i64: 8, 64>}]} {
    %c0 = arith.constant 0 : index
    %c0_0 = arith.constant 0 : index
    %0 = vector.load %arg1[%c0, %c0_0] : memref<8x128xf32, #tpu.memory_space<vmem>>, vector<8x128xf32>
    %cst = arith.constant dense<0.000000e+00> : vector<8xf32>
    %1 = vector.multi_reduction <add>, %0, %cst [1] : vector<8x128xf32> to vector<8xf32>
    %2 = vector.shape_cast %1 : vector<8xf32> to vector<8x1xf32>
    %cst_1 = arith.constant 1.280000e+02 : f32
    %3 = vector.broadcast %cst_1 : f32 to vector<8x1xf32>
    %4 = arith.divf %2, %3 : vector<8x1xf32>
    %5 = vector.broadcast %4 : vector<8x1xf32> to vector<8x128xf32>
    %6 = arith.subf %0, %5 : vector<8x128xf32>
    %7 = arith.mulf %6, %6 : vector<8x128xf32>
    %cst_2 = arith.constant dense<0.000000e+00> : vector<8xf32>
    %8 = vector.multi_reduction <add>, %7, %cst_2 [1] : vector<8x128xf32> to vector<8xf32>
    %9 = vector.shape_cast %8 : vector<8xf32> to vector<8x1xf32>
    %cst_3 = arith.constant 1.280000e+02 : f32
    %10 = vector.broadcast %cst_3 : f32 to vector<8x1xf32>
    %11 = arith.divf %9, %10 : vector<8x1xf32>
    %cst_4 = arith.constant 9.99999974E-6 : f32
    %12 = vector.broadcast %cst_4 : f32 to vector<8x1xf32>
    %13 = arith.addf %11, %12 : vector<8x1xf32>
    %14 = math.rsqrt %13 : vector<8x1xf32>
    %15 = vector.broadcast %14 : vector<8x1xf32> to vector<8x128xf32>
    %16 = arith.mulf %6, %15 : vector<8x128xf32>
    %c0_5 = arith.constant 0 : index
    %c0_6 = arith.constant 0 : index
    %17 = vector.load %arg2[%c0_5, %c0_6] : memref<1x128xf32, #tpu.memory_space<vmem>>, vector<1x128xf32>
    %18 = vector.broadcast %17 : vector<1x128xf32> to vector<8x128xf32>
    %19 = arith.mulf %16, %18 : vector<8x128xf32>
    %c0_7 = arith.constant 0 : index
    %c0_8 = arith.constant 0 : index
    %20 = vector.load %arg3[%c0_7, %c0_8] : memref<1x128xf32, #tpu.memory_space<vmem>>, vector<1x128xf32>
    %21 = vector.broadcast %20 : vector<1x128xf32> to vector<8x128xf32>
    %22 = arith.addf %19, %21 : vector<8x128xf32>
    %23 = arith.truncf %22 : vector<8x128xf32> to vector<8x128xbf16>
    %c0_9 = arith.constant 0 : index
    %c0_10 = arith.constant 0 : index
    %24 = vector.load %arg4[%c0_9, %c0_10] : memref<128x64xbf16, #tpu.memory_space<vmem>>, vector<128x64xbf16>
    %cst_11 = arith.constant dense<0.000000e+00> : vector<8x64xf32>
    %25 = tpu.matmul %23, %24, %cst_11 {dimension_numbers = #tpu.dot_dimension_numbers<[1], [0], [0], [1], [0, 0, 1, 1], [], []>} : vector<8x128xbf16>, vector<128x64xbf16>, vector<8x64xf32> -> vector<8x64xf32>
    %c0_12 = arith.constant 0 : index
    %c0_13 = arith.constant 0 : index
    %26 = vector.load %arg5[%c0_12, %c0_13] : memref<8x64xf32, #tpu.memory_space<vmem>>, vector<8x64xf32>
    tpu.vector_store %arg5[%c0_12, %c0_13], %25 {strides = array<i32>} : memref<8x64xf32, #tpu.memory_space<vmem>>, vector<8x64xf32>,
    return
  }
  func.func @transform_0(%arg0: i32) -> (i32, i32) {
    %c0_i32 = arith.constant 0 : i32
    %c0_i32_0 = arith.constant 0 : i32
    return %arg0, %c0_i32 : i32, i32
  }
  func.func @transform_1(%arg0: i32) -> (i32, i32) {
    %c0_i32 = arith.constant 0 : i32
    %c0_i32_0 = arith.constant 0 : i32
    %c0_i32_1 = arith.constant 0 : i32
    return %c0_i32, %c0_i32_0 : i32, i32
  }
  func.func @transform_2(%arg0: i32) -> (i32, i32) {
    %c0_i32 = arith.constant 0 : i32
    %c0_i32_0 = arith.constant 0 : i32
    %c0_i32_1 = arith.constant 0 : i32
    return %c0_i32, %c0_i32_0 : i32, i32
  }
  func.func @transform_3(%arg0: i32) -> (i32, i32) {
    %c0_i32 = arith.constant 0 : i32
    %c0_i32_0 = arith.constant 0 : i32
    %c0_i32_1 = arith.constant 0 : i32
    return %c0_i32, %c0_i32_0 : i32, i32
  }
  func.func @transform_4(%arg0: i32) -> (i32, i32) {
    %c0_i32 = arith.constant 0 : i32
    %c0_i32_0 = arith.constant 0 : i32
    return %arg0, %c0_i32 : i32, i32
  }
}

module attributes {stable_mosaic.version = 11 : i64} {
  func.func @_fused_mlp_kernel(%arg0: i32, %arg1: memref<8x64xf32, #tpu.memory_space<vmem>>, %arg2: memref<1x64xf32, #tpu.memory_space<vmem>>, %arg3: memref<1x64xf32, #tpu.memory_space<vmem>>, %arg4: memref<64x256xbf16, #tpu.memory_space<vmem>>, %arg5: memref<1x256xf32, #tpu.memory_space<vmem>>, %arg6: memref<256x64xbf16, #tpu.memory_space<vmem>>, %arg7: memref<1x64xf32, #tpu.memory_space<vmem>>, %arg8: memref<8x64xf32, #tpu.memory_space<vmem>>) attributes {dimension_semantics = [#tpu.dimension_semantics<parallel>], iteration_bounds = array<i64: 2>, scalar_prefetch = 0 : i64, scratch_operands = 0 : i64, tpu.core_type = #tpu.core_type<tc>, window_params = [{transform_indices = @transform_0, window_bounds = array<i64: 8, 64>}, {pipeline_mode = #tpu.pipeline_mode<synchronous>, transform_indices = @transform_1, window_bounds = array<i64: 1, 64>}, {pipeline_mode = #tpu.pipeline_mode<synchronous>, transform_indices = @transform_2, window_bounds = array<i64: 1, 64>}, {pipeline_mode = #tpu.pipeline_mode<synchronous>, transform_indices = @transform_3, window_bounds = array<i64: 64, 256>}, {pipeline_mode = #tpu.pipeline_mode<synchronous>, transform_indices = @transform_4, window_bounds = array<i64: 1, 256>}, {pipeline_mode = #tpu.pipeline_mode<synchronous>, transform_indices = @transform_5, window_bounds = array<i64: 256, 64>}, {pipeline_mode = #tpu.pipeline_mode<synchronous>, transform_indices = @transform_6, window_bounds = array<i64: 1, 64>}, {transform_indices = @transform_7, window_bounds = array<i64: 8, 64>}]} {
    %c0 = arith.constant 0 : index
    %c0_0 = arith.constant 0 : index
    %0 = vector.load %arg1[%c0, %c0_0] : memref<8x64xf32, #tpu.memory_space<vmem>>, vector<8x64xf32>
    %cst = arith.constant dense<0.000000e+00> : vector<8xf32>
    %1 = vector.multi_reduction <add>, %0, %cst [1] : vector<8x64xf32> to vector<8xf32>
    %2 = vector.shape_cast %1 : vector<8xf32> to vector<8x1xf32>
    %cst_1 = arith.constant 6.400000e+01 : f32
    %3 = vector.broadcast %cst_1 : f32 to vector<8x1xf32>
    %4 = arith.divf %2, %3 : vector<8x1xf32>
    %5 = vector.broadcast %4 : vector<8x1xf32> to vector<8x64xf32>
    %6 = arith.subf %0, %5 : vector<8x64xf32>
    %7 = arith.mulf %6, %6 : vector<8x64xf32>
    %cst_2 = arith.constant dense<0.000000e+00> : vector<8xf32>
    %8 = vector.multi_reduction <add>, %7, %cst_2 [1] : vector<8x64xf32> to vector<8xf32>
    %9 = vector.shape_cast %8 : vector<8xf32> to vector<8x1xf32>
    %cst_3 = arith.constant 6.400000e+01 : f32
    %10 = vector.broadcast %cst_3 : f32 to vector<8x1xf32>
    %11 = arith.divf %9, %10 : vector<8x1xf32>
    %cst_4 = arith.constant 9.99999974E-6 : f32
    %12 = vector.broadcast %cst_4 : f32 to vector<8x1xf32>
    %13 = arith.addf %11, %12 : vector<8x1xf32>
    %14 = math.rsqrt %13 : vector<8x1xf32>
    %15 = vector.broadcast %14 : vector<8x1xf32> to vector<8x64xf32>
    %16 = arith.mulf %6, %15 : vector<8x64xf32>
    %c0_5 = arith.constant 0 : index
    %c0_6 = arith.constant 0 : index
    %17 = vector.load %arg2[%c0_5, %c0_6] : memref<1x64xf32, #tpu.memory_space<vmem>>, vector<1x64xf32>
    %18 = vector.broadcast %17 : vector<1x64xf32> to vector<8x64xf32>
    %19 = arith.mulf %16, %18 : vector<8x64xf32>
    %c0_7 = arith.constant 0 : index
    %c0_8 = arith.constant 0 : index
    %20 = vector.load %arg3[%c0_7, %c0_8] : memref<1x64xf32, #tpu.memory_space<vmem>>, vector<1x64xf32>
    %21 = vector.broadcast %20 : vector<1x64xf32> to vector<8x64xf32>
    %22 = arith.addf %19, %21 : vector<8x64xf32>
    %23 = arith.truncf %22 : vector<8x64xf32> to vector<8x64xbf16>
    %c0_9 = arith.constant 0 : index
    %c0_10 = arith.constant 0 : index
    %24 = vector.load %arg4[%c0_9, %c0_10] : memref<64x256xbf16, #tpu.memory_space<vmem>>, vector<64x256xbf16>
    %cst_11 = arith.constant dense<0.000000e+00> : vector<8x256xf32>
    %25 = tpu.matmul %23, %24, %cst_11 {dimension_numbers = #tpu.dot_dimension_numbers<[1], [0], [0], [1], [0, 0, 1, 1], [], []>} : vector<8x64xbf16>, vector<64x256xbf16>, vector<8x256xf32> -> vector<8x256xf32>
    %c0_12 = arith.constant 0 : index
    %c0_13 = arith.constant 0 : index
    %26 = vector.load %arg5[%c0_12, %c0_13] : memref<1x256xf32, #tpu.memory_space<vmem>>, vector<1x256xf32>
    %27 = vector.broadcast %26 : vector<1x256xf32> to vector<8x256xf32>
    %28 = arith.addf %25, %27 : vector<8x256xf32>
    %29 = arith.mulf %28, %28 : vector<8x256xf32>
    %30 = arith.mulf %28, %29 : vector<8x256xf32>
    %cst_14 = arith.constant 4.471500e-02 : f32
    %31 = vector.broadcast %cst_14 : f32 to vector<8x256xf32>
    %32 = arith.mulf %31, %30 : vector<8x256xf32>
    %33 = arith.addf %28, %32 : vector<8x256xf32>
    %cst_15 = arith.constant 0.797884583 : f32
    %34 = vector.broadcast %cst_15 : f32 to vector<8x256xf32>
    %35 = arith.mulf %34, %33 : vector<8x256xf32>
    %36 = math.tanh %35 : vector<8x256xf32>
    %cst_16 = arith.constant 1.000000e+00 : f32
    %37 = vector.broadcast %cst_16 : f32 to vector<8x256xf32>
    %38 = arith.addf %37, %36 : vector<8x256xf32>
    %cst_17 = arith.constant 5.000000e-01 : f32
    %39 = vector.broadcast %cst_17 : f32 to vector<8x256xf32>
    %40 = arith.mulf %39, %38 : vector<8x256xf32>
    %41 = arith.mulf %28, %40 : vector<8x256xf32>
    %42 = arith.truncf %41 : vector<8x256xf32> to vector<8x256xbf16>
    %c0_18 = arith.constant 0 : index
    %c0_19 = arith.constant 0 : index
    %43 = vector.load %arg6[%c0_18, %c0_19] : memref<256x64xbf16, #tpu.memory_space<vmem>>, vector<256x64xbf16>
    %cst_20 = arith.constant dense<0.000000e+00> : vector<8x64xf32>
    %44 = tpu.matmul %42, %43, %cst_20 {dimension_numbers = #tpu.dot_dimension_numbers<[1], [0], [0], [1], [0, 0, 1, 1], [], []>} : vector<8x256xbf16>, vector<256x64xbf16>, vector<8x64xf32> -> vector<8x64xf32>
    %c0_21 = arith.constant 0 : index
    %c0_22 = arith.constant 0 : index
    %45 = vector.load %arg7[%c0_21, %c0_22] : memref<1x64xf32, #tpu.memory_space<vmem>>, vector<1x64xf32>
    %46 = vector.broadcast %45 : vector<1x64xf32> to vector<8x64xf32>
    %47 = arith.addf %44, %46 : vector<8x64xf32>
    %48 = arith.addf %0, %47 : vector<8x64xf32>
    %c0_23 = arith.constant 0 : index
    %c0_24 = arith.constant 0 : index
    %49 = vector.load %arg8[%c0_23, %c0_24] : memref<8x64xf32, #tpu.memory_space<vmem>>, vector<8x64xf32>
    tpu.vector_store %arg8[%c0_23, %c0_24], %48 {strides = array<i32>} : memref<8x64xf32, #tpu.memory_space<vmem>>, vector<8x64xf32>,
    return
  }
  func.func @transform_0(%arg0: i32) -> (i32, i32) {
    %c0_i32 = arith.constant 0 : i32
    %c0_i32_0 = arith.constant 0 : i32
    return %arg0, %c0_i32 : i32, i32
  }
  func.func @transform_1(%arg0: i32) -> (i32, i32) {
    %c0_i32 = arith.constant 0 : i32
    %c0_i32_0 = arith.constant 0 : i32
    %c0_i32_1 = arith.constant 0 : i32
    return %c0_i32, %c0_i32_0 : i32, i32
  }
  func.func @transform_2(%arg0: i32) -> (i32, i32) {
    %c0_i32 = arith.constant 0 : i32
    %c0_i32_0 = arith.constant 0 : i32
    %c0_i32_1 = arith.constant 0 : i32
    return %c0_i32, %c0_i32_0 : i32, i32
  }
  func.func @transform_3(%arg0: i32) -> (i32, i32) {
    %c0_i32 = arith.constant 0 : i32
    %c0_i32_0 = arith.constant 0 : i32
    %c0_i32_1 = arith.constant 0 : i32
    return %c0_i32, %c0_i32_0 : i32, i32
  }
  func.func @transform_4(%arg0: i32) -> (i32, i32) {
    %c0_i32 = arith.constant 0 : i32
    %c0_i32_0 = arith.constant 0 : i32
    %c0_i32_1 = arith.constant 0 : i32
    return %c0_i32, %c0_i32_0 : i32, i32
  }
  func.func @transform_5(%arg0: i32) -> (i32, i32) {
    %c0_i32 = arith.constant 0 : i32
    %c0_i32_0 = arith.constant 0 : i32
    %c0_i32_1 = arith.constant 0 : i32
    return %c0_i32, %c0_i32_0 : i32, i32
  }
  func.func @transform_6(%arg0: i32) -> (i32, i32) {
    %c0_i32 = arith.constant 0 : i32
    %c0_i32_0 = arith.constant 0 : i32
    %c0_i32_1 = arith.constant 0 : i32
    return %c0_i32, %c0_i32_0 : i32, i32
  }
  func.func @transform_7(%arg0: i32) -> (i32, i32) {
    %c0_i32 = arith.constant 0 : i32
    %c0_i32_0 = arith.constant 0 : i32
    return %arg0, %c0_i32 : i32, i32
  }
}

module attributes {stable_mosaic.version = 11 : i64} {
  func.func @_fused_window_attn_kernel(%arg0: i32, %arg1: memref<2x8x64xf32, #tpu.memory_space<vmem>>, %arg2: memref<1x64xf32, #tpu.memory_space<vmem>>, %arg3: memref<1x64xf32, #tpu.memory_space<vmem>>, %arg4: memref<64x192xbf16, #tpu.memory_space<vmem>>, %arg5: memref<1x192xf32, #tpu.memory_space<vmem>>, %arg6: memref<64x64xbf16, #tpu.memory_space<vmem>>, %arg7: memref<1x64xf32, #tpu.memory_space<vmem>>, %arg8: memref<4x8x8xf32, #tpu.memory_space<vmem>>, %arg9: memref<2x8x64xf32, #tpu.memory_space<vmem>>) attributes {dimension_semantics = [#tpu.dimension_semantics<arbitrary>], iteration_bounds = array<i64: 1>, scalar_prefetch = 0 : i64, scratch_operands = 0 : i64, tpu.core_type = #tpu.core_type<tc>, window_params = [{pipeline_mode = #tpu.pipeline_mode<synchronous>, transform_indices = @transform_0, window_bounds = array<i64: 2, 8, 64>}, {pipeline_mode = #tpu.pipeline_mode<synchronous>, transform_indices = @transform_1, window_bounds = array<i64: 1, 64>}, {pipeline_mode = #tpu.pipeline_mode<synchronous>, transform_indices = @transform_2, window_bounds = array<i64: 1, 64>}, {pipeline_mode = #tpu.pipeline_mode<synchronous>, transform_indices = @transform_3, window_bounds = array<i64: 64, 192>}, {pipeline_mode = #tpu.pipeline_mode<synchronous>, transform_indices = @transform_4, window_bounds = array<i64: 1, 192>}, {pipeline_mode = #tpu.pipeline_mode<synchronous>, transform_indices = @transform_5, window_bounds = array<i64: 64, 64>}, {pipeline_mode = #tpu.pipeline_mode<synchronous>, transform_indices = @transform_6, window_bounds = array<i64: 1, 64>}, {pipeline_mode = #tpu.pipeline_mode<synchronous>, transform_indices = @transform_7, window_bounds = array<i64: 4, 8, 8>}, {pipeline_mode = #tpu.pipeline_mode<synchronous>, transform_indices = @transform_8, window_bounds = array<i64: 2, 8, 64>}]} {
    %c0 = arith.constant 0 : index
    %c0_0 = arith.constant 0 : index
    %c0_1 = arith.constant 0 : index
    %0 = vector.load %arg1[%c0, %c0_0, %c0_1] : memref<2x8x64xf32, #tpu.memory_space<vmem>>, vector<2x8x64xf32>
    %1 = vector.shape_cast %0 : vector<2x8x64xf32> to vector<16x64xf32>
    %cst = arith.constant dense<0.000000e+00> : vector<16xf32>
    %2 = vector.multi_reduction <add>, %1, %cst [1] : vector<16x64xf32> to vector<16xf32>
    %3 = vector.shape_cast %2 : vector<16xf32> to vector<16x1xf32>
    %cst_2 = arith.constant 6.400000e+01 : f32
    %4 = vector.broadcast %cst_2 : f32 to vector<16x1xf32>
    %5 = arith.divf %3, %4 : vector<16x1xf32>
    %6 = vector.broadcast %5 : vector<16x1xf32> to vector<16x64xf32>
    %7 = arith.subf %1, %6 : vector<16x64xf32>
    %8 = arith.mulf %7, %7 : vector<16x64xf32>
    %cst_3 = arith.constant dense<0.000000e+00> : vector<16xf32>
    %9 = vector.multi_reduction <add>, %8, %cst_3 [1] : vector<16x64xf32> to vector<16xf32>
    %10 = vector.shape_cast %9 : vector<16xf32> to vector<16x1xf32>
    %cst_4 = arith.constant 6.400000e+01 : f32
    %11 = vector.broadcast %cst_4 : f32 to vector<16x1xf32>
    %12 = arith.divf %10, %11 : vector<16x1xf32>
    %cst_5 = arith.constant 9.99999974E-6 : f32
    %13 = vector.broadcast %cst_5 : f32 to vector<16x1xf32>
    %14 = arith.addf %12, %13 : vector<16x1xf32>
    %15 = math.rsqrt %14 : vector<16x1xf32>
    %16 = vector.broadcast %15 : vector<16x1xf32> to vector<16x64xf32>
    %17 = arith.mulf %7, %16 : vector<16x64xf32>
    %c0_6 = arith.constant 0 : index
    %c0_7 = arith.constant 0 : index
    %18 = vector.load %arg2[%c0_6, %c0_7] : memref<1x64xf32, #tpu.memory_space<vmem>>, vector<1x64xf32>
    %19 = vector.broadcast %18 : vector<1x64xf32> to vector<16x64xf32>
    %20 = arith.mulf %17, %19 : vector<16x64xf32>
    %c0_8 = arith.constant 0 : index
    %c0_9 = arith.constant 0 : index
    %21 = vector.load %arg3[%c0_8, %c0_9] : memref<1x64xf32, #tpu.memory_space<vmem>>, vector<1x64xf32>
    %22 = vector.broadcast %21 : vector<1x64xf32> to vector<16x64xf32>
    %23 = arith.addf %20, %22 : vector<16x64xf32>
    %24 = arith.truncf %23 : vector<16x64xf32> to vector<16x64xbf16>
    %c0_10 = arith.constant 0 : index
    %c0_11 = arith.constant 0 : index
    %25 = vector.load %arg4[%c0_10, %c0_11] : memref<64x192xbf16, #tpu.memory_space<vmem>>, vector<64x192xbf16>
    %cst_12 = arith.constant dense<0.000000e+00> : vector<16x192xf32>
    %26 = tpu.matmul %24, %25, %cst_12 {dimension_numbers = #tpu.dot_dimension_numbers<[1], [0], [0], [1], [0, 0, 1, 1], [], []>} : vector<16x64xbf16>, vector<64x192xbf16>, vector<16x192xf32> -> vector<16x192xf32>
    %c0_13 = arith.constant 0 : index
    %c0_14 = arith.constant 0 : index
    %27 = vector.load %arg5[%c0_13, %c0_14] : memref<1x192xf32, #tpu.memory_space<vmem>>, vector<1x192xf32>
    %28 = vector.broadcast %27 : vector<1x192xf32> to vector<16x192xf32>
    %29 = arith.addf %26, %28 : vector<16x192xf32>
    %30 = vector.extract_strided_slice %29 {offsets = [0, 0], sizes = [16, 16], strides = [1, 1]} : vector<16x192xf32> to vector<16x16xf32>
    %cst_15 = arith.constant 2.500000e-01 : f32
    %31 = vector.broadcast %cst_15 : f32 to vector<16x16xf32>
    %32 = arith.mulf %30, %31 : vector<16x16xf32>
    %33 = vector.shape_cast %32 : vector<16x16xf32> to vector<2x1x8x16xf32>
    %34 = vector.extract_strided_slice %29 {offsets = [0, 16], sizes = [16, 16], strides = [1, 1]} : vector<16x192xf32> to vector<16x16xf32>
    %cst_16 = arith.constant 2.500000e-01 : f32
    %35 = vector.broadcast %cst_16 : f32 to vector<16x16xf32>
    %36 = arith.mulf %34, %35 : vector<16x16xf32>
    %37 = vector.shape_cast %36 : vector<16x16xf32> to vector<2x1x8x16xf32>
    %38 = vector.extract_strided_slice %29 {offsets = [0, 32], sizes = [16, 16], strides = [1, 1]} : vector<16x192xf32> to vector<16x16xf32>
    %cst_17 = arith.constant 2.500000e-01 : f32
    %39 = vector.broadcast %cst_17 : f32 to vector<16x16xf32>
    %40 = arith.mulf %38, %39 : vector<16x16xf32>
    %41 = vector.shape_cast %40 : vector<16x16xf32> to vector<2x1x8x16xf32>
    %42 = vector.extract_strided_slice %29 {offsets = [0, 48], sizes = [16, 16], strides = [1, 1]} : vector<16x192xf32> to vector<16x16xf32>
    %cst_18 = arith.constant 2.500000e-01 : f32
    %43 = vector.broadcast %cst_18 : f32 to vector<16x16xf32>
    %44 = arith.mulf %42, %43 : vector<16x16xf32>
    %45 = vector.shape_cast %44 : vector<16x16xf32> to vector<2x1x8x16xf32>
    %46 = tpu.concatenate %33, %37, %41, %45 in 1 : vector<2x1x8x16xf32>, vector<2x1x8x16xf32>, vector<2x1x8x16xf32>, vector<2x1x8x16xf32> -> vector<2x4x8x16xf32>
    %47 = vector.shape_cast %46 : vector<2x4x8x16xf32> to vector<8x8x16xf32>
    %48 = arith.truncf %47 : vector<8x8x16xf32> to vector<8x8x16xbf16>
    %49 = vector.extract_strided_slice %29 {offsets = [0, 64], sizes = [16, 16], strides = [1, 1]} : vector<16x192xf32> to vector<16x16xf32>
    %50 = vector.shape_cast %49 : vector<16x16xf32> to vector<2x1x8x16xf32>
    %51 = vector.extract_strided_slice %29 {offsets = [0, 80], sizes = [16, 16], strides = [1, 1]} : vector<16x192xf32> to vector<16x16xf32>
    %52 = vector.shape_cast %51 : vector<16x16xf32> to vector<2x1x8x16xf32>
    %53 = vector.extract_strided_slice %29 {offsets = [0, 96], sizes = [16, 16], strides = [1, 1]} : vector<16x192xf32> to vector<16x16xf32>
    %54 = vector.shape_cast %53 : vector<16x16xf32> to vector<2x1x8x16xf32>
    %55 = vector.extract_strided_slice %29 {offsets = [0, 112], sizes = [16, 16], strides = [1, 1]} : vector<16x192xf32> to vector<16x16xf32>
    %56 = vector.shape_cast %55 : vector<16x16xf32> to vector<2x1x8x16xf32>
    %57 = tpu.concatenate %50, %52, %54, %56 in 1 : vector<2x1x8x16xf32>, vector<2x1x8x16xf32>, vector<2x1x8x16xf32>, vector<2x1x8x16xf32> -> vector<2x4x8x16xf32>
    %58 = vector.shape_cast %57 : vector<2x4x8x16xf32> to vector<8x8x16xf32>
    %59 = arith.truncf %58 : vector<8x8x16xf32> to vector<8x8x16xbf16>
    %60 = vector.extract_strided_slice %29 {offsets = [0, 128], sizes = [16, 16], strides = [1, 1]} : vector<16x192xf32> to vector<16x16xf32>
    %61 = vector.shape_cast %60 : vector<16x16xf32> to vector<2x1x8x16xf32>
    %62 = vector.extract_strided_slice %29 {offsets = [0, 144], sizes = [16, 16], strides = [1, 1]} : vector<16x192xf32> to vector<16x16xf32>
    %63 = vector.shape_cast %62 : vector<16x16xf32> to vector<2x1x8x16xf32>
    %64 = vector.extract_strided_slice %29 {offsets = [0, 160], sizes = [16, 16], strides = [1, 1]} : vector<16x192xf32> to vector<16x16xf32>
    %65 = vector.shape_cast %64 : vector<16x16xf32> to vector<2x1x8x16xf32>
    %66 = vector.extract_strided_slice %29 {offsets = [0, 176], sizes = [16, 16], strides = [1, 1]} : vector<16x192xf32> to vector<16x16xf32>
    %67 = vector.shape_cast %66 : vector<16x16xf32> to vector<2x1x8x16xf32>
    %68 = tpu.concatenate %61, %63, %65, %67 in 1 : vector<2x1x8x16xf32>, vector<2x1x8x16xf32>, vector<2x1x8x16xf32>, vector<2x1x8x16xf32> -> vector<2x4x8x16xf32>
    %69 = vector.shape_cast %68 : vector<2x4x8x16xf32> to vector<8x8x16xf32>
    %70 = arith.truncf %69 : vector<8x8x16xf32> to vector<8x8x16xbf16>
    "tpu.trace_start"() <{level = 10 : i32, message = "bnd,bmd->bnm"}> : () -> ()
    %cst_19 = arith.constant dense<0.000000e+00> : vector<8x8x8xf32>
    %71 = tpu.matmul %48, %59, %cst_19 {dimension_numbers = #tpu.dot_dimension_numbers<[2], [2], [1], [1], [0, 0, 0, 1, 1, 1], [0], [0]>} : vector<8x8x16xbf16>, vector<8x8x16xbf16>, vector<8x8x8xf32> -> vector<8x8x8xf32>
    "tpu.trace_stop"() : () -> ()
    %72 = vector.shape_cast %71 : vector<8x8x8xf32> to vector<2x4x8x8xf32>
    %c0_20 = arith.constant 0 : index
    %c0_21 = arith.constant 0 : index
    %c0_22 = arith.constant 0 : index
    %73 = vector.load %arg8[%c0_20, %c0_21, %c0_22] : memref<4x8x8xf32, #tpu.memory_space<vmem>>, vector<4x8x8xf32>
    %74 = vector.shape_cast %73 : vector<4x8x8xf32> to vector<1x4x8x8xf32>
    %75 = vector.broadcast %74 : vector<1x4x8x8xf32> to vector<2x4x8x8xf32>
    %76 = arith.addf %72, %75 : vector<2x4x8x8xf32>
    %77 = vector.shape_cast %76 : vector<2x4x8x8xf32> to vector<8x8x8xf32>
    %cst_23 = arith.constant dense<0xFF800000> : vector<8x8xf32>
    %78 = vector.multi_reduction <maximumf>, %77, %cst_23 [2] : vector<8x8x8xf32> to vector<8x8xf32>
    %79 = vector.shape_cast %78 : vector<8x8xf32> to vector<8x8x1xf32>
    %80 = vector.broadcast %79 : vector<8x8x1xf32> to vector<8x8x8xf32>
    %81 = arith.subf %77, %80 : vector<8x8x8xf32>
    %82 = math.exp %81 : vector<8x8x8xf32>
    %cst_24 = arith.constant dense<0.000000e+00> : vector<8x8xf32>
    %83 = vector.multi_reduction <add>, %82, %cst_24 [2] : vector<8x8x8xf32> to vector<8x8xf32>
    %84 = vector.shape_cast %83 : vector<8x8xf32> to vector<8x8x1xf32>
    %85 = tpu.reciprocal %84 {approx = true} : vector<8x8x1xf32> -> vector<8x8x1xf32>
    %86 = vector.broadcast %85 : vector<8x8x1xf32> to vector<8x8x8xf32>
    %87 = arith.mulf %82, %86 : vector<8x8x8xf32>
    %88 = arith.truncf %87 : vector<8x8x8xf32> to vector<8x8x8xbf16>
    "tpu.trace_start"() <{level = 10 : i32, message = "bnm,bmd->bnd"}> : () -> ()
    %cst_25 = arith.constant dense<0.000000e+00> : vector<8x8x16xf32>
    %89 = tpu.matmul %88, %70, %cst_25 {dimension_numbers = #tpu.dot_dimension_numbers<[2], [1], [1], [2], [0, 0, 0, 1, 1, 2], [0], [0]>} : vector<8x8x8xbf16>, vector<8x8x16xbf16>, vector<8x8x16xf32> -> vector<8x8x16xf32>
    "tpu.trace_stop"() : () -> ()
    %90 = vector.shape_cast %89 : vector<8x8x16xf32> to vector<2x4x8x16xf32>
    %91 = vector.extract_strided_slice %90 {offsets = [0, 0, 0, 0], sizes = [2, 1, 8, 16], strides = [1, 1, 1, 1]} : vector<2x4x8x16xf32> to vector<2x1x8x16xf32>
    %92 = vector.shape_cast %91 : vector<2x1x8x16xf32> to vector<2x8x16xf32>
    %93 = vector.shape_cast %92 : vector<2x8x16xf32> to vector<16x16xf32>
    %94 = vector.extract_strided_slice %90 {offsets = [0, 1, 0, 0], sizes = [2, 1, 8, 16], strides = [1, 1, 1, 1]} : vector<2x4x8x16xf32> to vector<2x1x8x16xf32>
    %95 = vector.shape_cast %94 : vector<2x1x8x16xf32> to vector<2x8x16xf32>
    %96 = vector.shape_cast %95 : vector<2x8x16xf32> to vector<16x16xf32>
    %97 = vector.extract_strided_slice %90 {offsets = [0, 2, 0, 0], sizes = [2, 1, 8, 16], strides = [1, 1, 1, 1]} : vector<2x4x8x16xf32> to vector<2x1x8x16xf32>
    %98 = vector.shape_cast %97 : vector<2x1x8x16xf32> to vector<2x8x16xf32>
    %99 = vector.shape_cast %98 : vector<2x8x16xf32> to vector<16x16xf32>
    %100 = vector.extract_strided_slice %90 {offsets = [0, 3, 0, 0], sizes = [2, 1, 8, 16], strides = [1, 1, 1, 1]} : vector<2x4x8x16xf32> to vector<2x1x8x16xf32>
    %101 = vector.shape_cast %100 : vector<2x1x8x16xf32> to vector<2x8x16xf32>
    %102 = vector.shape_cast %101 : vector<2x8x16xf32> to vector<16x16xf32>
    %103 = tpu.concatenate %93, %96, %99, %102 in 1 : vector<16x16xf32>, vector<16x16xf32>, vector<16x16xf32>, vector<16x16xf32> -> vector<16x64xf32>
    %104 = arith.truncf %103 : vector<16x64xf32> to vector<16x64xbf16>
    %c0_26 = arith.constant 0 : index
    %c0_27 = arith.constant 0 : index
    %105 = vector.load %arg6[%c0_26, %c0_27] : memref<64x64xbf16, #tpu.memory_space<vmem>>, vector<64x64xbf16>
    %cst_28 = arith.constant dense<0.000000e+00> : vector<16x64xf32>
    %106 = tpu.matmul %104, %105, %cst_28 {dimension_numbers = #tpu.dot_dimension_numbers<[1], [0], [0], [1], [0, 0, 1, 1], [], []>} : vector<16x64xbf16>, vector<64x64xbf16>, vector<16x64xf32> -> vector<16x64xf32>
    %c0_29 = arith.constant 0 : index
    %c0_30 = arith.constant 0 : index
    %107 = vector.load %arg7[%c0_29, %c0_30] : memref<1x64xf32, #tpu.memory_space<vmem>>, vector<1x64xf32>
    %108 = vector.broadcast %107 : vector<1x64xf32> to vector<16x64xf32>
    %109 = arith.addf %106, %108 : vector<16x64xf32>
    %110 = arith.addf %1, %109 : vector<16x64xf32>
    %111 = vector.shape_cast %110 : vector<16x64xf32> to vector<2x8x64xf32>
    %c0_31 = arith.constant 0 : index
    %c0_32 = arith.constant 0 : index
    %c0_33 = arith.constant 0 : index
    %112 = vector.load %arg9[%c0_31, %c0_32, %c0_33] : memref<2x8x64xf32, #tpu.memory_space<vmem>>, vector<2x8x64xf32>
    tpu.vector_store %arg9[%c0_31, %c0_32, %c0_33], %111 {strides = array<i32>} : memref<2x8x64xf32, #tpu.memory_space<vmem>>, vector<2x8x64xf32>,
    return
  }
  func.func @transform_0(%arg0: i32) -> (i32, i32, i32) {
    %c0_i32 = arith.constant 0 : i32
    %c0_i32_0 = arith.constant 0 : i32
    %c0_i32_1 = arith.constant 0 : i32
    %c0_i32_2 = arith.constant 0 : i32
    return %c0_i32, %c0_i32_0, %c0_i32_1 : i32, i32, i32
  }
  func.func @transform_1(%arg0: i32) -> (i32, i32) {
    %c0_i32 = arith.constant 0 : i32
    %c0_i32_0 = arith.constant 0 : i32
    %c0_i32_1 = arith.constant 0 : i32
    return %c0_i32, %c0_i32_0 : i32, i32
  }
  func.func @transform_2(%arg0: i32) -> (i32, i32) {
    %c0_i32 = arith.constant 0 : i32
    %c0_i32_0 = arith.constant 0 : i32
    %c0_i32_1 = arith.constant 0 : i32
    return %c0_i32, %c0_i32_0 : i32, i32
  }
  func.func @transform_3(%arg0: i32) -> (i32, i32) {
    %c0_i32 = arith.constant 0 : i32
    %c0_i32_0 = arith.constant 0 : i32
    %c0_i32_1 = arith.constant 0 : i32
    return %c0_i32, %c0_i32_0 : i32, i32
  }
  func.func @transform_4(%arg0: i32) -> (i32, i32) {
    %c0_i32 = arith.constant 0 : i32
    %c0_i32_0 = arith.constant 0 : i32
    %c0_i32_1 = arith.constant 0 : i32
    return %c0_i32, %c0_i32_0 : i32, i32
  }
  func.func @transform_5(%arg0: i32) -> (i32, i32) {
    %c0_i32 = arith.constant 0 : i32
    %c0_i32_0 = arith.constant 0 : i32
    %c0_i32_1 = arith.constant 0 : i32
    return %c0_i32, %c0_i32_0 : i32, i32
  }
  func.func @transform_6(%arg0: i32) -> (i32, i32) {
    %c0_i32 = arith.constant 0 : i32
    %c0_i32_0 = arith.constant 0 : i32
    %c0_i32_1 = arith.constant 0 : i32
    return %c0_i32, %c0_i32_0 : i32, i32
  }
  func.func @transform_7(%arg0: i32) -> (i32, i32, i32) {
    %c0_i32 = arith.constant 0 : i32
    %c0_i32_0 = arith.constant 0 : i32
    %c0_i32_1 = arith.constant 0 : i32
    %c0_i32_2 = arith.constant 0 : i32
    return %c0_i32, %c0_i32_0, %c0_i32_1 : i32, i32, i32
  }
  func.func @transform_8(%arg0: i32) -> (i32, i32, i32) {
    %c0_i32 = arith.constant 0 : i32
    %c0_i32_0 = arith.constant 0 : i32
    %c0_i32_1 = arith.constant 0 : i32
    %c0_i32_2 = arith.constant 0 : i32
    return %c0_i32, %c0_i32_0, %c0_i32_1 : i32, i32, i32
  }
}

module attributes {stable_mosaic.version = 11 : i64} {
  func.func @_norm_pool_head_kernel(%arg0: i32, %arg1: memref<2x8x64xf32, #tpu.memory_space<vmem>>, %arg2: memref<1x64xf32, #tpu.memory_space<vmem>>, %arg3: memref<1x64xf32, #tpu.memory_space<vmem>>, %arg4: memref<64x1xf32, #tpu.memory_space<vmem>>, %arg5: memref<1x1xf32, #tpu.memory_space<vmem>>, %arg6: memref<2x1xf32, #tpu.memory_space<vmem>>) attributes {dimension_semantics = [#tpu.dimension_semantics<arbitrary>], iteration_bounds = array<i64: 1>, scalar_prefetch = 0 : i64, scratch_operands = 0 : i64, tpu.core_type = #tpu.core_type<tc>, window_params = [{pipeline_mode = #tpu.pipeline_mode<synchronous>, transform_indices = @transform_0, window_bounds = array<i64: 2, 8, 64>}, {pipeline_mode = #tpu.pipeline_mode<synchronous>, transform_indices = @transform_1, window_bounds = array<i64: 1, 64>}, {pipeline_mode = #tpu.pipeline_mode<synchronous>, transform_indices = @transform_2, window_bounds = array<i64: 1, 64>}, {pipeline_mode = #tpu.pipeline_mode<synchronous>, transform_indices = @transform_3, window_bounds = array<i64: 64, 1>}, {pipeline_mode = #tpu.pipeline_mode<synchronous>, transform_indices = @transform_4, window_bounds = array<i64: 1, 1>}, {pipeline_mode = #tpu.pipeline_mode<synchronous>, transform_indices = @transform_5, window_bounds = array<i64: 2, 1>}]} {
    %c0 = arith.constant 0 : index
    %c0_0 = arith.constant 0 : index
    %c0_1 = arith.constant 0 : index
    %0 = vector.load %arg1[%c0, %c0_0, %c0_1] : memref<2x8x64xf32, #tpu.memory_space<vmem>>, vector<2x8x64xf32>
    %cst = arith.constant dense<0.000000e+00> : vector<2x8xf32>
    %1 = vector.multi_reduction <add>, %0, %cst [2] : vector<2x8x64xf32> to vector<2x8xf32>
    %2 = vector.shape_cast %1 : vector<2x8xf32> to vector<2x8x1xf32>
    %cst_2 = arith.constant 6.400000e+01 : f32
    %3 = vector.broadcast %cst_2 : f32 to vector<2x8x1xf32>
    %4 = arith.divf %2, %3 : vector<2x8x1xf32>
    %5 = vector.broadcast %4 : vector<2x8x1xf32> to vector<2x8x64xf32>
    %6 = arith.subf %0, %5 : vector<2x8x64xf32>
    %7 = arith.mulf %6, %6 : vector<2x8x64xf32>
    %cst_3 = arith.constant dense<0.000000e+00> : vector<2x8xf32>
    %8 = vector.multi_reduction <add>, %7, %cst_3 [2] : vector<2x8x64xf32> to vector<2x8xf32>
    %9 = vector.shape_cast %8 : vector<2x8xf32> to vector<2x8x1xf32>
    %cst_4 = arith.constant 6.400000e+01 : f32
    %10 = vector.broadcast %cst_4 : f32 to vector<2x8x1xf32>
    %11 = arith.divf %9, %10 : vector<2x8x1xf32>
    %cst_5 = arith.constant 9.99999974E-6 : f32
    %12 = vector.broadcast %cst_5 : f32 to vector<2x8x1xf32>
    %13 = arith.addf %11, %12 : vector<2x8x1xf32>
    %14 = math.rsqrt %13 : vector<2x8x1xf32>
    %15 = vector.broadcast %14 : vector<2x8x1xf32> to vector<2x8x64xf32>
    %16 = arith.mulf %6, %15 : vector<2x8x64xf32>
    %c0_6 = arith.constant 0 : index
    %c0_7 = arith.constant 0 : index
    %17 = vector.load %arg2[%c0_6, %c0_7] : memref<1x64xf32, #tpu.memory_space<vmem>>, vector<1x64xf32>
    %18 = vector.shape_cast %17 : vector<1x64xf32> to vector<64xf32>
    %19 = vector.shape_cast %18 : vector<64xf32> to vector<1x1x64xf32>
    %20 = vector.broadcast %19 : vector<1x1x64xf32> to vector<2x8x64xf32>
    %21 = arith.mulf %16, %20 : vector<2x8x64xf32>
    %c0_8 = arith.constant 0 : index
    %c0_9 = arith.constant 0 : index
    %22 = vector.load %arg3[%c0_8, %c0_9] : memref<1x64xf32, #tpu.memory_space<vmem>>, vector<1x64xf32>
    %23 = vector.shape_cast %22 : vector<1x64xf32> to vector<64xf32>
    %24 = vector.shape_cast %23 : vector<64xf32> to vector<1x1x64xf32>
    %25 = vector.broadcast %24 : vector<1x1x64xf32> to vector<2x8x64xf32>
    %26 = arith.addf %21, %25 : vector<2x8x64xf32>
    %cst_10 = arith.constant dense<0.000000e+00> : vector<2x64xf32>
    %27 = vector.multi_reduction <add>, %26, %cst_10 [1] : vector<2x8x64xf32> to vector<2x64xf32>
    %cst_11 = arith.constant 8.000000e+00 : f32
    %28 = vector.broadcast %cst_11 : f32 to vector<2x64xf32>
    %29 = arith.divf %27, %28 : vector<2x64xf32>
    %c0_12 = arith.constant 0 : index
    %c0_13 = arith.constant 0 : index
    %30 = vector.load %arg4[%c0_12, %c0_13] : memref<64x1xf32, #tpu.memory_space<vmem>>, vector<64x1xf32>
    %cst_14 = arith.constant dense<0.000000e+00> : vector<2x1xf32>
    %31 = tpu.matmul %29, %30, %cst_14 {dimension_numbers = #tpu.dot_dimension_numbers<[1], [0], [0], [1], [0, 0, 1, 1], [], []>} : vector<2x64xf32>, vector<64x1xf32>, vector<2x1xf32> -> vector<2x1xf32>
    %c0_15 = arith.constant 0 : index
    %c0_16 = arith.constant 0 : index
    %32 = vector.load %arg5[%c0_15, %c0_16] : memref<1x1xf32, #tpu.memory_space<vmem>>, vector<1x1xf32>
    %33 = vector.broadcast %32 : vector<1x1xf32> to vector<2x1xf32>
    %34 = arith.addf %31, %33 : vector<2x1xf32>
    %c0_17 = arith.constant 0 : index
    %c0_18 = arith.constant 0 : index
    %35 = vector.load %arg6[%c0_17, %c0_18] : memref<2x1xf32, #tpu.memory_space<vmem>>, vector<2x1xf32>
    tpu.vector_store %arg6[%c0_17, %c0_18], %34 {strides = array<i32>} : memref<2x1xf32, #tpu.memory_space<vmem>>, vector<2x1xf32>,
    return
  }
  func.func @transform_0(%arg0: i32) -> (i32, i32, i32) {
    %c0_i32 = arith.constant 0 : i32
    %c0_i32_0 = arith.constant 0 : i32
    %c0_i32_1 = arith.constant 0 : i32
    %c0_i32_2 = arith.constant 0 : i32
    return %c0_i32, %c0_i32_0, %c0_i32_1 : i32, i32, i32
  }
  func.func @transform_1(%arg0: i32) -> (i32, i32) {
    %c0_i32 = arith.constant 0 : i32
    %c0_i32_0 = arith.constant 0 : i32
    %c0_i32_1 = arith.constant 0 : i32
    return %c0_i32, %c0_i32_0 : i32, i32
  }
  func.func @transform_2(%arg0: i32) -> (i32, i32) {
    %c0_i32 = arith.constant 0 : i32
    %c0_i32_0 = arith.constant 0 : i32
    %c0_i32_1 = arith.constant 0 : i32
    return %c0_i32, %c0_i32_0 : i32, i32
  }
  func.func @transform_3(%arg0: i32) -> (i32, i32) {
    %c0_i32 = arith.constant 0 : i32
    %c0_i32_0 = arith.constant 0 : i32
    %c0_i32_1 = arith.constant 0 : i32
    return %c0_i32, %c0_i32_0 : i32, i32
  }
  func.func @transform_4(%arg0: i32) -> (i32, i32) {
    %c0_i32 = arith.constant 0 : i32
    %c0_i32_0 = arith.constant 0 : i32
    %c0_i32_1 = arith.constant 0 : i32
    return %c0_i32, %c0_i32_0 : i32, i32
  }
  func.func @transform_5(%arg0: i32) -> (i32, i32) {
    %c0_i32 = arith.constant 0 : i32
    %c0_i32_0 = arith.constant 0 : i32
    %c0_i32_1 = arith.constant 0 : i32
    return %c0_i32, %c0_i32_0 : i32, i32
  }
}

</mosaic_0001>

<bundles_post_ra>
// kernel: video_swin_forward.11
= control target key start
LH: loop header
LB: loop body
LE: loop exit
PB: predicated region body
PF: predicated region fallthrough
CT: control target
= control target key end

     0   :  { %s588_s18 = smov 0   ;;  %s653_s0 = inlined_call_operand.vmem [shape: f32[64,96], index: 0, kind: input, shape index: {}]   ;;  %s654_s1 = inlined_call_operand.vmem [shape: bf16[96,32], index: 1, kind: input, shape index: {}]   ;;  %s655_s2 = inlined_call_operand.vmem [shape: f32[1,32], index: 2, kind: input, shape index: {}]   ;;  %s656_s3 = inlined_call_operand.vmem [shape: f32[1,32], index: 3, kind: input, shape index: {}]   ;;  %s657_s4 = inlined_call_operand.vmem [shape: f32[1,32], index: 4, kind: input, shape index: {}]   ;;  %s658_s5 = inlined_call_operand.vmem [shape: f32[64,32], index: 5, kind: output, shape index: {}]  }
   0x1 LB: > { %s482_s19 = sadd.s32 4294967295, %s556_s18   ;;  %p486_p0 = scmp.ge.s32.totalorder %s556_s18, 1  ;;  %s556_s18 = sphi %s588_s18, %s15_s18  }
   0x2   : > { %p188_p1 = scmp.lt.s32.totalorder %s556_s18, 3 }
   0x4   : > { %p189_p2 = pnand %p486_p0, %p188_p1 }
   0x5   : > { %v536_v0 = vld [vmem:[%s654_s1] sm:$0xff] (!%p189_p2)   ;;  %s487_s22 = sshll.u32 (!%p189_p2), %s482_s19, 2  ;;  %v537_v1 = vld [vmem:[%s654_s1 + $0x8] sm:$0xff] (!%p189_p2)   ;;  %v538_v2 = vld [vmem:[%s654_s1 + $0x10] sm:$0xff] (!%p189_p2)   ;;  %vm290_vm0 = vcmask (!%p189_p2), 785408   ;;  %vm346_vm1 = vcmask (!%p189_p2), 261120  }
   0x6   : > { %192 = sbr.rel (%p189_p2) target bundleno = 567 (0x237), region = 40  ;;  %p217_p3 = scmp.lt.s32.totalorder (!%p189_p2), %s487_s22, 7  ;;  %512 = vmatprep.subr.bf16.mxu0 (!%p189_p2), %v536_v0  ;;  %v539_v5 = vld [vmem:[%s654_s1 + $0x18] sm:$0xff] (!%p189_p2)   ;;  %v540_v7 = vld [vmem:[%s654_s1 + $0x20] sm:$0xff] (!%p189_p2)   ;;  %v541_v8 = vld [vmem:[%s654_s1 + $0x28] sm:$0xff] (!%p189_p2)  }
   0x7   : > { %513 = vmatpush3.bf16.msra.mxu0 (!%p189_p2), %v536_v0  ;;  %v491_v12 = vld [vmem:[%s655_s2] ss:$0 sm:$0xff] (!%p189_p2) }
   0x8   : > { %514 = vmatprep.subr.bf16.mxu0 (!%p189_p2), %v537_v1  ;;  %v500_v58 = vld [vmem:[%s656_s3] ss:$0 sm:$0xff] (!%p189_p2) }
   0x9   : > { %v501_v60 = vld [vmem:[%s657_s4] ss:$0 sm:$0xff] (!%p189_p2) }
   0xb   : > { %515 = vmatpush3.bf16.msra.mxu0 (!%p189_p2), %v537_v1 }
   0xc   : > { %516 = vmatprep.subr.bf16.mxu0 (!%p189_p2), %v538_v2 }
   0xd   : > { %s660_s22 = smov (!%p217_p3, %s487_s22), 7 }
   0xe   : > { %s488_s27 = sshll.u32 %s660_s22, 3 }
   0xf   : > { %s220_s30 = scalar_lea.vmem %s653_s0, %s488_s27  ;;  %517 = vmatpush3.bf16.msra.mxu0 %v538_v2  ;;  %s226_s21 = scalar_lea.vmem %s658_s5, %s488_s27 }
  0x10   : > { %v229_v3 = vld [vmem:[%s220_s30] sm:$0xff]  ;;  %v230_v4 = vld [vmem:[%s220_s30 + $0x8] sm:$0xff]  ;;  %518 = vmatprep.subr.bf16.mxu0 %v539_v5  ;;  %v231_v9 = vld [vmem:[%s220_s30 + $0x10] sm:$0xff] }
  0x11   : > { %v233_v6 = vpack.c.bf16 %v230_v4, %v229_v3  ;;  %v232_v10 = vld [vmem:[%s220_s30 + $0x18] sm:$0xff] }
  0x12   : > { %v234_v11 = vpack.c.bf16 %v232_v10, %v231_v9 }
  0x13   : > { %524 = vmatprep.mubr.msk.bf16.mxu0 %vm290_vm0, %v233_v6  ;;  %519 = vmatpush3.bf16.msra.mxu0 %v539_v5 }
  0x14   : > { %520 = vmatprep.subr.bf16.mxu0 %v540_v7 }
  0x17   : > { %521 = vmatpush3.bf16.msra.mxu0 %v540_v7 }
  0x18   : > { %522 = vmatprep.subr.bf16.mxu0 %v541_v8 }
  0x1b   : > { %523 = vmatpush3.bf16.msra.mxu0 %v541_v8 }
  0x1e   : > { %525 = vmatmul.mubr.msk.bf16.vlgmr.msra.gmra.mrb[0].mxu0 %vm290_vm0, %v234_v11 }
  0xf1   : > { %v526_v13 = vpop.f32.mrb[0].mxu0 }
  0xf2   : > { %v340_v14 = vadd.f32 %v526_v13, %v491_v12  ;;  %v331_v15 = vpop.f32.mrb[1].mxu0 }
  0xf3   : > { %v332_v16 = vadd.f32 %v491_v12, %v331_v15  ;;  %v527_v17 = vpop.f32.mrb[2].mxu0 }
  0xf4   : > { %v343_v18 = vadd.f32 %v527_v17, %v491_v12  ;;  %v334_v19 = vpop.f32.mrb[3].mxu0  ;;  %v353_v20 = vsel %vm346_vm1, %v340_v14, 0.0 }
  0xf5   : > { %v335_v21 = vadd.f32 %v491_v12, %v334_v19  ;;  %354 = vadd.xlane.f32.xlu1 %v353_v20  ;;  %v347_v22 = vsel %vm346_vm1, %v332_v16, 0.0 }
  0xf6   : > { %348 = vadd.xlane.f32.xlu0 %v347_v22  ;;  %v356_v23 = vsel %vm346_vm1, %v343_v18, 0.0 }
  0xf7   : > { %v350_v24 = vsel %vm346_vm1, %v335_v21, 0.0 }
  0xf9   : > { %357 = vadd.xlane.f32.xlu1 %v356_v23 }
  0xfa   : > { %351 = vadd.xlane.f32.xlu0 %v350_v24 }
 0x182   : > { %v355_v25 = vpop.xlane.xlu1 %354 }
 0x183   : > { %v362_v26 = vmul.f32 0.03125, %v355_v25  ;;  %v349_v27 = vpop.xlane.xlu0 %348 }
 0x184   : > { %v360_v28 = vmul.f32 0.03125, %v349_v27 }
 0x185   : > { %v366_v29 = vsub.f32 %v340_v14, %v362_v26 }
 0x186   : > { %v364_v30 = vsub.f32 %v332_v16, %v360_v28  ;;  %v358_v31 = vpop.xlane.xlu1 %357 }
 0x187   : > { %v363_v32 = vmul.f32 0.03125, %v358_v31  ;;  %v352_v33 = vpop.xlane.xlu0 %351  ;;  %v370_v39 = vmul.f32 %v366_v29, %v366_v29 }
 0x188   : > { %v361_v34 = vmul.f32 0.03125, %v352_v33  ;;  %v368_v35 = vmul.f32 %v364_v30, %v364_v30 }
 0x189   : > { %v367_v36 = vsub.f32 %v343_v18, %v363_v32  ;;  %v378_v41 = vsel %vm346_vm1, %v370_v39, 0.0 }
 0x18a   : > { %v365_v37 = vsub.f32 %v335_v21, %v361_v34  ;;  %v372_v38 = vsel %vm346_vm1, %v368_v35, 0.0 }
 0x18b   : > { %373 = vadd.xlane.f32.xlu0 %v372_v38  ;;  %v371_v43 = vmul.f32 %v367_v36, %v367_v36 }
 0x18c   : > { %v369_v40 = vmul.f32 %v365_v37, %v365_v37 }
 0x18d   : > { %v381_v44 = vsel %vm346_vm1, %v371_v43, 0.0 }
 0x18e   : > { %v375_v42 = vsel %vm346_vm1, %v369_v40, 0.0 }
 0x18f   : > { %379 = vadd.xlane.f32.xlu0 %v378_v41  ;;  %376 = vadd.xlane.f32.xlu1 %v375_v42 }
 0x193   : > { %382 = vadd.xlane.f32.xlu1 %v381_v44 }
 0x218   : > { %v374_v45 = vpop.xlane.xlu0 %373 }
 0x219   : > { %v384_v46 = vmul.f32 0.03125, %v374_v45 }
 0x21b   : > { %v388_v47 = vadd.f32 1e-05, %v384_v46 }
 0x21c   : > { %v377_v48 = vpop.xlane.xlu1 %376  ;;  %v380_v49 = vpop.xlane.xlu0 %379 }
 0x21d   : > { %542 = vrsqrt.f32 %v388_v47  ;;  %v385_v50 = vmul.f32 0.03125, %v377_v48  ;;  %v386_v51 = vmul.f32 0.03125, %v380_v49 }
 0x21f   : > { %v389_v52 = vadd.f32 1e-05, %v385_v50  ;;  %v390_v53 = vadd.f32 1e-05, %v386_v51 }
 0x220   : > { %v383_v54 = vpop.xlane.xlu1 %382 }
 0x221   : > { %544 = vrsqrt.f32 %v389_v52  ;;  %v387_v55 = vmul.f32 0.03125, %v383_v54 }
 0x222   : > { %546 = vrsqrt.f32 %v390_v53 }
 0x223   : > { %v391_v56 = vadd.f32 1e-05, %v387_v55 }
 0x225   : > { %548 = vrsqrt.f32 %v391_v56 }
 0x227   : > { %v543_v57 = vpop.eup %542 }
 0x228   : > { %v396_v59 = vmul.f32 %v543_v57, %v364_v30 }
 0x22a   : > { %v407_v61 = vmul.f32 %v500_v58, %v396_v59 }
 0x22b   : > { %v545_v62 = vpop.eup %544 }
 0x22c   : > { %v547_v63 = vpop.eup %546  ;;  %v418_v0 = vadd.f32 %v501_v60, %v407_v61  ;;  %v397_v1 = vmul.f32 %v545_v62, %v365_v37 }
 0x22d   : > { %v398_v2 = vmul.f32 %v547_v63, %v366_v29 }
 0x22e   : > { %422 = vst.msk [vmem:[%s226_s21] sm:$0xff] %vm346_vm1, %v418_v0  ;;  %v408_v3 = vmul.f32 %v500_v58, %v397_v1 }
 0x22f   : > { %v549_v4 = vpop.eup %548  ;;  %v409_v5 = vmul.f32 %v500_v58, %v398_v2 }
 0x230   : > { %v419_v6 = vadd.f32 %v501_v60, %v408_v3  ;;  %v399_v7 = vmul.f32 %v549_v4, %v367_v36 }
 0x231   : > { %v420_v8 = vadd.f32 %v501_v60, %v409_v5 }
 0x232   : > { %423 = vst.msk [vmem:[%s226_s21 + $0x8] sm:$0xff] %vm346_vm1, %v419_v6  ;;  %v410_v9 = vmul.f32 %v500_v58, %v399_v7 }
 0x233   : > { %424 = vst.msk [vmem:[%s226_s21 + $0x10] sm:$0xff] %vm346_vm1, %v420_v8 }
 0x234   : > { %v421_v10 = vadd.f32 %v501_v60, %v410_v9 }
 0x236   : > { %425 = vst.msk [vmem:[%s226_s21 + $0x18] sm:$0xff] %vm346_vm1, %v421_v10 }
 0x237 PF: > { %s15_s18 = sadd.s32 1, %s556_s18  }
 0x238   : > { %p12_p4 = scmp.ge.s32.totalorder %s15_s18, 4  }
 0x23a   :  { %14 = sbr.rel (!%p12_p4) target bundleno = 1 (0x1), region = 70 }

// kernel: video_swin_forward.13
= control target key start
LH: loop header
LB: loop body
LE: loop exit
PB: predicated region body
PF: predicated region fallthrough
CT: control target
= control target key end

     0   :  { %s816_s24 = smov 0   ;;  %s916_s0 = inlined_call_operand.vmem [shape: f32[64,32], index: 0, kind: input, shape index: {}]   ;;  %s917_s1 = inlined_call_operand.vmem [shape: f32[1,32], index: 1, kind: input, shape index: {}]   ;;  %s918_s2 = inlined_call_operand.vmem [shape: f32[1,32], index: 2, kind: input, shape index: {}]   ;;  %s919_s3 = inlined_call_operand.vmem [shape: bf16[32,128], index: 3, kind: input, shape index: {}]   ;;  %s920_s4 = inlined_call_operand.vmem [shape: f32[1,128], index: 4, kind: input, shape index: {}]   ;;  %s921_s5 = inlined_call_operand.vmem [shape: bf16[128,32], index: 5, kind: input, shape index: {}]   ;;  %s922_s6 = inlined_call_operand.vmem [shape: f32[1,32], index: 6, kind: input, shape index: {}]   ;;  %s923_s7 = inlined_call_operand.vmem [shape: f32[64,32], index: 7, kind: output, shape index: {}]  }
   0x1 LB: > { %s665_s25 = sadd.s32 4294967295, %s774_s24   ;;  %p669_p0 = scmp.ge.s32.totalorder %s774_s24, 1  ;;  %s774_s24 = sphi %s816_s24, %s17_s24  }
   0x2   : > { %p238_p1 = scmp.lt.s32.totalorder %s774_s24, 3 }
   0x4   : > { %p239_p2 = pnand %p669_p0, %p238_p1 }
   0x5   : > { %s670_s26 = sshll.u32 (!%p239_p2), %s665_s25, 2  ;;  %vm287_vm0 = vcmask (!%p239_p2), 261120   ;;  %v742_v28 = vld [vmem:[%s919_s3] sm:$0xff] (!%p239_p2)   ;;  %v743_v29 = vld [vmem:[%s919_s3 + $0x8] sm:$0xff] (!%p239_p2)  }
   0x6   : > { %242 = sbr.rel (%p239_p2) target bundleno = 807 (0x327), region = 48  ;;  %p271_p3 = scmp.lt.s32.totalorder (!%p239_p2), %s670_s26, 7  ;;  %706 = vmatprep.subr.bf16.mxu0 (!%p239_p2), %v742_v28  ;;  %v674_v44 = vld [vmem:[%s917_s1] ss:$0 sm:$0xff] (!%p239_p2)  ;;  %v745_v63 = vld [vmem:[%s921_s5 + $0x8] sm:$0xff] (!%p239_p2)  }
   0x7   : > { %707 = vmatpush3.bf16.msra.mxu0 (!%p239_p2), %v742_v28  ;;  %v675_v50 = vld [vmem:[%s918_s2] ss:$0 sm:$0xff] (!%p239_p2) }
   0x8   : > { %708 = vmatprep.subr.bf16.mxu0 (!%p239_p2), %v743_v29  ;;  %v744_v62 = vld [vmem:[%s921_s5] sm:$0xff] (!%p239_p2)  }
   0x9   : > { %714 = vmatprep.subr.bf16.mxu1 (!%p239_p2), %v744_v62 }
   0xa   : > { %715 = vmatpush3.bf16.msra.mxu1 (!%p239_p2), %v744_v62 }
   0xb   : > { %709 = vmatpush3.bf16.msra.mxu0 (!%p239_p2), %v743_v29  ;;  %716 = vmatprep.subr.bf16.mxu1 (!%p239_p2), %v745_v63 }
   0xd   : > { %s925_s26 = smov (!%p271_p3, %s670_s26), 7 }
   0xe   : > { %s671_s27 = sshll.u32 %s925_s26, 3  ;;  %717 = vmatpush3.bf16.msra.mxu1 %v745_v63 }
   0xf   : > { %s274_s30 = scalar_lea.vmem %s916_s0, %s671_s27  ;;  %s280_s18 = scalar_lea.vmem %s923_s7, %s671_s27 }
  0x10   : > { %v832_v0 = vld [vmem:[%s274_s30] sm:$0xff]  ;;  %v834_v1 = vld [vmem:[%s274_s30 + $0x10] sm:$0xff]  ;;  %v836_v2 = vld [vmem:[%s274_s30 + $0x8] sm:$0xff] }
  0x11   : > { %v288_v3 = vsel %vm287_vm0, %v832_v0, 0.0  ;;  %v294_v4 = vsel %vm287_vm0, %v834_v1, 0.0  ;;  %v842_v5 = vld [vmem:[%s274_s30 + $0x18] sm:$0xff]  ;;  %v291_v6 = vsel %vm287_vm0, %v836_v2, 0.0 }
  0x12   : > { %289 = vadd.xlane.f32.xlu0 %v288_v3  ;;  %295 = vadd.xlane.f32.xlu1 %v294_v4  ;;  %v297_v7 = vsel %vm287_vm0, %v842_v5, 0.0  ;;  %v746_v3 = vld [vmem:[%s921_s5 + $0x10] sm:$0xff]   ;;  %v747_v4 = vld [vmem:[%s921_s5 + $0x18] sm:$0xff]  }
  0x13   : > { %718 = vmatprep.subr.bf16.mxu1 %v746_v3 }
  0x14   : > { %719 = vmatpush3.bf16.msra.mxu1 %v746_v3 }
  0x15   : > { %720 = vmatprep.subr.bf16.mxu1 %v747_v4 }
  0x16   : > { %292 = vadd.xlane.f32.xlu0 %v291_v6  ;;  %298 = vadd.xlane.f32.xlu1 %v297_v7  ;;  %v748_v6 = vld [vmem:[%s921_s5 + $0x20] sm:$0xff]   ;;  %v749_v7 = vld [vmem:[%s921_s5 + $0x28] sm:$0xff]  }
  0x18   : > { %721 = vmatpush3.bf16.msra.mxu1 %v747_v4 }
  0x19   : > { %722 = vmatprep.subr.bf16.mxu1 %v748_v6 }
  0x1c   : > { %723 = vmatpush3.bf16.msra.mxu1 %v748_v6 }
  0x1d   : > { %724 = vmatprep.subr.bf16.mxu1 %v749_v7 }
  0x20   : > { %725 = vmatpush3.bf16.msra.mxu1 %v749_v7 }
  0x9f   : > { %v290_v8 = vpop.xlane.xlu0 %289  ;;  %v296_v9 = vpop.xlane.xlu1 %295 }
  0xa0   : > { %v301_v10 = vmul.f32 0.03125, %v290_v8  ;;  %v303_v11 = vmul.f32 0.03125, %v296_v9  ;;  %v750_v8 = vld [vmem:[%s921_s5 + $0x30] sm:$0xff]   ;;  %v751_v9 = vld [vmem:[%s921_s5 + $0x38] sm:$0xff]  }
  0xa1   : > { %726 = vmatprep.subr.bf16.mxu1 %v750_v8 }
  0xa2   : > { %v305_v12 = vsub.f32 %v832_v0, %v301_v10  ;;  %v307_v13 = vsub.f32 %v834_v1, %v303_v11  ;;  %727 = vmatpush3.bf16.msra.mxu1 %v750_v8  ;;  %v676_v10 = vld [vmem:[%s920_s4] ss:$0 sm:$0xff] }
  0xa3   : > { %v293_v14 = vpop.xlane.xlu0 %292  ;;  %v299_v15 = vpop.xlane.xlu1 %298  ;;  %728 = vmatprep.subr.bf16.mxu1 %v751_v9 }
  0xa4   : > { %v302_v16 = vmul.f32 0.03125, %v293_v14  ;;  %v304_v17 = vmul.f32 0.03125, %v299_v15  ;;  %v309_v18 = vmul.f32 %v305_v12, %v305_v12  ;;  %v311_v19 = vmul.f32 %v307_v13, %v307_v13 }
  0xa6   : > { %v306_v20 = vsub.f32 %v836_v2, %v302_v16  ;;  %v308_v21 = vsub.f32 %v842_v5, %v304_v17  ;;  %v313_v22 = vsel %vm287_vm0, %v309_v18, 0.0  ;;  %v319_v23 = vsel %vm287_vm0, %v311_v19, 0.0  ;;  %729 = vmatpush3.bf16.msra.mxu1 %v751_v9 }
  0xa7   : > { %314 = vadd.xlane.f32.xlu0 %v313_v22 }
  0xa8   : > { %v310_v24 = vmul.f32 %v306_v20, %v306_v20  ;;  %v312_v25 = vmul.f32 %v308_v21, %v308_v21 }
  0xaa   : > { %v316_v26 = vsel %vm287_vm0, %v310_v24, 0.0  ;;  %v322_v27 = vsel %vm287_vm0, %v312_v25, 0.0 }
  0xab   : > { %320 = vadd.xlane.f32.xlu0 %v319_v23  ;;  %317 = vadd.xlane.f32.xlu1 %v316_v26 }
  0xaf   : > { %323 = vadd.xlane.f32.xlu1 %v322_v27 }
 0x134   : > { %v315_v30 = vpop.xlane.xlu0 %314 }
 0x135   : > { %v325_v31 = vmul.f32 0.03125, %v315_v30 }
 0x137   : > { %v329_v32 = vadd.f32 1e-05, %v325_v31 }
 0x138   : > { %v318_v33 = vpop.xlane.xlu1 %317  ;;  %v321_v34 = vpop.xlane.xlu0 %320 }
 0x139   : > { %752 = vrsqrt.f32 %v329_v32  ;;  %v326_v35 = vmul.f32 0.03125, %v318_v33  ;;  %v327_v36 = vmul.f32 0.03125, %v321_v34 }
 0x13b   : > { %v330_v37 = vadd.f32 1e-05, %v326_v35  ;;  %v331_v38 = vadd.f32 1e-05, %v327_v36 }
 0x13c   : > { %v324_v39 = vpop.xlane.xlu1 %323 }
 0x13d   : > { %754 = vrsqrt.f32 %v330_v37  ;;  %v328_v40 = vmul.f32 0.03125, %v324_v39 }
 0x13e   : > { %756 = vrsqrt.f32 %v331_v38 }
 0x13f   : > { %v332_v41 = vadd.f32 1e-05, %v328_v40 }
 0x141   : > { %758 = vrsqrt.f32 %v332_v41 }
 0x143   : > { %v753_v42 = vpop.eup %752 }
 0x144   : > { %v337_v43 = vmul.f32 %v753_v42, %v305_v12 }
 0x146   : > { %v348_v48 = vmul.f32 %v674_v44, %v337_v43 }
 0x147   : > { %v755_v45 = vpop.eup %754 }
 0x148   : > { %v757_v46 = vpop.eup %756  ;;  %v338_v47 = vmul.f32 %v755_v45, %v306_v20  ;;  %v359_v54 = vadd.f32 %v675_v50, %v348_v48 }
 0x149   : > { %v339_v49 = vmul.f32 %v757_v46, %v307_v13 }
 0x14a   : > { %v349_v51 = vmul.f32 %v674_v44, %v338_v47 }
 0x14b   : > { %v759_v52 = vpop.eup %758  ;;  %v350_v56 = vmul.f32 %v674_v44, %v339_v49 }
 0x14c   : > { %v340_v53 = vmul.f32 %v759_v52, %v308_v21  ;;  %v360_v55 = vadd.f32 %v675_v50, %v349_v51 }
 0x14d   : > { %v361_v59 = vadd.f32 %v675_v50, %v350_v56 }
 0x14e   : > { %v363_v57 = vpack.c.bf16 %v360_v55, %v359_v54  ;;  %v351_v58 = vmul.f32 %v674_v44, %v340_v53 }
 0x150   : > { %710 = vmatprep.mubr.msk.bf16.mxu0 %vm287_vm0, %v363_v57  ;;  %v362_v60 = vadd.f32 %v675_v50, %v351_v58  ;;  %v681_v57 = vld [vmem:[%s922_s6] ss:$0 sm:$0xff] }
 0x152   : > { %v364_v61 = vpack.c.bf16 %v362_v60, %v361_v59 }
 0x154   : > { %711 = vmatmul.mubr.msk.bf16.vlgmr.msra.gmra.mrb[0].mxu0 %vm287_vm0, %v364_v61 }
 0x227   : > { %v712_v11 = vpop.f32.mrb[0].mxu0 }
 0x228   : > { %v437_v12 = vadd.f32 %v712_v11, %v676_v10  ;;  %v428_v13 = vpop.f32.mrb[1].mxu0 }
 0x229   : > { %v429_v14 = vadd.f32 %v676_v10, %v428_v13  ;;  %v713_v15 = vpop.f32.mrb[2].mxu0 }
 0x22a   : > { %v445_v16 = vmul.f32 %v437_v12, %v437_v12  ;;  %v440_v17 = vadd.f32 %v713_v15, %v676_v10  ;;  %v431_v18 = vpop.f32.mrb[3].mxu0 }
 0x22b   : > { %v443_v19 = vmul.f32 %v429_v14, %v429_v14  ;;  %v432_v20 = vadd.f32 %v676_v10, %v431_v18 }
 0x22c   : > { %v449_v21 = vmul.f32 %v445_v16, %v437_v12  ;;  %v446_v22 = vmul.f32 %v440_v17, %v440_v17 }
 0x22d   : > { %v447_v23 = vmul.f32 %v443_v19, %v429_v14  ;;  %v444_v24 = vmul.f32 %v432_v20, %v432_v20 }
 0x22e   : > { %v453_v25 = vmul.f32 0.044715, %v449_v21  ;;  %v450_v26 = vmul.f32 %v446_v22, %v440_v17 }
 0x22f   : > { %v451_v27 = vmul.f32 0.044715, %v447_v23  ;;  %v448_v28 = vmul.f32 %v444_v24, %v432_v20 }
 0x230   : > { %v457_v29 = vadd.f32 %v453_v25, %v437_v12  ;;  %v454_v30 = vmul.f32 0.044715, %v450_v26 }
 0x231   : > { %v452_v31 = vmul.f32 0.044715, %v448_v28  ;;  %v455_v32 = vadd.f32 %v451_v27, %v429_v14 }
 0x232   : > { %v461_v33 = vmul.f32 0.7978846, %v457_v29  ;;  %v458_v34 = vadd.f32 %v454_v30, %v440_v17 }
 0x233   : > { %v456_v35 = vadd.f32 %v452_v31, %v432_v20  ;;  %v459_v36 = vmul.f32 0.7978846, %v455_v32 }
 0x234   : > { %760 = vtanh.f32 %v461_v33  ;;  %v462_v37 = vmul.f32 0.7978846, %v458_v34 }
 0x235   : > { %v460_v38 = vmul.f32 0.7978846, %v456_v35  ;;  %762 = vtanh.f32 %v459_v36 }
 0x236   : > { %764 = vtanh.f32 %v462_v37 }
 0x237   : > { %766 = vtanh.f32 %v460_v38 }
 0x23e   : > { %v761_v39 = vpop.eup %760 }
 0x23f   : > { %v763_v40 = vpop.eup %762  ;;  %v469_v41 = vadd.f32 1.0, %v761_v39 }
 0x240   : > { %v765_v42 = vpop.eup %764  ;;  %v467_v43 = vadd.f32 1.0, %v763_v40 }
 0x241   : > { %v767_v44 = vpop.eup %766  ;;  %v470_v45 = vadd.f32 1.0, %v765_v42  ;;  %v473_v46 = vmul.f32 0.5, %v469_v41 }
 0x242   : > { %v468_v47 = vadd.f32 1.0, %v767_v44  ;;  %v471_v48 = vmul.f32 0.5, %v467_v43 }
 0x243   : > { %v474_v49 = vmul.f32 0.5, %v470_v45  ;;  %v477_v51 = vmul.f32 %v473_v46, %v437_v12 }
 0x244   : > { %v472_v50 = vmul.f32 0.5, %v468_v47  ;;  %v475_v53 = vmul.f32 %v471_v48, %v429_v14 }
 0x245   : > { %v478_v52 = vmul.f32 %v474_v49, %v440_v17 }
 0x246   : > { %v476_v54 = vmul.f32 %v472_v50, %v432_v20 }
 0x247   : > { %v480_v55 = vpack.c.bf16 %v478_v52, %v477_v51 }
 0x248   : > { %v479_v56 = vpack.c.bf16 %v476_v54, %v475_v53 }
 0x24a   : > { %730 = vmatprep.mubr.bf16.mxu1 %v479_v56 }
 0x24b   : > { %731 = vmatmul.mubr.bf16.vlgmr.msra.gmra.mrb[0].mxu1 %v480_v55 }
 0x31e   : > { %v732_v58 = vpop.f32.mrb[0].mxu1 }
 0x31f   : > { %v586_v59 = vpop.f32.mrb[1].mxu1  ;;  %v595_v62 = vadd.f32 %v732_v58, %v681_v57 }
 0x320   : > { %v587_v60 = vadd.f32 %v681_v57, %v586_v59  ;;  %v733_v61 = vpop.f32.mrb[2].mxu1 }
 0x321   : > { %v589_v63 = vpop.f32.mrb[3].mxu1  ;;  %v598_v4 = vadd.f32 %v733_v61, %v681_v57  ;;  %v603_v8 = vadd.f32 %v595_v62, %v834_v1 }
 0x322   : > { %v601_v3 = vadd.f32 %v587_v60, %v832_v0  ;;  %v590_v6 = vadd.f32 %v681_v57, %v589_v63 }
 0x323   : > { %v604_v9 = vadd.f32 %v598_v4, %v842_v5  ;;  %607 = vst.msk [vmem:[%s280_s18 + $0x10] sm:$0xff] %vm287_vm0, %v603_v8 }
 0x324   : > { %605 = vst.msk [vmem:[%s280_s18] sm:$0xff] %vm287_vm0, %v601_v3  ;;  %v602_v7 = vadd.f32 %v590_v6, %v836_v2 }
 0x325   : > { %608 = vst.msk [vmem:[%s280_s18 + $0x18] sm:$0xff] %vm287_vm0, %v604_v9 }
 0x326   : > { %606 = vst.msk [vmem:[%s280_s18 + $0x8] sm:$0xff] %vm287_vm0, %v602_v7 }
 0x327 PF: > { %s17_s24 = sadd.s32 1, %s774_s24  }
 0x328   : > { %p14_p4 = scmp.ge.s32.totalorder %s17_s24, 4  }
 0x32a   :  { %16 = sbr.rel (!%p14_p4) target bundleno = 1 (0x1), region = 78 }

// kernel: video_swin_forward.12
= control target key start
LH: loop header
LB: loop body
LE: loop exit
PB: predicated region body
PF: predicated region fallthrough
CT: control target
= control target key end

     0   :  { %vm38_vm0 = vcmask 261120   ;;  %s2773_s28 = smov 112   ;;  %vm2775_vm1 = vmmov 0   ;;  %vm385_vm2 = vcmask 130048   ;;  %vm1185_vm3 = vcmask 64512   ;;  %s2778_s11 = smov 16   ;;  %s3521_s0 = inlined_call_operand.vmem [shape: f32[8,8,32], index: 0, kind: input, shape index: {}]   ;;  %s3522_s3 = inlined_call_operand.vmem [shape: bf16[32,96], index: 3, kind: input, shape index: {}]   ;;  %s3523_s1 = inlined_call_operand.vmem [shape: f32[1,32], index: 1, kind: input, shape index: {}]   ;;  %s3524_s2 = inlined_call_operand.vmem [shape: f32[1,32], index: 2, kind: input, shape index: {}]   ;;  %s3525_s4 = inlined_call_operand.vmem [shape: f32[1,96], index: 4, kind: input, shape index: {}]   ;;  %s3526_s7 = inlined_call_operand.vmem [shape: f32[2,8,8], index: 7, kind: input, shape index: {}]   ;;  %s3527_s5 = inlined_call_operand.vmem [shape: bf16[32,32], index: 5, kind: input, shape index: {}]   ;;  %s3528_s6 = inlined_call_operand.vmem [shape: f32[1,32], index: 6, kind: input, shape index: {}]   ;;  %s3529_s8 = inlined_call_operand.vmem [shape: f32[8,8,32], index: 8, kind: output, shape index: {}]  }
   0x1   :  { %v30_v0 = vld [vmem:[%s3521_s0] sm:$0xff]  ;;  %v32_v1 = vld [vmem:[%s3521_s0 + $0x10] sm:$0xff]  ;;  %v31_v2 = vld [vmem:[%s3521_s0 + $0x8] sm:$0xff]  ;;  %vm1383_vm4 = vcmask 1043456  }
   0x2   :  { %v39_v3 = vsel %vm38_vm0, %v30_v0, 0.0  ;;  %v45_v4 = vsel %vm38_vm0, %v32_v1, 0.0  ;;  %v33_v5 = vld [vmem:[%s3521_s0 + $0x18] sm:$0xff]  ;;  %v42_v6 = vsel %vm38_vm0, %v31_v2, 0.0  ;;  %v34_v8 = vld [vmem:[%s3521_s0 + $0x20] sm:$0xff]  ;;  %v35_v9 = vld [vmem:[%s3521_s0 + $0x28] sm:$0xff] }
   0x3   :  { %40 = vadd.xlane.f32.xlu0 %v39_v3  ;;  %46 = vadd.xlane.f32.xlu1 %v45_v4  ;;  %v48_v7 = vsel %vm38_vm0, %v33_v5, 0.0  ;;  %v51_v10 = vsel %vm38_vm0, %v34_v8, 0.0  ;;  %v54_v11 = vsel %vm38_vm0, %v35_v9, 0.0  ;;  %v36_v12 = vld [vmem:[%s3521_s0 + $0x30] sm:$0xff]  ;;  %v37_v13 = vld [vmem:[%s3521_s0 + $0x38] sm:$0xff]  ;;  %v2681_v56 = vld [vmem:[%s3522_s3] sm:$0xff]  }
   0x4   :  { %v57_v14 = vsel %vm38_vm0, %v36_v12, 0.0  ;;  %v60_v15 = vsel %vm38_vm0, %v37_v13, 0.0  ;;  %2435 = vmatprep.subr.bf16.mxu0 %v2681_v56  ;;  %2651 = vmatprep.subr.bf16.mxu1 %v2681_v56  ;;  %v2682_v57 = vld [vmem:[%s3522_s3 + $0x8] sm:$0xff]  }
   0x5   :  { %2436 = vmatpush3.bf16.msra.mxu0 %v2681_v56  ;;  %2653 = vmatpush3.bf16.msra.mxu1 %v2681_v56 }
   0x6   :  { %2437 = vmatprep.subr.bf16.mxu0 %v2682_v57  ;;  %2652 = vmatprep.subr.bf16.mxu1 %v2682_v57 }
   0x7   :  { %43 = vadd.xlane.f32.xlu0 %v42_v6  ;;  %49 = vadd.xlane.f32.xlu1 %v48_v7 }
   0x9   :  { %2438 = vmatpush3.bf16.msra.mxu0 %v2682_v57  ;;  %2654 = vmatpush3.bf16.msra.mxu1 %v2682_v57 }
   0xb   :  { %52 = vadd.xlane.f32.xlu0 %v51_v10  ;;  %55 = vadd.xlane.f32.xlu1 %v54_v11 }
   0xf   :  { %58 = vadd.xlane.f32.xlu0 %v57_v14  ;;  %61 = vadd.xlane.f32.xlu1 %v60_v15 }
  0x90   :  { %v41_v16 = vpop.xlane.xlu0 %40  ;;  %v47_v17 = vpop.xlane.xlu1 %46 }
  0x91   :  { %v64_v18 = vmul.f32 0.03125, %v41_v16  ;;  %v66_v19 = vmul.f32 0.03125, %v47_v17 }
  0x93   :  { %v2856_v20 = vsub.f32 %v30_v0, %v64_v18  ;;  %v2858_v21 = vsub.f32 %v32_v1, %v66_v19  ;;  %v2311_v19 = vld [vmem:[%s3523_s1] ss:$0 sm:$0xff] }
  0x94   :  { %v44_v22 = vpop.xlane.xlu0 %43  ;;  %v50_v23 = vpop.xlane.xlu1 %49 }
  0x95   :  { %v65_v24 = vmul.f32 0.03125, %v44_v22  ;;  %v67_v25 = vmul.f32 0.03125, %v50_v23  ;;  %v80_v26 = vmul.f32 %v2856_v20, %v2856_v20  ;;  %v82_v27 = vmul.f32 %v2858_v21, %v2858_v21 }
  0x97   :  { %v2864_v28 = vsub.f32 %v31_v2, %v65_v24  ;;  %v2866_v29 = vsub.f32 %v33_v5, %v67_v25  ;;  %v88_v30 = vsel %vm38_vm0, %v80_v26, 0.0  ;;  %v94_v33 = vsel %vm38_vm0, %v82_v27, 0.0 }
  0x98   :  { %89 = vadd.xlane.f32.xlu0 %v88_v30  ;;  %v53_v31 = vpop.xlane.xlu0 %52  ;;  %v56_v32 = vpop.xlane.xlu1 %55 }
  0x99   :  { %v68_v34 = vmul.f32 0.03125, %v53_v31  ;;  %v69_v35 = vmul.f32 0.03125, %v56_v32  ;;  %v81_v36 = vmul.f32 %v2864_v28, %v2864_v28  ;;  %v83_v37 = vmul.f32 %v2866_v29, %v2866_v29 }
  0x9b   :  { %v2874_v38 = vsub.f32 %v34_v8, %v68_v34  ;;  %v2876_v39 = vsub.f32 %v35_v9, %v69_v35  ;;  %v91_v40 = vsel %vm38_vm0, %v81_v36, 0.0  ;;  %v97_v43 = vsel %vm38_vm0, %v83_v37, 0.0 }
  0x9c   :  { %95 = vadd.xlane.f32.xlu0 %v94_v33  ;;  %92 = vadd.xlane.f32.xlu1 %v91_v40  ;;  %v59_v41 = vpop.xlane.xlu0 %58  ;;  %v62_v42 = vpop.xlane.xlu1 %61 }
  0x9d   :  { %v70_v44 = vmul.f32 0.03125, %v59_v41  ;;  %v71_v45 = vmul.f32 0.03125, %v62_v42  ;;  %v84_v46 = vmul.f32 %v2874_v38, %v2874_v38  ;;  %v85_v47 = vmul.f32 %v2876_v39, %v2876_v39 }
  0x9f   :  { %v2884_v48 = vsub.f32 %v36_v12, %v70_v44  ;;  %v2886_v49 = vsub.f32 %v37_v13, %v71_v45  ;;  %v100_v50 = vsel %vm38_vm0, %v84_v46, 0.0  ;;  %v103_v51 = vsel %vm38_vm0, %v85_v47, 0.0 }
  0xa0   :  { %98 = vadd.xlane.f32.xlu1 %v97_v43  ;;  %101 = vadd.xlane.f32.xlu0 %v100_v50 }
  0xa1   :  { %v86_v52 = vmul.f32 %v2884_v48, %v2884_v48  ;;  %v87_v53 = vmul.f32 %v2886_v49, %v2886_v49 }
  0xa3   :  { %v106_v54 = vsel %vm38_vm0, %v86_v52, 0.0  ;;  %v109_v55 = vsel %vm38_vm0, %v87_v53, 0.0 }
  0xa4   :  { %104 = vadd.xlane.f32.xlu1 %v103_v51  ;;  %107 = vadd.xlane.f32.xlu0 %v106_v54 }
  0xa8   :  { %110 = vadd.xlane.f32.xlu1 %v109_v55 }
 0x125   :  { %v90_v58 = vpop.xlane.xlu0 %89 }
 0x126   :  { %v112_v59 = vmul.f32 0.03125, %v90_v58 }
 0x128   :  { %v120_v60 = vadd.f32 1e-05, %v112_v59 }
 0x129   :  { %v93_v61 = vpop.xlane.xlu1 %92  ;;  %v96_v62 = vpop.xlane.xlu0 %95 }
 0x12a   :  { %2685 = vrsqrt.f32 %v120_v60  ;;  %v113_v63 = vmul.f32 0.03125, %v93_v61  ;;  %v114_v0 = vmul.f32 0.03125, %v96_v62 }
 0x12c   :  { %v121_v1 = vadd.f32 1e-05, %v113_v63  ;;  %v122_v2 = vadd.f32 1e-05, %v114_v0 }
 0x12d   :  { %v99_v3 = vpop.xlane.xlu1 %98  ;;  %v102_v4 = vpop.xlane.xlu0 %101 }
 0x12e   :  { %2687 = vrsqrt.f32 %v121_v1  ;;  %v115_v5 = vmul.f32 0.03125, %v99_v3  ;;  %v116_v6 = vmul.f32 0.03125, %v102_v4  ;;  %v2774_v4 = vmov 0.0  }
 0x12f   :  { %2689 = vrsqrt.f32 %v122_v2  ;;  %2447 = vmatprep.subr.bf16.mxu1 %v2774_v4  ;;  %2459 = vmatprep.subr.bf16.mxu0 %v2774_v4 }
 0x130   :  { %v123_v7 = vadd.f32 1e-05, %v115_v5  ;;  %v124_v8 = vadd.f32 1e-05, %v116_v6 }
 0x131   :  { %v105_v9 = vpop.xlane.xlu1 %104  ;;  %v108_v10 = vpop.xlane.xlu0 %107 }
 0x132   :  { %2691 = vrsqrt.f32 %v123_v7  ;;  %v117_v11 = vmul.f32 0.03125, %v105_v9  ;;  %v118_v12 = vmul.f32 0.03125, %v108_v10 }
 0x133   :  { %2693 = vrsqrt.f32 %v124_v8 }
 0x134   :  { %v2686_v13 = vpop.eup %2685  ;;  %v125_v14 = vadd.f32 1e-05, %v117_v11  ;;  %v126_v15 = vadd.f32 1e-05, %v118_v12 }
 0x135   :  { %v111_v16 = vpop.xlane.xlu1 %110  ;;  %v136_v17 = vmul.f32 %v2686_v13, %v2856_v20  ;;  %v2312_v20 = vld [vmem:[%s3524_s2] ss:$0 sm:$0xff] }
 0x136   :  { %2695 = vrsqrt.f32 %v125_v14  ;;  %v119_v18 = vmul.f32 0.03125, %v111_v16 }
 0x137   :  { %2697 = vrsqrt.f32 %v126_v15  ;;  %v151_v26 = vmul.f32 %v2311_v19, %v136_v17 }
 0x138   :  { %v2688_v22 = vpop.eup %2687  ;;  %v127_v23 = vadd.f32 1e-05, %v119_v18 }
 0x139   :  { %v2690_v24 = vpop.eup %2689  ;;  %v137_v25 = vmul.f32 %v2688_v22, %v2864_v28  ;;  %v166_v34 = vadd.f32 %v2312_v20, %v151_v26 }
 0x13a   :  { %v138_v27 = vmul.f32 %v2690_v24, %v2858_v21  ;;  %2699 = vrsqrt.f32 %v127_v23 }
 0x13b   :  { %v152_v30 = vmul.f32 %v2311_v19, %v137_v25 }
 0x13c   :  { %v2692_v31 = vpop.eup %2691  ;;  %v153_v36 = vmul.f32 %v2311_v19, %v138_v27 }
 0x13d   :  { %v2694_v32 = vpop.eup %2693  ;;  %v139_v33 = vmul.f32 %v2692_v31, %v2866_v29  ;;  %v167_v35 = vadd.f32 %v2312_v20, %v152_v30 }
 0x13e   :  { %v140_v37 = vmul.f32 %v2694_v32, %v2874_v38  ;;  %v168_v21 = vadd.f32 %v2312_v20, %v153_v36 }
 0x13f   :  { %v174_v40 = vpack.c.bf16 %v167_v35, %v166_v34  ;;  %v154_v28 = vmul.f32 %v2311_v19, %v139_v33 }
 0x140   :  { %v2696_v41 = vpop.eup %2695  ;;  %v155_v45 = vmul.f32 %v2311_v19, %v140_v37 }
 0x141   :  { %v2698_v42 = vpop.eup %2697  ;;  %2439 = vmatprep.mubr.msk.bf16.mxu0 %vm38_vm0, %v174_v40  ;;  %v169_v43 = vadd.f32 %v2312_v20, %v154_v28  ;;  %v141_v44 = vmul.f32 %v2696_v41, %v2876_v39 }
 0x142   :  { %v142_v46 = vmul.f32 %v2698_v42, %v2884_v48  ;;  %v170_v38 = vadd.f32 %v2312_v20, %v155_v45  ;;  %v2313_v48 = vld [vmem:[%s3525_s4] ss:$0 sm:$0xff]  ;;  %s2776_s4 = smov 96  }
 0x143   :  { %v175_v47 = vpack.c.bf16 %v169_v43, %v168_v21  ;;  %v156_v29 = vmul.f32 %v2311_v19, %v141_v44 }
 0x144   :  { %v2700_v50 = vpop.eup %2699  ;;  %v157_v53 = vmul.f32 %v2311_v19, %v142_v46 }
 0x145   :  { %v143_v51 = vmul.f32 %v2700_v50, %v2886_v49  ;;  %2440 = vmatmul.mubr.msk.bf16.vlgmr.msra.gmra.mrb[0].mxu0 %vm38_vm0, %v175_v47  ;;  %v171_v52 = vadd.f32 %v2312_v20, %v156_v29 }
 0x146   :  { %v172_v56 = vadd.f32 %v2312_v20, %v157_v53  ;;  %2461 = vmatprep.mubr.msk.bf16.mxu0 %vm2775_vm1, %v2774_v4 }
 0x147   :  { %v176_v54 = vpack.c.bf16 %v171_v52, %v170_v38  ;;  %v158_v55 = vmul.f32 %v2311_v19, %v143_v51 }
 0x149   :  { %2443 = vmatprep.mubr.msk.bf16.mxu1 %vm38_vm0, %v176_v54  ;;  %v173_v57 = vadd.f32 %v2312_v20, %v158_v55 }
 0x14b   :  { %v177_v39 = vpack.c.bf16 %v173_v57, %v172_v56 }
 0x14d   :  { %2444 = vmatmul.mubr.msk.bf16.vlgmr.msra.gmra.mrb[0].mxu1 %vm38_vm0, %v177_v39 }
 0x14e   :  { %2449 = vmatprep.mubr.msk.bf16.mxu1 %vm2775_vm1, %v2774_v4 }
 0x218   :  { %v2441_v58 = vpop.f32.mrb[0].mxu0 }
 0x219   :  { %v247_v49 = vpop.f32.mrb[1].mxu0  ;;  %v256_v63 = vadd.f32 %v2441_v58, %v2313_v48 }
 0x21a   :  { %v248_v59 = vadd.f32 %v2313_v48, %v247_v49  ;;  %v2442_v60 = vpop.f32.mrb[2].mxu0 }
 0x21b   :  { %v250_v61 = vpop.f32.mrb[3].mxu0  ;;  %v2931_v6 = vadd.f32 %v2442_v60, %v2313_v48  ;;  %v2959_v13 = vmul.f32 0.25, %v256_v63  ;;  %v2986_v19 = vpack.c.bf16 %v256_v63, %v256_v63 }
 0x21c   :  { %v2923_v62 = vadd.f32 %v2313_v48, %v250_v61  ;;  %342 = vrot.lane.b32.xlu0 %v248_v59, %s2773_s28  ;;  %v2949_v10 = vpack.c.bf16 %v248_v59, %v248_v59  ;;  %v278_v11 = vmul.f32 0.25, %v248_v59 }
 0x21d   :  { %v2964_v14 = vmul.f32 0.25, %v2931_v6  ;;  %v3043_v45 = vpack.c.bf16 %v2931_v6, %v2931_v6 }
 0x21e   :  { %344 = vrot.lane.b32.xlu1 %v2923_v62, %s2773_s28  ;;  %v2955_v12 = vmul.f32 0.25, %v2923_v62  ;;  %v318_v41 = vpack.c.bf16 %v278_v11, %v278_v11  ;;  %v3037_v44 = vpack.c.bf16 %v2923_v62, %v2923_v62 }
 0x220   :  { %v2445_v0 = vpop.f32.mrb[0].mxu1 }
 0x221   :  { %v263_v1 = vpop.f32.mrb[1].mxu1  ;;  %v272_v7 = vadd.f32 %v2445_v0, %v2313_v48 }
 0x222   :  { %v264_v2 = vadd.f32 %v2313_v48, %v263_v1  ;;  %346 = vrot.lane.b32.xlu1 %v256_v63, %s2773_s28  ;;  %v2446_v3 = vpop.f32.mrb[2].mxu1 }
 0x223   :  { %v266_v5 = vpop.f32.mrb[3].mxu1  ;;  %v2943_v9 = vadd.f32 %v2446_v3, %v2313_v48  ;;  %v2977_v17 = vmul.f32 0.25, %v272_v7  ;;  %v2994_v23 = vpack.c.bf16 %v272_v7, %v272_v7 }
 0x224   :  { %350 = vrot.lane.b32.xlu0 %v264_v2, %s2773_s28  ;;  %v2936_v8 = vadd.f32 %v2313_v48, %v266_v5  ;;  %v2968_v15 = vmul.f32 0.25, %v264_v2  ;;  %v2990_v22 = vpack.c.bf16 %v264_v2, %v264_v2 }
 0x225   :  { %v2982_v18 = vmul.f32 0.25, %v2943_v9  ;;  %v3055_v47 = vpack.c.bf16 %v2943_v9, %v2943_v9 }
 0x226   :  { %348 = vrot.lane.b32.xlu1 %v2931_v6, %s2773_s28  ;;  %v2973_v16 = vmul.f32 0.25, %v2936_v8  ;;  %v3049_v46 = vpack.c.bf16 %v2936_v8, %v2936_v8 }
 0x228   :  { %354 = vrot.lane.b32.xlu0 %v272_v7, %s2773_s28 }
 0x22a   :  { %352 = vrot.lane.b32.xlu1 %v2936_v8, %s2773_s28 }
 0x22c   :  { %356 = vrot.lane.b32.xlu0 %v2943_v9, %s2773_s28 }
 0x22e   :  { %383 = vrot.lane.b32.xlu1 %v2949_v10, %s2776_s4 }
 0x230   :  { %294 = vrot.lane.b32.xlu0 %v278_v11, %s2773_s28  ;;  %v320_v11 = vpack.c.bf16 %v2955_v12, %v2955_v12 }
 0x234   :  { %296 = vrot.lane.b32.xlu0 %v2955_v12, %s2773_s28 }
 0x238   :  { %298 = vrot.lane.b32.xlu0 %v2959_v13, %s2773_s28 }
 0x23c   :  { %300 = vrot.lane.b32.xlu0 %v2964_v14, %s2773_s28 }
 0x240   :  { %302 = vrot.lane.b32.xlu0 %v2968_v15, %s2773_s28 }
 0x244   :  { %304 = vrot.lane.b32.xlu0 %v2973_v16, %s2773_s28 }
 0x248   :  { %306 = vrot.lane.b32.xlu0 %v2977_v17, %s2773_s28 }
 0x24c   :  { %308 = vrot.lane.b32.xlu0 %v2982_v18, %s2773_s28 }
 0x250   :  { %580 = vrot.lane.b32.xlu0 %v2986_v19, %s2776_s4 }
 0x254   :  { %776 = vrot.lane.b32.xlu0 %v2990_v22, %s2776_s4 }
 0x258   :  { %972 = vrot.lane.b32.xlu0 %v2994_v23, %s2776_s4 }
 0x28e   :  { %v343_v24 = vpop.permute.xlu0 %342 }
 0x28f   :  { %v2998_v25 = vpack.c.bf16 %v343_v24, %v343_v24 }
 0x290   :  { %v345_v26 = vpop.permute.xlu1 %344 }
 0x291   :  { %433 = vrot.lane.b32.xlu1 %v2998_v25, %s2776_s4  ;;  %v3002_v27 = vpack.c.bf16 %v345_v26, %v345_v26 }
 0x294   :  { %v347_v20 = vpop.permute.xlu1 %346 }
 0x295   :  { %531 = vrot.lane.b32.xlu1 %v3002_v27, %s2776_s4  ;;  %v3006_v30 = vpack.c.bf16 %v347_v20, %v347_v20 }
 0x296   :  { %v351_v33 = vpop.permute.xlu0 %350 }
 0x297   :  { %v3014_v35 = vpack.c.bf16 %v351_v33, %v351_v33 }
 0x298   :  { %v349_v31 = vpop.permute.xlu1 %348 }
 0x299   :  { %629 = vrot.lane.b32.xlu1 %v3006_v30, %s2776_s4  ;;  %v3010_v32 = vpack.c.bf16 %v349_v31, %v349_v31  ;;  %v322_v31 = vpack.c.bf16 %v2959_v13, %v2959_v13 }
 0x29a   :  { %v355_v40 = vpop.permute.xlu0 %354 }
 0x29b   :  { %v3024_v42 = vpack.c.bf16 %v355_v40, %v355_v40 }
 0x29c   :  { %v353_v34 = vpop.permute.xlu1 %352 }
 0x29d   :  { %727 = vrot.lane.b32.xlu1 %v3010_v32, %s2776_s4  ;;  %v3019_v28 = vpack.c.bf16 %v353_v34, %v353_v34 }
 0x29e   :  { %v357_v21 = vpop.permute.xlu0 %356 }
 0x29f   :  { %v3031_v43 = vpack.c.bf16 %v357_v21, %v357_v21 }
 0x2a0   :  { %v384_v36 = vpop.permute.xlu1 %383 }
 0x2a1   :  { %v390_v37 = vsel %vm385_vm2, %v384_v36, 0  ;;  %825 = vrot.lane.b32.xlu1 %v3014_v35, %s2776_s4 }
 0x2a2   :  { %2448 = vmatpush3.bf16.xpose.msra.mxu1 %v390_v37  ;;  %v295_v29 = vpop.permute.xlu0 %294  ;;  %v324_v37 = vpack.c.bf16 %v2964_v14, %v2964_v14 }
 0x2a3   :  { %2453 = vmatprep.subr.bf16.mxu1 %v2774_v4  ;;  %v319_v54 = vpack.c.bf16 %v295_v29, %v295_v29  ;;  %v326_v29 = vpack.c.bf16 %v2968_v15, %v2968_v15  ;;  %v328_v15 = vpack.c.bf16 %v2973_v16, %v2973_v16  ;;  %v332_v16 = vpack.c.bf16 %v2982_v18, %v2982_v18 }
 0x2a5   :  { %923 = vrot.lane.b32.xlu1 %v3019_v28, %s2776_s4 }
 0x2a6   :  { %v297_v50 = vpop.permute.xlu0 %296 }
 0x2a7   :  { %v321_v58 = vpack.c.bf16 %v297_v50, %v297_v50 }
 0x2a9   :  { %2450 = vmatmul.mubr.msk.bf16.vlgmr.msra.gmra.mrb[4].mxu1 %vm385_vm2, %v318_v41  ;;  %1021 = vrot.lane.b32.xlu1 %v3024_v42, %s2776_s4 }
 0x2aa   :  { %2455 = vmatprep.mubr.msk.bf16.mxu1 %vm2775_vm1, %v2774_v4  ;;  %v299_v52 = vpop.permute.xlu0 %298 }
 0x2ab   :  { %v323_v62 = vpack.c.bf16 %v299_v52, %v299_v52 }
 0x2ad   :  { %1119 = vrot.lane.b32.xlu1 %v3031_v43, %s2776_s4 }
 0x2ae   :  { %v301_v55 = vpop.permute.xlu0 %300 }
 0x2af   :  { %v325_v3 = vpack.c.bf16 %v301_v55, %v301_v55 }
 0x2b1   :  { %482 = vrot.lane.b32.xlu1 %v3037_v44, %s2776_s4 }
 0x2b2   :  { %v303_v48 = vpop.permute.xlu0 %302 }
 0x2b3   :  { %v327_v24 = vpack.c.bf16 %v303_v48, %v303_v48  ;;  %v3151_v48 = vld [vmem:[%s3526_s7 + $0x8] sm:$0xff] }
 0x2b5   :  { %678 = vrot.lane.b32.xlu1 %v3043_v45, %s2776_s4 }
 0x2b6   :  { %v305_v60 = vpop.permute.xlu0 %304 }
 0x2b7   :  { %v329_v33 = vpack.c.bf16 %v305_v60, %v305_v60 }
 0x2b9   :  { %874 = vrot.lane.b32.xlu1 %v3049_v46, %s2776_s4 }
 0x2ba   :  { %v307_v1 = vpop.permute.xlu0 %306 }
 0x2bb   :  { %v331_v40 = vpack.c.bf16 %v307_v1, %v307_v1 }
 0x2bd   :  { %1070 = vrot.lane.b32.xlu1 %v3055_v47, %s2776_s4 }
 0x2be   :  { %v309_v5 = vpop.permute.xlu0 %308 }
 0x2bf   :  { %v333_v50 = vpack.c.bf16 %v309_v5, %v309_v5 }
 0x2c2   :  { %v581_v9 = vpop.permute.xlu0 %580 }
 0x2c3   :  { %v586_v26 = vsel %vm385_vm2, %v581_v9, 0 }
 0x2c6   :  { %v777_v13 = vpop.permute.xlu0 %776 }
 0x2c7   :  { %v782_v41 = vsel %vm385_vm2, %v777_v13, 0 }
 0x303   :  { %v434_v51 = vpop.permute.xlu1 %433 }
 0x304   :  { %v439_v38 = vsel %vm385_vm2, %v434_v51, 0 }
 0x305   :  { %2454 = vmatpush3.bf16.xpose.msra.mxu1 %v439_v38  ;;  %v973_v38 = vpop.permute.xlu0 %972 }
 0x306   :  { %2465 = vmatprep.subr.bf16.mxu1 %v2774_v4  ;;  %v978_v52 = vsel %vm385_vm2, %v973_v38, 0 }
 0x307   :  { %v532_v53 = vpop.permute.xlu1 %531 }
 0x308   :  { %v537_v57 = vsel %vm385_vm2, %v532_v53, 0 }
 0x30b   :  { %v630_v56 = vpop.permute.xlu1 %629 }
 0x30c   :  { %2456 = vmatmul.mubr.msk.bf16.vlgmr.msra.gmra.mrb[8].mxu1 %vm385_vm2, %v319_v54  ;;  %v635_v59 = vsel %vm385_vm2, %v630_v56, 0  ;;  %v330_v54 = vpack.c.bf16 %v2977_v17, %v2977_v17 }
 0x30d   :  { %2466 = vmatpush3.bf16.xpose.msra.mxu1 %v537_v57  ;;  %2467 = vmatprep.mubr.msk.bf16.mxu1 %vm2775_vm1, %v2774_v4 }
 0x30e   :  { %2477 = vmatprep.subr.bf16.mxu1 %v2774_v4 }
 0x30f   :  { %v728_v39 = vpop.permute.xlu1 %727 }
 0x310   :  { %v733_v0 = vsel %vm385_vm2, %v728_v39, 0 }
 0x313   :  { %v826_v49 = vpop.permute.xlu1 %825 }
 0x314   :  { %2468 = vmatmul.mubr.msk.bf16.vlgmr.msra.gmra.mrb[12].mxu1 %vm385_vm2, %v321_v58  ;;  %v831_v7 = vsel %vm385_vm2, %v826_v49, 0  ;;  %v3156_v58 = vld [vmem:[%s3526_s7] sm:$0xff]  ;;  %s2777_s7 = smov 64  }
 0x315   :  { %2478 = vmatpush3.bf16.xpose.msra.mxu1 %v635_v59  ;;  %2479 = vmatprep.mubr.msk.bf16.mxu1 %vm2775_vm1, %v2774_v4 }
 0x316   :  { %2489 = vmatprep.subr.bf16.mxu1 %v2774_v4 }
 0x317   :  { %v924_v61 = vpop.permute.xlu1 %923 }
 0x318   :  { %v929_v20 = vsel %vm385_vm2, %v924_v61, 0 }
 0x31b   :  { %v1022_v63 = vpop.permute.xlu1 %1021 }
 0x31c   :  { %2480 = vmatmul.mubr.msk.bf16.vlgmr.msra.gmra.mrb[16].mxu1 %vm385_vm2, %v323_v62  ;;  %v1027_v34 = vsel %vm385_vm2, %v1022_v63, 0 }
 0x31d   :  { %2490 = vmatpush3.bf16.xpose.msra.mxu1 %v733_v0  ;;  %2491 = vmatprep.mubr.msk.bf16.mxu1 %vm2775_vm1, %v2774_v4 }
 0x31e   :  { %2501 = vmatprep.subr.bf16.mxu1 %v2774_v4 }
 0x31f   :  { %v1120_v2 = vpop.permute.xlu1 %1119 }
 0x320   :  { %v1125_v21 = vsel %vm385_vm2, %v1120_v2, 0 }
 0x323   :  { %v483_v6 = vpop.permute.xlu1 %482 }
 0x324   :  { %v488_v8 = vsel %vm385_vm2, %v483_v6, 0  ;;  %2492 = vmatmul.mubr.msk.bf16.vlgmr.msra.gmra.mrb[20].mxu1 %vm385_vm2, %v325_v3 }
 0x325   :  { %2460 = vmatpush3.bf16.xpose.msra.mxu0 %v488_v8  ;;  %2502 = vmatpush3.bf16.xpose.msra.mxu1 %v831_v7 }
 0x326   :  { %2503 = vmatprep.mubr.msk.bf16.mxu1 %vm2775_vm1, %v2774_v4  ;;  %2471 = vmatprep.subr.bf16.mxu0 %v2774_v4 }
 0x327   :  { %2513 = vmatprep.subr.bf16.mxu1 %v2774_v4  ;;  %v679_v12 = vpop.permute.xlu1 %678 }
 0x328   :  { %v684_v36 = vsel %vm385_vm2, %v679_v12, 0 }
 0x32b   :  { %v875_v14 = vpop.permute.xlu1 %874 }
 0x32c   :  { %2462 = vmatmul.mubr.msk.bf16.vlgmr.msra.gmra.mrb[4].mxu0 %vm385_vm2, %v320_v11  ;;  %2504 = vmatmul.mubr.msk.bf16.vlgmr.msra.gmra.mrb[24].mxu1 %vm385_vm2, %v327_v24  ;;  %v880_v51 = vsel %vm385_vm2, %v875_v14, 0 }
 0x32d   :  { %2472 = vmatpush3.bf16.xpose.msra.mxu0 %v586_v26  ;;  %2514 = vmatpush3.bf16.xpose.msra.mxu1 %v929_v20 }
 0x32e   :  { %2473 = vmatprep.mubr.msk.bf16.mxu0 %vm2775_vm1, %v2774_v4  ;;  %2515 = vmatprep.mubr.msk.bf16.mxu1 %vm2775_vm1, %v2774_v4 }
 0x32f   :  { %2483 = vmatprep.subr.bf16.mxu0 %v2774_v4  ;;  %2525 = vmatprep.subr.bf16.mxu1 %v2774_v4  ;;  %v1071_v53 = vpop.permute.xlu1 %1070 }
 0x330   :  { %v1076_v55 = vsel %vm385_vm2, %v1071_v53, 0 }
 0x334   :  { %2474 = vmatmul.mubr.msk.bf16.vlgmr.msra.gmra.mrb[8].mxu0 %vm385_vm2, %v322_v31  ;;  %2516 = vmatmul.mubr.msk.bf16.vlgmr.msra.gmra.mrb[28].mxu1 %vm385_vm2, %v329_v33 }
 0x335   :  { %2484 = vmatpush3.bf16.xpose.msra.mxu0 %v684_v36  ;;  %2526 = vmatpush3.bf16.xpose.msra.mxu1 %v1027_v34 }
 0x336   :  { %2485 = vmatprep.mubr.msk.bf16.mxu0 %vm2775_vm1, %v2774_v4  ;;  %2527 = vmatprep.mubr.msk.bf16.mxu1 %vm2775_vm1, %v2774_v4 }
 0x337   :  { %2495 = vmatprep.subr.bf16.mxu0 %v2774_v4  ;;  %2537 = vmatprep.subr.bf16.mxu1 %v2774_v4 }
 0x33c   :  { %2486 = vmatmul.mubr.msk.bf16.vlgmr.msra.gmra.mrb[12].mxu0 %vm385_vm2, %v324_v37  ;;  %2528 = vmatmul.mubr.msk.bf16.vlgmr.msra.gmra.mrb[32].mxu1 %vm385_vm2, %v331_v40 }
 0x33d   :  { %2496 = vmatpush3.bf16.xpose.msra.mxu0 %v782_v41  ;;  %2538 = vmatpush3.bf16.xpose.msra.mxu1 %v1125_v21 }
 0x33e   :  { %2497 = vmatprep.mubr.msk.bf16.mxu0 %vm2775_vm1, %v2774_v4  ;;  %2539 = vmatprep.mubr.msk.bf16.mxu1 %vm2775_vm1, %v2774_v4 }
 0x33f   :  { %2507 = vmatprep.subr.bf16.mxu0 %v2774_v4  ;;  %2549 = vmatprep.subr.bf16.mxu1 %v2774_v4 }
 0x344   :  { %2498 = vmatmul.mubr.msk.bf16.vlgmr.msra.gmra.mrb[16].mxu0 %vm385_vm2, %v326_v29  ;;  %2540 = vmatmul.mubr.msk.bf16.vlgmr.msra.gmra.mrb[36].mxu1 %vm385_vm2, %v333_v50 }
 0x345   :  { %2508 = vmatpush3.bf16.xpose.msra.mxu0 %v880_v51  ;;  %2509 = vmatprep.mubr.msk.bf16.mxu0 %vm2775_vm1, %v2774_v4 }
 0x346   :  { %2519 = vmatprep.subr.bf16.mxu0 %v2774_v4  ;;  %2551 = vmatprep.mubr.msk.bf16.mxu1 %vm2775_vm1, %v2774_v4 }
 0x34c   :  { %2510 = vmatmul.mubr.msk.bf16.vlgmr.msra.gmra.mrb[20].mxu0 %vm385_vm2, %v328_v15 }
 0x34d   :  { %2520 = vmatpush3.bf16.xpose.msra.mxu0 %v978_v52  ;;  %2521 = vmatprep.mubr.msk.bf16.mxu0 %vm2775_vm1, %v2774_v4 }
 0x34e   :  { %2531 = vmatprep.subr.bf16.mxu0 %v2774_v4 }
 0x354   :  { %2522 = vmatmul.mubr.msk.bf16.vlgmr.msra.gmra.mrb[24].mxu0 %vm385_vm2, %v330_v54 }
 0x355   :  { %2532 = vmatpush3.bf16.xpose.msra.mxu0 %v1076_v55  ;;  %2533 = vmatprep.mubr.msk.bf16.mxu0 %vm2775_vm1, %v2774_v4 }
 0x356   :  { %2543 = vmatprep.subr.bf16.mxu0 %v2774_v4 }
 0x35c   :  { %2534 = vmatmul.mubr.msk.bf16.vlgmr.msra.gmra.mrb[28].mxu0 %vm385_vm2, %v332_v16 }
 0x35d   :  { %2545 = vmatprep.mubr.msk.bf16.mxu0 %vm2775_vm1, %v2774_v4 }
 0x37c   :  { %v426_v56 = vpop.f32.mrb[4].mxu1 }
 0x37d   :  { %v2451_v17 = vpop.f32.mrb[5].mxu1  ;;  %v3162_v61 = vadd.f32 %v3156_v58, %v426_v56 }
 0x37e   :  { %v429_v57 = vpop.f32.mrb[6].mxu1 }
 0x37f   :  { %v2452_v39 = vpop.f32.mrb[7].mxu1  ;;  %v1186_v0 = vsel %vm1185_vm3, %v3162_v61, -inf }
 0x3df   :  { %v475_v18 = vpop.f32.mrb[8].mxu1 }
 0x3e0   :  { %v3159_v49 = vadd.f32 %v3151_v48, %v475_v18  ;;  %v2457_v59 = vpop.f32.mrb[9].mxu1 }
 0x3e1   :  { %v478_v60 = vpop.f32.mrb[10].mxu1 }
 0x3e2   :  { %v2458_v62 = vpop.f32.mrb[11].mxu1  ;;  %v1189_v63 = vsel %vm1185_vm3, %v3159_v49, -inf }
 0x3e3   :  { %1190 = vmax.xlane.f32.xlu0 %v1189_v63 }
 0x3e7   :  { %1187 = vmax.xlane.f32.xlu0 %v1186_v0  ;;  %v573_v1 = vpop.f32.mrb[12].mxu1 }
 0x3e8   :  { %v3169_v2 = vadd.f32 %v3151_v48, %v573_v1  ;;  %v2469_v3 = vpop.f32.mrb[13].mxu1 }
 0x3e9   :  { %v576_v5 = vpop.f32.mrb[14].mxu1 }
 0x3ea   :  { %v2470_v6 = vpop.f32.mrb[15].mxu1  ;;  %v1195_v7 = vsel %vm1185_vm3, %v3169_v2, -inf }
 0x3eb   :  { %1196 = vmax.xlane.f32.xlu1 %v1195_v7 }
 0x3ef   :  { %v671_v8 = vpop.f32.mrb[16].mxu1 }
 0x3f0   :  { %v2481_v9 = vpop.f32.mrb[17].mxu1  ;;  %v3185_v16 = vadd.f32 %v3151_v48, %v671_v8 }
 0x3f1   :  { %v674_v11 = vpop.f32.mrb[18].mxu1 }
 0x3f2   :  { %v2482_v24 = vpop.f32.mrb[19].mxu1  ;;  %v1201_v18 = vsel %vm1185_vm3, %v3185_v16, -inf }
 0x3f7   :  { %v769_v26 = vpop.f32.mrb[20].mxu1 }
 0x3f8   :  { %v2493_v20 = vpop.f32.mrb[21].mxu1  ;;  %v3190_v39 = vadd.f32 %v3151_v48, %v769_v26 }
 0x3f9   :  { %v772_v12 = vpop.f32.mrb[22].mxu1 }
 0x3fa   :  { %v2494_v31 = vpop.f32.mrb[23].mxu1  ;;  %v1207_v8 = vsel %vm1185_vm3, %v3190_v39, -inf }
 0x3ff   :  { %v524_v33 = vpop.f32.mrb[4].mxu0  ;;  %v867_v34 = vpop.f32.mrb[24].mxu1 }
 0x400   :  { %v3174_v36 = vadd.f32 %v3156_v58, %v524_v33  ;;  %v2463_v13 = vpop.f32.mrb[5].mxu0  ;;  %v2505_v37 = vpop.f32.mrb[25].mxu1  ;;  %v3198_v5 = vadd.f32 %v3151_v48, %v867_v34 }
 0x401   :  { %v527_v40 = vpop.f32.mrb[6].mxu0  ;;  %v870_v41 = vpop.f32.mrb[26].mxu1 }
 0x402   :  { %v2464_v21 = vpop.f32.mrb[7].mxu0  ;;  %v2506_v14 = vpop.f32.mrb[27].mxu1  ;;  %v1192_v29 = vsel %vm1185_vm3, %v3174_v36, -inf  ;;  %v1213_v24 = vsel %vm1185_vm3, %v3198_v5, -inf }
 0x403   :  { %1193 = vmax.xlane.f32.xlu1 %v1192_v29 }
 0x407   :  { %v622_v50 = vpop.f32.mrb[8].mxu0  ;;  %v965_v51 = vpop.f32.mrb[28].mxu1 }
 0x408   :  { %v3179_v38 = vadd.f32 %v3156_v58, %v622_v50  ;;  %v3182_v15 = vadd.f32 %v3151_v48, %v965_v51  ;;  %v2475_v52 = vpop.f32.mrb[9].mxu0  ;;  %v2517_v53 = vpop.f32.mrb[29].mxu1 }
 0x409   :  { %v625_v54 = vpop.f32.mrb[10].mxu0  ;;  %v968_v55 = vpop.f32.mrb[30].mxu1 }
 0x40a   :  { %v2476_v56 = vpop.f32.mrb[11].mxu0  ;;  %v2518_v17 = vpop.f32.mrb[31].mxu1  ;;  %v1198_v57 = vsel %vm1185_vm3, %v3179_v38, -inf  ;;  %v1219_v54 = vsel %vm1185_vm3, %v3182_v15, -inf }
 0x40b   :  { %1199 = vmax.xlane.f32.xlu0 %v1198_v57 }
 0x40f   :  { %v1063_v59 = vpop.f32.mrb[32].mxu1  ;;  %1202 = vmax.xlane.f32.xlu0 %v1201_v18  ;;  %v720_v60 = vpop.f32.mrb[12].mxu0 }
 0x410   :  { %v3195_v62 = vadd.f32 %v3156_v58, %v720_v60  ;;  %v2487_v63 = vpop.f32.mrb[13].mxu0  ;;  %v2529_v0 = vpop.f32.mrb[33].mxu1  ;;  %v3205_v11 = vadd.f32 %v3151_v48, %v1063_v59 }
 0x411   :  { %v723_v1 = vpop.f32.mrb[14].mxu0  ;;  %v1066_v3 = vpop.f32.mrb[34].mxu1 }
 0x412   :  { %v2488_v6 = vpop.f32.mrb[15].mxu0  ;;  %v2530_v7 = vpop.f32.mrb[35].mxu1  ;;  %v1204_v9 = vsel %vm1185_vm3, %v3195_v62, -inf  ;;  %v1225_v21 = vsel %vm1185_vm3, %v3205_v11, -inf }
 0x413   :  { %1208 = vmax.xlane.f32.xlu0 %v1207_v8  ;;  %1205 = vmax.xlane.f32.xlu1 %v1204_v9 }
 0x417   :  { %v1161_v26 = vpop.f32.mrb[36].mxu1  ;;  %1214 = vmax.xlane.f32.xlu0 %v1213_v24  ;;  %v818_v20 = vpop.f32.mrb[16].mxu0 }
 0x418   :  { %v3210_v12 = vadd.f32 %v3151_v48, %v1161_v26  ;;  %v3213_v31 = vadd.f32 %v3156_v58, %v818_v20  ;;  %v2499_v33 = vpop.f32.mrb[17].mxu0  ;;  %v2541_v34 = vpop.f32.mrb[37].mxu1 }
 0x419   :  { %v821_v13 = vpop.f32.mrb[18].mxu0  ;;  %v1164_v37 = vpop.f32.mrb[38].mxu1 }
 0x41a   :  { %v2500_v40 = vpop.f32.mrb[19].mxu0  ;;  %v2542_v41 = vpop.f32.mrb[39].mxu1  ;;  %v1210_v14 = vsel %vm1185_vm3, %v3213_v31, -inf  ;;  %v1231_v60 = vsel %vm1185_vm3, %v3210_v12, -inf }
 0x41b   :  { %1226 = vmax.xlane.f32.xlu0 %v1225_v21  ;;  %1211 = vmax.xlane.f32.xlu1 %v1210_v14 }
 0x41f   :  { %v916_v29 = vpop.f32.mrb[20].mxu0 }
 0x420   :  { %v3220_v48 = vadd.f32 %v3156_v58, %v916_v29  ;;  %v2511_v50 = vpop.f32.mrb[21].mxu0 }
 0x421   :  { %v919_v51 = vpop.f32.mrb[22].mxu0 }
 0x422   :  { %v2512_v52 = vpop.f32.mrb[23].mxu0  ;;  %v1216_v53 = vsel %vm1185_vm3, %v3220_v48, -inf }
 0x423   :  { %1217 = vmax.xlane.f32.xlu1 %v1216_v53 }
 0x427   :  { %1220 = vmax.xlane.f32.xlu1 %v1219_v54  ;;  %v1014_v55 = vpop.f32.mrb[24].mxu0 }
 0x428   :  { %v3227_v56 = vadd.f32 %v3156_v58, %v1014_v55  ;;  %v2523_v17 = vpop.f32.mrb[25].mxu0 }
 0x429   :  { %v1017_v57 = vpop.f32.mrb[26].mxu0 }
 0x42a   :  { %v2524_v18 = vpop.f32.mrb[27].mxu0  ;;  %v1222_v59 = vsel %vm1185_vm3, %v3227_v56, -inf }
 0x42b   :  { %1223 = vmax.xlane.f32.xlu1 %v1222_v59 }
 0x42f   :  { %1232 = vmax.xlane.f32.xlu1 %v1231_v60  ;;  %v1112_v63 = vpop.f32.mrb[28].mxu0 }
 0x430   :  { %v3234_v0 = vadd.f32 %v3156_v58, %v1112_v63  ;;  %v2535_v1 = vpop.f32.mrb[29].mxu0 }
 0x431   :  { %v1115_v3 = vpop.f32.mrb[30].mxu0 }
 0x432   :  { %v2536_v6 = vpop.f32.mrb[31].mxu0  ;;  %v1228_v7 = vsel %vm1185_vm3, %v3234_v0, -inf }
 0x433   :  { %1229 = vmax.xlane.f32.xlu0 %v1228_v7 }
 0x440   :  { %1427 = vrot.lane.b32.xlu1 %v2998_v25, %s2777_s7 }
 0x449   :  { %1523 = vrot.lane.b32.xlu0 %v3002_v27, %s2777_s7 }
 0x470   :  { %v1191_v8 = vpop.xlane.xlu0 %1190 }
 0x471   :  { %v1235_v9 = vsub.f32 %v3159_v49, %v1191_v8 }
 0x473   :  { %v1252_v24 = vmul.f32 1.442695, %v1235_v9 }
 0x474   :  { %v1188_v49 = vpop.xlane.xlu0 %1187 }
 0x475   :  { %2701 = vpow2.f32 %v1252_v24 }
 0x478   :  { %v1197_v58 = vpop.xlane.xlu1 %1196 }
 0x479   :  { %v1237_v26 = vsub.f32 %v3169_v2, %v1197_v58 }
 0x47b   :  { %v1256_v20 = vmul.f32 1.442695, %v1237_v26 }
 0x47d   :  { %2703 = vpow2.f32 %v1256_v20  ;;  %v1234_v20 = vsub.f32 %v3162_v61, %v1188_v49 }
 0x47f   :  { %v3244_v33 = vpop.eup %2701 }
 0x480   :  { %v1285_v34 = vsel %vm1185_vm3, %v3244_v33, 0.0 }
 0x481   :  { %1286 = vadd.xlane.f32.xlu0 %v1285_v34 }
 0x487   :  { %v3248_v25 = vpop.eup %2703 }
 0x488   :  { %v1291_v27 = vsel %vm1185_vm3, %v3248_v25, 0.0 }
 0x489   :  { %1292 = vadd.xlane.f32.xlu0 %v1291_v27 }
 0x490   :  { %v1194_v29 = vpop.xlane.xlu1 %1193 }
 0x491   :  { %v1236_v27 = vsub.f32 %v3174_v36, %v1194_v29 }
 0x498   :  { %v1200_v13 = vpop.xlane.xlu0 %1199 }
 0x49c   :  { %v1203_v37 = vpop.xlane.xlu0 %1202 }
 0x49d   :  { %v1239_v40 = vsub.f32 %v3185_v16, %v1203_v37 }
 0x49f   :  { %v1260_v2 = vmul.f32 1.442695, %v1239_v40 }
 0x4a0   :  { %v1209_v41 = vpop.xlane.xlu0 %1208  ;;  %v1206_v53 = vpop.xlane.xlu1 %1205 }
 0x4a1   :  { %2705 = vpow2.f32 %v1260_v2  ;;  %v1241_v21 = vsub.f32 %v3190_v39, %v1209_v41 }
 0x4a3   :  { %v1264_v14 = vmul.f32 1.442695, %v1241_v21 }
 0x4a4   :  { %v1215_v50 = vpop.xlane.xlu0 %1214 }
 0x4a5   :  { %v1243_v51 = vsub.f32 %v3198_v5, %v1215_v50  ;;  %2707 = vpow2.f32 %v1264_v14 }
 0x4a7   :  { %v1268_v52 = vmul.f32 1.442695, %v1243_v51 }
 0x4a8   :  { %v1212_v55 = vpop.xlane.xlu1 %1211 }
 0x4a9   :  { %2709 = vpow2.f32 %v1268_v52 }
 0x4ab   :  { %v3255_v54 = vpop.eup %2705 }
 0x4ac   :  { %v1297_v16 = vsel %vm1185_vm3, %v3255_v54, 0.0 }
 0x4ad   :  { %1298 = vadd.xlane.f32.xlu0 %v1297_v16 }
 0x4af   :  { %v3259_v17 = vpop.eup %2707 }
 0x4b0   :  { %v1218_v57 = vpop.xlane.xlu1 %1217  ;;  %v1303_v39 = vsel %vm1185_vm3, %v3259_v17, 0.0 }
 0x4b1   :  { %1304 = vadd.xlane.f32.xlu0 %v1303_v39  ;;  %v1244_v49 = vsub.f32 %v3220_v48, %v1218_v57 }
 0x4b3   :  { %v3263_v18 = vpop.eup %2709 }
 0x4b4   :  { %v1221_v5 = vpop.xlane.xlu1 %1220  ;;  %v1309_v59 = vsel %vm1185_vm3, %v3263_v18, 0.0 }
 0x4b5   :  { %v1245_v60 = vsub.f32 %v3182_v15, %v1221_v5  ;;  %1310 = vadd.xlane.f32.xlu0 %v1309_v59  ;;  %v1227_v15 = vpop.xlane.xlu0 %1226 }
 0x4b6   :  { %v1247_v24 = vsub.f32 %v3205_v11, %v1227_v15  ;;  %v1238_v11 = vsub.f32 %v3179_v38, %v1200_v13 }
 0x4b7   :  { %v1272_v63 = vmul.f32 1.442695, %v1245_v60 }
 0x4b8   :  { %v1224_v1 = vpop.xlane.xlu1 %1223  ;;  %v1276_v58 = vmul.f32 1.442695, %v1247_v24  ;;  %v1258_v61 = vmul.f32 1.442695, %v1238_v11 }
 0x4b9   :  { %2711 = vpow2.f32 %v1272_v63  ;;  %v1246_v37 = vsub.f32 %v3227_v56, %v1224_v1 }
 0x4ba   :  { %2713 = vpow2.f32 %v1276_v58 }
 0x4bc   :  { %v1233_v3 = vpop.xlane.xlu1 %1232 }
 0x4bd   :  { %v1249_v26 = vsub.f32 %v3210_v12, %v1233_v3  ;;  %v1242_v12 = vsub.f32 %v3213_v31, %v1212_v55 }
 0x4bf   :  { %v1280_v34 = vmul.f32 1.442695, %v1249_v26 }
 0x4c0   :  { %v1428_v6 = vpop.permute.xlu1 %1427  ;;  %v1230_v40 = vpop.xlane.xlu0 %1229 }
 0x4c1   :  { %v1433_v7 = vsel %vm1383_vm4, %v1428_v6, 0  ;;  %2715 = vpow2.f32 %v1280_v34  ;;  %v1248_v41 = vsub.f32 %v3234_v0, %v1230_v40 }
 0x4c2   :  { %2550 = vmatpush3.bf16.msra.mxu1 %v1433_v7 }
 0x4c3   :  { %v3269_v8 = vpop.eup %2711  ;;  %2561 = vmatprep.subr.bf16.mxu1 %v2774_v4 }
 0x4c4   :  { %v1315_v9 = vsel %vm1185_vm3, %v3269_v8, 0.0  ;;  %v1524_v51 = vpop.permute.xlu0 %1523 }
 0x4c5   :  { %1316 = vadd.xlane.f32.xlu1 %v1315_v9  ;;  %v1529_v59 = vsel %vm1383_vm4, %v1524_v51, 0 }
 0x4cb   :  { %1619 = vrot.lane.b32.xlu0 %v3006_v30, %s2777_s7  ;;  %v1250_v30 = vmul.f32 1.442695, %v1234_v20 }
 0x4cd   :  { %2717 = vpow2.f32 %v1250_v30 }
 0x4d6   :  { %1715 = vrot.lane.b32.xlu1 %v3010_v32, %s2777_s7  ;;  %v1254_v32 = vmul.f32 1.442695, %v1236_v27 }
 0x4d8   :  { %2719 = vpow2.f32 %v1254_v32 }
 0x4d9   :  { %2721 = vpow2.f32 %v1258_v61 }
 0x4da   :  { %1811 = vrot.lane.b32.xlu1 %v3014_v35, %s2777_s7  ;;  %v3291_v35 = vpop.eup %2713 }
 0x4db   :  { %v1321_v36 = vsel %vm1185_vm3, %v3291_v35, 0.0 }
 0x4de   :  { %1907 = vrot.lane.b32.xlu1 %v3019_v28, %s2777_s7  ;;  %v1240_v28 = vsub.f32 %v3195_v62, %v1206_v53 }
 0x4e0   :  { %v1262_v38 = vmul.f32 1.442695, %v1240_v28 }
 0x4e2   :  { %2003 = vrot.lane.b32.xlu1 %v3024_v42, %s2777_s7  ;;  %v3298_v42 = vpop.eup %2715  ;;  %2723 = vpow2.f32 %v1262_v38 }
 0x4e3   :  { %v3305_v62 = vpop.eup %2717 }
 0x4e4   :  { %v1282_v13 = vsel %vm1185_vm3, %v3305_v62, 0.0  ;;  %v3312_v31 = vpop.eup %2719 }
 0x4e5   :  { %v1288_v48 = vsel %vm1185_vm3, %v3312_v31, 0.0  ;;  %v3319_v2 = vpop.eup %2721 }
 0x4e6   :  { %2099 = vrot.lane.b32.xlu1 %v3031_v43, %s2777_s7  ;;  %v1327_v43 = vsel %vm1185_vm3, %v3298_v42, 0.0  ;;  %v1294_v56 = vsel %vm1185_vm3, %v3319_v2, 0.0 }
 0x4ea   :  { %1378 = vrot.lane.b32.xlu1 %v2949_v10, %s2777_s7  ;;  %1322 = vadd.xlane.f32.xlu0 %v1321_v36  ;;  %v1266_v10 = vmul.f32 1.442695, %v1242_v12 }
 0x4ec   :  { %2725 = vpow2.f32 %v1266_v10  ;;  %v3326_v21 = vpop.eup %2723 }
 0x4ed   :  { %v1300_v14 = vsel %vm1185_vm3, %v3326_v21, 0.0 }
 0x4ee   :  { %1475 = vrot.lane.b32.xlu1 %v3037_v44, %s2777_s7  ;;  %1328 = vadd.xlane.f32.xlu0 %v1327_v43  ;;  %v1270_v44 = vmul.f32 1.442695, %v1244_v49 }
 0x4f0   :  { %2727 = vpow2.f32 %v1270_v44 }
 0x4f2   :  { %1571 = vrot.lane.b32.xlu1 %v2986_v19, %s2777_s7  ;;  %1283 = vadd.xlane.f32.xlu0 %v1282_v13  ;;  %v1274_v19 = vmul.f32 1.442695, %v1246_v37 }
 0x4f4   :  { %2729 = vpow2.f32 %v1274_v19 }
 0x4f6   :  { %1667 = vrot.lane.b32.xlu1 %v3043_v45, %s2777_s7  ;;  %1289 = vadd.xlane.f32.xlu0 %v1288_v48  ;;  %v1278_v45 = vmul.f32 1.442695, %v1248_v41  ;;  %v3332_v29 = vpop.eup %2725 }
 0x4f8   :  { %2731 = vpow2.f32 %v1278_v45 }
 0x4fa   :  { %1763 = vrot.lane.b32.xlu1 %v2990_v22, %s2777_s7  ;;  %1295 = vadd.xlane.f32.xlu0 %v1294_v56  ;;  %v1306_v22 = vsel %vm1185_vm3, %v3332_v29, 0.0  ;;  %v3338_v0 = vpop.eup %2727 }
 0x4fb   :  { %v1312_v50 = vsel %vm1185_vm3, %v3338_v0, 0.0 }
 0x4fe   :  { %1955 = vrot.lane.b32.xlu1 %v2994_v23, %s2777_s7  ;;  %1301 = vadd.xlane.f32.xlu0 %v1300_v14  ;;  %v3342_v23 = vpop.eup %2729 }
 0x4ff   :  { %v1318_v52 = vsel %vm1185_vm3, %v3342_v23, 0.0 }
 0x502   :  { %2051 = vrot.lane.b32.xlu1 %v3055_v47, %s2777_s7  ;;  %1307 = vadd.xlane.f32.xlu0 %v1306_v22  ;;  %v3346_v53 = vpop.eup %2731 }
 0x503   :  { %v1324_v47 = vsel %vm1185_vm3, %v3346_v53, 0.0 }
 0x506   :  { %1313 = vadd.xlane.f32.xlu0 %v1312_v50 }
 0x50a   :  { %1319 = vadd.xlane.f32.xlu0 %v1318_v52 }
 0x50e   :  { %v1287_v55 = vpop.xlane.xlu0 %1286  ;;  %1325 = vadd.xlane.f32.xlu0 %v1324_v47 }
 0x50f   :  { %2733 = vrcp.f32 %v1287_v55 }
 0x516   :  { %v1293_v16 = vpop.xlane.xlu0 %1292 }
 0x517   :  { %2735 = vrcp.f32 %v1293_v16 }
 0x519   :  { %v2734_v57 = vpop.eup %2733 }
 0x51a   :  { %v1347_v39 = vmul.f32 %v2734_v57, %v3244_v33 }
 0x51c   :  { %v1363_v5 = vpack.c.bf16 %v1347_v39, %v1347_v39 }
 0x51e   :  { %2552 = vmatmul.mubr.msk.bf16.vlgmr.msra.gmra.mrb[40].mxu1 %vm1185_vm3, %v1363_v5 }
 0x51f   :  { %2562 = vmatpush3.bf16.msra.mxu1 %v1529_v59  ;;  %2563 = vmatprep.mubr.msk.bf16.mxu1 %vm2775_vm1, %v2774_v4 }
 0x520   :  { %2573 = vmatprep.subr.bf16.mxu1 %v2774_v4 }
 0x521   :  { %v2736_v60 = vpop.eup %2735 }
 0x522   :  { %v1349_v63 = vmul.f32 %v2736_v60, %v3248_v25 }
 0x524   :  { %v1365_v1 = vpack.c.bf16 %v1349_v63, %v1349_v63  ;;  %1859 = vrot.lane.b32.xlu0 %v3049_v46, %s2777_s7 }
 0x526   :  { %2564 = vmatmul.mubr.msk.bf16.vlgmr.msra.gmra.mrb[44].mxu1 %vm1185_vm3, %v1365_v1 }
 0x527   :  { %2575 = vmatprep.mubr.msk.bf16.mxu1 %vm2775_vm1, %v2774_v4 }
 0x53a   :  { %v1299_v33 = vpop.xlane.xlu0 %1298 }
 0x53b   :  { %2737 = vrcp.f32 %v1299_v33 }
 0x53e   :  { %v1305_v3 = vpop.xlane.xlu0 %1304 }
 0x53f   :  { %2739 = vrcp.f32 %v1305_v3 }
 0x542   :  { %v1311_v6 = vpop.xlane.xlu0 %1310 }
 0x543   :  { %2741 = vrcp.f32 %v1311_v6 }
 0x545   :  { %v2738_v7 = vpop.eup %2737 }
 0x546   :  { %v1351_v9 = vmul.f32 %v2738_v7, %v3255_v54  ;;  %v1620_v15 = vpop.permute.xlu0 %1619 }
 0x547   :  { %v1625_v25 = vsel %vm1383_vm4, %v1620_v15, 0 }
 0x548   :  { %v1367_v24 = vpack.c.bf16 %v1351_v9, %v1351_v9  ;;  %2574 = vmatpush3.bf16.msra.mxu1 %v1625_v25 }
 0x549   :  { %2585 = vmatprep.subr.bf16.mxu1 %v2774_v4  ;;  %v2740_v46 = vpop.eup %2739 }
 0x54a   :  { %v1353_v26 = vmul.f32 %v2740_v46, %v3259_v17 }
 0x54b   :  { %2576 = vmatmul.mubr.msk.bf16.vlgmr.msra.gmra.mrb[48].mxu1 %vm1185_vm3, %v1367_v24 }
 0x54c   :  { %2587 = vmatprep.mubr.msk.bf16.mxu1 %vm2775_vm1, %v2774_v4  ;;  %v1369_v34 = vpack.c.bf16 %v1353_v26, %v1353_v26 }
 0x54d   :  { %v2742_v30 = vpop.eup %2741 }
 0x54e   :  { %v1355_v17 = vmul.f32 %v2742_v30, %v3263_v18 }
 0x550   :  { %v1371_v61 = vpack.c.bf16 %v1355_v17, %v1355_v17 }
 0x552   :  { %v1317_v58 = vpop.xlane.xlu1 %1316 }
 0x553   :  { %2743 = vrcp.f32 %v1317_v58 }
 0x556   :  { %v1716_v20 = vpop.permute.xlu1 %1715 }
 0x557   :  { %v1721_v54 = vsel %vm1383_vm4, %v1716_v20, 0 }
 0x558   :  { %2586 = vmatpush3.bf16.msra.mxu1 %v1721_v54 }
 0x559   :  { %2597 = vmatprep.subr.bf16.mxu1 %v2774_v4 }
 0x55a   :  { %v1812_v27 = vpop.permute.xlu1 %1811 }
 0x55b   :  { %v1817_v32 = vsel %vm1383_vm4, %v1812_v27, 0  ;;  %2588 = vmatmul.mubr.msk.bf16.vlgmr.msra.gmra.mrb[52].mxu1 %vm1185_vm3, %v1369_v34 }
 0x55c   :  { %2598 = vmatpush3.bf16.msra.mxu1 %v1817_v32  ;;  %2599 = vmatprep.mubr.msk.bf16.mxu1 %vm2775_vm1, %v2774_v4 }
 0x55d   :  { %2609 = vmatprep.subr.bf16.mxu1 %v2774_v4  ;;  %v2744_v28 = vpop.eup %2743 }
 0x55e   :  { %v1908_v11 = vpop.permute.xlu1 %1907  ;;  %v1357_v12 = vmul.f32 %v2744_v28, %v3269_v8 }
 0x55f   :  { %v1913_v38 = vsel %vm1383_vm4, %v1908_v11, 0 }
 0x560   :  { %v1373_v18 = vpack.c.bf16 %v1357_v12, %v1357_v12 }
 0x562   :  { %v2004_v36 = vpop.permute.xlu1 %2003 }
 0x563   :  { %2600 = vmatmul.mubr.msk.bf16.vlgmr.msra.gmra.mrb[56].mxu1 %vm1185_vm3, %v1371_v61  ;;  %v2009_v49 = vsel %vm1383_vm4, %v2004_v36, 0 }
 0x564   :  { %2610 = vmatpush3.bf16.msra.mxu1 %v1913_v38  ;;  %2611 = vmatprep.mubr.msk.bf16.mxu1 %vm2775_vm1, %v2774_v4 }
 0x565   :  { %2621 = vmatprep.subr.bf16.mxu1 %v2774_v4 }
 0x566   :  { %v2100_v43 = vpop.permute.xlu1 %2099 }
 0x567   :  { %v2105_v45 = vsel %vm1383_vm4, %v2100_v43, 0 }
 0x56a   :  { %v1379_v10 = vpop.permute.xlu1 %1378 }
 0x56b   :  { %v1385_v13 = vsel %vm1383_vm4, %v1379_v10, 0  ;;  %2612 = vmatmul.mubr.msk.bf16.vlgmr.msra.gmra.mrb[60].mxu1 %vm1185_vm3, %v1373_v18 }
 0x56c   :  { %2622 = vmatpush3.bf16.msra.mxu1 %v2009_v49  ;;  %2544 = vmatpush3.bf16.msra.mxu0 %v1385_v13 }
 0x56d   :  { %2623 = vmatprep.mubr.msk.bf16.mxu1 %vm2775_vm1, %v2774_v4  ;;  %2633 = vmatprep.subr.bf16.mxu1 %v2774_v4 }
 0x56e   :  { %2555 = vmatprep.subr.bf16.mxu0 %v2774_v4  ;;  %v1476_v52 = vpop.permute.xlu1 %1475 }
 0x56f   :  { %v1481_v57 = vsel %vm1383_vm4, %v1476_v52, 0 }
 0x577   :  { %v1323_v8 = vpop.xlane.xlu0 %1322 }
 0x578   :  { %2745 = vrcp.f32 %v1323_v8 }
 0x57b   :  { %v1329_v44 = vpop.xlane.xlu0 %1328 }
 0x57c   :  { %2747 = vrcp.f32 %v1329_v44 }
 0x57f   :  { %v1284_v37 = vpop.xlane.xlu0 %1283 }
 0x580   :  { %2749 = vrcp.f32 %v1284_v37 }
 0x582   :  { %v2746_v40 = vpop.eup %2745 }
 0x583   :  { %v1359_v48 = vmul.f32 %v2746_v40, %v3291_v35  ;;  %v1290_v19 = vpop.xlane.xlu0 %1289 }
 0x584   :  { %2751 = vrcp.f32 %v1290_v19  ;;  %v2684_v19 = vld [vmem:[%s3527_s5 + $0x8] sm:$0xff]  }
 0x585   :  { %v1375_v41 = vpack.c.bf16 %v1359_v48, %v1359_v48 }
 0x586   :  { %v2748_v56 = vpop.eup %2747 }
 0x587   :  { %2624 = vmatmul.mubr.msk.bf16.vlgmr.msra.gmra.mrb[64].mxu1 %vm1185_vm3, %v1375_v41  ;;  %v1296_v14 = vpop.xlane.xlu0 %1295  ;;  %v1361_v22 = vmul.f32 %v2748_v56, %v3298_v42 }
 0x588   :  { %2634 = vmatpush3.bf16.msra.mxu1 %v2105_v45  ;;  %2635 = vmatprep.mubr.msk.bf16.mxu1 %vm2775_vm1, %v2774_v4  ;;  %2753 = vrcp.f32 %v1296_v14 }
 0x589   :  { %v1377_v47 = vpack.c.bf16 %v1361_v22, %v1361_v22 }
 0x58a   :  { %v2750_v50 = vpop.eup %2749 }
 0x58b   :  { %v1346_v51 = vmul.f32 %v2750_v50, %v3305_v62  ;;  %v1302_v16 = vpop.xlane.xlu0 %1301  ;;  %v1572_v62 = vpop.permute.xlu1 %1571 }
 0x58c   :  { %2755 = vrcp.f32 %v1302_v16  ;;  %v1577_v60 = vsel %vm1383_vm4, %v1572_v62, 0 }
 0x58d   :  { %v1362_v35 = vpack.c.bf16 %v1346_v51, %v1346_v51 }
 0x58e   :  { %v2752_v55 = vpop.eup %2751 }
 0x58f   :  { %2546 = vmatmul.mubr.msk.bf16.vlgmr.msra.gmra.mrb[32].mxu0 %vm1185_vm3, %v1362_v35  ;;  %2636 = vmatmul.mubr.msk.bf16.vlgmr.msra.gmra.mrb[68].mxu1 %vm1185_vm3, %v1377_v47  ;;  %v1348_v42 = vmul.f32 %v2752_v55, %v3312_v31  ;;  %v1308_v39 = vpop.xlane.xlu0 %1307  ;;  %v1668_v1 = vpop.permute.xlu1 %1667 }
 0x590   :  { %2556 = vmatpush3.bf16.msra.mxu0 %v1481_v57  ;;  %2557 = vmatprep.mubr.msk.bf16.mxu0 %vm2775_vm1, %v2774_v4  ;;  %2757 = vrcp.f32 %v1308_v39  ;;  %v1673_v6 = vsel %vm1383_vm4, %v1668_v1, 0 }
 0x591   :  { %2567 = vmatprep.subr.bf16.mxu0 %v2774_v4  ;;  %v1364_v5 = vpack.c.bf16 %v1348_v42, %v1348_v42 }
 0x592   :  { %v2754_v59 = vpop.eup %2753 }
 0x593   :  { %v1350_v63 = vmul.f32 %v2754_v59, %v3319_v2  ;;  %v1314_v31 = vpop.xlane.xlu0 %1313  ;;  %v1764_v2 = vpop.permute.xlu1 %1763 }
 0x594   :  { %2759 = vrcp.f32 %v1314_v31  ;;  %v1769_v46 = vsel %vm1383_vm4, %v1764_v2, 0 }
 0x595   :  { %v1366_v33 = vpack.c.bf16 %v1350_v63, %v1350_v63 }
 0x596   :  { %v2756_v3 = vpop.eup %2755 }
 0x597   :  { %2558 = vmatmul.mubr.msk.bf16.vlgmr.msra.gmra.mrb[36].mxu0 %vm1185_vm3, %v1364_v5  ;;  %v1320_v7 = vpop.xlane.xlu0 %1319  ;;  %v1352_v9 = vmul.f32 %v2756_v3, %v3326_v21  ;;  %v1956_v30 = vpop.permute.xlu1 %1955 }
 0x598   :  { %2568 = vmatpush3.bf16.msra.mxu0 %v1577_v60  ;;  %2569 = vmatprep.mubr.msk.bf16.mxu0 %vm2775_vm1, %v2774_v4  ;;  %2761 = vrcp.f32 %v1320_v7  ;;  %v1961_v32 = vsel %vm1383_vm4, %v1956_v30, 0 }
 0x599   :  { %2579 = vmatprep.subr.bf16.mxu0 %v2774_v4  ;;  %v1368_v15 = vpack.c.bf16 %v1352_v9, %v1352_v9 }
 0x59a   :  { %v2758_v25 = vpop.eup %2757 }
 0x59b   :  { %v1326_v24 = vpop.xlane.xlu0 %1325  ;;  %v1354_v58 = vmul.f32 %v2758_v25, %v3332_v29  ;;  %v2052_v11 = vpop.permute.xlu1 %2051 }
 0x59c   :  { %2763 = vrcp.f32 %v1326_v24  ;;  %v2057_v28 = vsel %vm1383_vm4, %v2052_v11, 0 }
 0x59d   :  { %v1370_v26 = vpack.c.bf16 %v1354_v58, %v1354_v58 }
 0x59e   :  { %v2760_v20 = vpop.eup %2759 }
 0x59f   :  { %2570 = vmatmul.mubr.msk.bf16.vlgmr.msra.gmra.mrb[40].mxu0 %vm1185_vm3, %v1366_v33  ;;  %v1860_v21 = vpop.permute.xlu0 %1859  ;;  %v1356_v34 = vmul.f32 %v2760_v20, %v3338_v0 }
 0x5a0   :  { %2580 = vmatpush3.bf16.msra.mxu0 %v1673_v6  ;;  %2581 = vmatprep.mubr.msk.bf16.mxu0 %vm2775_vm1, %v2774_v4  ;;  %v1865_v54 = vsel %vm1383_vm4, %v1860_v21, 0 }
 0x5a1   :  { %2591 = vmatprep.subr.bf16.mxu0 %v2774_v4  ;;  %v1372_v29 = vpack.c.bf16 %v1356_v34, %v1356_v34 }
 0x5a2   :  { %v2762_v27 = vpop.eup %2761 }
 0x5a3   :  { %v1358_v17 = vmul.f32 %v2762_v27, %v3342_v23 }
 0x5a5   :  { %v1374_v0 = vpack.c.bf16 %v1358_v17, %v1358_v17 }
 0x5a6   :  { %v2764_v61 = vpop.eup %2763 }
 0x5a7   :  { %2582 = vmatmul.mubr.msk.bf16.vlgmr.msra.gmra.mrb[44].mxu0 %vm1185_vm3, %v1368_v15  ;;  %v1360_v36 = vmul.f32 %v2764_v61, %v3346_v53 }
 0x5a8   :  { %2592 = vmatpush3.bf16.msra.mxu0 %v1769_v46  ;;  %2593 = vmatprep.mubr.msk.bf16.mxu0 %vm2775_vm1, %v2774_v4 }
 0x5a9   :  { %2603 = vmatprep.subr.bf16.mxu0 %v2774_v4  ;;  %v1376_v38 = vpack.c.bf16 %v1360_v36, %v1360_v36 }
 0x5af   :  { %2594 = vmatmul.mubr.msk.bf16.vlgmr.msra.gmra.mrb[48].mxu0 %vm1185_vm3, %v1370_v26 }
 0x5b0   :  { %2604 = vmatpush3.bf16.msra.mxu0 %v1865_v54  ;;  %2605 = vmatprep.mubr.msk.bf16.mxu0 %vm2775_vm1, %v2774_v4 }
 0x5b1   :  { %2615 = vmatprep.subr.bf16.mxu0 %v2774_v4 }
 0x5b7   :  { %2606 = vmatmul.mubr.msk.bf16.vlgmr.msra.gmra.mrb[52].mxu0 %vm1185_vm3, %v1372_v29 }
 0x5b8   :  { %2616 = vmatpush3.bf16.msra.mxu0 %v1961_v32  ;;  %2617 = vmatprep.mubr.msk.bf16.mxu0 %vm2775_vm1, %v2774_v4 }
 0x5b9   :  { %2627 = vmatprep.subr.bf16.mxu0 %v2774_v4 }
 0x5bf   :  { %2618 = vmatmul.mubr.msk.bf16.vlgmr.msra.gmra.mrb[56].mxu0 %vm1185_vm3, %v1374_v0 }
 0x5c0   :  { %2628 = vmatpush3.bf16.msra.mxu0 %v2057_v28  ;;  %2629 = vmatprep.mubr.msk.bf16.mxu0 %vm2775_vm1, %v2774_v4  ;;  %v2683_v4 = vld [vmem:[%s3527_s5] sm:$0xff]  }
 0x5c1   :  { %2639 = vmatprep.subr.bf16.mxu0 %v2683_v4 }
 0x5c7   :  { %2630 = vmatmul.mubr.msk.bf16.vlgmr.msra.gmra.mrb[60].mxu0 %vm1185_vm3, %v1376_v38 }
 0x5c8   :  { %2640 = vmatpush3.bf16.msra.mxu0 %v2683_v4 }
 0x5c9   :  { %2641 = vmatprep.subr.bf16.mxu0 %v2684_v19 }
 0x5cc   :  { %2642 = vmatpush3.bf16.msra.mxu0 %v2684_v19 }
 0x5f1   :  { %v1469_v12 = vpop.f32.mrb[40].mxu1 }
 0x5f2   :  { %v2553_v23 = vpop.f32.mrb[41].mxu1 }
 0x5f3   :  { %v1472_v43 = vpop.f32.mrb[42].mxu1 }
 0x5f4   :  { %v2554_v18 = vpop.f32.mrb[43].mxu1 }
 0x5f9   :  { %v1565_v10 = vpop.f32.mrb[44].mxu1 }
 0x5fa   :  { %v2661_v49 = vpack.i.bf16 %v1565_v10, %v1469_v12  ;;  %v2565_v13 = vpop.f32.mrb[45].mxu1 }
 0x5fb   :  { %v1568_v8 = vpop.f32.mrb[46].mxu1 }
 0x5fc   :  { %2662 = vrot.lane.b32.xlu1 %v2661_v49, %s2778_s11  ;;  %v2566_v44 = vpop.f32.mrb[47].mxu1 }
 0x61e   :  { %v1661_v37 = vpop.f32.mrb[48].mxu1 }
 0x61f   :  { %v2577_v53 = vpop.f32.mrb[49].mxu1 }
 0x620   :  { %v1664_v40 = vpop.f32.mrb[50].mxu1 }
 0x621   :  { %v2578_v48 = vpop.f32.mrb[51].mxu1 }
 0x62e   :  { %v1757_v41 = vpop.f32.mrb[52].mxu1 }
 0x62f   :  { %v2666_v56 = vpack.i.bf16 %v1757_v41, %v1661_v37  ;;  %v2589_v45 = vpop.f32.mrb[53].mxu1 }
 0x630   :  { %v1760_v14 = vpop.f32.mrb[54].mxu1 }
 0x631   :  { %2667 = vrot.lane.b32.xlu1 %v2666_v56, %s2778_s11  ;;  %v2590_v22 = vpop.f32.mrb[55].mxu1 }
 0x636   :  { %v1853_v50 = vpop.f32.mrb[56].mxu1 }
 0x637   :  { %v2601_v51 = vpop.f32.mrb[57].mxu1 }
 0x638   :  { %v1856_v52 = vpop.f32.mrb[58].mxu1 }
 0x639   :  { %v2602_v35 = vpop.f32.mrb[59].mxu1 }
 0x63e   :  { %v1949_v47 = vpop.f32.mrb[60].mxu1 }
 0x63f   :  { %v2671_v55 = vpack.i.bf16 %v1949_v47, %v1853_v50  ;;  %v2613_v16 = vpop.f32.mrb[61].mxu1 }
 0x640   :  { %v1952_v57 = vpop.f32.mrb[62].mxu1 }
 0x641   :  { %2672 = vrot.lane.b32.xlu1 %v2671_v55, %s2778_s11  ;;  %v2614_v42 = vpop.f32.mrb[63].mxu1 }
 0x65a   :  { %v2045_v62 = vpop.f32.mrb[64].mxu1 }
 0x65b   :  { %v2625_v39 = vpop.f32.mrb[65].mxu1 }
 0x65c   :  { %v2048_v5 = vpop.f32.mrb[66].mxu1  ;;  %v2352_v39 = vld [vmem:[%s3528_s6] ss:$0 sm:$0xff] }
 0x65d   :  { %v2626_v59 = vpop.f32.mrb[67].mxu1 }
 0x662   :  { %v1421_v60 = vpop.f32.mrb[32].mxu0  ;;  %v2141_v63 = vpop.f32.mrb[68].mxu1 }
 0x663   :  { %v2676_v31 = vpack.i.bf16 %v2141_v63, %v2045_v62  ;;  %v2547_v1 = vpop.f32.mrb[33].mxu0  ;;  %v2637_v33 = vpop.f32.mrb[69].mxu1 }
 0x664   :  { %v1424_v3 = vpop.f32.mrb[34].mxu0  ;;  %v2144_v6 = vpop.f32.mrb[70].mxu1  ;;  %v2765_v1 = vld [vmem:[%s3521_s0 + $0x10] sm:$0xff] }
 0x665   :  { %2677 = vrot.lane.b32.xlu1 %v2676_v31, %s2778_s11  ;;  %v2548_v7 = vpop.f32.mrb[35].mxu0  ;;  %v2638_v9 = vpop.f32.mrb[71].mxu1 }
 0x666   :  { %v2766_v7 = vld [vmem:[%s3521_s0] sm:$0xff] }
 0x66a   :  { %v1517_v2 = vpop.f32.mrb[36].mxu0 }
 0x66b   :  { %v2559_v15 = vpop.f32.mrb[37].mxu0 }
 0x66c   :  { %v1520_v25 = vpop.f32.mrb[38].mxu0  ;;  %v2767_v15 = vld [vmem:[%s3521_s0 + $0x18] sm:$0xff] }
 0x66d   :  { %v2560_v24 = vpop.f32.mrb[39].mxu0 }
 0x66e   :  { %v2663_v46 = vpop.permute.xlu1 %2662  ;;  %v2768_v24 = vld [vmem:[%s3521_s0 + $0x8] sm:$0xff] }
 0x66f   :  { %v2665_v58 = vunpack.i.h.bf16 %v2663_v46  ;;  %v2664_v21 = vunpack.i.l.bf16 %v2663_v46 }
 0x671   :  { %v2179_v26 = vsel %vm385_vm2, %v1421_v60, %v2664_v21  ;;  %v2180_v20 = vsel %vm385_vm2, %v1517_v2, %v2665_v58 }
 0x672   :  { %v2187_v54 = vpack.c.bf16 %v2180_v20, %v2179_v26  ;;  %v1613_v34 = vpop.f32.mrb[40].mxu0 }
 0x673   :  { %v2571_v30 = vpop.f32.mrb[41].mxu0 }
 0x674   :  { %2643 = vmatprep.mubr.msk.bf16.mxu0 %vm38_vm0, %v2187_v54  ;;  %v1616_v29 = vpop.f32.mrb[42].mxu0 }
 0x675   :  { %v2572_v27 = vpop.f32.mrb[43].mxu0 }
 0x67a   :  { %v1709_v32 = vpop.f32.mrb[44].mxu0 }
 0x67b   :  { %v2583_v17 = vpop.f32.mrb[45].mxu0 }
 0x67c   :  { %v1712_v11 = vpop.f32.mrb[46].mxu0 }
 0x67d   :  { %v2584_v0 = vpop.f32.mrb[47].mxu0 }
 0x67e   :  { %v2771_v0 = vld [vmem:[%s3521_s0 + $0x38] sm:$0xff] }
 0x682   :  { %v1805_v61 = vpop.f32.mrb[48].mxu0 }
 0x683   :  { %v2595_v28 = vpop.f32.mrb[49].mxu0 }
 0x684   :  { %v1808_v36 = vpop.f32.mrb[50].mxu0  ;;  %v2772_v28 = vld [vmem:[%s3521_s0 + $0x28] sm:$0xff] }
 0x685   :  { %v2596_v38 = vpop.f32.mrb[51].mxu0 }
 0x68a   :  { %v1901_v12 = vpop.f32.mrb[52].mxu0 }
 0x68b   :  { %v2607_v23 = vpop.f32.mrb[53].mxu0 }
 0x68c   :  { %v1904_v43 = vpop.f32.mrb[54].mxu0 }
 0x68d   :  { %v2608_v18 = vpop.f32.mrb[55].mxu0 }
 0x692   :  { %v1997_v10 = vpop.f32.mrb[56].mxu0 }
 0x693   :  { %v2619_v49 = vpop.f32.mrb[57].mxu0 }
 0x694   :  { %v2000_v13 = vpop.f32.mrb[58].mxu0 }
 0x695   :  { %v2620_v8 = vpop.f32.mrb[59].mxu0 }
 0x69a   :  { %v2093_v44 = vpop.f32.mrb[60].mxu0 }
 0x69b   :  { %v2631_v37 = vpop.f32.mrb[61].mxu0 }
 0x69c   :  { %v2096_v4 = vpop.f32.mrb[62].mxu0 }
 0x69d   :  { %v2632_v53 = vpop.f32.mrb[63].mxu0 }
 0x6a3   :  { %v2668_v40 = vpop.permute.xlu1 %2667 }
 0x6a4   :  { %v2670_v48 = vunpack.i.h.bf16 %v2668_v40  ;;  %v2669_v19 = vunpack.i.l.bf16 %v2668_v40 }
 0x6a6   :  { %v2181_v41 = vsel %vm385_vm2, %v1613_v34, %v2669_v19  ;;  %v2182_v56 = vsel %vm385_vm2, %v1709_v32, %v2670_v48  ;;  %v2769_v34 = vld [vmem:[%s3521_s0 + $0x30] sm:$0xff]  ;;  %v2770_v32 = vld [vmem:[%s3521_s0 + $0x20] sm:$0xff] }
 0x6a7   :  { %v2188_v45 = vpack.c.bf16 %v2182_v56, %v2181_v41 }
 0x6a9   :  { %2644 = vmatmul.mubr.msk.bf16.vlgmr.msra.gmra.mrb[64].mxu0 %vm38_vm0, %v2188_v45 }
 0x6b3   :  { %v2673_v14 = vpop.permute.xlu1 %2672 }
 0x6b4   :  { %v2675_v22 = vunpack.i.h.bf16 %v2673_v14  ;;  %v2674_v50 = vunpack.i.l.bf16 %v2673_v14 }
 0x6b6   :  { %v2183_v51 = vsel %vm385_vm2, %v1805_v61, %v2674_v50  ;;  %v2184_v52 = vsel %vm385_vm2, %v1901_v12, %v2675_v22 }
 0x6b7   :  { %v2189_v35 = vpack.c.bf16 %v2184_v52, %v2183_v51 }
 0x6b9   :  { %2647 = vmatprep.mubr.msk.bf16.mxu0 %vm38_vm0, %v2189_v35 }
 0x6d7   :  { %v2678_v47 = vpop.permute.xlu1 %2677 }
 0x6d8   :  { %v2680_v55 = vunpack.i.h.bf16 %v2678_v47  ;;  %v2679_v16 = vunpack.i.l.bf16 %v2678_v47 }
 0x6da   :  { %v2185_v57 = vsel %vm385_vm2, %v1997_v10, %v2679_v16  ;;  %v2186_v42 = vsel %vm385_vm2, %v2093_v44, %v2680_v55 }
 0x6db   :  { %v2190_v62 = vpack.c.bf16 %v2186_v42, %v2185_v57 }
 0x6dd   :  { %2648 = vmatmul.mubr.msk.bf16.gmra.mrb[68].mxu0 %vm38_vm0, %v2190_v62 }
 0x77c   :  { %v2645_v5 = vpop.f32.mrb[64].mxu0 }
 0x77d   :  { %v2269_v59 = vadd.f32 %v2645_v5, %v2352_v39  ;;  %v2260_v60 = vpop.f32.mrb[65].mxu0 }
 0x77e   :  { %v2261_v63 = vadd.f32 %v2352_v39, %v2260_v60  ;;  %v2646_v31 = vpop.f32.mrb[66].mxu0 }
 0x77f   :  { %v2293_v33 = vadd.f32 %v2765_v1, %v2269_v59  ;;  %v2272_v3 = vadd.f32 %v2646_v31, %v2352_v39  ;;  %v2263_v6 = vpop.f32.mrb[67].mxu0 }
 0x780   :  { %v2291_v9 = vadd.f32 %v2766_v7, %v2261_v63  ;;  %v2264_v2 = vadd.f32 %v2352_v39, %v2263_v6 }
 0x781   :  { %2301 = vst.msk [vmem:[%s3529_s8 + $0x10] sm:$0xff] %vm38_vm0, %v2293_v33  ;;  %v2294_v25 = vadd.f32 %v2767_v15, %v2272_v3 }
 0x782   :  { %2299 = vst.msk [vmem:[%s3529_s8] sm:$0xff] %vm38_vm0, %v2291_v9  ;;  %v2292_v46 = vadd.f32 %v2768_v24, %v2264_v2 }
 0x783   :  { %2302 = vst.msk [vmem:[%s3529_s8 + $0x18] sm:$0xff] %vm38_vm0, %v2294_v25 }
 0x784   :  { %2300 = vst.msk [vmem:[%s3529_s8 + $0x8] sm:$0xff] %vm38_vm0, %v2292_v46 }
 0x7b0   :  { %v2649_v58 = vpop.f32.mrb[68].mxu0 }
 0x7b1   :  { %v2285_v21 = vadd.f32 %v2649_v58, %v2352_v39  ;;  %v2276_v26 = vpop.f32.mrb[69].mxu0 }
 0x7b2   :  { %v2277_v20 = vadd.f32 %v2352_v39, %v2276_v26  ;;  %v2650_v54 = vpop.f32.mrb[70].mxu0 }
 0x7b3   :  { %v2297_v30 = vadd.f32 %v2769_v34, %v2285_v21  ;;  %v2288_v29 = vadd.f32 %v2650_v54, %v2352_v39  ;;  %v2279_v27 = vpop.f32.mrb[71].mxu0 }
 0x7b4   :  { %v2295_v17 = vadd.f32 %v2770_v32, %v2277_v20  ;;  %v2280_v11 = vadd.f32 %v2352_v39, %v2279_v27 }
 0x7b5   :  { %2305 = vst.msk [vmem:[%s3529_s8 + $0x30] sm:$0xff] %vm38_vm0, %v2297_v30  ;;  %v2298_v61 = vadd.f32 %v2771_v0, %v2288_v29 }
 0x7b6   :  { %2303 = vst.msk [vmem:[%s3529_s8 + $0x20] sm:$0xff] %vm38_vm0, %v2295_v17  ;;  %v2296_v36 = vadd.f32 %v2772_v28, %v2280_v11 }
 0x7b7   :  { %2306 = vst.msk [vmem:[%s3529_s8 + $0x38] sm:$0xff] %vm38_vm0, %v2298_v61 }
 0x7b8   :  { %2304 = vst.msk [vmem:[%s3529_s8 + $0x28] sm:$0xff] %vm38_vm0, %v2296_v36 }

// kernel: video_swin_forward.16
= control target key start
LH: loop header
LB: loop body
LE: loop exit
PB: predicated region body
PF: predicated region fallthrough
CT: control target
= control target key end

     0   :  { %s486_s15 = smov 0   ;;  %s540_s0 = inlined_call_operand.vmem [shape: f32[16,128], index: 0, kind: input, shape index: {}]   ;;  %s541_s1 = inlined_call_operand.vmem [shape: f32[1,128], index: 1, kind: input, shape index: {}]   ;;  %s542_s2 = inlined_call_operand.vmem [shape: f32[1,128], index: 2, kind: input, shape index: {}]   ;;  %s543_s3 = inlined_call_operand.vmem [shape: bf16[128,64], index: 3, kind: input, shape index: {}]   ;;  %s544_s4 = inlined_call_operand.vmem [shape: f32[16,64], index: 4, kind: output, shape index: {}]  }
   0x1 LB: > { %s383_s16 = sadd.s32 4294967295, %s457_s15   ;;  %p387_p0 = scmp.ge.s32.totalorder %s457_s15, 1  ;;  %s457_s15 = sphi %s486_s15, %s14_s15  }
   0x2   : > { %p161_p1 = scmp.lt.s32.totalorder %s457_s15, 3 }
   0x4   : > { %p162_p2 = pnand %p387_p0, %p161_p1 }
   0x5   : > { %p185_p3 = scmp.lt.s32.totalorder (!%p162_p2), %s383_s16, 1  ;;  %v441_v1 = vld [vmem:[%s543_s3] sm:$0xff] (!%p162_p2)   ;;  %v459_v2 = vmov (!%p162_p2), 0.0   ;;  %v442_v3 = vld [vmem:[%s543_s3 + $0x8] sm:$0xff] (!%p162_p2)   ;;  %v443_v8 = vld [vmem:[%s543_s3 + $0x10] sm:$0xff] (!%p162_p2)   ;;  %vm460_vm0 = vmmov (!%p162_p2), 0  }
   0x6   : > { %165 = sbr.rel (%p162_p2) target bundleno = 545 (0x221), region = 36  ;;  %411 = vmatprep.subr.bf16.mxu0 (!%p162_p2), %v459_v2  ;;  %v444_v9 = vld [vmem:[%s543_s3 + $0x18] sm:$0xff] (!%p162_p2)   ;;  %v445_v10 = vld [vmem:[%s543_s3 + $0x20] sm:$0xff] (!%p162_p2)   ;;  %427 = vmatprep.mubr.msk.bf16.mxu0 (!%p162_p2), %vm460_vm0, %v459_v2  ;;  %v446_v11 = vld [vmem:[%s543_s3 + $0x28] sm:$0xff] (!%p162_p2)   ;;  %vm328_vm1 = vcmask (!%p162_p2), 523264  }
   0x7   : > { %412 = vmatpush3.bf16.msra.mxu0 (!%p162_p2), %v441_v1  ;;  %v447_v12 = vld [vmem:[%s543_s3 + $0x30] sm:$0xff] (!%p162_p2)   ;;  %v448_v13 = vld [vmem:[%s543_s3 + $0x38] sm:$0xff] (!%p162_p2)   ;;  %v390_v18 = vld [vmem:[%s541_s1] ss:$0 sm:$0xff] (!%p162_p2) }
   0x8   : > { %413 = vmatprep.subr.bf16.mxu0 (!%p162_p2), %v459_v2  ;;  %v391_v20 = vld [vmem:[%s542_s2] ss:$0 sm:$0xff] (!%p162_p2) }
   0xb   : > { %414 = vmatpush3.bf16.msra.mxu0 (!%p162_p2), %v442_v3 }
   0xc   : > { %415 = vmatprep.subr.bf16.mxu0 (!%p162_p2), %v459_v2 }
   0xd   : > { %s546_s16 = smov (!%p185_p3, %s383_s16), 1 }
   0xe   : > { %s388_s17 = sshll.u32 %s546_s16, 3 }
   0xf   : > { %s188_s20 = scalar_lea.vmem %s540_s0, %s388_s17  ;;  %416 = vmatpush3.bf16.msra.mxu0 %v443_v8 }
  0x10   : > { %v194_v0 = vld [vmem:[%s188_s20] sm:$0xff]  ;;  %417 = vmatprep.subr.bf16.mxu0 %v459_v2  ;;  %s192_s20 = scalar_lea.vmem %s544_s4, %s388_s17 }
  0x11   : > { %195 = vadd.xlane.f32.xlu0 %v194_v0 }
  0x13   : > { %418 = vmatpush3.bf16.msra.mxu0 %v444_v9 }
  0x14   : > { %419 = vmatprep.subr.bf16.mxu0 %v459_v2 }
  0x17   : > { %420 = vmatpush3.bf16.msra.mxu0 %v445_v10 }
  0x18   : > { %421 = vmatprep.subr.bf16.mxu0 %v459_v2 }
  0x1b   : > { %422 = vmatpush3.bf16.msra.mxu0 %v446_v11 }
  0x1c   : > { %423 = vmatprep.subr.bf16.mxu0 %v459_v2 }
  0x1f   : > { %424 = vmatpush3.bf16.msra.mxu0 %v447_v12 }
  0x20   : > { %425 = vmatprep.subr.bf16.mxu0 %v459_v2 }
  0x23   : > { %426 = vmatpush3.bf16.msra.mxu0 %v448_v13 }
  0x9e   : > { %v196_v4 = vpop.xlane.xlu0 %195 }
  0x9f   : > { %v198_v5 = vmul.f32 0.0078125, %v196_v4 }
  0xa1   : > { %v199_v6 = vsub.f32 %v194_v0, %v198_v5 }
  0xa3   : > { %v200_v7 = vmul.f32 %v199_v6, %v199_v6 }
  0xa5   : > { %201 = vadd.xlane.f32.xlu0 %v200_v7 }
 0x132   : > { %v202_v14 = vpop.xlane.xlu0 %201 }
 0x133   : > { %v203_v15 = vmul.f32 0.0078125, %v202_v14 }
 0x135   : > { %v204_v16 = vadd.f32 1e-05, %v203_v15 }
 0x137   : > { %449 = vrsqrt.f32 %v204_v16 }
 0x141   : > { %v450_v17 = vpop.eup %449 }
 0x142   : > { %v206_v19 = vmul.f32 %v450_v17, %v199_v6 }
 0x144   : > { %v214_v21 = vmul.f32 %v390_v18, %v206_v19 }
 0x146   : > { %v222_v22 = vadd.f32 %v391_v20, %v214_v21 }
 0x148   : > { %v223_v23 = vpack.c.bf16 %v222_v22, %v222_v22 }
 0x14a   : > { %428 = vmatmul.mubr.bf16.vlgmr.msra.gmra.mrb[0].mxu0 %v223_v23 }
 0x21d   : > { %v322_v24 = vpop.f32.mrb[0].mxu0 }
 0x21e   : > { %329 = vst.msk [vmem:[%s192_s20] sm:$0xff] %vm328_vm1, %v322_v24  ;;  %v429_v25 = vpop.f32.mrb[1].mxu0 }
 0x21f   : > { %v325_v26 = vpop.f32.mrb[2].mxu0 }
 0x220   : > { %v430_v27 = vpop.f32.mrb[3].mxu0 }
 0x221 PF: > { %s14_s15 = sadd.s32 1, %s457_s15  }
 0x222   : > { %p11_p4 = scmp.ge.s32.totalorder %s14_s15, 4  }
 0x224   :  { %13 = sbr.rel (!%p11_p4) target bundleno = 1 (0x1), region = 66 }

// kernel: video_swin_forward.18
= control target key start
LH: loop header
LB: loop body
LE: loop exit
PB: predicated region body
PF: predicated region fallthrough
CT: control target
= control target key end

     0   :  { %s813_s24 = smov 0   ;;  %s930_s0 = inlined_call_operand.vmem [shape: f32[16,64], index: 0, kind: input, shape index: {}]   ;;  %s931_s1 = inlined_call_operand.vmem [shape: f32[1,64], index: 1, kind: input, shape index: {}]   ;;  %s932_s2 = inlined_call_operand.vmem [shape: f32[1,64], index: 2, kind: input, shape index: {}]   ;;  %s933_s3 = inlined_call_operand.vmem [shape: bf16[64,256], index: 3, kind: input, shape index: {}]   ;;  %s934_s4 = inlined_call_operand.vmem [shape: f32[1,256], index: 4, kind: input, shape index: {}]   ;;  %s935_s5 = inlined_call_operand.vmem [shape: bf16[256,64], index: 5, kind: input, shape index: {}]   ;;  %s936_s6 = inlined_call_operand.vmem [shape: f32[1,64], index: 6, kind: input, shape index: {}]   ;;  %s937_s7 = inlined_call_operand.vmem [shape: f32[16,64], index: 7, kind: output, shape index: {}]  }
   0x1 LB: > { %s662_s25 = sadd.s32 4294967295, %s770_s24   ;;  %p666_p0 = scmp.ge.s32.totalorder %s770_s24, 1  ;;  %s770_s24 = sphi %s813_s24, %s17_s24  }
   0x2   : > { %p236_p1 = scmp.lt.s32.totalorder %s770_s24, 3 }
   0x4   : > { %p237_p2 = pnand %p666_p0, %p236_p1 }
   0x5   : > { %p266_p3 = scmp.lt.s32.totalorder (!%p237_p2), %s662_s25, 1  ;;  %vm276_vm0 = vcmask (!%p237_p2), 523264   ;;  %v730_v7 = vld [vmem:[%s933_s3 + $0x4] ss:$8 sps:$4 sm:$0xff] (!%p237_p2)   ;;  %v732_v8 = vld [vmem:[%s933_s3] ss:$8 sps:$4 sm:$0xff] (!%p237_p2)   ;;  %v318_v42 = vlaneseq (!%p237_p2) }
   0x6   : > { %240 = sbr.rel (%p237_p2) target bundleno = 797 (0x31d), region = 48  ;;  %371 = vmatprep.subr.bf16.mxu0 (!%p237_p2), %v730_v7  ;;  %v733_v9 = vld [vmem:[%s933_s3 + $0x14] ss:$8 sps:$4 sm:$0xff] (!%p237_p2)   ;;  %v735_v10 = vld [vmem:[%s933_s3 + $0x10] ss:$8 sps:$4 sm:$0xff] (!%p237_p2)   ;;  %v772_v15 = vmov (!%p237_p2), 0  }
   0x7   : > { %372 = vmatpush1.bf16.msra.mxu0 (!%p237_p2), %v732_v8  ;;  %v736_v11 = vld [vmem:[%s933_s3 + $0x24] ss:$8 sps:$4 sm:$0xff] (!%p237_p2)   ;;  %v738_v12 = vld [vmem:[%s933_s3 + $0x20] ss:$8 sps:$4 sm:$0xff] (!%p237_p2)   ;;  %v739_v13 = vld [vmem:[%s933_s3 + $0x34] ss:$8 sps:$4 sm:$0xff] (!%p237_p2)   ;;  %403 = vmatprep.mubr.bf16.mxu0 (!%p237_p2), %v772_v15 }
   0x8   : > { %373 = vmatprep.subr.bf16.mxu0 (!%p237_p2), %v733_v9  ;;  %v741_v14 = vld [vmem:[%s933_s3 + $0x30] ss:$8 sps:$4 sm:$0xff] (!%p237_p2)   ;;  %v669_v20 = vld [vmem:[%s931_s1] ss:$0 sm:$0xff] (!%p237_p2)  ;;  %v744_v28 = vld [vmem:[%s935_s5 + $0x48] sm:$0xff] (!%p237_p2)   ;;  %v319_v43 = vshrl.u32 (!%p237_p2), %v318_v42, 7 }
   0x9   : > { %v670_v22 = vld [vmem:[%s932_s2] ss:$0 sm:$0xff] (!%p237_p2)  ;;  %v745_v29 = vld [vmem:[%s935_s5 + $0x8] sm:$0xff] (!%p237_p2)   ;;  %v746_v30 = vld [vmem:[%s935_s5 + $0x50] sm:$0xff] (!%p237_p2)  }
   0xa   : > { %v742_v26 = vld [vmem:[%s935_s5 + $0x40] sm:$0xff] (!%p237_p2)   ;;  %v747_v31 = vld [vmem:[%s935_s5 + $0x10] sm:$0xff] (!%p237_p2)   ;;  %v748_v32 = vld [vmem:[%s935_s5 + $0x58] sm:$0xff] (!%p237_p2)   ;;  %v320_v44 = vsub.s32 (!%p237_p2), 0, %v319_v43  ;;  %v324_v46 = vsub.s32 (!%p237_p2), 1, %v319_v43 }
   0xb   : > { %374 = vmatpush1.bf16.msra.mxu0 (!%p237_p2), %v735_v10  ;;  %v743_v27 = vld [vmem:[%s935_s5] sm:$0xff] (!%p237_p2)   ;;  %699 = vmatprep.subr.bf16.mxu1 (!%p237_p2), %v742_v26  ;;  %v749_v33 = vld [vmem:[%s935_s5 + $0x18] sm:$0xff] (!%p237_p2)   ;;  %v752_v36 = vld [vmem:[%s935_s5 + $0x68] sm:$0xff] (!%p237_p2)  }
   0xc   : > { %375 = vmatprep.subr.bf16.mxu0 (!%p237_p2), %v736_v11  ;;  %700 = vmatpush3.bf16.msra.mxu1 (!%p237_p2), %v743_v27  ;;  %v750_v34 = vld [vmem:[%s935_s5 + $0x60] sm:$0xff] (!%p237_p2)   ;;  %v753_v37 = vld [vmem:[%s935_s5 + $0x28] sm:$0xff] (!%p237_p2)   ;;  %v754_v38 = vld [vmem:[%s935_s5 + $0x70] sm:$0xff] (!%p237_p2)  }
   0xd   : > { %s939_s25 = smov (!%p266_p3, %s662_s25), 1  ;;  %701 = vmatprep.subr.bf16.mxu1 %v744_v28  ;;  %v751_v35 = vld [vmem:[%s935_s5 + $0x20] sm:$0xff]   ;;  %v755_v39 = vld [vmem:[%s935_s5 + $0x30] sm:$0xff]   ;;  %v756_v40 = vld [vmem:[%s935_s5 + $0x78] sm:$0xff]  }
   0xe   : > { %s667_s26 = sshll.u32 %s939_s25, 3  ;;  %v757_v41 = vld [vmem:[%s935_s5 + $0x38] sm:$0xff]   ;;  %v316_v45 = vld [vmem:[%s934_s4] sm:$0x3] }
   0xf   : > { %s269_s29 = scalar_lea.vmem %s930_s0, %s667_s26  ;;  %376 = vmatpush1.bf16.msra.mxu0 %v738_v12  ;;  %v321_v47 = vrot.slane %v316_v45, %v320_v44  ;;  %v325_v48 = vrot.slane %v316_v45, %v324_v46  ;;  %s273_s28 = scalar_lea.vmem %s937_s7, %s667_s26 }
  0x10   : > { %v829_v0 = vld [vmem:[%s269_s29] sm:$0xff]  ;;  %377 = vmatprep.subr.bf16.mxu0 %v739_v13  ;;  %702 = vmatpush3.bf16.msra.mxu1 %v745_v29 }
  0x11   : > { %v277_v1 = vsel %vm276_vm0, %v829_v0, 0.0  ;;  %703 = vmatprep.subr.bf16.mxu1 %v746_v30  ;;  %v680_v13 = vld [vmem:[%s936_s6] ss:$0 sm:$0xff] }
  0x12   : > { %278 = vadd.xlane.f32.xlu0 %v277_v1 }
  0x13   : > { %378 = vmatpush1.bf16.msra.mxu0 %v741_v14 }
  0x14   : > { %704 = vmatpush3.bf16.msra.mxu1 %v747_v31 }
  0x15   : > { %705 = vmatprep.subr.bf16.mxu1 %v748_v32 }
  0x18   : > { %706 = vmatpush3.bf16.msra.mxu1 %v749_v33 }
  0x19   : > { %707 = vmatprep.subr.bf16.mxu1 %v750_v34 }
  0x1c   : > { %708 = vmatpush3.bf16.msra.mxu1 %v751_v35 }
  0x1d   : > { %709 = vmatprep.subr.bf16.mxu1 %v752_v36 }
  0x20   : > { %710 = vmatpush3.bf16.msra.mxu1 %v753_v37 }
  0x21   : > { %711 = vmatprep.subr.bf16.mxu1 %v754_v38 }
  0x24   : > { %712 = vmatpush3.bf16.msra.mxu1 %v755_v39 }
  0x25   : > { %713 = vmatprep.subr.bf16.mxu1 %v756_v40 }
  0x28   : > { %714 = vmatpush3.bf16.msra.mxu1 %v757_v41 }
  0x9f   : > { %v279_v2 = vpop.xlane.xlu0 %278 }
  0xa0   : > { %v281_v3 = vmul.f32 0.015625, %v279_v2 }
  0xa2   : > { %v282_v4 = vsub.f32 %v829_v0, %v281_v3 }
  0xa4   : > { %v283_v5 = vmul.f32 %v282_v4, %v282_v4 }
  0xa6   : > { %v284_v6 = vsel %vm276_vm0, %v283_v5, 0.0 }
  0xa7   : > { %285 = vadd.xlane.f32.xlu0 %v284_v6 }
 0x134   : > { %v286_v16 = vpop.xlane.xlu0 %285 }
 0x135   : > { %v287_v17 = vmul.f32 0.015625, %v286_v16 }
 0x137   : > { %v288_v18 = vadd.f32 1e-05, %v287_v17 }
 0x139   : > { %758 = vrsqrt.f32 %v288_v18 }
 0x143   : > { %v759_v19 = vpop.eup %758 }
 0x144   : > { %v290_v21 = vmul.f32 %v759_v19, %v282_v4 }
 0x146   : > { %v298_v23 = vmul.f32 %v669_v20, %v290_v21 }
 0x148   : > { %v306_v24 = vadd.f32 %v670_v22, %v298_v23 }
 0x14a   : > { %v307_v25 = vpack.c.bf16 %v306_v24, %v306_v24 }
 0x14c   : > { %679 = vmatmul.mubr.msk.bf16.vlgmr.msra.gmra.mrb[0].mxu0 %vm276_vm0, %v307_v25 }
 0x21f   : > { %v405_v49 = vpop.f32.mrb[0].mxu0 }
 0x220   : > { %v406_v50 = vadd.f32 %v405_v49, %v321_v47  ;;  %v407_v51 = vpop.f32.mrb[1].mxu0 }
 0x221   : > { %v408_v52 = vadd.f32 %v407_v51, %v325_v48  ;;  %v409_v53 = vpop.f32.mrb[2].mxu0 }
 0x222   : > { %v412_v54 = vmul.f32 %v406_v50, %v406_v50  ;;  %v410_v55 = vpop.f32.mrb[3].mxu0 }
 0x223   : > { %v413_v56 = vmul.f32 %v408_v52, %v408_v52 }
 0x224   : > { %v414_v57 = vmul.f32 %v412_v54, %v406_v50 }
 0x225   : > { %v415_v58 = vmul.f32 %v413_v56, %v408_v52 }
 0x226   : > { %v416_v59 = vmul.f32 0.044715, %v414_v57 }
 0x227   : > { %v417_v60 = vmul.f32 0.044715, %v415_v58 }
 0x228   : > { %v418_v61 = vadd.f32 %v416_v59, %v406_v50 }
 0x229   : > { %v419_v62 = vadd.f32 %v417_v60, %v408_v52 }
 0x22a   : > { %v420_v63 = vmul.f32 0.7978846, %v418_v61 }
 0x22b   : > { %v421_v1 = vmul.f32 0.7978846, %v419_v62 }
 0x22c   : > { %760 = vtanh.f32 %v420_v63 }
 0x22d   : > { %762 = vtanh.f32 %v421_v1 }
 0x236   : > { %v761_v2 = vpop.eup %760 }
 0x237   : > { %v763_v3 = vpop.eup %762  ;;  %v424_v4 = vadd.f32 1.0, %v761_v2 }
 0x238   : > { %v425_v5 = vadd.f32 1.0, %v763_v3 }
 0x239   : > { %v426_v6 = vmul.f32 0.5, %v424_v4 }
 0x23a   : > { %v427_v7 = vmul.f32 0.5, %v425_v5 }
 0x23b   : > { %v428_v8 = vmul.f32 %v426_v6, %v406_v50 }
 0x23c   : > { %v429_v9 = vmul.f32 %v427_v7, %v408_v52 }
 0x23d   : > { %v430_v11 = vpack.c.bf16 %v428_v8, %v428_v8 }
 0x23e   : > { %v431_v10 = vpack.c.bf16 %v429_v9, %v429_v9 }
 0x240   : > { %599 = vmatprep.mubr.bf16.mxu1 %v431_v10 }
 0x241   : > { %600 = vmatmul.mubr.bf16.vlgmr.msra.gmra.mrb[0].mxu1 %v430_v11 }
 0x314   : > { %v715_v12 = vpop.f32.mrb[0].mxu1 }
 0x315   : > { %v716_v14 = vpop.f32.mrb[1].mxu1 }
 0x316   : > { %v717_v15 = vadd.f32 %v716_v14, %v715_v12  ;;  %v718_v16 = vpop.f32.mrb[2].mxu1 }
 0x317   : > { %v719_v17 = vpop.f32.mrb[3].mxu1 }
 0x318   : > { %v602_v18 = vadd.f32 %v717_v15, %v680_v13 }
 0x31a   : > { %v607_v19 = vadd.f32 %v602_v18, %v829_v0 }
 0x31c   : > { %608 = vst.msk [vmem:[%s273_s28] sm:$0xff] %vm276_vm0, %v607_v19 }
 0x31d PF: > { %s17_s24 = sadd.s32 1, %s770_s24  }
 0x31e   : > { %p14_p4 = scmp.ge.s32.totalorder %s17_s24, 4  }
 0x320   :  { %16 = sbr.rel (!%p14_p4) target bundleno = 1 (0x1), region = 78 }

// kernel: video_swin_forward.14
= control target key start
LH: loop header
LB: loop body
LE: loop exit
PB: predicated region body
PF: predicated region fallthrough
CT: control target
= control target key end

     0   :  { %vm38_vm0 = vcmask 261120   ;;  %s2779_s28 = smov 112   ;;  %vm2781_vm1 = vmmov 0   ;;  %vm385_vm2 = vcmask 130048   ;;  %vm1191_vm3 = vcmask 64512   ;;  %s2784_s23 = smov 16   ;;  %s3537_s0 = inlined_call_operand.vmem [shape: f32[8,8,32], index: 0, kind: input, shape index: {}]   ;;  %s3538_s3 = inlined_call_operand.vmem [shape: bf16[32,96], index: 3, kind: input, shape index: {}]   ;;  %s3539_s1 = inlined_call_operand.vmem [shape: f32[1,32], index: 1, kind: input, shape index: {}]   ;;  %s3540_s2 = inlined_call_operand.vmem [shape: f32[1,32], index: 2, kind: input, shape index: {}]   ;;  %s3541_s4 = inlined_call_operand.vmem [shape: f32[1,96], index: 4, kind: input, shape index: {}]   ;;  %s3542_s7 = inlined_call_operand.vmem [shape: f32[8,8,8], index: 7, kind: input, shape index: {}]   ;;  %s3543_s5 = inlined_call_operand.vmem [shape: bf16[32,32], index: 5, kind: input, shape index: {}]   ;;  %s3544_s6 = inlined_call_operand.vmem [shape: f32[1,32], index: 6, kind: input, shape index: {}]   ;;  %s3545_s8 = inlined_call_operand.vmem [shape: f32[8,8,32], index: 8, kind: output, shape index: {}]  }
   0x1   :  { %v30_v0 = vld [vmem:[%s3537_s0] sm:$0xff]  ;;  %v32_v1 = vld [vmem:[%s3537_s0 + $0x10] sm:$0xff]  ;;  %v31_v2 = vld [vmem:[%s3537_s0 + $0x8] sm:$0xff]  ;;  %vm1389_vm4 = vcmask 1043456  }
   0x2   :  { %v39_v3 = vsel %vm38_vm0, %v30_v0, 0.0  ;;  %v45_v4 = vsel %vm38_vm0, %v32_v1, 0.0  ;;  %v33_v5 = vld [vmem:[%s3537_s0 + $0x18] sm:$0xff]  ;;  %v42_v6 = vsel %vm38_vm0, %v31_v2, 0.0  ;;  %v34_v8 = vld [vmem:[%s3537_s0 + $0x20] sm:$0xff]  ;;  %v35_v9 = vld [vmem:[%s3537_s0 + $0x28] sm:$0xff] }
   0x3   :  { %40 = vadd.xlane.f32.xlu0 %v39_v3  ;;  %46 = vadd.xlane.f32.xlu1 %v45_v4  ;;  %v48_v7 = vsel %vm38_vm0, %v33_v5, 0.0  ;;  %v51_v10 = vsel %vm38_vm0, %v34_v8, 0.0  ;;  %v54_v11 = vsel %vm38_vm0, %v35_v9, 0.0  ;;  %v36_v12 = vld [vmem:[%s3537_s0 + $0x30] sm:$0xff]  ;;  %v37_v13 = vld [vmem:[%s3537_s0 + $0x38] sm:$0xff]  ;;  %v2687_v56 = vld [vmem:[%s3538_s3] sm:$0xff]  }
   0x4   :  { %v57_v14 = vsel %vm38_vm0, %v36_v12, 0.0  ;;  %v60_v15 = vsel %vm38_vm0, %v37_v13, 0.0  ;;  %2441 = vmatprep.subr.bf16.mxu0 %v2687_v56  ;;  %2657 = vmatprep.subr.bf16.mxu1 %v2687_v56  ;;  %v2688_v57 = vld [vmem:[%s3538_s3 + $0x8] sm:$0xff]  }
   0x5   :  { %2442 = vmatpush3.bf16.msra.mxu0 %v2687_v56  ;;  %2659 = vmatpush3.bf16.msra.mxu1 %v2687_v56 }
   0x6   :  { %2443 = vmatprep.subr.bf16.mxu0 %v2688_v57  ;;  %2658 = vmatprep.subr.bf16.mxu1 %v2688_v57 }
   0x7   :  { %43 = vadd.xlane.f32.xlu0 %v42_v6  ;;  %49 = vadd.xlane.f32.xlu1 %v48_v7 }
   0x9   :  { %2444 = vmatpush3.bf16.msra.mxu0 %v2688_v57  ;;  %2660 = vmatpush3.bf16.msra.mxu1 %v2688_v57 }
   0xb   :  { %52 = vadd.xlane.f32.xlu0 %v51_v10  ;;  %55 = vadd.xlane.f32.xlu1 %v54_v11 }
   0xf   :  { %58 = vadd.xlane.f32.xlu0 %v57_v14  ;;  %61 = vadd.xlane.f32.xlu1 %v60_v15 }
  0x90   :  { %v41_v16 = vpop.xlane.xlu0 %40  ;;  %v47_v17 = vpop.xlane.xlu1 %46 }
  0x91   :  { %v64_v18 = vmul.f32 0.03125, %v41_v16  ;;  %v66_v19 = vmul.f32 0.03125, %v47_v17 }
  0x93   :  { %v2862_v20 = vsub.f32 %v30_v0, %v64_v18  ;;  %v2864_v21 = vsub.f32 %v32_v1, %v66_v19  ;;  %v2317_v19 = vld [vmem:[%s3539_s1] ss:$0 sm:$0xff] }
  0x94   :  { %v44_v22 = vpop.xlane.xlu0 %43  ;;  %v50_v23 = vpop.xlane.xlu1 %49 }
  0x95   :  { %v65_v24 = vmul.f32 0.03125, %v44_v22  ;;  %v67_v25 = vmul.f32 0.03125, %v50_v23  ;;  %v80_v26 = vmul.f32 %v2862_v20, %v2862_v20  ;;  %v82_v27 = vmul.f32 %v2864_v21, %v2864_v21 }
  0x97   :  { %v2870_v28 = vsub.f32 %v31_v2, %v65_v24  ;;  %v2872_v29 = vsub.f32 %v33_v5, %v67_v25  ;;  %v88_v30 = vsel %vm38_vm0, %v80_v26, 0.0  ;;  %v94_v33 = vsel %vm38_vm0, %v82_v27, 0.0 }
  0x98   :  { %89 = vadd.xlane.f32.xlu0 %v88_v30  ;;  %v53_v31 = vpop.xlane.xlu0 %52  ;;  %v56_v32 = vpop.xlane.xlu1 %55 }
  0x99   :  { %v68_v34 = vmul.f32 0.03125, %v53_v31  ;;  %v69_v35 = vmul.f32 0.03125, %v56_v32  ;;  %v81_v36 = vmul.f32 %v2870_v28, %v2870_v28  ;;  %v83_v37 = vmul.f32 %v2872_v29, %v2872_v29 }
  0x9b   :  { %v2880_v38 = vsub.f32 %v34_v8, %v68_v34  ;;  %v2882_v39 = vsub.f32 %v35_v9, %v69_v35  ;;  %v91_v40 = vsel %vm38_vm0, %v81_v36, 0.0  ;;  %v97_v43 = vsel %vm38_vm0, %v83_v37, 0.0 }
  0x9c   :  { %95 = vadd.xlane.f32.xlu0 %v94_v33  ;;  %92 = vadd.xlane.f32.xlu1 %v91_v40  ;;  %v59_v41 = vpop.xlane.xlu0 %58  ;;  %v62_v42 = vpop.xlane.xlu1 %61 }
  0x9d   :  { %v70_v44 = vmul.f32 0.03125, %v59_v41  ;;  %v71_v45 = vmul.f32 0.03125, %v62_v42  ;;  %v84_v46 = vmul.f32 %v2880_v38, %v2880_v38  ;;  %v85_v47 = vmul.f32 %v2882_v39, %v2882_v39 }
  0x9f   :  { %v2890_v48 = vsub.f32 %v36_v12, %v70_v44  ;;  %v2892_v49 = vsub.f32 %v37_v13, %v71_v45  ;;  %v100_v50 = vsel %vm38_vm0, %v84_v46, 0.0  ;;  %v103_v51 = vsel %vm38_vm0, %v85_v47, 0.0 }
  0xa0   :  { %98 = vadd.xlane.f32.xlu1 %v97_v43  ;;  %101 = vadd.xlane.f32.xlu0 %v100_v50 }
  0xa1   :  { %v86_v52 = vmul.f32 %v2890_v48, %v2890_v48  ;;  %v87_v53 = vmul.f32 %v2892_v49, %v2892_v49 }
  0xa3   :  { %v106_v54 = vsel %vm38_vm0, %v86_v52, 0.0  ;;  %v109_v55 = vsel %vm38_vm0, %v87_v53, 0.0 }
  0xa4   :  { %104 = vadd.xlane.f32.xlu1 %v103_v51  ;;  %107 = vadd.xlane.f32.xlu0 %v106_v54 }
  0xa8   :  { %110 = vadd.xlane.f32.xlu1 %v109_v55 }
 0x125   :  { %v90_v58 = vpop.xlane.xlu0 %89 }
 0x126   :  { %v112_v59 = vmul.f32 0.03125, %v90_v58 }
 0x128   :  { %v120_v60 = vadd.f32 1e-05, %v112_v59 }
 0x129   :  { %v93_v61 = vpop.xlane.xlu1 %92  ;;  %v96_v62 = vpop.xlane.xlu0 %95 }
 0x12a   :  { %2691 = vrsqrt.f32 %v120_v60  ;;  %v113_v63 = vmul.f32 0.03125, %v93_v61  ;;  %v114_v0 = vmul.f32 0.03125, %v96_v62 }
 0x12c   :  { %v121_v1 = vadd.f32 1e-05, %v113_v63  ;;  %v122_v2 = vadd.f32 1e-05, %v114_v0 }
 0x12d   :  { %v99_v3 = vpop.xlane.xlu1 %98  ;;  %v102_v4 = vpop.xlane.xlu0 %101 }
 0x12e   :  { %2693 = vrsqrt.f32 %v121_v1  ;;  %v115_v5 = vmul.f32 0.03125, %v99_v3  ;;  %v116_v6 = vmul.f32 0.03125, %v102_v4  ;;  %v2780_v4 = vmov 0.0  }
 0x12f   :  { %2695 = vrsqrt.f32 %v122_v2  ;;  %2453 = vmatprep.subr.bf16.mxu1 %v2780_v4  ;;  %2465 = vmatprep.subr.bf16.mxu0 %v2780_v4 }
 0x130   :  { %v123_v7 = vadd.f32 1e-05, %v115_v5  ;;  %v124_v8 = vadd.f32 1e-05, %v116_v6 }
 0x131   :  { %v105_v9 = vpop.xlane.xlu1 %104  ;;  %v108_v10 = vpop.xlane.xlu0 %107 }
 0x132   :  { %2697 = vrsqrt.f32 %v123_v7  ;;  %v117_v11 = vmul.f32 0.03125, %v105_v9  ;;  %v118_v12 = vmul.f32 0.03125, %v108_v10 }
 0x133   :  { %2699 = vrsqrt.f32 %v124_v8 }
 0x134   :  { %v2692_v13 = vpop.eup %2691  ;;  %v125_v14 = vadd.f32 1e-05, %v117_v11  ;;  %v126_v15 = vadd.f32 1e-05, %v118_v12 }
 0x135   :  { %v111_v16 = vpop.xlane.xlu1 %110  ;;  %v136_v17 = vmul.f32 %v2692_v13, %v2862_v20  ;;  %v2318_v20 = vld [vmem:[%s3540_s2] ss:$0 sm:$0xff] }
 0x136   :  { %2701 = vrsqrt.f32 %v125_v14  ;;  %v119_v18 = vmul.f32 0.03125, %v111_v16 }
 0x137   :  { %2703 = vrsqrt.f32 %v126_v15  ;;  %v151_v26 = vmul.f32 %v2317_v19, %v136_v17 }
 0x138   :  { %v2694_v22 = vpop.eup %2693  ;;  %v127_v23 = vadd.f32 1e-05, %v119_v18 }
 0x139   :  { %v2696_v24 = vpop.eup %2695  ;;  %v137_v25 = vmul.f32 %v2694_v22, %v2870_v28  ;;  %v166_v34 = vadd.f32 %v2318_v20, %v151_v26 }
 0x13a   :  { %v138_v27 = vmul.f32 %v2696_v24, %v2864_v21  ;;  %2705 = vrsqrt.f32 %v127_v23 }
 0x13b   :  { %v152_v30 = vmul.f32 %v2317_v19, %v137_v25 }
 0x13c   :  { %v2698_v31 = vpop.eup %2697  ;;  %v153_v36 = vmul.f32 %v2317_v19, %v138_v27 }
 0x13d   :  { %v2700_v32 = vpop.eup %2699  ;;  %v139_v33 = vmul.f32 %v2698_v31, %v2872_v29  ;;  %v167_v35 = vadd.f32 %v2318_v20, %v152_v30 }
 0x13e   :  { %v140_v37 = vmul.f32 %v2700_v32, %v2880_v38  ;;  %v168_v21 = vadd.f32 %v2318_v20, %v153_v36 }
 0x13f   :  { %v174_v40 = vpack.c.bf16 %v167_v35, %v166_v34  ;;  %v154_v28 = vmul.f32 %v2317_v19, %v139_v33 }
 0x140   :  { %v2702_v41 = vpop.eup %2701  ;;  %v155_v45 = vmul.f32 %v2317_v19, %v140_v37 }
 0x141   :  { %v2704_v42 = vpop.eup %2703  ;;  %2445 = vmatprep.mubr.msk.bf16.mxu0 %vm38_vm0, %v174_v40  ;;  %v169_v43 = vadd.f32 %v2318_v20, %v154_v28  ;;  %v141_v44 = vmul.f32 %v2702_v41, %v2882_v39 }
 0x142   :  { %v142_v46 = vmul.f32 %v2704_v42, %v2890_v48  ;;  %v170_v38 = vadd.f32 %v2318_v20, %v155_v45  ;;  %v2319_v48 = vld [vmem:[%s3541_s4] ss:$0 sm:$0xff]  ;;  %s2782_s4 = smov 96  }
 0x143   :  { %v175_v47 = vpack.c.bf16 %v169_v43, %v168_v21  ;;  %v156_v29 = vmul.f32 %v2317_v19, %v141_v44 }
 0x144   :  { %v2706_v50 = vpop.eup %2705  ;;  %v157_v53 = vmul.f32 %v2317_v19, %v142_v46 }
 0x145   :  { %v143_v51 = vmul.f32 %v2706_v50, %v2892_v49  ;;  %2446 = vmatmul.mubr.msk.bf16.vlgmr.msra.gmra.mrb[0].mxu0 %vm38_vm0, %v175_v47  ;;  %v171_v52 = vadd.f32 %v2318_v20, %v156_v29 }
 0x146   :  { %v172_v56 = vadd.f32 %v2318_v20, %v157_v53  ;;  %2467 = vmatprep.mubr.msk.bf16.mxu0 %vm2781_vm1, %v2780_v4 }
 0x147   :  { %v176_v54 = vpack.c.bf16 %v171_v52, %v170_v38  ;;  %v158_v55 = vmul.f32 %v2317_v19, %v143_v51 }
 0x149   :  { %2449 = vmatprep.mubr.msk.bf16.mxu1 %vm38_vm0, %v176_v54  ;;  %v173_v57 = vadd.f32 %v2318_v20, %v158_v55 }
 0x14b   :  { %v177_v39 = vpack.c.bf16 %v173_v57, %v172_v56 }
 0x14d   :  { %2450 = vmatmul.mubr.msk.bf16.vlgmr.msra.gmra.mrb[0].mxu1 %vm38_vm0, %v177_v39 }
 0x14e   :  { %2455 = vmatprep.mubr.msk.bf16.mxu1 %vm2781_vm1, %v2780_v4 }
 0x218   :  { %v2447_v58 = vpop.f32.mrb[0].mxu0 }
 0x219   :  { %v247_v49 = vpop.f32.mrb[1].mxu0  ;;  %v256_v63 = vadd.f32 %v2447_v58, %v2319_v48 }
 0x21a   :  { %v248_v59 = vadd.f32 %v2319_v48, %v247_v49  ;;  %v2448_v60 = vpop.f32.mrb[2].mxu0 }
 0x21b   :  { %v250_v61 = vpop.f32.mrb[3].mxu0  ;;  %v2937_v6 = vadd.f32 %v2448_v60, %v2319_v48  ;;  %v2965_v13 = vmul.f32 0.25, %v256_v63  ;;  %v2992_v19 = vpack.c.bf16 %v256_v63, %v256_v63 }
 0x21c   :  { %v2929_v62 = vadd.f32 %v2319_v48, %v250_v61  ;;  %342 = vrot.lane.b32.xlu0 %v248_v59, %s2779_s28  ;;  %v2955_v10 = vpack.c.bf16 %v248_v59, %v248_v59  ;;  %v278_v11 = vmul.f32 0.25, %v248_v59 }
 0x21d   :  { %v2970_v14 = vmul.f32 0.25, %v2937_v6  ;;  %v3049_v45 = vpack.c.bf16 %v2937_v6, %v2937_v6 }
 0x21e   :  { %344 = vrot.lane.b32.xlu1 %v2929_v62, %s2779_s28  ;;  %v2961_v12 = vmul.f32 0.25, %v2929_v62  ;;  %v318_v41 = vpack.c.bf16 %v278_v11, %v278_v11  ;;  %v3043_v44 = vpack.c.bf16 %v2929_v62, %v2929_v62 }
 0x220   :  { %v2451_v0 = vpop.f32.mrb[0].mxu1 }
 0x221   :  { %v263_v1 = vpop.f32.mrb[1].mxu1  ;;  %v272_v7 = vadd.f32 %v2451_v0, %v2319_v48 }
 0x222   :  { %v264_v2 = vadd.f32 %v2319_v48, %v263_v1  ;;  %346 = vrot.lane.b32.xlu1 %v256_v63, %s2779_s28  ;;  %v2452_v3 = vpop.f32.mrb[2].mxu1 }
 0x223   :  { %v266_v5 = vpop.f32.mrb[3].mxu1  ;;  %v2949_v9 = vadd.f32 %v2452_v3, %v2319_v48  ;;  %v2983_v17 = vmul.f32 0.25, %v272_v7  ;;  %v3000_v23 = vpack.c.bf16 %v272_v7, %v272_v7 }
 0x224   :  { %350 = vrot.lane.b32.xlu0 %v264_v2, %s2779_s28  ;;  %v2942_v8 = vadd.f32 %v2319_v48, %v266_v5  ;;  %v2974_v15 = vmul.f32 0.25, %v264_v2  ;;  %v2996_v22 = vpack.c.bf16 %v264_v2, %v264_v2 }
 0x225   :  { %v2988_v18 = vmul.f32 0.25, %v2949_v9  ;;  %v3061_v47 = vpack.c.bf16 %v2949_v9, %v2949_v9 }
 0x226   :  { %348 = vrot.lane.b32.xlu1 %v2937_v6, %s2779_s28  ;;  %v2979_v16 = vmul.f32 0.25, %v2942_v8  ;;  %v3055_v46 = vpack.c.bf16 %v2942_v8, %v2942_v8 }
 0x228   :  { %354 = vrot.lane.b32.xlu0 %v272_v7, %s2779_s28 }
 0x22a   :  { %352 = vrot.lane.b32.xlu1 %v2942_v8, %s2779_s28 }
 0x22c   :  { %356 = vrot.lane.b32.xlu0 %v2949_v9, %s2779_s28 }
 0x22e   :  { %383 = vrot.lane.b32.xlu1 %v2955_v10, %s2782_s4 }
 0x230   :  { %294 = vrot.lane.b32.xlu0 %v278_v11, %s2779_s28  ;;  %v320_v11 = vpack.c.bf16 %v2961_v12, %v2961_v12 }
 0x234   :  { %296 = vrot.lane.b32.xlu0 %v2961_v12, %s2779_s28 }
 0x238   :  { %298 = vrot.lane.b32.xlu0 %v2965_v13, %s2779_s28 }
 0x23c   :  { %300 = vrot.lane.b32.xlu0 %v2970_v14, %s2779_s28 }
 0x240   :  { %302 = vrot.lane.b32.xlu0 %v2974_v15, %s2779_s28 }
 0x244   :  { %304 = vrot.lane.b32.xlu0 %v2979_v16, %s2779_s28 }
 0x248   :  { %306 = vrot.lane.b32.xlu0 %v2983_v17, %s2779_s28 }
 0x24c   :  { %308 = vrot.lane.b32.xlu0 %v2988_v18, %s2779_s28 }
 0x250   :  { %580 = vrot.lane.b32.xlu0 %v2992_v19, %s2782_s4 }
 0x254   :  { %776 = vrot.lane.b32.xlu0 %v2996_v22, %s2782_s4 }
 0x258   :  { %972 = vrot.lane.b32.xlu0 %v3000_v23, %s2782_s4 }
 0x28e   :  { %v343_v24 = vpop.permute.xlu0 %342 }
 0x28f   :  { %v3004_v25 = vpack.c.bf16 %v343_v24, %v343_v24 }
 0x290   :  { %v345_v26 = vpop.permute.xlu1 %344 }
 0x291   :  { %433 = vrot.lane.b32.xlu1 %v3004_v25, %s2782_s4  ;;  %v3008_v27 = vpack.c.bf16 %v345_v26, %v345_v26 }
 0x294   :  { %v347_v20 = vpop.permute.xlu1 %346 }
 0x295   :  { %531 = vrot.lane.b32.xlu1 %v3008_v27, %s2782_s4  ;;  %v3012_v30 = vpack.c.bf16 %v347_v20, %v347_v20 }
 0x296   :  { %v351_v33 = vpop.permute.xlu0 %350 }
 0x297   :  { %v3020_v35 = vpack.c.bf16 %v351_v33, %v351_v33 }
 0x298   :  { %v349_v31 = vpop.permute.xlu1 %348 }
 0x299   :  { %629 = vrot.lane.b32.xlu1 %v3012_v30, %s2782_s4  ;;  %v3016_v32 = vpack.c.bf16 %v349_v31, %v349_v31  ;;  %v322_v31 = vpack.c.bf16 %v2965_v13, %v2965_v13 }
 0x29a   :  { %v355_v40 = vpop.permute.xlu0 %354 }
 0x29b   :  { %v3030_v42 = vpack.c.bf16 %v355_v40, %v355_v40 }
 0x29c   :  { %v353_v34 = vpop.permute.xlu1 %352 }
 0x29d   :  { %727 = vrot.lane.b32.xlu1 %v3016_v32, %s2782_s4  ;;  %v3025_v28 = vpack.c.bf16 %v353_v34, %v353_v34 }
 0x29e   :  { %v357_v21 = vpop.permute.xlu0 %356 }
 0x29f   :  { %v3037_v43 = vpack.c.bf16 %v357_v21, %v357_v21 }
 0x2a0   :  { %v384_v36 = vpop.permute.xlu1 %383 }
 0x2a1   :  { %v390_v37 = vsel %vm385_vm2, %v384_v36, 0  ;;  %825 = vrot.lane.b32.xlu1 %v3020_v35, %s2782_s4 }
 0x2a2   :  { %2454 = vmatpush3.bf16.xpose.msra.mxu1 %v390_v37  ;;  %v295_v29 = vpop.permute.xlu0 %294  ;;  %v324_v37 = vpack.c.bf16 %v2970_v14, %v2970_v14 }
 0x2a3   :  { %2459 = vmatprep.subr.bf16.mxu1 %v2780_v4  ;;  %v319_v54 = vpack.c.bf16 %v295_v29, %v295_v29  ;;  %v326_v29 = vpack.c.bf16 %v2974_v15, %v2974_v15  ;;  %v328_v15 = vpack.c.bf16 %v2979_v16, %v2979_v16  ;;  %v332_v16 = vpack.c.bf16 %v2988_v18, %v2988_v18 }
 0x2a5   :  { %923 = vrot.lane.b32.xlu1 %v3025_v28, %s2782_s4 }
 0x2a6   :  { %v297_v50 = vpop.permute.xlu0 %296 }
 0x2a7   :  { %v321_v58 = vpack.c.bf16 %v297_v50, %v297_v50 }
 0x2a9   :  { %2456 = vmatmul.mubr.msk.bf16.vlgmr.msra.gmra.mrb[4].mxu1 %vm385_vm2, %v318_v41  ;;  %1021 = vrot.lane.b32.xlu1 %v3030_v42, %s2782_s4 }
 0x2aa   :  { %2461 = vmatprep.mubr.msk.bf16.mxu1 %vm2781_vm1, %v2780_v4  ;;  %v299_v52 = vpop.permute.xlu0 %298 }
 0x2ab   :  { %v323_v62 = vpack.c.bf16 %v299_v52, %v299_v52 }
 0x2ad   :  { %1119 = vrot.lane.b32.xlu1 %v3037_v43, %s2782_s4 }
 0x2ae   :  { %v301_v55 = vpop.permute.xlu0 %300 }
 0x2af   :  { %v325_v3 = vpack.c.bf16 %v301_v55, %v301_v55 }
 0x2b1   :  { %482 = vrot.lane.b32.xlu1 %v3043_v44, %s2782_s4 }
 0x2b2   :  { %v303_v48 = vpop.permute.xlu0 %302 }
 0x2b3   :  { %v327_v24 = vpack.c.bf16 %v303_v48, %v303_v48  ;;  %v3157_v48 = vld [vmem:[%s3542_s7 + $0x8] sm:$0xff] }
 0x2b5   :  { %678 = vrot.lane.b32.xlu1 %v3049_v45, %s2782_s4 }
 0x2b6   :  { %v305_v60 = vpop.permute.xlu0 %304 }
 0x2b7   :  { %v329_v33 = vpack.c.bf16 %v305_v60, %v305_v60 }
 0x2b9   :  { %874 = vrot.lane.b32.xlu1 %v3055_v46, %s2782_s4 }
 0x2ba   :  { %v307_v1 = vpop.permute.xlu0 %306 }
 0x2bb   :  { %v331_v40 = vpack.c.bf16 %v307_v1, %v307_v1 }
 0x2bd   :  { %1070 = vrot.lane.b32.xlu1 %v3061_v47, %s2782_s4 }
 0x2be   :  { %v309_v5 = vpop.permute.xlu0 %308 }
 0x2bf   :  { %v333_v50 = vpack.c.bf16 %v309_v5, %v309_v5 }
 0x2c2   :  { %v581_v9 = vpop.permute.xlu0 %580 }
 0x2c3   :  { %v586_v26 = vsel %vm385_vm2, %v581_v9, 0 }
 0x2c6   :  { %v777_v13 = vpop.permute.xlu0 %776 }
 0x2c7   :  { %v782_v41 = vsel %vm385_vm2, %v777_v13, 0 }
 0x303   :  { %v434_v51 = vpop.permute.xlu1 %433 }
 0x304   :  { %v439_v38 = vsel %vm385_vm2, %v434_v51, 0 }
 0x305   :  { %2460 = vmatpush3.bf16.xpose.msra.mxu1 %v439_v38  ;;  %v973_v38 = vpop.permute.xlu0 %972 }
 0x306   :  { %2471 = vmatprep.subr.bf16.mxu1 %v2780_v4  ;;  %v978_v52 = vsel %vm385_vm2, %v973_v38, 0  ;;  %v1171_v38 = vld [vmem:[%s3542_s7 + $0x20] sm:$0xff] }
 0x307   :  { %v532_v53 = vpop.permute.xlu1 %531 }
 0x308   :  { %v537_v57 = vsel %vm385_vm2, %v532_v53, 0 }
 0x30b   :  { %v630_v56 = vpop.permute.xlu1 %629 }
 0x30c   :  { %2462 = vmatmul.mubr.msk.bf16.vlgmr.msra.gmra.mrb[8].mxu1 %vm385_vm2, %v319_v54  ;;  %v635_v59 = vsel %vm385_vm2, %v630_v56, 0  ;;  %v330_v54 = vpack.c.bf16 %v2983_v17, %v2983_v17 }
 0x30d   :  { %2472 = vmatpush3.bf16.xpose.msra.mxu1 %v537_v57  ;;  %2473 = vmatprep.mubr.msk.bf16.mxu1 %vm2781_vm1, %v2780_v4 }
 0x30e   :  { %2483 = vmatprep.subr.bf16.mxu1 %v2780_v4 }
 0x30f   :  { %v728_v39 = vpop.permute.xlu1 %727 }
 0x310   :  { %v733_v0 = vsel %vm385_vm2, %v728_v39, 0 }
 0x313   :  { %v826_v49 = vpop.permute.xlu1 %825 }
 0x314   :  { %2474 = vmatmul.mubr.msk.bf16.vlgmr.msra.gmra.mrb[12].mxu1 %vm385_vm2, %v321_v58  ;;  %v831_v7 = vsel %vm385_vm2, %v826_v49, 0  ;;  %v3162_v58 = vld [vmem:[%s3542_s7] sm:$0xff] }
 0x315   :  { %2484 = vmatpush3.bf16.xpose.msra.mxu1 %v635_v59  ;;  %2485 = vmatprep.mubr.msk.bf16.mxu1 %vm2781_vm1, %v2780_v4 }
 0x316   :  { %2495 = vmatprep.subr.bf16.mxu1 %v2780_v4 }
 0x317   :  { %v924_v61 = vpop.permute.xlu1 %923 }
 0x318   :  { %v929_v20 = vsel %vm385_vm2, %v924_v61, 0 }
 0x31b   :  { %v1022_v63 = vpop.permute.xlu1 %1021 }
 0x31c   :  { %2486 = vmatmul.mubr.msk.bf16.vlgmr.msra.gmra.mrb[16].mxu1 %vm385_vm2, %v323_v62  ;;  %v1027_v34 = vsel %vm385_vm2, %v1022_v63, 0 }
 0x31d   :  { %2496 = vmatpush3.bf16.xpose.msra.mxu1 %v733_v0  ;;  %2497 = vmatprep.mubr.msk.bf16.mxu1 %vm2781_vm1, %v2780_v4  ;;  %v3175_v0 = vld [vmem:[%s3542_s7 + $0x18] sm:$0xff] }
 0x31e   :  { %2507 = vmatprep.subr.bf16.mxu1 %v2780_v4 }
 0x31f   :  { %v1120_v2 = vpop.permute.xlu1 %1119 }
 0x320   :  { %v1125_v21 = vsel %vm385_vm2, %v1120_v2, 0 }
 0x323   :  { %v483_v6 = vpop.permute.xlu1 %482 }
 0x324   :  { %v488_v8 = vsel %vm385_vm2, %v483_v6, 0  ;;  %2498 = vmatmul.mubr.msk.bf16.vlgmr.msra.gmra.mrb[20].mxu1 %vm385_vm2, %v325_v3 }
 0x325   :  { %2466 = vmatpush3.bf16.xpose.msra.mxu0 %v488_v8  ;;  %2508 = vmatpush3.bf16.xpose.msra.mxu1 %v831_v7 }
 0x326   :  { %2509 = vmatprep.mubr.msk.bf16.mxu1 %vm2781_vm1, %v2780_v4  ;;  %2477 = vmatprep.subr.bf16.mxu0 %v2780_v4 }
 0x327   :  { %2519 = vmatprep.subr.bf16.mxu1 %v2780_v4  ;;  %v679_v12 = vpop.permute.xlu1 %678 }
 0x328   :  { %v684_v36 = vsel %vm385_vm2, %v679_v12, 0 }
 0x32b   :  { %v875_v14 = vpop.permute.xlu1 %874 }
 0x32c   :  { %2468 = vmatmul.mubr.msk.bf16.vlgmr.msra.gmra.mrb[4].mxu0 %vm385_vm2, %v320_v11  ;;  %2510 = vmatmul.mubr.msk.bf16.vlgmr.msra.gmra.mrb[24].mxu1 %vm385_vm2, %v327_v24  ;;  %v880_v51 = vsel %vm385_vm2, %v875_v14, 0 }
 0x32d   :  { %2478 = vmatpush3.bf16.xpose.msra.mxu0 %v586_v26  ;;  %2520 = vmatpush3.bf16.xpose.msra.mxu1 %v929_v20 }
 0x32e   :  { %2479 = vmatprep.mubr.msk.bf16.mxu0 %vm2781_vm1, %v2780_v4  ;;  %2521 = vmatprep.mubr.msk.bf16.mxu1 %vm2781_vm1, %v2780_v4 }
 0x32f   :  { %2489 = vmatprep.subr.bf16.mxu0 %v2780_v4  ;;  %2531 = vmatprep.subr.bf16.mxu1 %v2780_v4  ;;  %v1071_v53 = vpop.permute.xlu1 %1070 }
 0x330   :  { %v1076_v55 = vsel %vm385_vm2, %v1071_v53, 0 }
 0x334   :  { %2480 = vmatmul.mubr.msk.bf16.vlgmr.msra.gmra.mrb[8].mxu0 %vm385_vm2, %v322_v31  ;;  %2522 = vmatmul.mubr.msk.bf16.vlgmr.msra.gmra.mrb[28].mxu1 %vm385_vm2, %v329_v33 }
 0x335   :  { %2490 = vmatpush3.bf16.xpose.msra.mxu0 %v684_v36  ;;  %2532 = vmatpush3.bf16.xpose.msra.mxu1 %v1027_v34  ;;  %v1169_v34 = vld [vmem:[%s3542_s7 + $0x10] sm:$0xff] }
 0x336   :  { %2491 = vmatprep.mubr.msk.bf16.mxu0 %vm2781_vm1, %v2780_v4  ;;  %2533 = vmatprep.mubr.msk.bf16.mxu1 %vm2781_vm1, %v2780_v4 }
 0x337   :  { %2501 = vmatprep.subr.bf16.mxu0 %v2780_v4  ;;  %2543 = vmatprep.subr.bf16.mxu1 %v2780_v4 }
 0x33c   :  { %2492 = vmatmul.mubr.msk.bf16.vlgmr.msra.gmra.mrb[12].mxu0 %vm385_vm2, %v324_v37  ;;  %2534 = vmatmul.mubr.msk.bf16.vlgmr.msra.gmra.mrb[32].mxu1 %vm385_vm2, %v331_v40 }
 0x33d   :  { %2502 = vmatpush3.bf16.xpose.msra.mxu0 %v782_v41  ;;  %2544 = vmatpush3.bf16.xpose.msra.mxu1 %v1125_v21 }
 0x33e   :  { %2503 = vmatprep.mubr.msk.bf16.mxu0 %vm2781_vm1, %v2780_v4  ;;  %2545 = vmatprep.mubr.msk.bf16.mxu1 %vm2781_vm1, %v2780_v4 }
 0x33f   :  { %2513 = vmatprep.subr.bf16.mxu0 %v2780_v4  ;;  %2555 = vmatprep.subr.bf16.mxu1 %v2780_v4 }
 0x344   :  { %2504 = vmatmul.mubr.msk.bf16.vlgmr.msra.gmra.mrb[16].mxu0 %vm385_vm2, %v326_v29  ;;  %2546 = vmatmul.mubr.msk.bf16.vlgmr.msra.gmra.mrb[36].mxu1 %vm385_vm2, %v333_v50 }
 0x345   :  { %2514 = vmatpush3.bf16.xpose.msra.mxu0 %v880_v51  ;;  %2515 = vmatprep.mubr.msk.bf16.mxu0 %vm2781_vm1, %v2780_v4 }
 0x346   :  { %2525 = vmatprep.subr.bf16.mxu0 %v2780_v4  ;;  %2557 = vmatprep.mubr.msk.bf16.mxu1 %vm2781_vm1, %v2780_v4 }
 0x34c   :  { %2516 = vmatmul.mubr.msk.bf16.vlgmr.msra.gmra.mrb[20].mxu0 %vm385_vm2, %v328_v15  ;;  %v1172_v15 = vld [vmem:[%s3542_s7 + $0x28] sm:$0xff] }
 0x34d   :  { %2526 = vmatpush3.bf16.xpose.msra.mxu0 %v978_v52  ;;  %2527 = vmatprep.mubr.msk.bf16.mxu0 %vm2781_vm1, %v2780_v4 }
 0x34e   :  { %2537 = vmatprep.subr.bf16.mxu0 %v2780_v4 }
 0x354   :  { %2528 = vmatmul.mubr.msk.bf16.vlgmr.msra.gmra.mrb[24].mxu0 %vm385_vm2, %v330_v54 }
 0x355   :  { %2538 = vmatpush3.bf16.xpose.msra.mxu0 %v1076_v55  ;;  %2539 = vmatprep.mubr.msk.bf16.mxu0 %vm2781_vm1, %v2780_v4 }
 0x356   :  { %2549 = vmatprep.subr.bf16.mxu0 %v2780_v4 }
 0x35c   :  { %2540 = vmatmul.mubr.msk.bf16.vlgmr.msra.gmra.mrb[28].mxu0 %vm385_vm2, %v332_v16 }
 0x35d   :  { %2551 = vmatprep.mubr.msk.bf16.mxu0 %vm2781_vm1, %v2780_v4 }
 0x37c   :  { %v426_v56 = vpop.f32.mrb[4].mxu1 }
 0x37d   :  { %v2457_v17 = vpop.f32.mrb[5].mxu1  ;;  %v3168_v61 = vadd.f32 %v3162_v58, %v426_v56 }
 0x37e   :  { %v429_v57 = vpop.f32.mrb[6].mxu1 }
 0x37f   :  { %v2458_v39 = vpop.f32.mrb[7].mxu1  ;;  %v1192_v1 = vsel %vm1191_vm3, %v3168_v61, -inf }
 0x3df   :  { %v475_v18 = vpop.f32.mrb[8].mxu1 }
 0x3e0   :  { %v3165_v49 = vadd.f32 %v3157_v48, %v475_v18  ;;  %v2463_v59 = vpop.f32.mrb[9].mxu1 }
 0x3e1   :  { %v478_v60 = vpop.f32.mrb[10].mxu1 }
 0x3e2   :  { %v2464_v62 = vpop.f32.mrb[11].mxu1  ;;  %v1195_v63 = vsel %vm1191_vm3, %v3165_v49, -inf  ;;  %v1174_v60 = vld [vmem:[%s3542_s7 + $0x38] sm:$0xff] }
 0x3e3   :  { %1196 = vmax.xlane.f32.xlu0 %v1195_v63  ;;  %v1173_v62 = vld [vmem:[%s3542_s7 + $0x30] sm:$0xff]  ;;  %s2783_s7 = smov 64  }
 0x3e7   :  { %1193 = vmax.xlane.f32.xlu0 %v1192_v1  ;;  %v573_v2 = vpop.f32.mrb[12].mxu1 }
 0x3e8   :  { %v3180_v3 = vadd.f32 %v3175_v0, %v573_v2  ;;  %v2475_v5 = vpop.f32.mrb[13].mxu1 }
 0x3e9   :  { %v576_v6 = vpop.f32.mrb[14].mxu1 }
 0x3ea   :  { %v2476_v7 = vpop.f32.mrb[15].mxu1  ;;  %v1201_v8 = vsel %vm1191_vm3, %v3180_v3, -inf }
 0x3eb   :  { %1202 = vmax.xlane.f32.xlu1 %v1201_v8 }
 0x3ef   :  { %v671_v9 = vpop.f32.mrb[16].mxu1 }
 0x3f0   :  { %v2487_v11 = vpop.f32.mrb[17].mxu1  ;;  %v3199_v57 = vadd.f32 %v1172_v15, %v671_v9 }
 0x3f1   :  { %v674_v24 = vpop.f32.mrb[18].mxu1 }
 0x3f2   :  { %v2488_v26 = vpop.f32.mrb[19].mxu1  ;;  %v1207_v1 = vsel %vm1191_vm3, %v3199_v57, -inf }
 0x3f7   :  { %v769_v20 = vpop.f32.mrb[20].mxu1 }
 0x3f8   :  { %v2499_v12 = vpop.f32.mrb[21].mxu1  ;;  %v3209_v63 = vadd.f32 %v1174_v60, %v769_v20 }
 0x3f9   :  { %v772_v31 = vpop.f32.mrb[22].mxu1 }
 0x3fa   :  { %v2500_v33 = vpop.f32.mrb[23].mxu1  ;;  %v1213_v20 = vsel %vm1191_vm3, %v3209_v63, -inf }
 0x3ff   :  { %v524_v36 = vpop.f32.mrb[4].mxu0  ;;  %v867_v13 = vpop.f32.mrb[24].mxu1 }
 0x400   :  { %v3187_v37 = vadd.f32 %v1169_v34, %v524_v36  ;;  %v2469_v40 = vpop.f32.mrb[5].mxu0  ;;  %v2511_v41 = vpop.f32.mrb[25].mxu1  ;;  %v3216_v24 = vadd.f32 %v3157_v48, %v867_v13 }
 0x401   :  { %v527_v21 = vpop.f32.mrb[6].mxu0  ;;  %v870_v14 = vpop.f32.mrb[26].mxu1 }
 0x402   :  { %v2470_v29 = vpop.f32.mrb[7].mxu0  ;;  %v2512_v50 = vpop.f32.mrb[27].mxu1  ;;  %v1198_v51 = vsel %vm1191_vm3, %v3187_v37, -inf  ;;  %v1219_v36 = vsel %vm1191_vm3, %v3216_v24, -inf }
 0x403   :  { %1199 = vmax.xlane.f32.xlu1 %v1198_v51 }
 0x407   :  { %v622_v52 = vpop.f32.mrb[8].mxu0  ;;  %v965_v53 = vpop.f32.mrb[28].mxu1 }
 0x408   :  { %v3197_v54 = vadd.f32 %v1171_v38, %v622_v52  ;;  %v2481_v55 = vpop.f32.mrb[9].mxu0  ;;  %v2523_v16 = vpop.f32.mrb[29].mxu1 }
 0x409   :  { %v625_v56 = vpop.f32.mrb[10].mxu0  ;;  %v968_v17 = vpop.f32.mrb[30].mxu1 }
 0x40a   :  { %v2482_v39 = vpop.f32.mrb[11].mxu0  ;;  %v2524_v18 = vpop.f32.mrb[31].mxu1  ;;  %v1204_v59 = vsel %vm1191_vm3, %v3197_v54, -inf  ;;  %v3236_v17 = vadd.f32 %v3175_v0, %v965_v53 }
 0x40b   :  { %1205 = vmax.xlane.f32.xlu0 %v1204_v59 }
 0x40c   :  { %v1225_v59 = vsel %vm1191_vm3, %v3236_v17, -inf }
 0x40f   :  { %v1063_v2 = vpop.f32.mrb[32].mxu1  ;;  %1208 = vmax.xlane.f32.xlu0 %v1207_v1  ;;  %v720_v5 = vpop.f32.mrb[12].mxu0 }
 0x410   :  { %v3213_v6 = vadd.f32 %v1173_v62, %v720_v5  ;;  %v2493_v7 = vpop.f32.mrb[13].mxu0  ;;  %v2535_v8 = vpop.f32.mrb[33].mxu1  ;;  %v3222_v33 = vadd.f32 %v1172_v15, %v1063_v2 }
 0x411   :  { %v723_v9 = vpop.f32.mrb[14].mxu0  ;;  %v1066_v11 = vpop.f32.mrb[34].mxu1 }
 0x412   :  { %v2494_v26 = vpop.f32.mrb[15].mxu0  ;;  %v2536_v12 = vpop.f32.mrb[35].mxu1  ;;  %v1210_v31 = vsel %vm1191_vm3, %v3213_v6, -inf  ;;  %v1231_v52 = vsel %vm1191_vm3, %v3222_v33, -inf }
 0x413   :  { %1214 = vmax.xlane.f32.xlu0 %v1213_v20  ;;  %1211 = vmax.xlane.f32.xlu1 %v1210_v31 }
 0x417   :  { %v1161_v40 = vpop.f32.mrb[36].mxu1  ;;  %1220 = vmax.xlane.f32.xlu0 %v1219_v36  ;;  %v818_v41 = vpop.f32.mrb[16].mxu0 }
 0x418   :  { %v3227_v48 = vadd.f32 %v3162_v58, %v818_v41  ;;  %v2505_v13 = vpop.f32.mrb[17].mxu0  ;;  %v2547_v21 = vpop.f32.mrb[37].mxu1  ;;  %v3244_v7 = vadd.f32 %v1174_v60, %v1161_v40 }
 0x419   :  { %v821_v14 = vpop.f32.mrb[18].mxu0  ;;  %v1164_v29 = vpop.f32.mrb[38].mxu1 }
 0x41a   :  { %v2506_v50 = vpop.f32.mrb[19].mxu0  ;;  %v2548_v51 = vpop.f32.mrb[39].mxu1  ;;  %v1216_v15 = vsel %vm1191_vm3, %v3227_v48, -inf  ;;  %v1237_v53 = vsel %vm1191_vm3, %v3244_v7, -inf }
 0x41b   :  { %1232 = vmax.xlane.f32.xlu0 %v1231_v52  ;;  %1217 = vmax.xlane.f32.xlu1 %v1216_v15 }
 0x41f   :  { %v916_v55 = vpop.f32.mrb[20].mxu0 }
 0x420   :  { %v3233_v16 = vadd.f32 %v1169_v34, %v916_v55  ;;  %v2517_v56 = vpop.f32.mrb[21].mxu0 }
 0x421   :  { %v919_v58 = vpop.f32.mrb[22].mxu0 }
 0x422   :  { %v2518_v39 = vpop.f32.mrb[23].mxu0  ;;  %v1222_v18 = vsel %vm1191_vm3, %v3233_v16, -inf }
 0x423   :  { %1223 = vmax.xlane.f32.xlu1 %v1222_v18 }
 0x427   :  { %1226 = vmax.xlane.f32.xlu1 %v1225_v59  ;;  %v1014_v1 = vpop.f32.mrb[24].mxu0 }
 0x428   :  { %v3242_v2 = vadd.f32 %v1171_v38, %v1014_v1  ;;  %v2529_v5 = vpop.f32.mrb[25].mxu0 }
 0x429   :  { %v1017_v34 = vpop.f32.mrb[26].mxu0 }
 0x42a   :  { %v2530_v8 = vpop.f32.mrb[27].mxu0  ;;  %v1228_v0 = vsel %vm1191_vm3, %v3242_v2, -inf }
 0x42b   :  { %1229 = vmax.xlane.f32.xlu1 %v1228_v0 }
 0x42f   :  { %1238 = vmax.xlane.f32.xlu1 %v1237_v53  ;;  %v1112_v9 = vpop.f32.mrb[28].mxu0 }
 0x430   :  { %v3250_v11 = vadd.f32 %v1173_v62, %v1112_v9  ;;  %v2541_v26 = vpop.f32.mrb[29].mxu0 }
 0x431   :  { %v1115_v12 = vpop.f32.mrb[30].mxu0 }
 0x432   :  { %v2542_v38 = vpop.f32.mrb[31].mxu0  ;;  %v1234_v20 = vsel %vm1191_vm3, %v3250_v11, -inf }
 0x433   :  { %1235 = vmax.xlane.f32.xlu0 %v1234_v20 }
 0x440   :  { %1433 = vrot.lane.b32.xlu1 %v3004_v25, %s2783_s7 }
 0x449   :  { %1529 = vrot.lane.b32.xlu0 %v3008_v27, %s2783_s7 }
 0x470   :  { %v1197_v60 = vpop.xlane.xlu0 %1196 }
 0x471   :  { %v1241_v31 = vsub.f32 %v3165_v49, %v1197_v60 }
 0x473   :  { %v1258_v36 = vmul.f32 1.442695, %v1241_v31 }
 0x474   :  { %v1194_v49 = vpop.xlane.xlu0 %1193 }
 0x475   :  { %2707 = vpow2.f32 %v1258_v36 }
 0x478   :  { %v1203_v62 = vpop.xlane.xlu1 %1202 }
 0x479   :  { %v1243_v40 = vsub.f32 %v3180_v3, %v1203_v62 }
 0x47b   :  { %v1262_v41 = vmul.f32 1.442695, %v1243_v40 }
 0x47d   :  { %2709 = vpow2.f32 %v1262_v41  ;;  %v1240_v41 = vsub.f32 %v3168_v61, %v1194_v49 }
 0x47f   :  { %v3260_v13 = vpop.eup %2707 }
 0x480   :  { %v1291_v21 = vsel %vm1191_vm3, %v3260_v13, 0.0 }
 0x481   :  { %1292 = vadd.xlane.f32.xlu0 %v1291_v21 }
 0x487   :  { %v3264_v25 = vpop.eup %2709 }
 0x488   :  { %v1297_v27 = vsel %vm1191_vm3, %v3264_v25, 0.0 }
 0x489   :  { %1298 = vadd.xlane.f32.xlu0 %v1297_v27 }
 0x490   :  { %v1200_v55 = vpop.xlane.xlu1 %1199 }
 0x491   :  { %v1242_v27 = vsub.f32 %v3187_v37, %v1200_v55 }
 0x498   :  { %v1206_v14 = vpop.xlane.xlu0 %1205 }
 0x49c   :  { %v1209_v29 = vpop.xlane.xlu0 %1208 }
 0x49d   :  { %v1245_v50 = vsub.f32 %v3199_v57, %v1209_v29 }
 0x49f   :  { %v1266_v3 = vmul.f32 1.442695, %v1245_v50 }
 0x4a0   :  { %v1215_v51 = vpop.xlane.xlu0 %1214  ;;  %v1212_v18 = vpop.xlane.xlu1 %1211 }
 0x4a1   :  { %2711 = vpow2.f32 %v1266_v3  ;;  %v1247_v52 = vsub.f32 %v3209_v63, %v1215_v51 }
 0x4a3   :  { %v1270_v15 = vmul.f32 1.442695, %v1247_v52 }
 0x4a4   :  { %v1221_v56 = vpop.xlane.xlu0 %1220 }
 0x4a5   :  { %v1249_v58 = vsub.f32 %v3216_v24, %v1221_v56  ;;  %2713 = vpow2.f32 %v1270_v15 }
 0x4a7   :  { %v1274_v39 = vmul.f32 1.442695, %v1249_v58 }
 0x4a8   :  { %v1218_v1 = vpop.xlane.xlu1 %1217 }
 0x4a9   :  { %2715 = vpow2.f32 %v1274_v39 }
 0x4ab   :  { %v3271_v59 = vpop.eup %2711 }
 0x4ac   :  { %v1303_v57 = vsel %vm1191_vm3, %v3271_v59, 0.0 }
 0x4ad   :  { %1304 = vadd.xlane.f32.xlu0 %v1303_v57 }
 0x4af   :  { %v3275_v5 = vpop.eup %2713 }
 0x4b0   :  { %v1224_v34 = vpop.xlane.xlu1 %1223  ;;  %v1309_v63 = vsel %vm1191_vm3, %v3275_v5, 0.0 }
 0x4b1   :  { %1310 = vadd.xlane.f32.xlu0 %v1309_v63  ;;  %v1250_v49 = vsub.f32 %v3233_v16, %v1224_v34 }
 0x4b3   :  { %v3279_v8 = vpop.eup %2715 }
 0x4b4   :  { %v1227_v24 = vpop.xlane.xlu1 %1226  ;;  %v1315_v0 = vsel %vm1191_vm3, %v3279_v8, 0.0 }
 0x4b5   :  { %v1251_v53 = vsub.f32 %v3236_v17, %v1227_v24  ;;  %1316 = vadd.xlane.f32.xlu0 %v1315_v0  ;;  %v1233_v17 = vpop.xlane.xlu0 %1232 }
 0x4b6   :  { %v1253_v36 = vsub.f32 %v3222_v33, %v1233_v17  ;;  %v1244_v33 = vsub.f32 %v3197_v54, %v1206_v14 }
 0x4b7   :  { %v1278_v9 = vmul.f32 1.442695, %v1251_v53 }
 0x4b8   :  { %v1230_v26 = vpop.xlane.xlu1 %1229  ;;  %v1282_v62 = vmul.f32 1.442695, %v1253_v36  ;;  %v1264_v61 = vmul.f32 1.442695, %v1244_v33 }
 0x4b9   :  { %2717 = vpow2.f32 %v1278_v9  ;;  %v1252_v29 = vsub.f32 %v3242_v2, %v1230_v26 }
 0x4ba   :  { %2719 = vpow2.f32 %v1282_v62 }
 0x4bc   :  { %v1239_v12 = vpop.xlane.xlu1 %1238 }
 0x4bd   :  { %v1255_v40 = vsub.f32 %v3244_v7, %v1239_v12  ;;  %v1248_v7 = vsub.f32 %v3227_v48, %v1218_v1 }
 0x4bf   :  { %v1286_v21 = vmul.f32 1.442695, %v1255_v40 }
 0x4c0   :  { %v1434_v38 = vpop.permute.xlu1 %1433  ;;  %v1236_v50 = vpop.xlane.xlu0 %1235 }
 0x4c1   :  { %v1439_v20 = vsel %vm1389_vm4, %v1434_v38, 0  ;;  %2721 = vpow2.f32 %v1286_v21  ;;  %v1254_v51 = vsub.f32 %v3250_v11, %v1236_v50 }
 0x4c2   :  { %2556 = vmatpush3.bf16.msra.mxu1 %v1439_v20 }
 0x4c3   :  { %v3285_v60 = vpop.eup %2717  ;;  %2567 = vmatprep.subr.bf16.mxu1 %v2780_v4 }
 0x4c4   :  { %v1321_v31 = vsel %vm1191_vm3, %v3285_v60, 0.0  ;;  %v1530_v58 = vpop.permute.xlu0 %1529 }
 0x4c5   :  { %1322 = vadd.xlane.f32.xlu1 %v1321_v31  ;;  %v1535_v0 = vsel %vm1389_vm4, %v1530_v58, 0 }
 0x4cb   :  { %1625 = vrot.lane.b32.xlu0 %v3012_v30, %s2783_s7  ;;  %v1256_v30 = vmul.f32 1.442695, %v1240_v41 }
 0x4cd   :  { %2723 = vpow2.f32 %v1256_v30 }
 0x4d6   :  { %1721 = vrot.lane.b32.xlu1 %v3016_v32, %s2783_s7  ;;  %v1260_v32 = vmul.f32 1.442695, %v1242_v27 }
 0x4d8   :  { %2725 = vpow2.f32 %v1260_v32 }
 0x4d9   :  { %2727 = vpow2.f32 %v1264_v61 }
 0x4da   :  { %1817 = vrot.lane.b32.xlu1 %v3020_v35, %s2783_s7  ;;  %v3307_v35 = vpop.eup %2719 }
 0x4db   :  { %v1327_v37 = vsel %vm1191_vm3, %v3307_v35, 0.0 }
 0x4de   :  { %1913 = vrot.lane.b32.xlu1 %v3025_v28, %s2783_s7  ;;  %v1246_v28 = vsub.f32 %v3213_v6, %v1212_v18 }
 0x4e0   :  { %v1268_v54 = vmul.f32 1.442695, %v1246_v28 }
 0x4e2   :  { %2009 = vrot.lane.b32.xlu1 %v3030_v42, %s2783_s7  ;;  %v3314_v42 = vpop.eup %2721  ;;  %2729 = vpow2.f32 %v1268_v54 }
 0x4e3   :  { %v3321_v6 = vpop.eup %2723 }
 0x4e4   :  { %v1288_v14 = vsel %vm1191_vm3, %v3321_v6, 0.0  ;;  %v3328_v48 = vpop.eup %2725 }
 0x4e5   :  { %v1294_v16 = vsel %vm1191_vm3, %v3328_v48, 0.0  ;;  %v3335_v3 = vpop.eup %2727 }
 0x4e6   :  { %2105 = vrot.lane.b32.xlu1 %v3037_v43, %s2783_s7  ;;  %v1333_v43 = vsel %vm1191_vm3, %v3314_v42, 0.0  ;;  %v1300_v2 = vsel %vm1191_vm3, %v3335_v3, 0.0 }
 0x4ea   :  { %1384 = vrot.lane.b32.xlu1 %v2955_v10, %s2783_s7  ;;  %1328 = vadd.xlane.f32.xlu0 %v1327_v37  ;;  %v1272_v10 = vmul.f32 1.442695, %v1248_v7 }
 0x4ec   :  { %2731 = vpow2.f32 %v1272_v10  ;;  %v3342_v52 = vpop.eup %2729 }
 0x4ed   :  { %v1306_v15 = vsel %vm1191_vm3, %v3342_v52, 0.0 }
 0x4ee   :  { %1481 = vrot.lane.b32.xlu1 %v3043_v44, %s2783_s7  ;;  %1334 = vadd.xlane.f32.xlu0 %v1333_v43  ;;  %v1276_v44 = vmul.f32 1.442695, %v1250_v49 }
 0x4f0   :  { %2733 = vpow2.f32 %v1276_v44 }
 0x4f2   :  { %1577 = vrot.lane.b32.xlu1 %v2992_v19, %s2783_s7  ;;  %1289 = vadd.xlane.f32.xlu0 %v1288_v14  ;;  %v1280_v19 = vmul.f32 1.442695, %v1252_v29 }
 0x4f4   :  { %2735 = vpow2.f32 %v1280_v19 }
 0x4f6   :  { %1673 = vrot.lane.b32.xlu1 %v3049_v45, %s2783_s7  ;;  %1295 = vadd.xlane.f32.xlu0 %v1294_v16  ;;  %v1284_v45 = vmul.f32 1.442695, %v1254_v51  ;;  %v3348_v55 = vpop.eup %2731 }
 0x4f8   :  { %2737 = vpow2.f32 %v1284_v45 }
 0x4fa   :  { %1769 = vrot.lane.b32.xlu1 %v2996_v22, %s2783_s7  ;;  %1301 = vadd.xlane.f32.xlu0 %v1300_v2  ;;  %v1312_v22 = vsel %vm1191_vm3, %v3348_v55, 0.0  ;;  %v3354_v11 = vpop.eup %2733 }
 0x4fb   :  { %v1318_v56 = vsel %vm1191_vm3, %v3354_v11, 0.0 }
 0x4fe   :  { %1961 = vrot.lane.b32.xlu1 %v3000_v23, %s2783_s7  ;;  %1307 = vadd.xlane.f32.xlu0 %v1306_v15  ;;  %v3358_v23 = vpop.eup %2735 }
 0x4ff   :  { %v1324_v39 = vsel %vm1191_vm3, %v3358_v23, 0.0 }
 0x502   :  { %2057 = vrot.lane.b32.xlu1 %v3061_v47, %s2783_s7  ;;  %1313 = vadd.xlane.f32.xlu0 %v1312_v22  ;;  %v3362_v18 = vpop.eup %2737 }
 0x503   :  { %v1330_v47 = vsel %vm1191_vm3, %v3362_v18, 0.0 }
 0x506   :  { %1319 = vadd.xlane.f32.xlu0 %v1318_v56 }
 0x50a   :  { %1325 = vadd.xlane.f32.xlu0 %v1324_v39 }
 0x50e   :  { %v1293_v1 = vpop.xlane.xlu0 %1292  ;;  %1331 = vadd.xlane.f32.xlu0 %v1330_v47 }
 0x50f   :  { %2739 = vrcp.f32 %v1293_v1 }
 0x516   :  { %v1299_v57 = vpop.xlane.xlu0 %1298 }
 0x517   :  { %2741 = vrcp.f32 %v1299_v57 }
 0x519   :  { %v2740_v34 = vpop.eup %2739 }
 0x51a   :  { %v1353_v63 = vmul.f32 %v2740_v34, %v3260_v13 }
 0x51c   :  { %v1369_v24 = vpack.c.bf16 %v1353_v63, %v1353_v63 }
 0x51e   :  { %2558 = vmatmul.mubr.msk.bf16.vlgmr.msra.gmra.mrb[40].mxu1 %vm1191_vm3, %v1369_v24 }
 0x51f   :  { %2568 = vmatpush3.bf16.msra.mxu1 %v1535_v0  ;;  %2569 = vmatprep.mubr.msk.bf16.mxu1 %vm2781_vm1, %v2780_v4 }
 0x520   :  { %2579 = vmatprep.subr.bf16.mxu1 %v2780_v4 }
 0x521   :  { %v2742_v53 = vpop.eup %2741 }
 0x522   :  { %v1355_v9 = vmul.f32 %v2742_v53, %v3264_v25 }
 0x524   :  { %v1371_v26 = vpack.c.bf16 %v1355_v9, %v1355_v9  ;;  %1865 = vrot.lane.b32.xlu0 %v3055_v46, %s2783_s7 }
 0x526   :  { %2570 = vmatmul.mubr.msk.bf16.vlgmr.msra.gmra.mrb[44].mxu1 %vm1191_vm3, %v1371_v26 }
 0x527   :  { %2581 = vmatprep.mubr.msk.bf16.mxu1 %vm2781_vm1, %v2780_v4 }
 0x53a   :  { %v1305_v13 = vpop.xlane.xlu0 %1304 }
 0x53b   :  { %2743 = vrcp.f32 %v1305_v13 }
 0x53e   :  { %v1311_v12 = vpop.xlane.xlu0 %1310 }
 0x53f   :  { %2745 = vrcp.f32 %v1311_v12 }
 0x542   :  { %v1317_v38 = vpop.xlane.xlu0 %1316 }
 0x543   :  { %2747 = vrcp.f32 %v1317_v38 }
 0x545   :  { %v2744_v20 = vpop.eup %2743 }
 0x546   :  { %v1357_v31 = vmul.f32 %v2744_v20, %v3271_v59  ;;  %v1626_v17 = vpop.permute.xlu0 %1625 }
 0x547   :  { %v1631_v25 = vsel %vm1389_vm4, %v1626_v17, 0 }
 0x548   :  { %v1373_v36 = vpack.c.bf16 %v1357_v31, %v1357_v31  ;;  %2580 = vmatpush3.bf16.msra.mxu1 %v1631_v25 }
 0x549   :  { %2591 = vmatprep.subr.bf16.mxu1 %v2780_v4  ;;  %v2746_v46 = vpop.eup %2745 }
 0x54a   :  { %v1359_v40 = vmul.f32 %v2746_v46, %v3275_v5 }
 0x54b   :  { %2582 = vmatmul.mubr.msk.bf16.vlgmr.msra.gmra.mrb[48].mxu1 %vm1191_vm3, %v1373_v36 }
 0x54c   :  { %2593 = vmatprep.mubr.msk.bf16.mxu1 %vm2781_vm1, %v2780_v4  ;;  %v1375_v21 = vpack.c.bf16 %v1359_v40, %v1359_v40 }
 0x54d   :  { %v2748_v30 = vpop.eup %2747 }
 0x54e   :  { %v1361_v5 = vmul.f32 %v2748_v30, %v3279_v8 }
 0x550   :  { %v1377_v61 = vpack.c.bf16 %v1361_v5, %v1361_v5 }
 0x552   :  { %v1323_v62 = vpop.xlane.xlu1 %1322 }
 0x553   :  { %2749 = vrcp.f32 %v1323_v62 }
 0x556   :  { %v1722_v41 = vpop.permute.xlu1 %1721 }
 0x557   :  { %v1727_v59 = vsel %vm1389_vm4, %v1722_v41, 0 }
 0x558   :  { %2592 = vmatpush3.bf16.msra.mxu1 %v1727_v59 }
 0x559   :  { %2603 = vmatprep.subr.bf16.mxu1 %v2780_v4 }
 0x55a   :  { %v1818_v27 = vpop.permute.xlu1 %1817 }
 0x55b   :  { %v1823_v32 = vsel %vm1389_vm4, %v1818_v27, 0  ;;  %2594 = vmatmul.mubr.msk.bf16.vlgmr.msra.gmra.mrb[52].mxu1 %vm1191_vm3, %v1375_v21 }
 0x55c   :  { %2604 = vmatpush3.bf16.msra.mxu1 %v1823_v32  ;;  %2605 = vmatprep.mubr.msk.bf16.mxu1 %vm2781_vm1, %v2780_v4 }
 0x55d   :  { %2615 = vmatprep.subr.bf16.mxu1 %v2780_v4  ;;  %v2750_v28 = vpop.eup %2749 }
 0x55e   :  { %v1914_v33 = vpop.permute.xlu1 %1913  ;;  %v1363_v7 = vmul.f32 %v2750_v28, %v3285_v60 }
 0x55f   :  { %v1919_v54 = vsel %vm1389_vm4, %v1914_v33, 0 }
 0x560   :  { %v1379_v8 = vpack.c.bf16 %v1363_v7, %v1363_v7 }
 0x562   :  { %v2010_v37 = vpop.permute.xlu1 %2009 }
 0x563   :  { %2606 = vmatmul.mubr.msk.bf16.vlgmr.msra.gmra.mrb[56].mxu1 %vm1191_vm3, %v1377_v61  ;;  %v2015_v49 = vsel %vm1389_vm4, %v2010_v37, 0 }
 0x564   :  { %2616 = vmatpush3.bf16.msra.mxu1 %v1919_v54  ;;  %2617 = vmatprep.mubr.msk.bf16.mxu1 %vm2781_vm1, %v2780_v4 }
 0x565   :  { %2627 = vmatprep.subr.bf16.mxu1 %v2780_v4 }
 0x566   :  { %v2106_v43 = vpop.permute.xlu1 %2105 }
 0x567   :  { %v2111_v45 = vsel %vm1389_vm4, %v2106_v43, 0 }
 0x56a   :  { %v1385_v10 = vpop.permute.xlu1 %1384 }
 0x56b   :  { %v1391_v14 = vsel %vm1389_vm4, %v1385_v10, 0  ;;  %2618 = vmatmul.mubr.msk.bf16.vlgmr.msra.gmra.mrb[60].mxu1 %vm1191_vm3, %v1379_v8 }
 0x56c   :  { %2628 = vmatpush3.bf16.msra.mxu1 %v2015_v49  ;;  %2550 = vmatpush3.bf16.msra.mxu0 %v1391_v14 }
 0x56d   :  { %2629 = vmatprep.mubr.msk.bf16.mxu1 %vm2781_vm1, %v2780_v4  ;;  %2639 = vmatprep.subr.bf16.mxu1 %v2780_v4 }
 0x56e   :  { %2561 = vmatprep.subr.bf16.mxu0 %v2780_v4  ;;  %v1482_v39 = vpop.permute.xlu1 %1481 }
 0x56f   :  { %v1487_v34 = vsel %vm1389_vm4, %v1482_v39, 0 }
 0x577   :  { %v1329_v60 = vpop.xlane.xlu0 %1328 }
 0x578   :  { %2751 = vrcp.f32 %v1329_v60 }
 0x57b   :  { %v1335_v44 = vpop.xlane.xlu0 %1334 }
 0x57c   :  { %2753 = vrcp.f32 %v1335_v44 }
 0x57f   :  { %v1290_v29 = vpop.xlane.xlu0 %1289 }
 0x580   :  { %2755 = vrcp.f32 %v1290_v29 }
 0x582   :  { %v2752_v50 = vpop.eup %2751 }
 0x583   :  { %v1365_v16 = vmul.f32 %v2752_v50, %v3307_v35  ;;  %v1296_v19 = vpop.xlane.xlu0 %1295 }
 0x584   :  { %2757 = vrcp.f32 %v1296_v19  ;;  %v2690_v19 = vld [vmem:[%s3543_s5 + $0x8] sm:$0xff]  }
 0x585   :  { %v1381_v51 = vpack.c.bf16 %v1365_v16, %v1365_v16 }
 0x586   :  { %v2754_v2 = vpop.eup %2753 }
 0x587   :  { %2630 = vmatmul.mubr.msk.bf16.vlgmr.msra.gmra.mrb[64].mxu1 %vm1191_vm3, %v1381_v51  ;;  %v1302_v15 = vpop.xlane.xlu0 %1301  ;;  %v1367_v22 = vmul.f32 %v2754_v2, %v3314_v42 }
 0x588   :  { %2640 = vmatpush3.bf16.msra.mxu1 %v2111_v45  ;;  %2641 = vmatprep.mubr.msk.bf16.mxu1 %vm2781_vm1, %v2780_v4  ;;  %2759 = vrcp.f32 %v1302_v15 }
 0x589   :  { %v1383_v47 = vpack.c.bf16 %v1367_v22, %v1367_v22 }
 0x58a   :  { %v2756_v56 = vpop.eup %2755 }
 0x58b   :  { %v1352_v58 = vmul.f32 %v2756_v56, %v3321_v6  ;;  %v1308_v57 = vpop.xlane.xlu0 %1307  ;;  %v1578_v6 = vpop.permute.xlu1 %1577 }
 0x58c   :  { %2761 = vrcp.f32 %v1308_v57  ;;  %v1583_v53 = vsel %vm1389_vm4, %v1578_v6, 0 }
 0x58d   :  { %v1368_v35 = vpack.c.bf16 %v1352_v58, %v1352_v58 }
 0x58e   :  { %v2758_v1 = vpop.eup %2757 }
 0x58f   :  { %2552 = vmatmul.mubr.msk.bf16.vlgmr.msra.gmra.mrb[32].mxu0 %vm1191_vm3, %v1368_v35  ;;  %2642 = vmatmul.mubr.msk.bf16.vlgmr.msra.gmra.mrb[68].mxu1 %vm1191_vm3, %v1383_v47  ;;  %v1354_v42 = vmul.f32 %v2758_v1, %v3328_v48  ;;  %v1314_v63 = vpop.xlane.xlu0 %1313  ;;  %v1674_v26 = vpop.permute.xlu1 %1673 }
 0x590   :  { %2562 = vmatpush3.bf16.msra.mxu0 %v1487_v34  ;;  %2563 = vmatprep.mubr.msk.bf16.mxu0 %vm2781_vm1, %v2780_v4  ;;  %2763 = vrcp.f32 %v1314_v63  ;;  %v1679_v38 = vsel %vm1389_vm4, %v1674_v26, 0 }
 0x591   :  { %2573 = vmatprep.subr.bf16.mxu0 %v2780_v4  ;;  %v1370_v24 = vpack.c.bf16 %v1354_v42, %v1354_v42 }
 0x592   :  { %v2760_v0 = vpop.eup %2759 }
 0x593   :  { %v1356_v9 = vmul.f32 %v2760_v0, %v3335_v3  ;;  %v1320_v48 = vpop.xlane.xlu0 %1319  ;;  %v1770_v3 = vpop.permute.xlu1 %1769 }
 0x594   :  { %2765 = vrcp.f32 %v1320_v48  ;;  %v1775_v46 = vsel %vm1389_vm4, %v1770_v3, 0 }
 0x595   :  { %v1372_v13 = vpack.c.bf16 %v1356_v9, %v1356_v9 }
 0x596   :  { %v2762_v12 = vpop.eup %2761 }
 0x597   :  { %2564 = vmatmul.mubr.msk.bf16.vlgmr.msra.gmra.mrb[36].mxu0 %vm1191_vm3, %v1370_v24  ;;  %v1326_v20 = vpop.xlane.xlu0 %1325  ;;  %v1358_v31 = vmul.f32 %v2762_v12, %v3342_v52  ;;  %v1962_v30 = vpop.permute.xlu1 %1961 }
 0x598   :  { %2574 = vmatpush3.bf16.msra.mxu0 %v1583_v53  ;;  %2575 = vmatprep.mubr.msk.bf16.mxu0 %vm2781_vm1, %v2780_v4  ;;  %2767 = vrcp.f32 %v1326_v20  ;;  %v1967_v32 = vsel %vm1389_vm4, %v1962_v30, 0 }
 0x599   :  { %2585 = vmatprep.subr.bf16.mxu0 %v2780_v4  ;;  %v1374_v17 = vpack.c.bf16 %v1358_v31, %v1358_v31 }
 0x59a   :  { %v2764_v25 = vpop.eup %2763 }
 0x59b   :  { %v1332_v36 = vpop.xlane.xlu0 %1331  ;;  %v1360_v62 = vmul.f32 %v2764_v25, %v3348_v55  ;;  %v2058_v33 = vpop.permute.xlu1 %2057 }
 0x59c   :  { %2769 = vrcp.f32 %v1332_v36  ;;  %v2063_v28 = vsel %vm1389_vm4, %v2058_v33, 0 }
 0x59d   :  { %v1376_v40 = vpack.c.bf16 %v1360_v62, %v1360_v62 }
 0x59e   :  { %v2766_v41 = vpop.eup %2765 }
 0x59f   :  { %2576 = vmatmul.mubr.msk.bf16.vlgmr.msra.gmra.mrb[40].mxu0 %vm1191_vm3, %v1372_v13  ;;  %v1866_v52 = vpop.permute.xlu0 %1865  ;;  %v1362_v21 = vmul.f32 %v2766_v41, %v3354_v11 }
 0x5a0   :  { %2586 = vmatpush3.bf16.msra.mxu0 %v1679_v38  ;;  %2587 = vmatprep.mubr.msk.bf16.mxu0 %vm2781_vm1, %v2780_v4  ;;  %v1871_v59 = vsel %vm1389_vm4, %v1866_v52, 0 }
 0x5a1   :  { %2597 = vmatprep.subr.bf16.mxu0 %v2780_v4  ;;  %v1378_v55 = vpack.c.bf16 %v1362_v21, %v1362_v21 }
 0x5a2   :  { %v2768_v27 = vpop.eup %2767 }
 0x5a3   :  { %v1364_v5 = vmul.f32 %v2768_v27, %v3358_v23 }
 0x5a5   :  { %v1380_v11 = vpack.c.bf16 %v1364_v5, %v1364_v5 }
 0x5a6   :  { %v2770_v61 = vpop.eup %2769 }
 0x5a7   :  { %2588 = vmatmul.mubr.msk.bf16.vlgmr.msra.gmra.mrb[44].mxu0 %vm1191_vm3, %v1374_v17  ;;  %v1366_v37 = vmul.f32 %v2770_v61, %v3362_v18 }
 0x5a8   :  { %2598 = vmatpush3.bf16.msra.mxu0 %v1775_v46  ;;  %2599 = vmatprep.mubr.msk.bf16.mxu0 %vm2781_vm1, %v2780_v4 }
 0x5a9   :  { %2609 = vmatprep.subr.bf16.mxu0 %v2780_v4  ;;  %v1382_v54 = vpack.c.bf16 %v1366_v37, %v1366_v37 }
 0x5af   :  { %2600 = vmatmul.mubr.msk.bf16.vlgmr.msra.gmra.mrb[48].mxu0 %vm1191_vm3, %v1376_v40 }
 0x5b0   :  { %2610 = vmatpush3.bf16.msra.mxu0 %v1871_v59  ;;  %2611 = vmatprep.mubr.msk.bf16.mxu0 %vm2781_vm1, %v2780_v4 }
 0x5b1   :  { %2621 = vmatprep.subr.bf16.mxu0 %v2780_v4 }
 0x5b7   :  { %2612 = vmatmul.mubr.msk.bf16.vlgmr.msra.gmra.mrb[52].mxu0 %vm1191_vm3, %v1378_v55 }
 0x5b8   :  { %2622 = vmatpush3.bf16.msra.mxu0 %v1967_v32  ;;  %2623 = vmatprep.mubr.msk.bf16.mxu0 %vm2781_vm1, %v2780_v4 }
 0x5b9   :  { %2633 = vmatprep.subr.bf16.mxu0 %v2780_v4 }
 0x5bf   :  { %2624 = vmatmul.mubr.msk.bf16.vlgmr.msra.gmra.mrb[56].mxu0 %vm1191_vm3, %v1380_v11 }
 0x5c0   :  { %2634 = vmatpush3.bf16.msra.mxu0 %v2063_v28  ;;  %2635 = vmatprep.mubr.msk.bf16.mxu0 %vm2781_vm1, %v2780_v4  ;;  %v2689_v4 = vld [vmem:[%s3543_s5] sm:$0xff]  }
 0x5c1   :  { %2645 = vmatprep.subr.bf16.mxu0 %v2689_v4 }
 0x5c7   :  { %2636 = vmatmul.mubr.msk.bf16.vlgmr.msra.gmra.mrb[60].mxu0 %vm1191_vm3, %v1382_v54 }
 0x5c8   :  { %2646 = vmatpush3.bf16.msra.mxu0 %v2689_v4 }
 0x5c9   :  { %2647 = vmatprep.subr.bf16.mxu0 %v2690_v19 }
 0x5cc   :  { %2648 = vmatpush3.bf16.msra.mxu0 %v2690_v19 }
 0x5f1   :  { %v1475_v7 = vpop.f32.mrb[40].mxu1 }
 0x5f2   :  { %v2559_v23 = vpop.f32.mrb[41].mxu1 }
 0x5f3   :  { %v1478_v43 = vpop.f32.mrb[42].mxu1 }
 0x5f4   :  { %v2560_v8 = vpop.f32.mrb[43].mxu1 }
 0x5f9   :  { %v1571_v10 = vpop.f32.mrb[44].mxu1 }
 0x5fa   :  { %v2667_v49 = vpack.i.bf16 %v1571_v10, %v1475_v7  ;;  %v2571_v14 = vpop.f32.mrb[45].mxu1 }
 0x5fb   :  { %v1574_v60 = vpop.f32.mrb[46].mxu1 }
 0x5fc   :  { %2668 = vrot.lane.b32.xlu1 %v2667_v49, %s2784_s23  ;;  %v2572_v44 = vpop.f32.mrb[47].mxu1 }
 0x61e   :  { %v1667_v29 = vpop.f32.mrb[48].mxu1 }
 0x61f   :  { %v2583_v18 = vpop.f32.mrb[49].mxu1 }
 0x620   :  { %v1670_v50 = vpop.f32.mrb[50].mxu1 }
 0x621   :  { %v2584_v16 = vpop.f32.mrb[51].mxu1 }
 0x62e   :  { %v1763_v51 = vpop.f32.mrb[52].mxu1 }
 0x62f   :  { %v2672_v2 = vpack.i.bf16 %v1763_v51, %v1667_v29  ;;  %v2595_v45 = vpop.f32.mrb[53].mxu1 }
 0x630   :  { %v1766_v15 = vpop.f32.mrb[54].mxu1 }
 0x631   :  { %2673 = vrot.lane.b32.xlu1 %v2672_v2, %s2784_s23  ;;  %v2596_v22 = vpop.f32.mrb[55].mxu1 }
 0x636   :  { %v1859_v56 = vpop.f32.mrb[56].mxu1 }
 0x637   :  { %v2607_v58 = vpop.f32.mrb[57].mxu1 }
 0x638   :  { %v1862_v39 = vpop.f32.mrb[58].mxu1 }
 0x639   :  { %v2608_v35 = vpop.f32.mrb[59].mxu1 }
 0x63e   :  { %v1955_v47 = vpop.f32.mrb[60].mxu1 }
 0x63f   :  { %v2677_v1 = vpack.i.bf16 %v1955_v47, %v1859_v56  ;;  %v2619_v57 = vpop.f32.mrb[61].mxu1 }
 0x640   :  { %v1958_v34 = vpop.f32.mrb[62].mxu1 }
 0x641   :  { %2678 = vrot.lane.b32.xlu1 %v2677_v1, %s2784_s23  ;;  %v2620_v42 = vpop.f32.mrb[63].mxu1 }
 0x65a   :  { %v2051_v6 = vpop.f32.mrb[64].mxu1 }
 0x65b   :  { %v2631_v63 = vpop.f32.mrb[65].mxu1 }
 0x65c   :  { %v2054_v24 = vpop.f32.mrb[66].mxu1  ;;  %v2358_v63 = vld [vmem:[%s3544_s6] ss:$0 sm:$0xff] }
 0x65d   :  { %v2632_v0 = vpop.f32.mrb[67].mxu1 }
 0x662   :  { %v1427_v53 = vpop.f32.mrb[32].mxu0  ;;  %v2147_v9 = vpop.f32.mrb[68].mxu1 }
 0x663   :  { %v2682_v48 = vpack.i.bf16 %v2147_v9, %v2051_v6  ;;  %v2553_v26 = vpop.f32.mrb[33].mxu0  ;;  %v2643_v13 = vpop.f32.mrb[69].mxu1 }
 0x664   :  { %v1430_v12 = vpop.f32.mrb[34].mxu0  ;;  %v2150_v38 = vpop.f32.mrb[70].mxu1  ;;  %v2771_v26 = vld [vmem:[%s3537_s0 + $0x10] sm:$0xff] }
 0x665   :  { %2683 = vrot.lane.b32.xlu1 %v2682_v48, %s2784_s23  ;;  %v2554_v20 = vpop.f32.mrb[35].mxu0  ;;  %v2644_v31 = vpop.f32.mrb[71].mxu1 }
 0x666   :  { %v2772_v20 = vld [vmem:[%s3537_s0] sm:$0xff] }
 0x66a   :  { %v1523_v3 = vpop.f32.mrb[36].mxu0 }
 0x66b   :  { %v2565_v17 = vpop.f32.mrb[37].mxu0 }
 0x66c   :  { %v1526_v25 = vpop.f32.mrb[38].mxu0  ;;  %v2773_v17 = vld [vmem:[%s3537_s0 + $0x18] sm:$0xff] }
 0x66d   :  { %v2566_v36 = vpop.f32.mrb[39].mxu0 }
 0x66e   :  { %v2669_v46 = vpop.permute.xlu1 %2668  ;;  %v2774_v36 = vld [vmem:[%s3537_s0 + $0x8] sm:$0xff] }
 0x66f   :  { %v2671_v62 = vunpack.i.h.bf16 %v2669_v46  ;;  %v2670_v52 = vunpack.i.l.bf16 %v2669_v46 }
 0x671   :  { %v2185_v40 = vsel %vm385_vm2, %v1427_v53, %v2670_v52  ;;  %v2186_v41 = vsel %vm385_vm2, %v1523_v3, %v2671_v62 }
 0x672   :  { %v2193_v59 = vpack.c.bf16 %v2186_v41, %v2185_v40  ;;  %v1619_v21 = vpop.f32.mrb[40].mxu0 }
 0x673   :  { %v2577_v30 = vpop.f32.mrb[41].mxu0 }
 0x674   :  { %2649 = vmatprep.mubr.msk.bf16.mxu0 %vm38_vm0, %v2193_v59  ;;  %v1622_v55 = vpop.f32.mrb[42].mxu0 }
 0x675   :  { %v2578_v27 = vpop.f32.mrb[43].mxu0 }
 0x67a   :  { %v1715_v32 = vpop.f32.mrb[44].mxu0 }
 0x67b   :  { %v2589_v5 = vpop.f32.mrb[45].mxu0 }
 0x67c   :  { %v1718_v33 = vpop.f32.mrb[46].mxu0 }
 0x67d   :  { %v2590_v11 = vpop.f32.mrb[47].mxu0 }
 0x67e   :  { %v2777_v11 = vld [vmem:[%s3537_s0 + $0x38] sm:$0xff] }
 0x682   :  { %v1811_v61 = vpop.f32.mrb[48].mxu0 }
 0x683   :  { %v2601_v28 = vpop.f32.mrb[49].mxu0 }
 0x684   :  { %v1814_v37 = vpop.f32.mrb[50].mxu0  ;;  %v2778_v28 = vld [vmem:[%s3537_s0 + $0x28] sm:$0xff] }
 0x685   :  { %v2602_v54 = vpop.f32.mrb[51].mxu0 }
 0x68a   :  { %v1907_v7 = vpop.f32.mrb[52].mxu0 }
 0x68b   :  { %v2613_v23 = vpop.f32.mrb[53].mxu0 }
 0x68c   :  { %v1910_v43 = vpop.f32.mrb[54].mxu0 }
 0x68d   :  { %v2614_v8 = vpop.f32.mrb[55].mxu0 }
 0x692   :  { %v2003_v10 = vpop.f32.mrb[56].mxu0 }
 0x693   :  { %v2625_v49 = vpop.f32.mrb[57].mxu0 }
 0x694   :  { %v2006_v14 = vpop.f32.mrb[58].mxu0 }
 0x695   :  { %v2626_v60 = vpop.f32.mrb[59].mxu0 }
 0x69a   :  { %v2099_v44 = vpop.f32.mrb[60].mxu0 }
 0x69b   :  { %v2637_v29 = vpop.f32.mrb[61].mxu0 }
 0x69c   :  { %v2102_v4 = vpop.f32.mrb[62].mxu0 }
 0x69d   :  { %v2638_v18 = vpop.f32.mrb[63].mxu0 }
 0x6a3   :  { %v2674_v50 = vpop.permute.xlu1 %2673 }
 0x6a4   :  { %v2676_v16 = vunpack.i.h.bf16 %v2674_v50  ;;  %v2675_v19 = vunpack.i.l.bf16 %v2674_v50 }
 0x6a6   :  { %v2187_v51 = vsel %vm385_vm2, %v1619_v21, %v2675_v19  ;;  %v2188_v2 = vsel %vm385_vm2, %v1715_v32, %v2676_v16  ;;  %v2775_v21 = vld [vmem:[%s3537_s0 + $0x30] sm:$0xff]  ;;  %v2776_v32 = vld [vmem:[%s3537_s0 + $0x20] sm:$0xff] }
 0x6a7   :  { %v2194_v45 = vpack.c.bf16 %v2188_v2, %v2187_v51 }
 0x6a9   :  { %2650 = vmatmul.mubr.msk.bf16.vlgmr.msra.gmra.mrb[64].mxu0 %vm38_vm0, %v2194_v45 }
 0x6b3   :  { %v2679_v15 = vpop.permute.xlu1 %2678 }
 0x6b4   :  { %v2681_v22 = vunpack.i.h.bf16 %v2679_v15  ;;  %v2680_v56 = vunpack.i.l.bf16 %v2679_v15 }
 0x6b6   :  { %v2189_v58 = vsel %vm385_vm2, %v1811_v61, %v2680_v56  ;;  %v2190_v39 = vsel %vm385_vm2, %v1907_v7, %v2681_v22 }
 0x6b7   :  { %v2195_v35 = vpack.c.bf16 %v2190_v39, %v2189_v58 }
 0x6b9   :  { %2653 = vmatprep.mubr.msk.bf16.mxu0 %vm38_vm0, %v2195_v35 }
 0x6d7   :  { %v2684_v47 = vpop.permute.xlu1 %2683 }
 0x6d8   :  { %v2686_v1 = vunpack.i.h.bf16 %v2684_v47  ;;  %v2685_v57 = vunpack.i.l.bf16 %v2684_v47 }
 0x6da   :  { %v2191_v34 = vsel %vm385_vm2, %v2003_v10, %v2685_v57  ;;  %v2192_v42 = vsel %vm385_vm2, %v2099_v44, %v2686_v1 }
 0x6db   :  { %v2196_v6 = vpack.c.bf16 %v2192_v42, %v2191_v34 }
 0x6dd   :  { %2654 = vmatmul.mubr.msk.bf16.gmra.mrb[68].mxu0 %vm38_vm0, %v2196_v6 }
 0x77c   :  { %v2651_v24 = vpop.f32.mrb[64].mxu0 }
 0x77d   :  { %v2275_v0 = vadd.f32 %v2651_v24, %v2358_v63  ;;  %v2266_v53 = vpop.f32.mrb[65].mxu0 }
 0x77e   :  { %v2267_v9 = vadd.f32 %v2358_v63, %v2266_v53  ;;  %v2652_v48 = vpop.f32.mrb[66].mxu0 }
 0x77f   :  { %v2299_v13 = vadd.f32 %v2771_v26, %v2275_v0  ;;  %v2278_v12 = vadd.f32 %v2652_v48, %v2358_v63  ;;  %v2269_v38 = vpop.f32.mrb[67].mxu0 }
 0x780   :  { %v2297_v31 = vadd.f32 %v2772_v20, %v2267_v9  ;;  %v2270_v3 = vadd.f32 %v2358_v63, %v2269_v38 }
 0x781   :  { %2307 = vst.msk [vmem:[%s3545_s8 + $0x10] sm:$0xff] %vm38_vm0, %v2299_v13  ;;  %v2300_v25 = vadd.f32 %v2773_v17, %v2278_v12 }
 0x782   :  { %2305 = vst.msk [vmem:[%s3545_s8] sm:$0xff] %vm38_vm0, %v2297_v31  ;;  %v2298_v46 = vadd.f32 %v2774_v36, %v2270_v3 }
 0x783   :  { %2308 = vst.msk [vmem:[%s3545_s8 + $0x18] sm:$0xff] %vm38_vm0, %v2300_v25 }
 0x784   :  { %2306 = vst.msk [vmem:[%s3545_s8 + $0x8] sm:$0xff] %vm38_vm0, %v2298_v46 }
 0x7b0   :  { %v2655_v62 = vpop.f32.mrb[68].mxu0 }
 0x7b1   :  { %v2291_v52 = vadd.f32 %v2655_v62, %v2358_v63  ;;  %v2282_v40 = vpop.f32.mrb[69].mxu0 }
 0x7b2   :  { %v2283_v41 = vadd.f32 %v2358_v63, %v2282_v40  ;;  %v2656_v59 = vpop.f32.mrb[70].mxu0 }
 0x7b3   :  { %v2303_v30 = vadd.f32 %v2775_v21, %v2291_v52  ;;  %v2294_v55 = vadd.f32 %v2656_v59, %v2358_v63  ;;  %v2285_v27 = vpop.f32.mrb[71].mxu0 }
 0x7b4   :  { %v2301_v5 = vadd.f32 %v2776_v32, %v2283_v41  ;;  %v2286_v33 = vadd.f32 %v2358_v63, %v2285_v27 }
 0x7b5   :  { %2311 = vst.msk [vmem:[%s3545_s8 + $0x30] sm:$0xff] %vm38_vm0, %v2303_v30  ;;  %v2304_v61 = vadd.f32 %v2777_v11, %v2294_v55 }
 0x7b6   :  { %2309 = vst.msk [vmem:[%s3545_s8 + $0x20] sm:$0xff] %vm38_vm0, %v2301_v5  ;;  %v2302_v37 = vadd.f32 %v2778_v28, %v2286_v33 }
 0x7b7   :  { %2312 = vst.msk [vmem:[%s3545_s8 + $0x38] sm:$0xff] %vm38_vm0, %v2304_v61 }
 0x7b8   :  { %2310 = vst.msk [vmem:[%s3545_s8 + $0x28] sm:$0xff] %vm38_vm0, %v2302_v37 }

// kernel: video_swin_forward.21
= control target key start
LH: loop header
LB: loop body
LE: loop exit
PB: predicated region body
PF: predicated region fallthrough
CT: control target
= control target key end

     0   :  { %vm24_vm0 = vcmask 523264   ;;  %v235_v14 = vmov 0.0|0.0   ;;  %vm236_vm1 = vmmov 0   ;;  %v237_v18 = vmov 0.0   ;;  %s317_s0 = inlined_call_operand.vmem [shape: f32[2,8,64], index: 0, kind: input, shape index: {}]   ;;  %s318_s3 = inlined_call_operand.vmem [shape: f32[64,1], index: 3, kind: input, shape index: {}]   ;;  %s319_s4 = inlined_call_operand.<no memory space> [shape: f32[1,1], index: 4, kind: input, shape index: {}]   ;;  %s320_s1 = inlined_call_operand.vmem [shape: f32[1,64], index: 1, kind: input, shape index: {}]   ;;  %s321_s2 = inlined_call_operand.vmem [shape: f32[1,64], index: 2, kind: input, shape index: {}]   ;;  %s322_s5 = inlined_call_operand.vmem [shape: f32[2,1], index: 5, kind: output, shape index: {}]  }
   0x1   :  { %v22_v0 = vld [vmem:[%s317_s0] sm:$0xff]  ;;  %v23_v1 = vld [vmem:[%s317_s0 + $0x8] sm:$0xff]  ;;  %216 = vmatprep.subr.bf16.mxu0 %v235_v14  ;;  %v89_v17 = vld [vmem:[%s318_s3 + $0x10] sm:$0xff]  ;;  %213 = vmatprep.mubr.msk.f32.mxu0 %vm236_vm1, %v237_v18  ;;  %v10_v28 = vstv %s319_s4  ;;  %vm104_vm2 = vcmask 1041409   ;;  %vm178_vm3 = vcmask 1024  }
   0x2   :  { %v25_v2 = vsel %vm24_vm0, %v22_v0, 0.0  ;;  %v28_v3 = vsel %vm24_vm0, %v23_v1, 0.0  ;;  %v87_v15 = vld [vmem:[%s318_s3] sm:$0xff]  ;;  %v88_v16 = vld [vmem:[%s318_s3 + $0x8] sm:$0xff]  ;;  %v90_v20 = vld [vmem:[%s318_s3 + $0x18] sm:$0xff] }
   0x3   :  { %26 = vadd.xlane.f32.xlu0 %v25_v2  ;;  %v217_v19 = vpack.c.bf16 %v88_v16, %v87_v15  ;;  %v220_v21 = vpack.c.bf16 %v90_v20, %v89_v17  ;;  %v91_v22 = vld [vmem:[%s318_s3 + $0x20] sm:$0xff]  ;;  %v92_v23 = vld [vmem:[%s318_s3 + $0x28] sm:$0xff]  ;;  %v93_v25 = vld [vmem:[%s318_s3 + $0x30] sm:$0xff]  ;;  %11 = vst [vmem:[#allocation2] sm:$0x1] %v10_v28 }
   0x4   :  { %v223_v24 = vpack.c.bf16 %v92_v23, %v91_v22  ;;  %v94_v26 = vld [vmem:[%s318_s3 + $0x38] sm:$0xff]  ;;  %v184_v36 = vld [vmem:[%s320_s1] ss:$0 sm:$0xff] }
   0x5   :  { %218 = vmatpush3.bf16.msra.mxu0 %v217_v19  ;;  %v226_v27 = vpack.c.bf16 %v94_v26, %v93_v25  ;;  %v185_v38 = vld [vmem:[%s321_s2] ss:$0 sm:$0xff] }
   0x6   :  { %219 = vmatprep.subr.bf16.mxu0 %v235_v14 }
   0x7   :  { %29 = vadd.xlane.f32.xlu0 %v28_v3 }
   0x9   :  { %221 = vmatpush3.bf16.msra.mxu0 %v220_v21 }
   0xa   :  { %222 = vmatprep.subr.bf16.mxu0 %v235_v14  ;;  %v186_v62 = vld [vmem:[#allocation2] ss:$0 sm:$0xff] }
   0xd   :  { %224 = vmatpush3.bf16.msra.mxu0 %v223_v24 }
   0xe   :  { %225 = vmatprep.subr.bf16.mxu0 %v235_v14 }
  0x11   :  { %227 = vmatpush3.bf16.msra.mxu0 %v226_v27 }
  0x90   :  { %v27_v4 = vpop.xlane.xlu0 %26 }
  0x91   :  { %v32_v5 = vmul.f32 0.015625, %v27_v4 }
  0x93   :  { %v34_v6 = vsub.f32 %v22_v0, %v32_v5 }
  0x94   :  { %v30_v7 = vpop.xlane.xlu0 %29 }
  0x95   :  { %v33_v8 = vmul.f32 0.015625, %v30_v7  ;;  %v36_v9 = vmul.f32 %v34_v6, %v34_v6 }
  0x97   :  { %v35_v10 = vsub.f32 %v23_v1, %v33_v8  ;;  %v38_v11 = vsel %vm24_vm0, %v36_v9, 0.0 }
  0x98   :  { %39 = vadd.xlane.f32.xlu1 %v38_v11 }
  0x99   :  { %v37_v12 = vmul.f32 %v35_v10, %v35_v10 }
  0x9b   :  { %v41_v13 = vsel %vm24_vm0, %v37_v12, 0.0 }
  0x9c   :  { %42 = vadd.xlane.f32.xlu1 %v41_v13 }
 0x125   :  { %v40_v29 = vpop.xlane.xlu1 %39 }
 0x126   :  { %v44_v30 = vmul.f32 0.015625, %v40_v29 }
 0x128   :  { %v46_v31 = vadd.f32 1e-05, %v44_v30 }
 0x129   :  { %v43_v32 = vpop.xlane.xlu1 %42 }
 0x12a   :  { %231 = vrsqrt.f32 %v46_v31  ;;  %v45_v33 = vmul.f32 0.015625, %v43_v32 }
 0x12c   :  { %v47_v34 = vadd.f32 1e-05, %v45_v33 }
 0x12e   :  { %233 = vrsqrt.f32 %v47_v34 }
 0x134   :  { %v232_v35 = vpop.eup %231 }
 0x135   :  { %v50_v37 = vmul.f32 %v232_v35, %v34_v6 }
 0x137   :  { %v59_v39 = vmul.f32 %v184_v36, %v50_v37 }
 0x138   :  { %v234_v40 = vpop.eup %233 }
 0x139   :  { %v51_v41 = vmul.f32 %v234_v40, %v35_v10  ;;  %v68_v42 = vadd.f32 %v185_v38, %v59_v39 }
 0x13b   :  { %v60_v43 = vmul.f32 %v184_v36, %v51_v41  ;;  %v70_v44 = vsel %vm24_vm0, %v68_v42, 0.0 }
 0x13c   :  { %v71_v45 = vrot.slane %v70_v44, 4 }
 0x13d   :  { %v69_v46 = vadd.f32 %v185_v38, %v60_v43 }
 0x13e   :  { %v72_v47 = vadd.f32 %v71_v45, %v70_v44 }
 0x13f   :  { %v77_v48 = vsel %vm24_vm0, %v69_v46, 0.0 }
 0x140   :  { %v73_v49 = vrot.slane %v72_v47, 2  ;;  %v78_v50 = vrot.slane %v77_v48, 4 }
 0x142   :  { %v74_v51 = vadd.f32 %v73_v49, %v72_v47  ;;  %v79_v52 = vadd.f32 %v78_v50, %v77_v48 }
 0x144   :  { %v75_v53 = vrot.slane %v74_v51, 1  ;;  %v80_v54 = vrot.slane %v79_v52, 2 }
 0x146   :  { %v81_v55 = vadd.f32 %v80_v54, %v79_v52  ;;  %v76_v56 = vadd.f32 %v75_v53, %v74_v51 }
 0x148   :  { %v82_v57 = vrot.slane %v81_v55, 1  ;;  %v85_v59 = vmul.f32 0.125, %v76_v56 }
 0x14a   :  { %v83_v58 = vadd.f32 %v82_v57, %v81_v55 }
 0x14c   :  { %v86_v60 = vmul.f32 0.125, %v83_v58 }
 0x14e   :  { %v105_v61 = vsel %vm104_vm2, %v86_v60, %v85_v59 }
 0x14f   :  { %214 = vmatmul.mubr.msk.f32.vlgmr.msra.gmra.mrb[0].mxu0 %vm24_vm0, %v105_v61 }
 0x222   :  { %v174_v63 = vpop.f32.mrb[0].mxu0 }
 0x223   :  { %v175_v0 = vadd.f32 %v186_v62, %v174_v63  ;;  %v215_v1 = vpop.f32.mrb[1].mxu0 }
 0x225   :  { %179 = vst.msk [vmem:[%s322_s5] sm:$0x3] %vm178_vm3, %v175_v0 }

// kernel: video_swin_forward.17
= control target key start
LH: loop header
LB: loop body
LE: loop exit
PB: predicated region body
PF: predicated region fallthrough
CT: control target
= control target key end

     0   :  { %vm32_vm0 = vcmask 523264   ;;  %v1521_v22 = vmov 0   ;;  %v89_v40 = vlaneseq  ;;  %v1522_v46 = vmov 0.0   ;;  %s1527_s29 = smov 64   ;;  %s1528_s16 = smov 32   ;;  %s1857_s0 = inlined_call_operand.vmem [shape: f32[2,8,64], index: 0, kind: input, shape index: {}]   ;;  %s1858_s3 = inlined_call_operand.vmem [shape: bf16[64,192], index: 3, kind: input, shape index: {}]   ;;  %s1859_s1 = inlined_call_operand.vmem [shape: f32[1,64], index: 1, kind: input, shape index: {}]   ;;  %s1860_s2 = inlined_call_operand.vmem [shape: f32[1,64], index: 2, kind: input, shape index: {}]   ;;  %s1861_s4 = inlined_call_operand.vmem [shape: f32[1,192], index: 4, kind: input, shape index: {}]   ;;  %s1862_s7 = inlined_call_operand.vmem [shape: f32[4,8,8], index: 7, kind: input, shape index: {}]   ;;  %s1863_s5 = inlined_call_operand.vmem [shape: bf16[64,64], index: 5, kind: input, shape index: {}]   ;;  %s1864_s6 = inlined_call_operand.vmem [shape: f32[1,64], index: 6, kind: input, shape index: {}]   ;;  %s1865_s8 = inlined_call_operand.vmem [shape: f32[2,8,64], index: 8, kind: output, shape index: {}]  }
   0x1   :  { %v1579_v0 = vld [vmem:[%s1857_s0] sm:$0xff]  ;;  %v1584_v1 = vld [vmem:[%s1857_s0 + $0x8] sm:$0xff]  ;;  %v1472_v16 = vld [vmem:[%s1858_s3 + $0x14] ss:$8 sps:$4 sm:$0xff]   ;;  %174 = vmatprep.mubr.bf16.mxu0 %v1521_v22  ;;  %1336 = vmatprep.subr.bf16.mxu1 %v1522_v46  ;;  %vm1525_vm1 = vmmov 0   ;;  %vm274_vm2 = vcmask 130048  }
   0x2   :  { %v33_v2 = vsel %vm32_vm0, %v1579_v0, 0.0  ;;  %v36_v3 = vsel %vm32_vm0, %v1584_v1, 0.0  ;;  %v1469_v14 = vld [vmem:[%s1858_s3 + $0x4] ss:$8 sps:$4 sm:$0xff]   ;;  %v1471_v15 = vld [vmem:[%s1858_s3] ss:$8 sps:$4 sm:$0xff]   ;;  %1338 = vmatprep.mubr.msk.bf16.mxu1 %vm1525_vm1, %v1522_v46 }
   0x3   :  { %34 = vadd.xlane.f32.xlu0 %v33_v2  ;;  %142 = vmatprep.subr.bf16.mxu0 %v1469_v14  ;;  %v1474_v17 = vld [vmem:[%s1858_s3 + $0x10] ss:$8 sps:$4 sm:$0xff]   ;;  %v1475_v18 = vld [vmem:[%s1858_s3 + $0x24] ss:$8 sps:$4 sm:$0xff]   ;;  %v1477_v19 = vld [vmem:[%s1858_s3 + $0x20] ss:$8 sps:$4 sm:$0xff]  }
   0x4   :  { %143 = vmatpush1.bf16.msra.mxu0 %v1471_v15  ;;  %v1478_v20 = vld [vmem:[%s1858_s3 + $0x34] ss:$8 sps:$4 sm:$0xff]   ;;  %v1480_v21 = vld [vmem:[%s1858_s3 + $0x30] ss:$8 sps:$4 sm:$0xff]   ;;  %v1266_v31 = vld [vmem:[%s1859_s1] ss:$0 sm:$0xff] }
   0x5   :  { %144 = vmatprep.subr.bf16.mxu0 %v1472_v16  ;;  %v1267_v35 = vld [vmem:[%s1860_s2] ss:$0 sm:$0xff]  ;;  %v90_v41 = vshrl.u32 %v89_v40, 7  ;;  %s1523_s1 = smov 96   ;;  %s1524_s2 = smov 112   ;;  %vm776_vm3 = vcmask 1043456  }
   0x6   :  { %v87_v43 = vld [vmem:[%s1861_s4] sm:$0x3]  ;;  %s1526_s4 = smov 80   ;;  %vm676_vm4 = vcmask 64512   ;;  %s1529_s23 = smov 16   ;;  %vm1168_vm5 = vcmask 261120  }
   0x7   :  { %37 = vadd.xlane.f32.xlu0 %v36_v3  ;;  %v91_v42 = vsub.s32 0, %v90_v41  ;;  %v95_v45 = vsub.s32 1, %v90_v41  ;;  %s1530_s24 = smov 48   ;;  %vm1171_vm6 = vcmask 392192  }
   0x8   :  { %145 = vmatpush1.bf16.msra.mxu0 %v1474_v17 }
   0x9   :  { %146 = vmatprep.subr.bf16.mxu0 %v1475_v18  ;;  %v92_v44 = vrot.slane %v87_v43, %v91_v42  ;;  %v1632_v50 = vrot.slane %v87_v43, %v95_v45  ;;  %v664_v42 = vld [vmem:[%s1862_s7] sm:$0xff] }
   0xc   :  { %147 = vmatpush1.bf16.msra.mxu0 %v1477_v19 }
   0xd   :  { %148 = vmatprep.subr.bf16.mxu0 %v1478_v20 }
  0x10   :  { %149 = vmatpush1.bf16.msra.mxu0 %v1480_v21 }
  0x11   :  { %1360 = vmatprep.subr.bf16.mxu0 %v1522_v46 }
  0x90   :  { %v35_v4 = vpop.xlane.xlu0 %34 }
  0x91   :  { %v40_v5 = vmul.f32 0.015625, %v35_v4 }
  0x93   :  { %v42_v6 = vsub.f32 %v1579_v0, %v40_v5 }
  0x94   :  { %v38_v7 = vpop.xlane.xlu0 %37 }
  0x95   :  { %v41_v8 = vmul.f32 0.015625, %v38_v7  ;;  %v44_v9 = vmul.f32 %v42_v6, %v42_v6 }
  0x97   :  { %v43_v10 = vsub.f32 %v1584_v1, %v41_v8  ;;  %v46_v11 = vsel %vm32_vm0, %v44_v9, 0.0 }
  0x98   :  { %47 = vadd.xlane.f32.xlu1 %v46_v11 }
  0x99   :  { %v45_v12 = vmul.f32 %v43_v10, %v43_v10 }
  0x9b   :  { %v49_v13 = vsel %vm32_vm0, %v45_v12, 0.0 }
  0x9c   :  { %50 = vadd.xlane.f32.xlu1 %v49_v13 }
 0x125   :  { %v48_v23 = vpop.xlane.xlu1 %47 }
 0x126   :  { %v52_v24 = vmul.f32 0.015625, %v48_v23 }
 0x128   :  { %v54_v25 = vadd.f32 1e-05, %v52_v24 }
 0x129   :  { %v51_v26 = vpop.xlane.xlu1 %50 }
 0x12a   :  { %1485 = vrsqrt.f32 %v54_v25  ;;  %v53_v27 = vmul.f32 0.015625, %v51_v26 }
 0x12c   :  { %v55_v28 = vadd.f32 1e-05, %v53_v27 }
 0x12e   :  { %1487 = vrsqrt.f32 %v55_v28 }
 0x134   :  { %v1486_v29 = vpop.eup %1485 }
 0x135   :  { %v58_v30 = vmul.f32 %v1486_v29, %v42_v6 }
 0x137   :  { %v67_v34 = vmul.f32 %v1266_v31, %v58_v30 }
 0x138   :  { %v1488_v32 = vpop.eup %1487 }
 0x139   :  { %v59_v33 = vmul.f32 %v1488_v32, %v43_v10  ;;  %v76_v37 = vadd.f32 %v1267_v35, %v67_v34 }
 0x13b   :  { %v68_v36 = vmul.f32 %v1266_v31, %v59_v33 }
 0x13d   :  { %v77_v38 = vadd.f32 %v1267_v35, %v68_v36 }
 0x13f   :  { %v78_v39 = vpack.c.bf16 %v77_v38, %v76_v37 }
 0x141   :  { %1276 = vmatmul.mubr.msk.bf16.vlgmr.msra.gmra.mrb[0].mxu0 %vm32_vm0, %v78_v39 }
 0x142   :  { %1362 = vmatprep.mubr.msk.bf16.mxu0 %vm1525_vm1, %v1522_v46 }
 0x214   :  { %v176_v47 = vpop.f32.mrb[0].mxu0 }
 0x215   :  { %v177_v48 = vadd.f32 %v176_v47, %v92_v44  ;;  %v1630_v49 = vpop.f32.mrb[1].mxu0 }
 0x216   :  { %v180_v51 = vpop.f32.mrb[2].mxu0  ;;  %v1682_v28 = vadd.f32 %v1630_v49, %v1632_v50 }
 0x217   :  { %v182_v52 = vpop.f32.mrb[3].mxu0  ;;  %223 = vrot.lane.b32.xlu1 %v177_v48, %s1523_s1  ;;  %217 = vrot.lane.b32.xlu0 %v177_v48, %s1524_s2  ;;  %v181_v54 = vadd.f32 %v180_v51, %v92_v44  ;;  %v235_v55 = vpack.c.bf16 %v177_v48, %v177_v48  ;;  %v185_v56 = vmul.f32 0.25, %v177_v48 }
 0x218   :  { %v1637_v53 = vadd.f32 %v182_v52, %v1632_v50  ;;  %v263_v34 = vpack.c.bf16 %v1682_v28, %v1682_v28  ;;  %v665_v50 = vld [vmem:[%s1862_s7 + $0x8] sm:$0xff] }
 0x219   :  { %v239_v7 = vpack.c.bf16 %v181_v54, %v181_v54  ;;  %v207_v8 = vpack.c.bf16 %v185_v56, %v185_v56  ;;  %v186_v9 = vmul.f32 0.25, %v181_v54 }
 0x21a   :  { %v778_v36 = vsel %vm776_vm3, %v263_v34, 0 }
 0x21b   :  { %229 = vrot.lane.b32.xlu1 %v177_v48, %s1526_s4  ;;  %225 = vrot.lane.b32.xlu0 %v181_v54, %s1523_s1  ;;  %v211_v27 = vpack.c.bf16 %v186_v9, %v186_v9 }
 0x21f   :  { %219 = vrot.lane.b32.xlu1 %v181_v54, %s1524_s2  ;;  %272 = vrot.lane.b32.xlu0 %v235_v55, %s1527_s29 }
 0x223   :  { %231 = vrot.lane.b32.xlu1 %v181_v54, %s1526_s4  ;;  %189 = vrot.lane.b32.xlu0 %v185_v56, %s1524_s2 }
 0x227   :  { %195 = vrot.lane.b32.xlu0 %v185_v56, %s1523_s1 }
 0x22b   :  { %201 = vrot.lane.b32.xlu0 %v185_v56, %s1526_s4 }
 0x289   :  { %v224_v57 = vpop.permute.xlu1 %223  ;;  %v218_v58 = vpop.permute.xlu0 %217 }
 0x28a   :  { %v236_v59 = vpack.c.bf16 %v218_v58, %v218_v58  ;;  %v237_v62 = vpack.c.bf16 %v224_v57, %v224_v57  ;;  %v666_v58 = vld [vmem:[%s1862_s7 + $0x10] sm:$0xff] }
 0x28c   :  { %322 = vrot.lane.b32.xlu1 %v236_v59, %s1527_s29 }
 0x28d   :  { %v230_v60 = vpop.permute.xlu1 %229  ;;  %v226_v61 = vpop.permute.xlu0 %225 }
 0x28e   :  { %v238_v3 = vpack.c.bf16 %v230_v60, %v230_v60  ;;  %v241_v6 = vpack.c.bf16 %v226_v61, %v226_v61 }
 0x290   :  { %371 = vrot.lane.b32.xlu1 %v237_v62, %s1527_s29 }
 0x291   :  { %v220_v63 = vpop.permute.xlu1 %219  ;;  %v273_v2 = vpop.permute.xlu0 %272 }
 0x292   :  { %v240_v4 = vpack.c.bf16 %v220_v63, %v220_v63  ;;  %v279_v5 = vsel %vm274_vm2, %v273_v2, 0 }
 0x293   :  { %1337 = vmatpush3.bf16.xpose.msra.mxu1 %v279_v5 }
 0x294   :  { %420 = vrot.lane.b32.xlu1 %v238_v3, %s1527_s29  ;;  %518 = vrot.lane.b32.xlu0 %v240_v4, %s1527_s29 }
 0x295   :  { %1342 = vmatprep.subr.bf16.mxu1 %v1522_v46  ;;  %v232_v10 = vpop.permute.xlu1 %231  ;;  %v190_v12 = vpop.permute.xlu0 %189 }
 0x296   :  { %v242_v11 = vpack.c.bf16 %v232_v10, %v232_v10  ;;  %v208_v17 = vpack.c.bf16 %v190_v12, %v190_v12 }
 0x298   :  { %469 = vrot.lane.b32.xlu1 %v239_v7, %s1527_s29  ;;  %567 = vrot.lane.b32.xlu0 %v241_v6, %s1527_s29  ;;  %v667_v6 = vld [vmem:[%s1862_s7 + $0x18] sm:$0xff] }
 0x299   :  { %v196_v15 = vpop.permute.xlu0 %195 }
 0x29a   :  { %1339 = vmatmul.mubr.msk.bf16.vlgmr.msra.gmra.mrb[0].mxu1 %vm274_vm2, %v207_v8  ;;  %v209_v24 = vpack.c.bf16 %v196_v15, %v196_v15 }
 0x29b   :  { %1344 = vmatprep.mubr.msk.bf16.mxu1 %vm1525_vm1, %v1522_v46 }
 0x29c   :  { %191 = vrot.lane.b32.xlu1 %v186_v9, %s1524_s2  ;;  %197 = vrot.lane.b32.xlu0 %v186_v9, %s1523_s1 }
 0x29d   :  { %v202_v18 = vpop.permute.xlu0 %201 }
 0x29e   :  { %v210_v30 = vpack.c.bf16 %v202_v18, %v202_v18 }
 0x2a0   :  { %616 = vrot.lane.b32.xlu1 %v242_v11, %s1527_s29 }
 0x2a4   :  { %203 = vrot.lane.b32.xlu1 %v186_v9, %s1526_s4 }
 0x2fe   :  { %v323_v13 = vpop.permute.xlu1 %322 }
 0x2ff   :  { %v328_v14 = vsel %vm274_vm2, %v323_v13, 0 }
 0x300   :  { %1343 = vmatpush3.bf16.xpose.msra.mxu1 %v328_v14 }
 0x301   :  { %1348 = vmatprep.subr.bf16.mxu1 %v1522_v46 }
 0x302   :  { %v372_v16 = vpop.permute.xlu1 %371 }
 0x303   :  { %v377_v20 = vsel %vm274_vm2, %v372_v16, 0 }
 0x306   :  { %v421_v19 = vpop.permute.xlu1 %420  ;;  %v519_v21 = vpop.permute.xlu0 %518 }
 0x307   :  { %1345 = vmatmul.mubr.msk.bf16.vlgmr.msra.gmra.mrb[4].mxu1 %vm274_vm2, %v208_v17  ;;  %v426_v25 = vsel %vm274_vm2, %v421_v19, 0  ;;  %v524_v33 = vsel %vm274_vm2, %v519_v21, 0 }
 0x308   :  { %1349 = vmatpush3.bf16.xpose.msra.mxu1 %v377_v20  ;;  %1350 = vmatprep.mubr.msk.bf16.mxu1 %vm1525_vm1, %v1522_v46 }
 0x309   :  { %1354 = vmatprep.subr.bf16.mxu1 %v1522_v46 }
 0x30a   :  { %v470_v22 = vpop.permute.xlu1 %469  ;;  %v568_v26 = vpop.permute.xlu0 %567 }
 0x30b   :  { %v475_v23 = vsel %vm274_vm2, %v470_v22, 0  ;;  %v573_v29 = vsel %vm274_vm2, %v568_v26, 0 }
 0x30c   :  { %1361 = vmatpush3.bf16.xpose.msra.mxu0 %v475_v23 }
 0x30d   :  { %1372 = vmatprep.subr.bf16.mxu0 %v1522_v46 }
 0x30e   :  { %v192_v31 = vpop.permute.xlu1 %191  ;;  %v198_v32 = vpop.permute.xlu0 %197 }
 0x30f   :  { %1351 = vmatmul.mubr.msk.bf16.vlgmr.msra.gmra.mrb[8].mxu1 %vm274_vm2, %v209_v24  ;;  %v213_v35 = vpack.c.bf16 %v198_v32, %v198_v32  ;;  %v212_v38 = vpack.c.bf16 %v192_v31, %v192_v31 }
 0x310   :  { %1355 = vmatpush3.bf16.xpose.msra.mxu1 %v426_v25  ;;  %1356 = vmatprep.mubr.msk.bf16.mxu1 %vm1525_vm1, %v1522_v46 }
 0x311   :  { %1366 = vmatprep.subr.bf16.mxu1 %v1522_v46 }
 0x312   :  { %v617_v37 = vpop.permute.xlu1 %616 }
 0x313   :  { %1363 = vmatmul.mubr.msk.bf16.vlgmr.msra.gmra.mrb[4].mxu0 %vm274_vm2, %v211_v27  ;;  %v622_v39 = vsel %vm274_vm2, %v617_v37, 0 }
 0x314   :  { %1373 = vmatpush3.bf16.xpose.msra.mxu0 %v573_v29  ;;  %1374 = vmatprep.mubr.msk.bf16.mxu0 %vm1525_vm1, %v1522_v46 }
 0x315   :  { %1384 = vmatprep.subr.bf16.mxu0 %v1522_v46 }
 0x316   :  { %v204_v40 = vpop.permute.xlu1 %203 }
 0x317   :  { %1357 = vmatmul.mubr.msk.bf16.vlgmr.msra.gmra.mrb[12].mxu1 %vm274_vm2, %v210_v30  ;;  %v214_v41 = vpack.c.bf16 %v204_v40, %v204_v40 }
 0x318   :  { %1367 = vmatpush3.bf16.xpose.msra.mxu1 %v524_v33  ;;  %1368 = vmatprep.mubr.msk.bf16.mxu1 %vm1525_vm1, %v1522_v46 }
 0x319   :  { %1378 = vmatprep.subr.bf16.mxu1 %v1522_v46 }
 0x31b   :  { %1375 = vmatmul.mubr.msk.bf16.vlgmr.msra.gmra.mrb[8].mxu0 %vm274_vm2, %v213_v35 }
 0x31c   :  { %1385 = vmatpush3.bf16.msra.mxu0 %v778_v36  ;;  %1386 = vmatprep.mubr.msk.bf16.mxu0 %vm1525_vm1, %v1522_v46 }
 0x31d   :  { %1396 = vmatprep.subr.bf16.mxu0 %v1522_v46 }
 0x31f   :  { %1369 = vmatmul.mubr.msk.bf16.vlgmr.msra.gmra.mrb[16].mxu1 %vm274_vm2, %v212_v38 }
 0x320   :  { %1379 = vmatpush3.bf16.xpose.msra.mxu1 %v622_v39  ;;  %1380 = vmatprep.mubr.msk.bf16.mxu1 %vm1525_vm1, %v1522_v46 }
 0x321   :  { %1390 = vmatprep.subr.bf16.mxu1 %v1522_v46 }
 0x327   :  { %1381 = vmatmul.mubr.msk.bf16.vlgmr.msra.gmra.mrb[20].mxu1 %vm274_vm2, %v214_v41 }
 0x328   :  { %1392 = vmatprep.mubr.msk.bf16.mxu1 %vm1525_vm1, %v1522_v46 }
 0x36d   :  { %v315_v43 = vpop.f32.mrb[0].mxu1 }
 0x36e   :  { %v668_v44 = vadd.f32 %v664_v42, %v315_v43  ;;  %v1340_v45 = vpop.f32.mrb[1].mxu1 }
 0x36f   :  { %v318_v47 = vpop.f32.mrb[2].mxu1 }
 0x370   :  { %v1341_v48 = vpop.f32.mrb[3].mxu1  ;;  %v677_v49 = vsel %vm676_vm4, %v668_v44, -inf }
 0x371   :  { %678 = vmax.xlane.f32.xlu0 %v677_v49 }
 0x3da   :  { %v364_v51 = vpop.f32.mrb[4].mxu1 }
 0x3db   :  { %v669_v52 = vadd.f32 %v665_v50, %v364_v51  ;;  %v1346_v54 = vpop.f32.mrb[5].mxu1 }
 0x3dc   :  { %v367_v55 = vpop.f32.mrb[6].mxu1 }
 0x3dd   :  { %v1347_v56 = vpop.f32.mrb[7].mxu1  ;;  %v680_v57 = vsel %vm676_vm4, %v669_v52, -inf }
 0x3de   :  { %681 = vmax.xlane.f32.xlu1 %v680_v57 }
 0x3e2   :  { %v413_v59 = vpop.f32.mrb[8].mxu1 }
 0x3e3   :  { %v1720_v60 = vadd.f32 %v666_v58, %v413_v59  ;;  %v1352_v61 = vpop.f32.mrb[9].mxu1 }
 0x3e4   :  { %v416_v62 = vpop.f32.mrb[10].mxu1 }
 0x3e5   :  { %v1353_v63 = vpop.f32.mrb[11].mxu1  ;;  %v683_v2 = vsel %vm676_vm4, %v1720_v60, -inf }
 0x3e6   :  { %v511_v3 = vpop.f32.mrb[4].mxu0  ;;  %684 = vmax.xlane.f32.xlu0 %v683_v2 }
 0x3e7   :  { %v1364_v4 = vpop.f32.mrb[5].mxu0  ;;  %v672_v12 = vadd.f32 %v664_v42, %v511_v3 }
 0x3e8   :  { %v514_v5 = vpop.f32.mrb[6].mxu0 }
 0x3e9   :  { %v1365_v7 = vpop.f32.mrb[7].mxu0  ;;  %v689_v20 = vsel %vm676_vm4, %v672_v12, -inf }
 0x3ea   :  { %v462_v8 = vpop.f32.mrb[12].mxu1 }
 0x3eb   :  { %v1727_v9 = vadd.f32 %v667_v6, %v462_v8  ;;  %v1358_v10 = vpop.f32.mrb[13].mxu1 }
 0x3ec   :  { %v465_v11 = vpop.f32.mrb[14].mxu1 }
 0x3ed   :  { %v1359_v13 = vpop.f32.mrb[15].mxu1  ;;  %v686_v14 = vsel %vm676_vm4, %v1727_v9, -inf }
 0x3ee   :  { %v609_v15 = vpop.f32.mrb[8].mxu0  ;;  %687 = vmax.xlane.f32.xlu0 %v686_v14 }
 0x3ef   :  { %v1376_v16 = vpop.f32.mrb[9].mxu0  ;;  %v674_v18 = vadd.f32 %v666_v58, %v609_v15 }
 0x3f0   :  { %v612_v17 = vpop.f32.mrb[10].mxu0 }
 0x3f1   :  { %v1377_v19 = vpop.f32.mrb[11].mxu0  ;;  %v695_v26 = vsel %vm676_vm4, %v674_v18, -inf }
 0x3f2   :  { %690 = vmax.xlane.f32.xlu0 %v689_v20  ;;  %v560_v21 = vpop.f32.mrb[16].mxu1 }
 0x3f3   :  { %v1732_v22 = vadd.f32 %v665_v50, %v560_v21  ;;  %v1370_v23 = vpop.f32.mrb[17].mxu1 }
 0x3f4   :  { %v563_v24 = vpop.f32.mrb[18].mxu1 }
 0x3f5   :  { %v1371_v25 = vpop.f32.mrb[19].mxu1  ;;  %v692_v27 = vsel %vm676_vm4, %v1732_v22, -inf }
 0x3f6   :  { %696 = vmax.xlane.f32.xlu0 %v695_v26  ;;  %693 = vmax.xlane.f32.xlu1 %v692_v27 }
 0x3fa   :  { %v658_v29 = vpop.f32.mrb[20].mxu1 }
 0x3fb   :  { %v1737_v30 = vadd.f32 %v667_v6, %v658_v29  ;;  %v1382_v31 = vpop.f32.mrb[21].mxu1 }
 0x3fc   :  { %v661_v32 = vpop.f32.mrb[22].mxu1 }
 0x3fd   :  { %v1383_v33 = vpop.f32.mrb[23].mxu1  ;;  %v698_v34 = vsel %vm676_vm4, %v1737_v30, -inf }
 0x3fe   :  { %699 = vmax.xlane.f32.xlu1 %v698_v34  ;;  %v679_v35 = vpop.xlane.xlu0 %678 }
 0x3ff   :  { %v701_v36 = vsub.f32 %v668_v44, %v679_v35 }
 0x401   :  { %v709_v37 = vmul.f32 1.442695, %v701_v36 }
 0x403   :  { %1489 = vpow2.f32 %v709_v37  ;;  %v267_v37 = vpack.c.bf16 %v1637_v53, %v1637_v53 }
 0x40c   :  { %245 = vrot.lane.b32.xlu0 %v1682_v28, %s1524_s2 }
 0x40d   :  { %v1490_v38 = vpop.eup %1489 }
 0x40e   :  { %v725_v39 = vsel %vm676_vm4, %v1490_v38, 0.0 }
 0x40f   :  { %251 = vrot.lane.b32.xlu1 %v1682_v28, %s1523_s1 }
 0x42b   :  { %726 = vadd.xlane.f32.xlu0 %v725_v39 }
 0x46b   :  { %v682_v40 = vpop.xlane.xlu1 %681 }
 0x46c   :  { %v702_v41 = vsub.f32 %v669_v52, %v682_v40  ;;  %v962_v40 = vsel %vm776_vm3, %v267_v37, 0 }
 0x46e   :  { %v711_v42 = vmul.f32 1.442695, %v702_v41 }
 0x470   :  { %1491 = vpow2.f32 %v711_v42 }
 0x473   :  { %v685_v43 = vpop.xlane.xlu0 %684 }
 0x474   :  { %v703_v44 = vsub.f32 %v1720_v60, %v685_v43 }
 0x476   :  { %v713_v51 = vmul.f32 1.442695, %v703_v44 }
 0x47a   :  { %v1746_v45 = vpop.eup %1491 }
 0x47b   :  { %v688_v47 = vpop.xlane.xlu0 %687  ;;  %v728_v48 = vsel %vm676_vm4, %v1746_v45, 0.0 }
 0x47c   :  { %729 = vadd.xlane.f32.xlu1 %v728_v48  ;;  %v704_v4 = vsub.f32 %v1727_v9, %v688_v47 }
 0x47e   :  { %v715_v6 = vmul.f32 1.442695, %v704_v4 }
 0x47f   :  { %v691_v49 = vpop.xlane.xlu0 %690 }
 0x480   :  { %v705_v50 = vsub.f32 %v672_v12, %v691_v49 }
 0x482   :  { %v717_v54 = vmul.f32 1.442695, %v705_v50 }
 0x483   :  { %v697_v55 = vpop.xlane.xlu0 %696  ;;  %v694_v5 = vpop.xlane.xlu1 %693 }
 0x484   :  { %1493 = vpow2.f32 %v717_v54  ;;  %v707_v56 = vsub.f32 %v674_v18, %v697_v55  ;;  %v706_v7 = vsub.f32 %v1732_v22, %v694_v5 }
 0x485   :  { %1495 = vpow2.f32 %v713_v51 }
 0x486   :  { %v721_v52 = vmul.f32 1.442695, %v707_v56  ;;  %v719_v11 = vmul.f32 1.442695, %v706_v7 }
 0x487   :  { %v246_v57 = vpop.permute.xlu0 %245 }
 0x488   :  { %1497 = vpow2.f32 %v721_v52  ;;  %v264_v58 = vpack.c.bf16 %v246_v57, %v246_v57 }
 0x48a   :  { %v824_v59 = vsel %vm776_vm3, %v264_v58, 0 }
 0x48b   :  { %1391 = vmatpush3.bf16.msra.mxu1 %v824_v59  ;;  %v700_v8 = vpop.xlane.xlu1 %699 }
 0x48c   :  { %1402 = vmatprep.subr.bf16.mxu1 %v1522_v46  ;;  %v708_v12 = vsub.f32 %v1737_v30, %v700_v8 }
 0x48e   :  { %v1753_v61 = vpop.eup %1493  ;;  %v723_v13 = vmul.f32 1.442695, %v708_v12 }
 0x48f   :  { %v737_v60 = vsel %vm676_vm4, %v1753_v61, 0.0  ;;  %v1496_v62 = vpop.eup %1495  ;;  %v252_v14 = vpop.permute.xlu1 %251 }
 0x490   :  { %738 = vadd.xlane.f32.xlu0 %v737_v60  ;;  %v731_v2 = vsel %vm676_vm4, %v1496_v62, 0.0  ;;  %v265_v15 = vpack.c.bf16 %v252_v14, %v252_v14 }
 0x492   :  { %v1757_v63 = vpop.eup %1497  ;;  %v870_v18 = vsel %vm776_vm3, %v265_v15, 0 }
 0x493   :  { %v743_v3 = vsel %vm676_vm4, %v1757_v63, 0.0 }
 0x494   :  { %732 = vadd.xlane.f32.xlu0 %v731_v2  ;;  %744 = vadd.xlane.f32.xlu1 %v743_v3 }
 0x4a5   :  { %247 = vrot.lane.b32.xlu1 %v1637_v53, %s1524_s2 }
 0x4aa   :  { %257 = vrot.lane.b32.xlu0 %v1682_v28, %s1526_s4 }
 0x4ae   :  { %253 = vrot.lane.b32.xlu0 %v1637_v53, %s1523_s1 }
 0x4b8   :  { %v727_v10 = vpop.xlane.xlu0 %726 }
 0x4b9   :  { %1499 = vrcp.f32 %v727_v10 }
 0x4ba   :  { %1501 = vpow2.f32 %v715_v6 }
 0x4bb   :  { %1503 = vpow2.f32 %v719_v11 }
 0x4bc   :  { %1505 = vpow2.f32 %v723_v13 }
 0x4c3   :  { %v1500_v28 = vpop.eup %1499 }
 0x4c4   :  { %v757_v16 = vmul.f32 %v1500_v28, %v1490_v38  ;;  %v1771_v17 = vpop.eup %1501 }
 0x4c5   :  { %v734_v19 = vsel %vm676_vm4, %v1771_v17, 0.0  ;;  %v1777_v20 = vpop.eup %1503 }
 0x4c6   :  { %v765_v9 = vpack.c.bf16 %v757_v16, %v757_v16  ;;  %v740_v21 = vsel %vm676_vm4, %v1777_v20, 0.0  ;;  %v1784_v22 = vpop.eup %1505 }
 0x4c7   :  { %v746_v23 = vsel %vm676_vm4, %v1784_v22, 0.0 }
 0x4c8   :  { %1387 = vmatmul.mubr.msk.bf16.vlgmr.msra.gmra.mrb[12].mxu0 %vm676_vm4, %v765_v9  ;;  %v1481_v9 = vld [vmem:[%s1863_s5] sm:$0xff]  }
 0x4c9   :  { %1397 = vmatpush3.bf16.msra.mxu0 %v870_v18  ;;  %735 = vadd.xlane.f32.xlu1 %v734_v19 }
 0x4ca   :  { %1398 = vmatprep.mubr.msk.bf16.mxu0 %vm1525_vm1, %v1522_v46  ;;  %1408 = vmatprep.subr.bf16.mxu0 %v1522_v46 }
 0x4cd   :  { %741 = vadd.xlane.f32.xlu1 %v740_v21 }
 0x4d1   :  { %747 = vadd.xlane.f32.xlu1 %v746_v23 }
 0x4e2   :  { %259 = vrot.lane.b32.xlu1 %v1637_v53, %s1526_s4 }
 0x509   :  { %v730_v24 = vpop.xlane.xlu1 %729 }
 0x50a   :  { %1507 = vrcp.f32 %v730_v24 }
 0x514   :  { %v1508_v25 = vpop.eup %1507 }
 0x515   :  { %v758_v26 = vmul.f32 %v1508_v25, %v1746_v45 }
 0x517   :  { %v766_v27 = vpack.c.bf16 %v758_v26, %v758_v26 }
 0x519   :  { %1393 = vmatmul.mubr.msk.bf16.vlgmr.msra.gmra.mrb[24].mxu1 %vm676_vm4, %v766_v27  ;;  %v1482_v27 = vld [vmem:[%s1863_s5 + $0x8] sm:$0xff]  }
 0x51a   :  { %1404 = vmatprep.mubr.msk.bf16.mxu1 %vm1525_vm1, %v1522_v46 }
 0x51d   :  { %v739_v29 = vpop.xlane.xlu0 %738 }
 0x521   :  { %v733_v30 = vpop.xlane.xlu0 %732  ;;  %v745_v34 = vpop.xlane.xlu1 %744 }
 0x522   :  { %1509 = vrcp.f32 %v733_v30 }
 0x523   :  { %1511 = vrcp.f32 %v739_v29 }
 0x524   :  { %1513 = vrcp.f32 %v745_v34  ;;  %v1484_v34 = vld [vmem:[%s1863_s5 + $0x18] sm:$0xff]  }
 0x525   :  { %v258_v31 = vpop.permute.xlu0 %257  ;;  %v248_v49 = vpop.permute.xlu1 %247 }
 0x526   :  { %v266_v32 = vpack.c.bf16 %v258_v31, %v258_v31  ;;  %v268_v56 = vpack.c.bf16 %v248_v49, %v248_v49  ;;  %v1483_v31 = vld [vmem:[%s1863_s5 + $0x10] sm:$0xff]  }
 0x528   :  { %v916_v33 = vsel %vm776_vm3, %v266_v32, 0  ;;  %v1008_v59 = vsel %vm776_vm3, %v268_v56, 0 }
 0x529   :  { %1403 = vmatpush3.bf16.msra.mxu1 %v916_v33  ;;  %v254_v41 = vpop.permute.xlu0 %253 }
 0x52a   :  { %1414 = vmatprep.subr.bf16.mxu1 %v1522_v46  ;;  %v269_v43 = vpack.c.bf16 %v254_v41, %v254_v41 }
 0x52c   :  { %v1510_v35 = vpop.eup %1509  ;;  %v1054_v53 = vsel %vm776_vm3, %v269_v43, 0 }
 0x52d   :  { %v759_v36 = vmul.f32 %v1510_v35, %v1496_v62  ;;  %v1512_v39 = vpop.eup %1511 }
 0x52e   :  { %v761_v42 = vmul.f32 %v1512_v39, %v1753_v61  ;;  %v1514_v47 = vpop.eup %1513 }
 0x52f   :  { %v767_v38 = vpack.c.bf16 %v759_v36, %v759_v36  ;;  %v763_v48 = vmul.f32 %v1514_v47, %v1757_v63 }
 0x530   :  { %v769_v45 = vpack.c.bf16 %v761_v42, %v761_v42 }
 0x531   :  { %1399 = vmatmul.mubr.msk.bf16.vlgmr.msra.gmra.mrb[16].mxu0 %vm676_vm4, %v767_v38  ;;  %v771_v44 = vpack.c.bf16 %v763_v48, %v763_v48 }
 0x532   :  { %1409 = vmatpush3.bf16.msra.mxu0 %v962_v40  ;;  %1410 = vmatprep.mubr.msk.bf16.mxu0 %vm1525_vm1, %v1522_v46 }
 0x533   :  { %1420 = vmatprep.subr.bf16.mxu0 %v1522_v46 }
 0x539   :  { %1411 = vmatmul.mubr.msk.bf16.vlgmr.msra.gmra.mrb[20].mxu0 %vm676_vm4, %v769_v45 }
 0x53a   :  { %1421 = vmatpush3.bf16.msra.mxu0 %v1054_v53  ;;  %1422 = vmatprep.mubr.msk.bf16.mxu0 %vm1525_vm1, %v1522_v46 }
 0x53b   :  { %1432 = vmatprep.subr.bf16.mxu0 %v1522_v46 }
 0x541   :  { %1423 = vmatmul.mubr.msk.bf16.vlgmr.msra.gmra.mrb[24].mxu0 %vm676_vm4, %v771_v44 }
 0x542   :  { %1440 = vmatprep.mubr.msk.bf16.mxu0 %vm1525_vm1, %v1522_v46  ;;  %1433 = vmatpush3.bf16.msra.mxu0 %v1481_v9 }
 0x543   :  { %1434 = vmatprep.subr.bf16.mxu0 %v1522_v46 }
 0x546   :  { %1435 = vmatpush3.bf16.msra.mxu0 %v1482_v27 }
 0x547   :  { %1436 = vmatprep.subr.bf16.mxu0 %v1522_v46 }
 0x54a   :  { %1437 = vmatpush3.bf16.msra.mxu0 %v1483_v31 }
 0x54b   :  { %1438 = vmatprep.subr.bf16.mxu0 %v1522_v46 }
 0x54e   :  { %1439 = vmatpush3.bf16.msra.mxu0 %v1484_v34 }
 0x556   :  { %v736_v50 = vpop.xlane.xlu1 %735 }
 0x557   :  { %1515 = vrcp.f32 %v736_v50 }
 0x55a   :  { %v742_v51 = vpop.xlane.xlu1 %741 }
 0x55b   :  { %1517 = vrcp.f32 %v742_v51 }
 0x55e   :  { %v748_v54 = vpop.xlane.xlu1 %747 }
 0x55f   :  { %1519 = vrcp.f32 %v748_v54 }
 0x561   :  { %v1516_v55 = vpop.eup %1515 }
 0x562   :  { %v760_v52 = vmul.f32 %v1516_v55, %v1771_v17  ;;  %v260_v61 = vpop.permute.xlu1 %259 }
 0x563   :  { %v270_v62 = vpack.c.bf16 %v260_v61, %v260_v61 }
 0x564   :  { %v768_v57 = vpack.c.bf16 %v760_v52, %v760_v52 }
 0x565   :  { %v1518_v58 = vpop.eup %1517  ;;  %v1100_v3 = vsel %vm776_vm3, %v270_v62, 0 }
 0x566   :  { %1405 = vmatmul.mubr.msk.bf16.vlgmr.msra.gmra.mrb[28].mxu1 %vm676_vm4, %v768_v57  ;;  %v762_v60 = vmul.f32 %v1518_v58, %v1777_v20 }
 0x567   :  { %1415 = vmatpush3.bf16.msra.mxu1 %v1008_v59  ;;  %1416 = vmatprep.mubr.msk.bf16.mxu1 %vm1525_vm1, %v1522_v46 }
 0x568   :  { %1426 = vmatprep.subr.bf16.mxu1 %v1522_v46  ;;  %v770_v63 = vpack.c.bf16 %v762_v60, %v762_v60  ;;  %v1293_v60 = vld [vmem:[%s1864_s6] ss:$0 sm:$0xff] }
 0x569   :  { %v1520_v2 = vpop.eup %1519 }
 0x56a   :  { %v764_v4 = vmul.f32 %v1520_v2, %v1784_v22 }
 0x56c   :  { %v772_v5 = vpack.c.bf16 %v764_v4, %v764_v4 }
 0x56e   :  { %1417 = vmatmul.mubr.msk.bf16.vlgmr.msra.gmra.mrb[32].mxu1 %vm676_vm4, %v770_v63 }
 0x56f   :  { %1427 = vmatpush3.bf16.msra.mxu1 %v1100_v3  ;;  %1428 = vmatprep.mubr.msk.bf16.mxu1 %vm1525_vm1, %v1522_v46 }
 0x576   :  { %1429 = vmatmul.mubr.msk.bf16.vlgmr.msra.gmra.mrb[36].mxu1 %vm676_vm4, %v772_v5 }
 0x59b   :  { %v814_v6 = vpop.f32.mrb[12].mxu0 }
 0x59c   :  { %v1388_v7 = vpop.f32.mrb[13].mxu0 }
 0x59d   :  { %v817_v8 = vpop.f32.mrb[14].mxu0 }
 0x59e   :  { %v1389_v10 = vpop.f32.mrb[15].mxu0 }
 0x5ec   :  { %v860_v11 = vpop.f32.mrb[24].mxu1 }
 0x5ed   :  { %v1394_v12 = vpop.f32.mrb[25].mxu1 }
 0x5ee   :  { %v863_v13 = vpop.f32.mrb[26].mxu1 }
 0x5ef   :  { %v1395_v14 = vpop.f32.mrb[27].mxu1 }
 0x604   :  { %v906_v28 = vpop.f32.mrb[16].mxu0 }
 0x605   :  { %v1400_v15 = vpop.f32.mrb[17].mxu0 }
 0x606   :  { %v909_v16 = vpop.f32.mrb[18].mxu0 }
 0x607   :  { %v1401_v17 = vpop.f32.mrb[19].mxu0 }
 0x60c   :  { %v998_v18 = vpop.f32.mrb[20].mxu0 }
 0x60d   :  { %v1412_v19 = vpop.f32.mrb[21].mxu0 }
 0x60e   :  { %v1001_v20 = vpop.f32.mrb[22].mxu0 }
 0x60f   :  { %v1413_v21 = vpop.f32.mrb[23].mxu0 }
 0x614   :  { %v1090_v22 = vpop.f32.mrb[24].mxu0 }
 0x615   :  { %v1459_v23 = vpack.i.bf16 %v1090_v22, %v906_v28  ;;  %v1424_v24 = vpop.f32.mrb[25].mxu0 }
 0x616   :  { %v1093_v25 = vpop.f32.mrb[26].mxu0 }
 0x617   :  { %1460 = vrot.lane.b32.xlu1 %v1459_v23, %s1528_s16  ;;  %v1425_v26 = vpop.f32.mrb[27].mxu0 }
 0x639   :  { %v952_v29 = vpop.f32.mrb[28].mxu1 }
 0x63a   :  { %v1406_v30 = vpop.f32.mrb[29].mxu1 }
 0x63b   :  { %v955_v32 = vpop.f32.mrb[30].mxu1 }
 0x63c   :  { %v1407_v33 = vpop.f32.mrb[31].mxu1 }
 0x641   :  { %v1044_v35 = vpop.f32.mrb[32].mxu1 }
 0x642   :  { %v1454_v36 = vpack.i.bf16 %v1044_v35, %v860_v11  ;;  %v1418_v37 = vpop.f32.mrb[33].mxu1 }
 0x643   :  { %v1047_v38 = vpop.f32.mrb[34].mxu1 }
 0x644   :  { %1455 = vrot.lane.b32.xlu0 %v1454_v36, %s1529_s23  ;;  %v1419_v39 = vpop.f32.mrb[35].mxu1 }
 0x649   :  { %v1136_v40 = vpop.f32.mrb[36].mxu1 }
 0x64a   :  { %v1464_v41 = vpack.i.bf16 %v1136_v40, %v952_v29  ;;  %v1430_v42 = vpop.f32.mrb[37].mxu1 }
 0x64b   :  { %v1139_v43 = vpop.f32.mrb[38].mxu1 }
 0x64c   :  { %1465 = vrot.lane.b32.xlu0 %v1464_v41, %s1530_s24  ;;  %v1431_v45 = vpop.f32.mrb[39].mxu1 }
 0x689   :  { %v1461_v48 = vpop.permute.xlu1 %1460 }
 0x68a   :  { %v1463_v50 = vunpack.i.h.bf16 %v1461_v48  ;;  %v1462_v51 = vunpack.i.l.bf16 %v1461_v48 }
 0x6b6   :  { %v1456_v46 = vpop.permute.xlu0 %1455 }
 0x6b7   :  { %v1458_v47 = vunpack.i.h.bf16 %v1456_v46  ;;  %v1457_v53 = vunpack.i.l.bf16 %v1456_v46 }
 0x6b9   :  { %v1167_v44 = vsel %vm274_vm2, %v998_v18, %v1458_v47  ;;  %v1166_v49 = vsel %vm274_vm2, %v814_v6, %v1457_v53 }
 0x6ba   :  { %v1169_v52 = vsel %vm1168_vm5, %v1166_v49, %v1462_v51  ;;  %v1170_v57 = vsel %vm1168_vm5, %v1167_v44, %v1463_v50 }
 0x6be   :  { %v1466_v54 = vpop.permute.xlu0 %1465 }
 0x6bf   :  { %v1468_v55 = vunpack.i.h.bf16 %v1466_v54  ;;  %v1467_v56 = vunpack.i.l.bf16 %v1466_v54 }
 0x6c1   :  { %v1173_v58 = vsel %vm1171_vm6, %v1170_v57, %v1468_v55  ;;  %v1172_v59 = vsel %vm1171_vm6, %v1169_v52, %v1467_v56 }
 0x6c2   :  { %v1174_v61 = vpack.c.bf16 %v1173_v58, %v1172_v59 }
 0x6c4   :  { %1441 = vmatmul.mubr.msk.bf16.vlgmr.msra.gmra.mrb[28].mxu0 %vm32_vm0, %v1174_v61 }
 0x797   :  { %v1251_v62 = vpop.f32.mrb[28].mxu0 }
 0x798   :  { %v1252_v63 = vadd.f32 %v1293_v60, %v1251_v62  ;;  %v1442_v2 = vpop.f32.mrb[29].mxu0 }
 0x799   :  { %v1254_v3 = vpop.f32.mrb[30].mxu0 }
 0x79a   :  { %v1258_v4 = vadd.f32 %v1252_v63, %v1579_v0  ;;  %v1255_v5 = vadd.f32 %v1293_v60, %v1254_v3  ;;  %v1443_v6 = vpop.f32.mrb[31].mxu0 }
 0x79c   :  { %1260 = vst.msk [vmem:[%s1865_s8] sm:$0xff] %vm32_vm0, %v1258_v4  ;;  %v1259_v7 = vadd.f32 %v1255_v5, %v1584_v1 }
 0x79e   :  { %1261 = vst.msk [vmem:[%s1865_s8 + $0x8] sm:$0xff] %vm32_vm0, %v1259_v7 }

</bundles_post_ra>
